<compile_context>
chip_gen: v7x
topology: tpu7x:2x2x1
jax: 0.10.0
libtpu: 0.0.40
codegen_flags: <defaults>
</compile_context>

<pallas_src>
import math
import functools

import jax
import jax.numpy as jnp
import numpy as np
from jax.experimental import pallas as pl
from jax.experimental.pallas import tpu as pltpu

# ---- module hyper-parameters (small but consistent with EfficientFormerV2Block) ----
B = 2
DIM = 64                       # dim
KEY_DIM = 16                   # key_dim
NUM_HEADS = 2                  # num_heads
ATTN_RATIO = 2                 # attn_ratio
RES = 8                        # resolution (stride=None)
H = W = RES                    # W must stay a power of two (bitmask below)
N = H * W                      # tokens
D = ATTN_RATIO * KEY_DIM       # per-head value dim
DH = D * NUM_HEADS             # value channels
KH = KEY_DIM * NUM_HEADS       # q/k channels
QKV = 2 * KH + DH              # fused q|k|v output channels (=128, lane dense)
SCALE = KEY_DIM ** -0.5
MLP_RATIO = 4.0
HID = int(DIM * MLP_RATIO)     # ConvMlpWithNorm hidden features
HID2 = HID // 2                # MLP processed in two 128-lane chunks
PAD = 16                       # per-batch zero halo for the dw3x3 (>= W, multiple of 8)
NPAD = N + 2 * PAD

assert W & (W - 1) == 0, "W must be a power of two (column masks use a bitmask)"
assert NUM_HEADS == 2, "packed-head layout assumes exactly two heads"
assert PAD >= W and PAD % 8 == 0 and N % 8 == 0


def _gelu(x):
    # tanh-approximate GELU: the transcendental lands on the EUP instead of a VALU
    # erf polynomial + divide.  |err| vs exact-erf GELU is ~1e-3 absolute.
    c = math.sqrt(2.0 / math.pi)
    return 0.5 * x * (1.0 + jnp.tanh(c * (x + 0.044715 * (x * x * x))))


# --------------------------------------------------------------------------------
# Pallas kernel factory: one grid step == `bb` batch elements (grid axis "parallel").
# --------------------------------------------------------------------------------
def _make_kernel(bb):
    m_rows = bb * N

    def kernel(x_ref,                                  # (bb*N, DIM) f32
               wqkv_ref, bqkv_ref,                     # (DIM, 128) bf16, (1, 128) f32
               wdw_ref, bdw_ref,                       # (9, DH) f32, (1, DH) f32
               ab_ref,                                 # (N, 2N) bf16  attn biases [h0|h1]
               th_ref,                                 # SMEM (12,) f32 talking heads
               wp_ref, bp_ref, ls1_ref,                # (DH, DIM) bf16, (1, DIM) x2
               w1_ref, b1_ref,                         # (DIM, HID) bf16, (1, HID)
               wmid_ref, bmid_ref,                     # (9, HID) f32, (1, HID)
               w2_ref, b2_ref, ls2_ref,                # (HID, DIM) bf16, (1, DIM) x2
               o_ref,                                  # (bb*N, DIM) f32
               vpad_ref, hpad_ref):                    # VMEM (bb, NPAD, DH)/(bb, NPAD, HID2)
        f32, bf16 = jnp.float32, jnp.bfloat16
        x = x_ref[...]                                 # (bb*N, DIM)
        xb = x.astype(bf16)

        # Column masks for the 3x3 depthwise shifts (j = token % W, W is a power of 2).
        tok = jax.lax.broadcasted_iota(jnp.int32, (N, 1), 0)
        j = jnp.bitwise_and(tok, W - 1)
        mask_l = (j >= 1).astype(f32)                  # dj == -1 is valid
        mask_r = (j <= W - 2).astype(f32)              # dj == +1 is valid

        def depthwise3x3(v, pad_ref, w_all, bias):
            # 3x3 depthwise conv (padding=1) over each batch's HxW token grid.
            # Per di row-offset: ONE sublane-aligned wide read of the zero-halo padded
            # copy; dj=+-1 are static value slices of that window, masked at row edges.
            c = v.shape[-1]
            outs = []
            for bi in range(bb):
                vb = v[bi * N:(bi + 1) * N]            # (N, C) static slice
                # halo-only zeroing: centre [PAD, PAD+N) is fully overwritten below
                pad_ref[bi, pl.ds(0, PAD), :] = jnp.zeros((PAD, c), f32)
                pad_ref[bi, pl.ds(PAD + N, PAD), :] = jnp.zeros((PAD, c), f32)
                pad_ref[bi, pl.ds(PAD, N), :] = vb
                accb = jnp.zeros_like(vb)
                for ti, di in enumerate((-1, 0, 1)):
                    start = PAD + di * W - W           # 0, 8, 16 -> sublane aligned
                    gw = pad_ref[bi, pl.ds(start, N + 2 * W), :]     # (N+16, C)
                    g_l = gw[W - 1:W - 1 + N]          # token t-1  (dj = -1)
                    g_c = gw[W:W + N]                  # token t    (dj =  0)
                    g_r = gw[W + 1:W + 1 + N]          # token t+1  (dj = +1)
                    accb = accb + (g_l * w_all[3 * ti + 0:3 * ti + 1]) * mask_l
                    accb = accb + g_c * w_all[3 * ti + 1:3 * ti + 2]
                    accb = accb + (g_r * w_all[3 * ti + 2:3 * ti + 3]) * mask_r
                outs.append(accb)
            out = outs[0] if bb == 1 else jnp.concatenate(outs, axis=0)
            return out + bias

        lane2 = jax.lax.broadcasted_iota(jnp.int32, (1, 2 * N), 1)
        is_h0 = lane2 < N                              # packed-head lane selector

        def head_mix(s, off):
            # talking_head 1x1 conv across the 2-head axis on the packed (N, 2N)
            # layout: per-lane coefficients (VPU) + a half-rotation (XLU).
            a_own = jnp.where(is_h0, th_ref[off + 0], th_ref[off + 3])
            a_oth = jnp.where(is_h0, th_ref[off + 1], th_ref[off + 2])
            bias = jnp.where(is_h0, th_ref[off + 4], th_ref[off + 5])
            swapped = pltpu.roll(s, N, axis=1)         # swap the two head halves
            return a_own * s + a_oth * swapped + bias

        def packed_softmax(t):
            big_neg = jnp.float32(-1e30)
            m0 = jnp.max(jnp.where(is_h0, t, big_neg), axis=-1, keepdims=True)
            m1 = jnp.max(jnp.where(is_h0, big_neg, t), axis=-1, keepdims=True)
            e = jnp.exp(t - jnp.where(is_h0, m0, m1))
            s0 = jnp.sum(jnp.where(is_h0, e, 0.0), axis=-1, keepdims=True)
            s1 = jnp.sum(jnp.where(is_h0, 0.0, e), axis=-1, keepdims=True)
            r = jnp.where(is_h0, pl.reciprocal(s0, approx=True),
                          pl.reciprocal(s1, approx=True))
            return e * r

        # ---- Attention2d token mixer -------------------------------------------
        # fused q|k|v projection: one lane-dense (DIM, 128) bf16 MXU call
        qkv = jnp.dot(xb, wqkv_ref[...], preferred_element_type=f32) + bqkv_ref[...]
        v_all = qkv[:, 2 * KH:2 * KH + DH]                           # (bb*N, DH)
        v_local = depthwise3x3(v_all, vpad_ref, wdw_ref[...], bdw_ref[...])

        kcol = jax.lax.broadcasted_iota(jnp.int32, (1, KH), 1)
        vcol = jax.lax.broadcasted_iota(jnp.int32, (1, DH), 1)
        ab = ab_ref[...].astype(f32)                                 # (N, 2N)

        xas = []
        for bi in range(bb):                          # per-batch scores / softmax
            q = qkv[bi * N:(bi + 1) * N, 0:KH]
            k = qkv[bi * N:(bi + 1) * N, KH:2 * KH]
            vb = v_all[bi * N:(bi + 1) * N]
            # both heads' scores in one MXU call against block-diagonal k (2N, KH)
            k_bd = jnp.concatenate([jnp.where(kcol < KEY_DIM, k, 0.0),
                                    jnp.where(kcol < KEY_DIM, 0.0, k)],
                                   axis=0).astype(bf16)
            scores = jax.lax.dot_general(q.astype(bf16), k_bd,
                                         (((1,), (1,)), ((), ())),
                                         preferred_element_type=f32)  # (N, 2N)
            scores = scores + ab                      # scale already folded into wq/bq
            attn = head_mix(scores, 0)
            attn = packed_softmax(attn)
            attn = head_mix(attn, 6)
            # both heads' attn @ v in one MXU call against block-diagonal v (2N, DH)
            v_bd = jnp.concatenate([jnp.where(vcol < D, vb, 0.0),
                                    jnp.where(vcol < D, 0.0, vb)],
                                   axis=0).astype(bf16)
            xas.append(jnp.dot(attn.astype(bf16), v_bd, preferred_element_type=f32))
        xattn = xas[0] if bb == 1 else jnp.concatenate(xas, axis=0)   # (bb*N, DH)

        y = _gelu(xattn + v_local)
        attn_out = jnp.dot(y.astype(bf16), wp_ref[...],
                           preferred_element_type=f32) + bp_ref[...]  # (bb*N, DIM)
        x1 = x + ls1_ref[...] * attn_out              # residual + LayerScale2d

        # ---- ConvMlpWithNorm: fc1(+act), mid dw3x3(+act), fc2 --------------------
        # HID processed in two 128-lane chunks to keep the working set in the vreg file
        x1b = x1.astype(bf16)
        m = jnp.zeros((m_rows, DIM), f32)
        for ci in range(HID // HID2):
            lo = ci * HID2
            hc = jnp.dot(x1b, w1_ref[:, lo:lo + HID2],
                         preferred_element_type=f32) + b1_ref[:, lo:lo + HID2]
            hc = _gelu(hc)
            hc = depthwise3x3(hc, hpad_ref, wmid_ref[:, lo:lo + HID2],
                              bmid_ref[:, lo:lo + HID2])
            hc = _gelu(hc)
            m = m + jnp.dot(hc.astype(bf16), w2_ref[lo:lo + HID2, :],
                            preferred_element_type=f32)
        m = m + b2_ref[...]

        o_ref[...] = (x1 + ls2_ref[...] * m).astype(o_ref.dtype)

    return kernel


def _fixed_spec(shape):
    zeros = (0,) * len(shape)
    return pl.BlockSpec(shape, lambda i, _z=zeros: _z)


def _grid_steps(batch):
    # v7x has two TensorCores per chip: split the batch across them (one element per
    # "parallel" grid step).  v5e / v6e are single-TC: fold the whole batch into one
    # grid step so per-token matmuls run at M = B*N rows and the per-step overhead is
    # paid once.
    try:
        kind = jax.devices()[0].device_kind.lower()
    except Exception:
        kind = ""
    if ("v7" in kind or "7x" in kind) and batch % 2 == 0:
        return 2
    return 1


def efficientformerv2_block_pallas(x_nchw, p):
    """x_nchw: (B, DIM, H, W) float32 -> (B, DIM, H, W)."""
    b, c, hh, ww = x_nchw.shape
    assert (c, hh, ww) == (DIM, H, W)
    f32, bf16 = jnp.float32, jnp.bfloat16
    x_tok = jnp.transpose(x_nchw, (0, 2, 3, 1)).reshape(b * N, DIM)

    g = _grid_steps(b)
    bb = b // g
    m_rows = bb * N

    row = lambda a: a[None, :].astype(f32)
    # fused q|k|v projection weights (attention scale already folded into wq/bq)
    wqkv = jnp.concatenate([p["wq"], p["wk"], p["wv"]], axis=1).astype(bf16)
    bqkv = jnp.concatenate([p["bq"], p["bk"], p["bv"]])[None, :].astype(f32)
    ab_packed = jnp.concatenate([p["ab"][0], p["ab"][1]], axis=-1).astype(bf16)
    th_packed = jnp.concatenate([p["th1w"].reshape(-1), p["th1b"],
                                 p["th2w"].reshape(-1), p["th2b"]]).astype(f32)

    smem = pl.BlockSpec(memory_space=pltpu.MemorySpace.SMEM)
    grid_spec = pltpu.PrefetchScalarGridSpec(
        num_scalar_prefetch=0,
        grid=(g,),
        in_specs=[
            pl.BlockSpec((m_rows, DIM), lambda i: (i, 0)),           # x tokens
            _fixed_spec((DIM, QKV)), _fixed_spec((1, QKV)),          # fused qkv
            _fixed_spec((9, DH)), _fixed_spec((1, DH)),              # v_local dw3x3
            _fixed_spec((N, 2 * N)),                                 # attention biases
            smem,                                                    # talking heads
            _fixed_spec((DH, DIM)), _fixed_spec((1, DIM)),           # proj
            _fixed_spec((1, DIM)),                                   # layer scale 1
            _fixed_spec((DIM, HID)), _fixed_spec((1, HID)),          # mlp.fc1
            _fixed_spec((9, HID)), _fixed_spec((1, HID)),            # mlp.mid dw3x3
            _fixed_spec((HID, DIM)), _fixed_spec((1, DIM)),          # mlp.fc2
            _fixed_spec((1, DIM)),                                   # layer scale 2
        ],
        out_specs=pl.BlockSpec((m_rows, DIM), lambda i: (i, 0)),
        scratch_shapes=[pltpu.VMEM((bb, NPAD, DH), f32),
                        pltpu.VMEM((bb, NPAD, HID2), f32)],
    )
    out_tok = pl.pallas_call(
        _make_kernel(bb),
        out_shape=jax.ShapeDtypeStruct((b * N, DIM), f32),
        grid_spec=grid_spec,
        compiler_params=pltpu.CompilerParams(dimension_semantics=("parallel",)),
    )(x_tok,
      wqkv, bqkv,
      p["wdw"], row(p["bdw"]),
      ab_packed,
      th_packed,
      p["wp"].astype(bf16), row(p["bp"]), row(p["ls1"]),
      p["w1"].astype(bf16), row(p["b1"]),
      p["wmid"], row(p["bmid"]),
      p["w2"].astype(bf16), row(p["b2"]), row(p["ls2"]))
    return jnp.transpose(out_tok.reshape(b, H, W, DIM), (0, 3, 1, 2))


# --------------------------------------------------------------------------------
# Deterministic synthetic parameters (BatchNorm folded into convs, inference mode).
# --------------------------------------------------------------------------------
def _fold_bn(w, bias, gamma, beta, mean, var, eps=1e-5):
    g = gamma / jnp.sqrt(var + eps)
    return w * g[None, :], bias * g + (beta - mean * g)


def _bn_params(key, c):
    k1, k2, k3, k4 = jax.random.split(key, 4)
    gamma = 1.0 + 0.1 * jax.random.normal(k1, (c,), jnp.float32)
    beta = 0.05 * jax.random.normal(k2, (c,), jnp.float32)
    mean = 0.05 * jax.random.normal(k3, (c,), jnp.float32)
    var = 1.0 + 0.1 * jax.random.uniform(k4, (c,), jnp.float32)
    return gamma, beta, mean, var


def _conv_norm(key, cin, cout, kdw=None):
    kw, kb, kbn = jax.random.split(key, 3)
    if kdw is None:  # 1x1 pointwise:  (cin, cout)
        w = jax.random.normal(kw, (cin, cout), jnp.float32) / math.sqrt(cin)
    else:            # depthwise 3x3:  (9, cout) taps
        w = jax.random.normal(kw, (9, cout), jnp.float32) / 3.0
    bias = 0.02 * jax.random.normal(kb, (cout,), jnp.float32)
    return _fold_bn(w, bias, *_bn_params(kbn, cout))


def _attention_bias_table(biases):
    ii, jj = np.meshgrid(np.arange(H), np.arange(W), indexing="ij")
    pos = np.stack([ii.reshape(-1), jj.reshape(-1)])            # (2, N)
    rel = np.abs(pos[:, :, None] - pos[:, None, :])             # (2, N, N)
    idx = rel[0] * W + rel[1]                                   # (N, N)
    return biases[:, jnp.asarray(idx)]                          # (NUM_HEADS, N, N)


def make_params(key):
    ks = jax.random.split(key, 15)
    wq, bq = _conv_norm(ks[0], DIM, KH)
    wq, bq = wq * SCALE, bq * SCALE          # fold key_dim**-0.5 into the q projection
    wk, bk = _conv_norm(ks[1], DIM, KH)
    wv, bv = _conv_norm(ks[2], DIM, DH)
    wdw, bdw = _conv_norm(ks[3], DH, DH, kdw=3)
    wp, bp = _conv_norm(ks[4], DH, DIM)
    th1w = jax.random.normal(ks[5], (NUM_HEADS, NUM_HEADS), jnp.float32) / math.sqrt(NUM_HEADS)
    th1b = 0.02 * jax.random.normal(ks[6], (NUM_HEADS,), jnp.float32)
    th2w = jax.random.normal(ks[7], (NUM_HEADS, NUM_HEADS), jnp.float32) / math.sqrt(NUM_HEADS)
    th2b = 0.02 * jax.random.normal(ks[8], (NUM_HEADS,), jnp.float32)
    attn_biases = 0.02 * jax.random.normal(ks[9], (NUM_HEADS, N), jnp.float32)
    w1, b1 = _conv_norm(ks[10], DIM, HID)
    wmid, bmid = _conv_norm(ks[11], HID, HID, kdw=3)
    w2, b2 = _conv_norm(ks[12], HID, DIM)
    # layer_scale_init_value is 1e-5 in the module; O(1) random values here so the
    # mixer / MLP branches are actually exercised by the numerical check.
    ls1 = jax.random.uniform(ks[13], (DIM,), jnp.float32, 0.3, 1.0)
    ls2 = jax.random.uniform(ks[14], (DIM,), jnp.float32, 0.3, 1.0)
    return dict(wq=wq, bq=bq, wk=wk, bk=bk, wv=wv, bv=bv, wdw=wdw, bdw=bdw,
                wp=wp, bp=bp, th1w=th1w, th1b=th1b, th2w=th2w, th2b=th2b,
                ab=_attention_bias_table(attn_biases), ls1=ls1,
                w1=w1, b1=b1, wmid=wmid, bmid=bmid, w2=w2, b2=b2, ls2=ls2)


# --------------------------------------------------------------------------------
# Pure-JAX reference mirroring the PyTorch forward (NCHW).  Matmul operands are
# rounded to bf16 (then accumulated in f32), matching the kernel's MXU precision.
# --------------------------------------------------------------------------------
def _dwconv3x3_ref(x_nchw, w9c, bias):
    c = x_nchw.shape[1]
    w = jnp.transpose(w9c.reshape(3, 3, c), (2, 0, 1))[:, None]     # (C,1,3,3)
    y = jax.lax.conv_general_dilated(
        x_nchw, w, (1, 1), "SAME", feature_group_count=c,
        dimension_numbers=("NCHW", "OIHW", "NCHW"),
        precision=jax.lax.Precision.HIGHEST)
    return y + bias[None, :, None, None]


def _gelu_ref(x):
    return 0.5 * x * (1.0 + jax.scipy.special.erf(x / math.sqrt(2.0)))


def block_reference(x, p):
    hi = jax.lax.Precision.HIGHEST
    eins = functools.partial(jnp.einsum, precision=hi)
    q16 = lambda a: a.astype(jnp.bfloat16).astype(jnp.float32)      # bf16 operand rounding
    b = x.shape[0]

    # ---- Attention2d ----
    xq = q16(x)
    q = eins("bchw,ck->bkhw", xq, q16(p["wq"])) + p["bq"][None, :, None, None]
    k = eins("bchw,ck->bkhw", xq, q16(p["wk"])) + p["bk"][None, :, None, None]
    v = eins("bchw,ck->bkhw", xq, q16(p["wv"])) + p["bv"][None, :, None, None]
    v_local = _dwconv3x3_ref(v, p["wdw"], p["bdw"])
    q_r = q.reshape(b, NUM_HEADS, KEY_DIM, N).transpose(0, 1, 3, 2)
    k_r = k.reshape(b, NUM_HEADS, KEY_DIM, N)
    v_r = v.reshape(b, NUM_HEADS, D, N).transpose(0, 1, 3, 2)
    attn = eins("bhnk,bhkm->bhnm", q16(q_r), q16(k_r)) + p["ab"][None]   # scale folded in wq/bq
    attn = eins("hg,bgnm->bhnm", p["th1w"], attn) + p["th1b"][None, :, None, None]
    attn = jax.nn.softmax(attn, axis=-1)
    attn = eins("hg,bgnm->bhnm", p["th2w"], attn) + p["th2b"][None, :, None, None]
    xo = eins("bhnm,bhmd->bhnd", q16(attn), q16(v_r)).transpose(0, 1, 3, 2).reshape(b, DH, H, W)
    xo = _gelu_ref(xo + v_local)
    attn_out = eins("bchw,cd->bdhw", q16(xo), q16(p["wp"])) + p["bp"][None, :, None, None]
    x1 = x + p["ls1"][None, :, None, None] * attn_out

    # ---- ConvMlpWithNorm ----
    h = eins("bchw,ck->bkhw", q16(x1), q16(p["w1"])) + p["b1"][None, :, None, None]
    h = _gelu_ref(h)
    h = _dwconv3x3_ref(h, p["wmid"], p["bmid"])
    h = _gelu_ref(h)
    m = eins("bchw,ck->bkhw", q16(h), q16(p["w2"])) + p["b2"][None, :, None, None]
    return x1 + p["ls2"][None, :, None, None] * m


if __name__ == "__main__":
    key = jax.random.PRNGKey(0)
    kx, kp = jax.random.split(key)
    x = jax.random.normal(kx, (B, DIM, H, W), jnp.float32)   # PyTorch-style NCHW input
    params = make_params(kp)

    out = jax.block_until_ready(efficientformerv2_block_pallas(x, params))
    ref = jax.block_until_ready(block_reference(x, params))

    np.testing.assert_allclose(np.asarray(out), np.asarray(ref), rtol=1e-2, atol=1e-2)
    assert out.shape == (B, DIM, H, W)

    print("KERNEL_OK")
</pallas_src>

<mosaic_0001>
module attributes {stable_mosaic.version = 11 : i64} {
  func.func @kernel(%arg0: i32, %arg1: memref<128x64xf32, #tpu.memory_space<vmem>>, %arg2: memref<64x128xbf16, #tpu.memory_space<vmem>>, %arg3: memref<1x128xf32, #tpu.memory_space<vmem>>, %arg4: memref<9x64xf32, #tpu.memory_space<vmem>>, %arg5: memref<1x64xf32, #tpu.memory_space<vmem>>, %arg6: memref<64x128xbf16, #tpu.memory_space<vmem>>, %arg7: memref<12xf32, #tpu.memory_space<smem>>, %arg8: memref<64x64xbf16, #tpu.memory_space<vmem>>, %arg9: memref<1x64xf32, #tpu.memory_space<vmem>>, %arg10: memref<1x64xf32, #tpu.memory_space<vmem>>, %arg11: memref<64x256xbf16, #tpu.memory_space<vmem>>, %arg12: memref<1x256xf32, #tpu.memory_space<vmem>>, %arg13: memref<9x256xf32, #tpu.memory_space<vmem>>, %arg14: memref<1x256xf32, #tpu.memory_space<vmem>>, %arg15: memref<256x64xbf16, #tpu.memory_space<vmem>>, %arg16: memref<1x64xf32, #tpu.memory_space<vmem>>, %arg17: memref<1x64xf32, #tpu.memory_space<vmem>>, %arg18: memref<128x64xf32, #tpu.memory_space<vmem>>, %arg19: memref<2x96x64xf32, #tpu.memory_space<vmem>>, %arg20: memref<2x96x128xf32, #tpu.memory_space<vmem>>) attributes {dimension_semantics = [#tpu.dimension_semantics<parallel>], iteration_bounds = array<i64: 1>, scalar_prefetch = 0 : i64, scratch_operands = 2 : i64, tpu.core_type = #tpu.core_type<tc>, window_params = [{transform_indices = @transform_0, window_bounds = array<i64: 128, 64>}, {pipeline_mode = #tpu.pipeline_mode<synchronous>, transform_indices = @transform_1, window_bounds = array<i64: 64, 128>}, {pipeline_mode = #tpu.pipeline_mode<synchronous>, transform_indices = @transform_2, window_bounds = array<i64: 1, 128>}, {pipeline_mode = #tpu.pipeline_mode<synchronous>, transform_indices = @transform_3, window_bounds = array<i64: 9, 64>}, {pipeline_mode = #tpu.pipeline_mode<synchronous>, transform_indices = @transform_4, window_bounds = array<i64: 1, 64>}, {pipeline_mode = #tpu.pipeline_mode<synchronous>, transform_indices = @transform_5, window_bounds = array<i64: 64, 128>}, {transform_indices = @transform_6, window_bounds = array<i64: 12>}, {pipeline_mode = #tpu.pipeline_mode<synchronous>, transform_indices = @transform_7, window_bounds = array<i64: 64, 64>}, {pipeline_mode = #tpu.pipeline_mode<synchronous>, transform_indices = @transform_8, window_bounds = array<i64: 1, 64>}, {pipeline_mode = #tpu.pipeline_mode<synchronous>, transform_indices = @transform_9, window_bounds = array<i64: 1, 64>}, {pipeline_mode = #tpu.pipeline_mode<synchronous>, transform_indices = @transform_10, window_bounds = array<i64: 64, 256>}, {pipeline_mode = #tpu.pipeline_mode<synchronous>, transform_indices = @transform_11, window_bounds = array<i64: 1, 256>}, {pipeline_mode = #tpu.pipeline_mode<synchronous>, transform_indices = @transform_12, window_bounds = array<i64: 9, 256>}, {pipeline_mode = #tpu.pipeline_mode<synchronous>, transform_indices = @transform_13, window_bounds = array<i64: 1, 256>}, {pipeline_mode = #tpu.pipeline_mode<synchronous>, transform_indices = @transform_14, window_bounds = array<i64: 256, 64>}, {pipeline_mode = #tpu.pipeline_mode<synchronous>, transform_indices = @transform_15, window_bounds = array<i64: 1, 64>}, {pipeline_mode = #tpu.pipeline_mode<synchronous>, transform_indices = @transform_16, window_bounds = array<i64: 1, 64>}, {transform_indices = @transform_17, window_bounds = array<i64: 128, 64>}]} {
    %c0 = arith.constant 0 : index
    %c0_0 = arith.constant 0 : index
    %0 = vector.load %arg1[%c0, %c0_0] : memref<128x64xf32, #tpu.memory_space<vmem>>, vector<128x64xf32>
    %1 = arith.truncf %0 : vector<128x64xf32> to vector<128x64xbf16>
    %2 = tpu.iota {dimensions = array<i32: 0>} : vector<64x1xi32>
    %c7_i32 = arith.constant 7 : i32
    %3 = vector.broadcast %c7_i32 : i32 to vector<64x1xi32>
    %4 = arith.andi %2, %3 : vector<64x1xi32>
    %c1_i32 = arith.constant 1 : i32
    %5 = vector.broadcast %c1_i32 : i32 to vector<64x1xi32>
    %6 = arith.cmpi sge, %4, %5 : vector<64x1xi32>
    %7 = arith.extui %6 : vector<64x1xi1> to vector<64x1xi32>
    %8 = arith.sitofp %7 : vector<64x1xi32> to vector<64x1xf32>
    %c6_i32 = arith.constant 6 : i32
    %9 = vector.broadcast %c6_i32 : i32 to vector<64x1xi32>
    %10 = arith.cmpi sle, %4, %9 : vector<64x1xi32>
    %11 = arith.extui %10 : vector<64x1xi1> to vector<64x1xi32>
    %12 = arith.sitofp %11 : vector<64x1xi32> to vector<64x1xf32>
    %13 = tpu.iota {dimensions = array<i32: 1>} : vector<1x128xi32>
    %c64_i32 = arith.constant 64 : i32
    %14 = vector.broadcast %c64_i32 : i32 to vector<1x128xi32>
    %15 = arith.cmpi slt, %13, %14 : vector<1x128xi32>
    %c0_1 = arith.constant 0 : index
    %c0_2 = arith.constant 0 : index
    %16 = vector.load %arg2[%c0_1, %c0_2] : memref<64x128xbf16, #tpu.memory_space<vmem>>, vector<64x128xbf16>
    %cst = arith.constant dense<0.000000e+00> : vector<128x128xf32>
    %17 = tpu.matmul %1, %16, %cst {dimension_numbers = #tpu.dot_dimension_numbers<[1], [0], [0], [1], [0, 0, 1, 1], [], []>} : vector<128x64xbf16>, vector<64x128xbf16>, vector<128x128xf32> -> vector<128x128xf32>
    %c0_3 = arith.constant 0 : index
    %c0_4 = arith.constant 0 : index
    %18 = vector.load %arg3[%c0_3, %c0_4] : memref<1x128xf32, #tpu.memory_space<vmem>>, vector<1x128xf32>
    %19 = vector.broadcast %18 : vector<1x128xf32> to vector<128x128xf32>
    %20 = arith.addf %17, %19 : vector<128x128xf32>
    %21 = vector.extract_strided_slice %20 {offsets = [0, 64], sizes = [128, 64], strides = [1, 1]} : vector<128x128xf32> to vector<128x64xf32>
    %c0_5 = arith.constant 0 : index
    %c0_6 = arith.constant 0 : index
    %22 = vector.load %arg4[%c0_5, %c0_6] : memref<9x64xf32, #tpu.memory_space<vmem>>, vector<9x64xf32>
    %c0_7 = arith.constant 0 : index
    %c0_8 = arith.constant 0 : index
    %23 = vector.load %arg5[%c0_7, %c0_8] : memref<1x64xf32, #tpu.memory_space<vmem>>, vector<1x64xf32>
    %24 = vector.extract_strided_slice %21 {offsets = [0, 0], sizes = [64, 64], strides = [1, 1]} : vector<128x64xf32> to vector<64x64xf32>
    %cst_9 = arith.constant 0.000000e+00 : f32
    %25 = vector.broadcast %cst_9 : f32 to vector<16x64xf32>
    %c0_10 = arith.constant 0 : index
    %c0_11 = arith.constant 0 : index
    %c0_12 = arith.constant 0 : index
    %26 = vector.load %arg19[%c0_10, %c0_11, %c0_12] : memref<2x96x64xf32, #tpu.memory_space<vmem>>, vector<1x16x64xf32>
    %27 = vector.shape_cast %26 : vector<1x16x64xf32> to vector<16x64xf32>
    %28 = vector.shape_cast %25 : vector<16x64xf32> to vector<1x16x64xf32>
    tpu.vector_store %arg19[%c0_10, %c0_11, %c0_12], %28 {strides = array<i32>} : memref<2x96x64xf32, #tpu.memory_space<vmem>>, vector<1x16x64xf32>,
    %cst_13 = arith.constant 0.000000e+00 : f32
    %29 = vector.broadcast %cst_13 : f32 to vector<16x64xf32>
    %c0_14 = arith.constant 0 : index
    %c80 = arith.constant 80 : index
    %c0_15 = arith.constant 0 : index
    %30 = vector.load %arg19[%c0_14, %c80, %c0_15] : memref<2x96x64xf32, #tpu.memory_space<vmem>>, vector<1x16x64xf32>
    %31 = vector.shape_cast %30 : vector<1x16x64xf32> to vector<16x64xf32>
    %32 = vector.shape_cast %29 : vector<16x64xf32> to vector<1x16x64xf32>
    tpu.vector_store %arg19[%c0_14, %c80, %c0_15], %32 {strides = array<i32>} : memref<2x96x64xf32, #tpu.memory_space<vmem>>, vector<1x16x64xf32>,
    %c0_16 = arith.constant 0 : index
    %c16 = arith.constant 16 : index
    %c0_17 = arith.constant 0 : index
    %33 = vector.load %arg19[%c0_16, %c16, %c0_17] : memref<2x96x64xf32, #tpu.memory_space<vmem>>, vector<1x64x64xf32>
    %34 = vector.shape_cast %33 : vector<1x64x64xf32> to vector<64x64xf32>
    %35 = vector.shape_cast %24 : vector<64x64xf32> to vector<1x64x64xf32>
    tpu.vector_store %arg19[%c0_16, %c16, %c0_17], %35 {strides = array<i32>} : memref<2x96x64xf32, #tpu.memory_space<vmem>>, vector<1x64x64xf32>,
    %cst_18 = arith.constant 0.000000e+00 : f32
    %36 = vector.broadcast %cst_18 : f32 to vector<64x64xf32>
    %c0_19 = arith.constant 0 : index
    %c0_20 = arith.constant 0 : index
    %c0_21 = arith.constant 0 : index
    %37 = vector.load %arg19[%c0_19, %c0_20, %c0_21] : memref<2x96x64xf32, #tpu.memory_space<vmem>>, vector<1x80x64xf32>
    %38 = vector.shape_cast %37 : vector<1x80x64xf32> to vector<80x64xf32>
    %39 = vector.extract_strided_slice %38 {offsets = [7, 0], sizes = [64, 64], strides = [1, 1]} : vector<80x64xf32> to vector<64x64xf32>
    %40 = vector.extract_strided_slice %38 {offsets = [8, 0], sizes = [64, 64], strides = [1, 1]} : vector<80x64xf32> to vector<64x64xf32>
    %41 = vector.extract_strided_slice %38 {offsets = [9, 0], sizes = [64, 64], strides = [1, 1]} : vector<80x64xf32> to vector<64x64xf32>
    %42 = vector.extract_strided_slice %22 {offsets = [0, 0], sizes = [1, 64], strides = [1, 1]} : vector<9x64xf32> to vector<1x64xf32>
    %43 = vector.broadcast %42 : vector<1x64xf32> to vector<64x64xf32>
    %44 = arith.mulf %39, %43 : vector<64x64xf32>
    %45 = vector.broadcast %8 : vector<64x1xf32> to vector<64x64xf32>
    %46 = arith.mulf %44, %45 : vector<64x64xf32>
    %47 = arith.addf %36, %46 : vector<64x64xf32>
    %48 = vector.extract_strided_slice %22 {offsets = [1, 0], sizes = [1, 64], strides = [1, 1]} : vector<9x64xf32> to vector<1x64xf32>
    %49 = vector.broadcast %48 : vector<1x64xf32> to vector<64x64xf32>
    %50 = arith.mulf %40, %49 : vector<64x64xf32>
    %51 = arith.addf %47, %50 : vector<64x64xf32>
    %52 = vector.extract_strided_slice %22 {offsets = [2, 0], sizes = [1, 64], strides = [1, 1]} : vector<9x64xf32> to vector<1x64xf32>
    %53 = vector.broadcast %52 : vector<1x64xf32> to vector<64x64xf32>
    %54 = arith.mulf %41, %53 : vector<64x64xf32>
    %55 = vector.broadcast %12 : vector<64x1xf32> to vector<64x64xf32>
    %56 = arith.mulf %54, %55 : vector<64x64xf32>
    %57 = arith.addf %51, %56 : vector<64x64xf32>
    %c0_22 = arith.constant 0 : index
    %c8 = arith.constant 8 : index
    %c0_23 = arith.constant 0 : index
    %58 = vector.load %arg19[%c0_22, %c8, %c0_23] : memref<2x96x64xf32, #tpu.memory_space<vmem>>, vector<1x80x64xf32>
    %59 = vector.shape_cast %58 : vector<1x80x64xf32> to vector<80x64xf32>
    %60 = vector.extract_strided_slice %59 {offsets = [7, 0], sizes = [64, 64], strides = [1, 1]} : vector<80x64xf32> to vector<64x64xf32>
    %61 = vector.extract_strided_slice %59 {offsets = [8, 0], sizes = [64, 64], strides = [1, 1]} : vector<80x64xf32> to vector<64x64xf32>
    %62 = vector.extract_strided_slice %59 {offsets = [9, 0], sizes = [64, 64], strides = [1, 1]} : vector<80x64xf32> to vector<64x64xf32>
    %63 = vector.extract_strided_slice %22 {offsets = [3, 0], sizes = [1, 64], strides = [1, 1]} : vector<9x64xf32> to vector<1x64xf32>
    %64 = vector.broadcast %63 : vector<1x64xf32> to vector<64x64xf32>
    %65 = arith.mulf %60, %64 : vector<64x64xf32>
    %66 = vector.broadcast %8 : vector<64x1xf32> to vector<64x64xf32>
    %67 = arith.mulf %65, %66 : vector<64x64xf32>
    %68 = arith.addf %57, %67 : vector<64x64xf32>
    %69 = vector.extract_strided_slice %22 {offsets = [4, 0], sizes = [1, 64], strides = [1, 1]} : vector<9x64xf32> to vector<1x64xf32>
    %70 = vector.broadcast %69 : vector<1x64xf32> to vector<64x64xf32>
    %71 = arith.mulf %61, %70 : vector<64x64xf32>
    %72 = arith.addf %68, %71 : vector<64x64xf32>
    %73 = vector.extract_strided_slice %22 {offsets = [5, 0], sizes = [1, 64], strides = [1, 1]} : vector<9x64xf32> to vector<1x64xf32>
    %74 = vector.broadcast %73 : vector<1x64xf32> to vector<64x64xf32>
    %75 = arith.mulf %62, %74 : vector<64x64xf32>
    %76 = vector.broadcast %12 : vector<64x1xf32> to vector<64x64xf32>
    %77 = arith.mulf %75, %76 : vector<64x64xf32>
    %78 = arith.addf %72, %77 : vector<64x64xf32>
    %c0_24 = arith.constant 0 : index
    %c16_25 = arith.constant 16 : index
    %c0_26 = arith.constant 0 : index
    %79 = vector.load %arg19[%c0_24, %c16_25, %c0_26] : memref<2x96x64xf32, #tpu.memory_space<vmem>>, vector<1x80x64xf32>
    %80 = vector.shape_cast %79 : vector<1x80x64xf32> to vector<80x64xf32>
    %81 = vector.extract_strided_slice %80 {offsets = [7, 0], sizes = [64, 64], strides = [1, 1]} : vector<80x64xf32> to vector<64x64xf32>
    %82 = vector.extract_strided_slice %80 {offsets = [8, 0], sizes = [64, 64], strides = [1, 1]} : vector<80x64xf32> to vector<64x64xf32>
    %83 = vector.extract_strided_slice %80 {offsets = [9, 0], sizes = [64, 64], strides = [1, 1]} : vector<80x64xf32> to vector<64x64xf32>
    %84 = vector.extract_strided_slice %22 {offsets = [6, 0], sizes = [1, 64], strides = [1, 1]} : vector<9x64xf32> to vector<1x64xf32>
    %85 = vector.broadcast %84 : vector<1x64xf32> to vector<64x64xf32>
    %86 = arith.mulf %81, %85 : vector<64x64xf32>
    %87 = vector.broadcast %8 : vector<64x1xf32> to vector<64x64xf32>
    %88 = arith.mulf %86, %87 : vector<64x64xf32>
    %89 = arith.addf %78, %88 : vector<64x64xf32>
    %90 = vector.extract_strided_slice %22 {offsets = [7, 0], sizes = [1, 64], strides = [1, 1]} : vector<9x64xf32> to vector<1x64xf32>
    %91 = vector.broadcast %90 : vector<1x64xf32> to vector<64x64xf32>
    %92 = arith.mulf %82, %91 : vector<64x64xf32>
    %93 = arith.addf %89, %92 : vector<64x64xf32>
    %94 = vector.extract_strided_slice %22 {offsets = [8, 0], sizes = [1, 64], strides = [1, 1]} : vector<9x64xf32> to vector<1x64xf32>
    %95 = vector.broadcast %94 : vector<1x64xf32> to vector<64x64xf32>
    %96 = arith.mulf %83, %95 : vector<64x64xf32>
    %97 = vector.broadcast %12 : vector<64x1xf32> to vector<64x64xf32>
    %98 = arith.mulf %96, %97 : vector<64x64xf32>
    %99 = arith.addf %93, %98 : vector<64x64xf32>
    %100 = vector.extract_strided_slice %21 {offsets = [64, 0], sizes = [64, 64], strides = [1, 1]} : vector<128x64xf32> to vector<64x64xf32>
    %cst_27 = arith.constant 0.000000e+00 : f32
    %101 = vector.broadcast %cst_27 : f32 to vector<16x64xf32>
    %c1 = arith.constant 1 : index
    %c0_28 = arith.constant 0 : index
    %c0_29 = arith.constant 0 : index
    %102 = vector.load %arg19[%c1, %c0_28, %c0_29] : memref<2x96x64xf32, #tpu.memory_space<vmem>>, vector<1x16x64xf32>
    %103 = vector.shape_cast %102 : vector<1x16x64xf32> to vector<16x64xf32>
    %104 = vector.shape_cast %101 : vector<16x64xf32> to vector<1x16x64xf32>
    tpu.vector_store %arg19[%c1, %c0_28, %c0_29], %104 {strides = array<i32>} : memref<2x96x64xf32, #tpu.memory_space<vmem>>, vector<1x16x64xf32>,
    %cst_30 = arith.constant 0.000000e+00 : f32
    %105 = vector.broadcast %cst_30 : f32 to vector<16x64xf32>
    %c1_31 = arith.constant 1 : index
    %c80_32 = arith.constant 80 : index
    %c0_33 = arith.constant 0 : index
    %106 = vector.load %arg19[%c1_31, %c80_32, %c0_33] : memref<2x96x64xf32, #tpu.memory_space<vmem>>, vector<1x16x64xf32>
    %107 = vector.shape_cast %106 : vector<1x16x64xf32> to vector<16x64xf32>
    %108 = vector.shape_cast %105 : vector<16x64xf32> to vector<1x16x64xf32>
    tpu.vector_store %arg19[%c1_31, %c80_32, %c0_33], %108 {strides = array<i32>} : memref<2x96x64xf32, #tpu.memory_space<vmem>>, vector<1x16x64xf32>,
    %c1_34 = arith.constant 1 : index
    %c16_35 = arith.constant 16 : index
    %c0_36 = arith.constant 0 : index
    %109 = vector.load %arg19[%c1_34, %c16_35, %c0_36] : memref<2x96x64xf32, #tpu.memory_space<vmem>>, vector<1x64x64xf32>
    %110 = vector.shape_cast %109 : vector<1x64x64xf32> to vector<64x64xf32>
    %111 = vector.shape_cast %100 : vector<64x64xf32> to vector<1x64x64xf32>
    tpu.vector_store %arg19[%c1_34, %c16_35, %c0_36], %111 {strides = array<i32>} : memref<2x96x64xf32, #tpu.memory_space<vmem>>, vector<1x64x64xf32>,
    %cst_37 = arith.constant 0.000000e+00 : f32
    %112 = vector.broadcast %cst_37 : f32 to vector<64x64xf32>
    %c1_38 = arith.constant 1 : index
    %c0_39 = arith.constant 0 : index
    %c0_40 = arith.constant 0 : index
    %113 = vector.load %arg19[%c1_38, %c0_39, %c0_40] : memref<2x96x64xf32, #tpu.memory_space<vmem>>, vector<1x80x64xf32>
    %114 = vector.shape_cast %113 : vector<1x80x64xf32> to vector<80x64xf32>
    %115 = vector.extract_strided_slice %114 {offsets = [7, 0], sizes = [64, 64], strides = [1, 1]} : vector<80x64xf32> to vector<64x64xf32>
    %116 = vector.extract_strided_slice %114 {offsets = [8, 0], sizes = [64, 64], strides = [1, 1]} : vector<80x64xf32> to vector<64x64xf32>
    %117 = vector.extract_strided_slice %114 {offsets = [9, 0], sizes = [64, 64], strides = [1, 1]} : vector<80x64xf32> to vector<64x64xf32>
    %118 = vector.extract_strided_slice %22 {offsets = [0, 0], sizes = [1, 64], strides = [1, 1]} : vector<9x64xf32> to vector<1x64xf32>
    %119 = vector.broadcast %118 : vector<1x64xf32> to vector<64x64xf32>
    %120 = arith.mulf %115, %119 : vector<64x64xf32>
    %121 = vector.broadcast %8 : vector<64x1xf32> to vector<64x64xf32>
    %122 = arith.mulf %120, %121 : vector<64x64xf32>
    %123 = arith.addf %112, %122 : vector<64x64xf32>
    %124 = vector.extract_strided_slice %22 {offsets = [1, 0], sizes = [1, 64], strides = [1, 1]} : vector<9x64xf32> to vector<1x64xf32>
    %125 = vector.broadcast %124 : vector<1x64xf32> to vector<64x64xf32>
    %126 = arith.mulf %116, %125 : vector<64x64xf32>
    %127 = arith.addf %123, %126 : vector<64x64xf32>
    %128 = vector.extract_strided_slice %22 {offsets = [2, 0], sizes = [1, 64], strides = [1, 1]} : vector<9x64xf32> to vector<1x64xf32>
    %129 = vector.broadcast %128 : vector<1x64xf32> to vector<64x64xf32>
    %130 = arith.mulf %117, %129 : vector<64x64xf32>
    %131 = vector.broadcast %12 : vector<64x1xf32> to vector<64x64xf32>
    %132 = arith.mulf %130, %131 : vector<64x64xf32>
    %133 = arith.addf %127, %132 : vector<64x64xf32>
    %c1_41 = arith.constant 1 : index
    %c8_42 = arith.constant 8 : index
    %c0_43 = arith.constant 0 : index
    %134 = vector.load %arg19[%c1_41, %c8_42, %c0_43] : memref<2x96x64xf32, #tpu.memory_space<vmem>>, vector<1x80x64xf32>
    %135 = vector.shape_cast %134 : vector<1x80x64xf32> to vector<80x64xf32>
    %136 = vector.extract_strided_slice %135 {offsets = [7, 0], sizes = [64, 64], strides = [1, 1]} : vector<80x64xf32> to vector<64x64xf32>
    %137 = vector.extract_strided_slice %135 {offsets = [8, 0], sizes = [64, 64], strides = [1, 1]} : vector<80x64xf32> to vector<64x64xf32>
    %138 = vector.extract_strided_slice %135 {offsets = [9, 0], sizes = [64, 64], strides = [1, 1]} : vector<80x64xf32> to vector<64x64xf32>
    %139 = vector.extract_strided_slice %22 {offsets = [3, 0], sizes = [1, 64], strides = [1, 1]} : vector<9x64xf32> to vector<1x64xf32>
    %140 = vector.broadcast %139 : vector<1x64xf32> to vector<64x64xf32>
    %141 = arith.mulf %136, %140 : vector<64x64xf32>
    %142 = vector.broadcast %8 : vector<64x1xf32> to vector<64x64xf32>
    %143 = arith.mulf %141, %142 : vector<64x64xf32>
    %144 = arith.addf %133, %143 : vector<64x64xf32>
    %145 = vector.extract_strided_slice %22 {offsets = [4, 0], sizes = [1, 64], strides = [1, 1]} : vector<9x64xf32> to vector<1x64xf32>
    %146 = vector.broadcast %145 : vector<1x64xf32> to vector<64x64xf32>
    %147 = arith.mulf %137, %146 : vector<64x64xf32>
    %148 = arith.addf %144, %147 : vector<64x64xf32>
    %149 = vector.extract_strided_slice %22 {offsets = [5, 0], sizes = [1, 64], strides = [1, 1]} : vector<9x64xf32> to vector<1x64xf32>
    %150 = vector.broadcast %149 : vector<1x64xf32> to vector<64x64xf32>
    %151 = arith.mulf %138, %150 : vector<64x64xf32>
    %152 = vector.broadcast %12 : vector<64x1xf32> to vector<64x64xf32>
    %153 = arith.mulf %151, %152 : vector<64x64xf32>
    %154 = arith.addf %148, %153 : vector<64x64xf32>
    %c1_44 = arith.constant 1 : index
    %c16_45 = arith.constant 16 : index
    %c0_46 = arith.constant 0 : index
    %155 = vector.load %arg19[%c1_44, %c16_45, %c0_46] : memref<2x96x64xf32, #tpu.memory_space<vmem>>, vector<1x80x64xf32>
    %156 = vector.shape_cast %155 : vector<1x80x64xf32> to vector<80x64xf32>
    %157 = vector.extract_strided_slice %156 {offsets = [7, 0], sizes = [64, 64], strides = [1, 1]} : vector<80x64xf32> to vector<64x64xf32>
    %158 = vector.extract_strided_slice %156 {offsets = [8, 0], sizes = [64, 64], strides = [1, 1]} : vector<80x64xf32> to vector<64x64xf32>
    %159 = vector.extract_strided_slice %156 {offsets = [9, 0], sizes = [64, 64], strides = [1, 1]} : vector<80x64xf32> to vector<64x64xf32>
    %160 = vector.extract_strided_slice %22 {offsets = [6, 0], sizes = [1, 64], strides = [1, 1]} : vector<9x64xf32> to vector<1x64xf32>
    %161 = vector.broadcast %160 : vector<1x64xf32> to vector<64x64xf32>
    %162 = arith.mulf %157, %161 : vector<64x64xf32>
    %163 = vector.broadcast %8 : vector<64x1xf32> to vector<64x64xf32>
    %164 = arith.mulf %162, %163 : vector<64x64xf32>
    %165 = arith.addf %154, %164 : vector<64x64xf32>
    %166 = vector.extract_strided_slice %22 {offsets = [7, 0], sizes = [1, 64], strides = [1, 1]} : vector<9x64xf32> to vector<1x64xf32>
    %167 = vector.broadcast %166 : vector<1x64xf32> to vector<64x64xf32>
    %168 = arith.mulf %158, %167 : vector<64x64xf32>
    %169 = arith.addf %165, %168 : vector<64x64xf32>
    %170 = vector.extract_strided_slice %22 {offsets = [8, 0], sizes = [1, 64], strides = [1, 1]} : vector<9x64xf32> to vector<1x64xf32>
    %171 = vector.broadcast %170 : vector<1x64xf32> to vector<64x64xf32>
    %172 = arith.mulf %159, %171 : vector<64x64xf32>
    %173 = vector.broadcast %12 : vector<64x1xf32> to vector<64x64xf32>
    %174 = arith.mulf %172, %173 : vector<64x64xf32>
    %175 = arith.addf %169, %174 : vector<64x64xf32>
    %176 = tpu.concatenate %99, %175 in 0 : vector<64x64xf32>, vector<64x64xf32> -> vector<128x64xf32>
    %177 = vector.broadcast %23 : vector<1x64xf32> to vector<128x64xf32>
    %178 = arith.addf %176, %177 : vector<128x64xf32>
    %179 = tpu.iota {dimensions = array<i32: 1>} : vector<1x32xi32>
    %180 = tpu.iota {dimensions = array<i32: 1>} : vector<1x64xi32>
    %c0_47 = arith.constant 0 : index
    %c0_48 = arith.constant 0 : index
    %181 = vector.load %arg6[%c0_47, %c0_48] : memref<64x128xbf16, #tpu.memory_space<vmem>>, vector<64x128xbf16>
    %182 = arith.extf %181 : vector<64x128xbf16> to vector<64x128xf32>
    %183 = vector.extract_strided_slice %20 {offsets = [0, 0], sizes = [64, 32], strides = [1, 1]} : vector<128x128xf32> to vector<64x32xf32>
    %184 = vector.extract_strided_slice %20 {offsets = [0, 32], sizes = [64, 32], strides = [1, 1]} : vector<128x128xf32> to vector<64x32xf32>
    %185 = vector.extract_strided_slice %21 {offsets = [0, 0], sizes = [64, 64], strides = [1, 1]} : vector<128x64xf32> to vector<64x64xf32>
    %c16_i32 = arith.constant 16 : i32
    %186 = vector.broadcast %c16_i32 : i32 to vector<1x32xi32>
    %187 = arith.cmpi slt, %179, %186 : vector<1x32xi32>
    %cst_49 = arith.constant 0.000000e+00 : f32
    %188 = vector.shape_cast %187 : vector<1x32xi1> to vector<1x32xi1>
    %189 = vector.broadcast %188 : vector<1x32xi1> to vector<64x32xi1>
    %190 = vector.broadcast %cst_49 : f32 to vector<64x32xf32>
    %191 = arith.select %189, %184, %190 : vector<64x32xi1>, vector<64x32xf32>
    %c16_i32_50 = arith.constant 16 : i32
    %192 = vector.broadcast %c16_i32_50 : i32 to vector<1x32xi32>
    %193 = arith.cmpi slt, %179, %192 : vector<1x32xi32>
    %cst_51 = arith.constant 0.000000e+00 : f32
    %194 = vector.shape_cast %193 : vector<1x32xi1> to vector<1x32xi1>
    %195 = vector.broadcast %194 : vector<1x32xi1> to vector<64x32xi1>
    %196 = vector.broadcast %cst_51 : f32 to vector<64x32xf32>
    %197 = arith.select %195, %196, %184 : vector<64x32xi1>, vector<64x32xf32>
    %198 = tpu.concatenate %191, %197 in 0 : vector<64x32xf32>, vector<64x32xf32> -> vector<128x32xf32>
    %199 = arith.truncf %198 : vector<128x32xf32> to vector<128x32xbf16>
    %200 = arith.truncf %183 : vector<64x32xf32> to vector<64x32xbf16>
    %cst_52 = arith.constant dense<0.000000e+00> : vector<64x128xf32>
    %201 = tpu.matmul %200, %199, %cst_52 {dimension_numbers = #tpu.dot_dimension_numbers<[1], [1], [0], [0], [0, 0, 1, 0], [], []>} : vector<64x32xbf16>, vector<128x32xbf16>, vector<64x128xf32> -> vector<64x128xf32>
    %202 = arith.addf %201, %182 : vector<64x128xf32>
    %c0_53 = arith.constant 0 : index
    %203 = memref.load %arg7[%c0_53] : memref<12xf32, #tpu.memory_space<smem>>
    %c3 = arith.constant 3 : index
    %204 = memref.load %arg7[%c3] : memref<12xf32, #tpu.memory_space<smem>>
    %205 = vector.broadcast %203 : f32 to vector<1x128xf32>
    %206 = vector.broadcast %204 : f32 to vector<1x128xf32>
    %207 = arith.select %15, %205, %206 : vector<1x128xi1>, vector<1x128xf32>
    %c1_54 = arith.constant 1 : index
    %208 = memref.load %arg7[%c1_54] : memref<12xf32, #tpu.memory_space<smem>>
    %c2 = arith.constant 2 : index
    %209 = memref.load %arg7[%c2] : memref<12xf32, #tpu.memory_space<smem>>
    %210 = vector.broadcast %208 : f32 to vector<1x128xf32>
    %211 = vector.broadcast %209 : f32 to vector<1x128xf32>
    %212 = arith.select %15, %210, %211 : vector<1x128xi1>, vector<1x128xf32>
    %c4 = arith.constant 4 : index
    %213 = memref.load %arg7[%c4] : memref<12xf32, #tpu.memory_space<smem>>
    %c5 = arith.constant 5 : index
    %214 = memref.load %arg7[%c5] : memref<12xf32, #tpu.memory_space<smem>>
    %215 = vector.broadcast %213 : f32 to vector<1x128xf32>
    %216 = vector.broadcast %214 : f32 to vector<1x128xf32>
    %217 = arith.select %15, %215, %216 : vector<1x128xi1>, vector<1x128xf32>
    %c64_i32_55 = arith.constant 64 : i32
    %218 = tpu.dynamic_rotate %202 by %c64_i32_55 dim 1 : vector<64x128xf32>, i32 -> vector<64x128xf32>
    %219 = vector.broadcast %207 : vector<1x128xf32> to vector<64x128xf32>
    %220 = arith.mulf %219, %202 : vector<64x128xf32>
    %221 = vector.broadcast %212 : vector<1x128xf32> to vector<64x128xf32>
    %222 = arith.mulf %221, %218 : vector<64x128xf32>
    %223 = arith.addf %220, %222 : vector<64x128xf32>
    %224 = vector.broadcast %217 : vector<1x128xf32> to vector<64x128xf32>
    %225 = arith.addf %223, %224 : vector<64x128xf32>
    %cst_56 = arith.constant -1.000000e+30 : f32
    %226 = vector.shape_cast %15 : vector<1x128xi1> to vector<1x128xi1>
    %227 = vector.broadcast %226 : vector<1x128xi1> to vector<64x128xi1>
    %228 = vector.broadcast %cst_56 : f32 to vector<64x128xf32>
    %229 = arith.select %227, %225, %228 : vector<64x128xi1>, vector<64x128xf32>
    %cst_57 = arith.constant dense<0xFF800000> : vector<64xf32>
    %230 = vector.multi_reduction <maximumf>, %229, %cst_57 [1] : vector<64x128xf32> to vector<64xf32>
    %231 = vector.shape_cast %230 : vector<64xf32> to vector<64x1xf32>
    %cst_58 = arith.constant -1.000000e+30 : f32
    %232 = vector.shape_cast %15 : vector<1x128xi1> to vector<1x128xi1>
    %233 = vector.broadcast %232 : vector<1x128xi1> to vector<64x128xi1>
    %234 = vector.broadcast %cst_58 : f32 to vector<64x128xf32>
    %235 = arith.select %233, %234, %225 : vector<64x128xi1>, vector<64x128xf32>
    %cst_59 = arith.constant dense<0xFF800000> : vector<64xf32>
    %236 = vector.multi_reduction <maximumf>, %235, %cst_59 [1] : vector<64x128xf32> to vector<64xf32>
    %237 = vector.shape_cast %236 : vector<64xf32> to vector<64x1xf32>
    %238 = vector.shape_cast %15 : vector<1x128xi1> to vector<1x128xi1>
    %239 = vector.broadcast %238 : vector<1x128xi1> to vector<64x128xi1>
    %240 = vector.shape_cast %231 : vector<64x1xf32> to vector<64x1xf32>
    %241 = vector.broadcast %240 : vector<64x1xf32> to vector<64x128xf32>
    %242 = vector.shape_cast %237 : vector<64x1xf32> to vector<64x1xf32>
    %243 = vector.broadcast %242 : vector<64x1xf32> to vector<64x128xf32>
    %244 = arith.select %239, %241, %243 : vector<64x128xi1>, vector<64x128xf32>
    %245 = arith.subf %225, %244 : vector<64x128xf32>
    %246 = math.exp %245 : vector<64x128xf32>
    %cst_60 = arith.constant 0.000000e+00 : f32
    %247 = vector.shape_cast %15 : vector<1x128xi1> to vector<1x128xi1>
    %248 = vector.broadcast %247 : vector<1x128xi1> to vector<64x128xi1>
    %249 = vector.broadcast %cst_60 : f32 to vector<64x128xf32>
    %250 = arith.select %248, %246, %249 : vector<64x128xi1>, vector<64x128xf32>
    %cst_61 = arith.constant dense<0.000000e+00> : vector<64xf32>
    %251 = vector.multi_reduction <add>, %250, %cst_61 [1] : vector<64x128xf32> to vector<64xf32>
    %252 = vector.shape_cast %251 : vector<64xf32> to vector<64x1xf32>
    %cst_62 = arith.constant 0.000000e+00 : f32
    %253 = vector.shape_cast %15 : vector<1x128xi1> to vector<1x128xi1>
    %254 = vector.broadcast %253 : vector<1x128xi1> to vector<64x128xi1>
    %255 = vector.broadcast %cst_62 : f32 to vector<64x128xf32>
    %256 = arith.select %254, %255, %246 : vector<64x128xi1>, vector<64x128xf32>
    %cst_63 = arith.constant dense<0.000000e+00> : vector<64xf32>
    %257 = vector.multi_reduction <add>, %256, %cst_63 [1] : vector<64x128xf32> to vector<64xf32>
    %258 = vector.shape_cast %257 : vector<64xf32> to vector<64x1xf32>
    %259 = tpu.reciprocal %252 {approx = true} : vector<64x1xf32> -> vector<64x1xf32>
    %260 = tpu.reciprocal %258 {approx = true} : vector<64x1xf32> -> vector<64x1xf32>
    %261 = vector.shape_cast %15 : vector<1x128xi1> to vector<1x128xi1>
    %262 = vector.broadcast %261 : vector<1x128xi1> to vector<64x128xi1>
    %263 = vector.shape_cast %259 : vector<64x1xf32> to vector<64x1xf32>
    %264 = vector.broadcast %263 : vector<64x1xf32> to vector<64x128xf32>
    %265 = vector.shape_cast %260 : vector<64x1xf32> to vector<64x1xf32>
    %266 = vector.broadcast %265 : vector<64x1xf32> to vector<64x128xf32>
    %267 = arith.select %262, %264, %266 : vector<64x128xi1>, vector<64x128xf32>
    %268 = arith.mulf %246, %267 : vector<64x128xf32>
    %c6 = arith.constant 6 : index
    %269 = memref.load %arg7[%c6] : memref<12xf32, #tpu.memory_space<smem>>
    %c9 = arith.constant 9 : index
    %270 = memref.load %arg7[%c9] : memref<12xf32, #tpu.memory_space<smem>>
    %271 = vector.broadcast %269 : f32 to vector<1x128xf32>
    %272 = vector.broadcast %270 : f32 to vector<1x128xf32>
    %273 = arith.select %15, %271, %272 : vector<1x128xi1>, vector<1x128xf32>
    %c7 = arith.constant 7 : index
    %274 = memref.load %arg7[%c7] : memref<12xf32, #tpu.memory_space<smem>>
    %c8_64 = arith.constant 8 : index
    %275 = memref.load %arg7[%c8_64] : memref<12xf32, #tpu.memory_space<smem>>
    %276 = vector.broadcast %274 : f32 to vector<1x128xf32>
    %277 = vector.broadcast %275 : f32 to vector<1x128xf32>
    %278 = arith.select %15, %276, %277 : vector<1x128xi1>, vector<1x128xf32>
    %c10 = arith.constant 10 : index
    %279 = memref.load %arg7[%c10] : memref<12xf32, #tpu.memory_space<smem>>
    %c11 = arith.constant 11 : index
    %280 = memref.load %arg7[%c11] : memref<12xf32, #tpu.memory_space<smem>>
    %281 = vector.broadcast %279 : f32 to vector<1x128xf32>
    %282 = vector.broadcast %280 : f32 to vector<1x128xf32>
    %283 = arith.select %15, %281, %282 : vector<1x128xi1>, vector<1x128xf32>
    %c64_i32_65 = arith.constant 64 : i32
    %284 = tpu.dynamic_rotate %268 by %c64_i32_65 dim 1 : vector<64x128xf32>, i32 -> vector<64x128xf32>
    %285 = vector.broadcast %273 : vector<1x128xf32> to vector<64x128xf32>
    %286 = arith.mulf %285, %268 : vector<64x128xf32>
    %287 = vector.broadcast %278 : vector<1x128xf32> to vector<64x128xf32>
    %288 = arith.mulf %287, %284 : vector<64x128xf32>
    %289 = arith.addf %286, %288 : vector<64x128xf32>
    %290 = vector.broadcast %283 : vector<1x128xf32> to vector<64x128xf32>
    %291 = arith.addf %289, %290 : vector<64x128xf32>
    %c32_i32 = arith.constant 32 : i32
    %292 = vector.broadcast %c32_i32 : i32 to vector<1x64xi32>
    %293 = arith.cmpi slt, %180, %292 : vector<1x64xi32>
    %cst_66 = arith.constant 0.000000e+00 : f32
    %294 = vector.shape_cast %293 : vector<1x64xi1> to vector<1x64xi1>
    %295 = vector.broadcast %294 : vector<1x64xi1> to vector<64x64xi1>
    %296 = vector.broadcast %cst_66 : f32 to vector<64x64xf32>
    %297 = arith.select %295, %185, %296 : vector<64x64xi1>, vector<64x64xf32>
    %c32_i32_67 = arith.constant 32 : i32
    %298 = vector.broadcast %c32_i32_67 : i32 to vector<1x64xi32>
    %299 = arith.cmpi slt, %180, %298 : vector<1x64xi32>
    %cst_68 = arith.constant 0.000000e+00 : f32
    %300 = vector.shape_cast %299 : vector<1x64xi1> to vector<1x64xi1>
    %301 = vector.broadcast %300 : vector<1x64xi1> to vector<64x64xi1>
    %302 = vector.broadcast %cst_68 : f32 to vector<64x64xf32>
    %303 = arith.select %301, %302, %185 : vector<64x64xi1>, vector<64x64xf32>
    %304 = tpu.concatenate %297, %303 in 0 : vector<64x64xf32>, vector<64x64xf32> -> vector<128x64xf32>
    %305 = arith.truncf %304 : vector<128x64xf32> to vector<128x64xbf16>
    %306 = arith.truncf %291 : vector<64x128xf32> to vector<64x128xbf16>
    %cst_69 = arith.constant dense<0.000000e+00> : vector<64x64xf32>
    %307 = tpu.matmul %306, %305, %cst_69 {dimension_numbers = #tpu.dot_dimension_numbers<[1], [0], [0], [1], [0, 0, 1, 1], [], []>} : vector<64x128xbf16>, vector<128x64xbf16>, vector<64x64xf32> -> vector<64x64xf32>
    %308 = vector.extract_strided_slice %20 {offsets = [64, 0], sizes = [64, 32], strides = [1, 1]} : vector<128x128xf32> to vector<64x32xf32>
    %309 = vector.extract_strided_slice %20 {offsets = [64, 32], sizes = [64, 32], strides = [1, 1]} : vector<128x128xf32> to vector<64x32xf32>
    %310 = vector.extract_strided_slice %21 {offsets = [64, 0], sizes = [64, 64], strides = [1, 1]} : vector<128x64xf32> to vector<64x64xf32>
    %c16_i32_70 = arith.constant 16 : i32
    %311 = vector.broadcast %c16_i32_70 : i32 to vector<1x32xi32>
    %312 = arith.cmpi slt, %179, %311 : vector<1x32xi32>
    %cst_71 = arith.constant 0.000000e+00 : f32
    %313 = vector.shape_cast %312 : vector<1x32xi1> to vector<1x32xi1>
    %314 = vector.broadcast %313 : vector<1x32xi1> to vector<64x32xi1>
    %315 = vector.broadcast %cst_71 : f32 to vector<64x32xf32>
    %316 = arith.select %314, %309, %315 : vector<64x32xi1>, vector<64x32xf32>
    %c16_i32_72 = arith.constant 16 : i32
    %317 = vector.broadcast %c16_i32_72 : i32 to vector<1x32xi32>
    %318 = arith.cmpi slt, %179, %317 : vector<1x32xi32>
    %cst_73 = arith.constant 0.000000e+00 : f32
    %319 = vector.shape_cast %318 : vector<1x32xi1> to vector<1x32xi1>
    %320 = vector.broadcast %319 : vector<1x32xi1> to vector<64x32xi1>
    %321 = vector.broadcast %cst_73 : f32 to vector<64x32xf32>
    %322 = arith.select %320, %321, %309 : vector<64x32xi1>, vector<64x32xf32>
    %323 = tpu.concatenate %316, %322 in 0 : vector<64x32xf32>, vector<64x32xf32> -> vector<128x32xf32>
    %324 = arith.truncf %323 : vector<128x32xf32> to vector<128x32xbf16>
    %325 = arith.truncf %308 : vector<64x32xf32> to vector<64x32xbf16>
    %cst_74 = arith.constant dense<0.000000e+00> : vector<64x128xf32>
    %326 = tpu.matmul %325, %324, %cst_74 {dimension_numbers = #tpu.dot_dimension_numbers<[1], [1], [0], [0], [0, 0, 1, 0], [], []>} : vector<64x32xbf16>, vector<128x32xbf16>, vector<64x128xf32> -> vector<64x128xf32>
    %327 = arith.addf %326, %182 : vector<64x128xf32>
    %c0_75 = arith.constant 0 : index
    %328 = memref.load %arg7[%c0_75] : memref<12xf32, #tpu.memory_space<smem>>
    %c3_76 = arith.constant 3 : index
    %329 = memref.load %arg7[%c3_76] : memref<12xf32, #tpu.memory_space<smem>>
    %330 = vector.broadcast %328 : f32 to vector<1x128xf32>
    %331 = vector.broadcast %329 : f32 to vector<1x128xf32>
    %332 = arith.select %15, %330, %331 : vector<1x128xi1>, vector<1x128xf32>
    %c1_77 = arith.constant 1 : index
    %333 = memref.load %arg7[%c1_77] : memref<12xf32, #tpu.memory_space<smem>>
    %c2_78 = arith.constant 2 : index
    %334 = memref.load %arg7[%c2_78] : memref<12xf32, #tpu.memory_space<smem>>
    %335 = vector.broadcast %333 : f32 to vector<1x128xf32>
    %336 = vector.broadcast %334 : f32 to vector<1x128xf32>
    %337 = arith.select %15, %335, %336 : vector<1x128xi1>, vector<1x128xf32>
    %c4_79 = arith.constant 4 : index
    %338 = memref.load %arg7[%c4_79] : memref<12xf32, #tpu.memory_space<smem>>
    %c5_80 = arith.constant 5 : index
    %339 = memref.load %arg7[%c5_80] : memref<12xf32, #tpu.memory_space<smem>>
    %340 = vector.broadcast %338 : f32 to vector<1x128xf32>
    %341 = vector.broadcast %339 : f32 to vector<1x128xf32>
    %342 = arith.select %15, %340, %341 : vector<1x128xi1>, vector<1x128xf32>
    %c64_i32_81 = arith.constant 64 : i32
    %343 = tpu.dynamic_rotate %327 by %c64_i32_81 dim 1 : vector<64x128xf32>, i32 -> vector<64x128xf32>
    %344 = vector.broadcast %332 : vector<1x128xf32> to vector<64x128xf32>
    %345 = arith.mulf %344, %327 : vector<64x128xf32>
    %346 = vector.broadcast %337 : vector<1x128xf32> to vector<64x128xf32>
    %347 = arith.mulf %346, %343 : vector<64x128xf32>
    %348 = arith.addf %345, %347 : vector<64x128xf32>
    %349 = vector.broadcast %342 : vector<1x128xf32> to vector<64x128xf32>
    %350 = arith.addf %348, %349 : vector<64x128xf32>
    %cst_82 = arith.constant -1.000000e+30 : f32
    %351 = vector.shape_cast %15 : vector<1x128xi1> to vector<1x128xi1>
    %352 = vector.broadcast %351 : vector<1x128xi1> to vector<64x128xi1>
    %353 = vector.broadcast %cst_82 : f32 to vector<64x128xf32>
    %354 = arith.select %352, %350, %353 : vector<64x128xi1>, vector<64x128xf32>
    %cst_83 = arith.constant dense<0xFF800000> : vector<64xf32>
    %355 = vector.multi_reduction <maximumf>, %354, %cst_83 [1] : vector<64x128xf32> to vector<64xf32>
    %356 = vector.shape_cast %355 : vector<64xf32> to vector<64x1xf32>
    %cst_84 = arith.constant -1.000000e+30 : f32
    %357 = vector.shape_cast %15 : vector<1x128xi1> to vector<1x128xi1>
    %358 = vector.broadcast %357 : vector<1x128xi1> to vector<64x128xi1>
    %359 = vector.broadcast %cst_84 : f32 to vector<64x128xf32>
    %360 = arith.select %358, %359, %350 : vector<64x128xi1>, vector<64x128xf32>
    %cst_85 = arith.constant dense<0xFF800000> : vector<64xf32>
    %361 = vector.multi_reduction <maximumf>, %360, %cst_85 [1] : vector<64x128xf32> to vector<64xf32>
    %362 = vector.shape_cast %361 : vector<64xf32> to vector<64x1xf32>
    %363 = vector.shape_cast %15 : vector<1x128xi1> to vector<1x128xi1>
    %364 = vector.broadcast %363 : vector<1x128xi1> to vector<64x128xi1>
    %365 = vector.shape_cast %356 : vector<64x1xf32> to vector<64x1xf32>
    %366 = vector.broadcast %365 : vector<64x1xf32> to vector<64x128xf32>
    %367 = vector.shape_cast %362 : vector<64x1xf32> to vector<64x1xf32>
    %368 = vector.broadcast %367 : vector<64x1xf32> to vector<64x128xf32>
    %369 = arith.select %364, %366, %368 : vector<64x128xi1>, vector<64x128xf32>
    %370 = arith.subf %350, %369 : vector<64x128xf32>
    %371 = math.exp %370 : vector<64x128xf32>
    %cst_86 = arith.constant 0.000000e+00 : f32
    %372 = vector.shape_cast %15 : vector<1x128xi1> to vector<1x128xi1>
    %373 = vector.broadcast %372 : vector<1x128xi1> to vector<64x128xi1>
    %374 = vector.broadcast %cst_86 : f32 to vector<64x128xf32>
    %375 = arith.select %373, %371, %374 : vector<64x128xi1>, vector<64x128xf32>
    %cst_87 = arith.constant dense<0.000000e+00> : vector<64xf32>
    %376 = vector.multi_reduction <add>, %375, %cst_87 [1] : vector<64x128xf32> to vector<64xf32>
    %377 = vector.shape_cast %376 : vector<64xf32> to vector<64x1xf32>
    %cst_88 = arith.constant 0.000000e+00 : f32
    %378 = vector.shape_cast %15 : vector<1x128xi1> to vector<1x128xi1>
    %379 = vector.broadcast %378 : vector<1x128xi1> to vector<64x128xi1>
    %380 = vector.broadcast %cst_88 : f32 to vector<64x128xf32>
    %381 = arith.select %379, %380, %371 : vector<64x128xi1>, vector<64x128xf32>
    %cst_89 = arith.constant dense<0.000000e+00> : vector<64xf32>
    %382 = vector.multi_reduction <add>, %381, %cst_89 [1] : vector<64x128xf32> to vector<64xf32>
    %383 = vector.shape_cast %382 : vector<64xf32> to vector<64x1xf32>
    %384 = tpu.reciprocal %377 {approx = true} : vector<64x1xf32> -> vector<64x1xf32>
    %385 = tpu.reciprocal %383 {approx = true} : vector<64x1xf32> -> vector<64x1xf32>
    %386 = vector.shape_cast %15 : vector<1x128xi1> to vector<1x128xi1>
    %387 = vector.broadcast %386 : vector<1x128xi1> to vector<64x128xi1>
    %388 = vector.shape_cast %384 : vector<64x1xf32> to vector<64x1xf32>
    %389 = vector.broadcast %388 : vector<64x1xf32> to vector<64x128xf32>
    %390 = vector.shape_cast %385 : vector<64x1xf32> to vector<64x1xf32>
    %391 = vector.broadcast %390 : vector<64x1xf32> to vector<64x128xf32>
    %392 = arith.select %387, %389, %391 : vector<64x128xi1>, vector<64x128xf32>
    %393 = arith.mulf %371, %392 : vector<64x128xf32>
    %c6_90 = arith.constant 6 : index
    %394 = memref.load %arg7[%c6_90] : memref<12xf32, #tpu.memory_space<smem>>
    %c9_91 = arith.constant 9 : index
    %395 = memref.load %arg7[%c9_91] : memref<12xf32, #tpu.memory_space<smem>>
    %396 = vector.broadcast %394 : f32 to vector<1x128xf32>
    %397 = vector.broadcast %395 : f32 to vector<1x128xf32>
    %398 = arith.select %15, %396, %397 : vector<1x128xi1>, vector<1x128xf32>
    %c7_92 = arith.constant 7 : index
    %399 = memref.load %arg7[%c7_92] : memref<12xf32, #tpu.memory_space<smem>>
    %c8_93 = arith.constant 8 : index
    %400 = memref.load %arg7[%c8_93] : memref<12xf32, #tpu.memory_space<smem>>
    %401 = vector.broadcast %399 : f32 to vector<1x128xf32>
    %402 = vector.broadcast %400 : f32 to vector<1x128xf32>
    %403 = arith.select %15, %401, %402 : vector<1x128xi1>, vector<1x128xf32>
    %c10_94 = arith.constant 10 : index
    %404 = memref.load %arg7[%c10_94] : memref<12xf32, #tpu.memory_space<smem>>
    %c11_95 = arith.constant 11 : index
    %405 = memref.load %arg7[%c11_95] : memref<12xf32, #tpu.memory_space<smem>>
    %406 = vector.broadcast %404 : f32 to vector<1x128xf32>
    %407 = vector.broadcast %405 : f32 to vector<1x128xf32>
    %408 = arith.select %15, %406, %407 : vector<1x128xi1>, vector<1x128xf32>
    %c64_i32_96 = arith.constant 64 : i32
    %409 = tpu.dynamic_rotate %393 by %c64_i32_96 dim 1 : vector<64x128xf32>, i32 -> vector<64x128xf32>
    %410 = vector.broadcast %398 : vector<1x128xf32> to vector<64x128xf32>
    %411 = arith.mulf %410, %393 : vector<64x128xf32>
    %412 = vector.broadcast %403 : vector<1x128xf32> to vector<64x128xf32>
    %413 = arith.mulf %412, %409 : vector<64x128xf32>
    %414 = arith.addf %411, %413 : vector<64x128xf32>
    %415 = vector.broadcast %408 : vector<1x128xf32> to vector<64x128xf32>
    %416 = arith.addf %414, %415 : vector<64x128xf32>
    %c32_i32_97 = arith.constant 32 : i32
    %417 = vector.broadcast %c32_i32_97 : i32 to vector<1x64xi32>
    %418 = arith.cmpi slt, %180, %417 : vector<1x64xi32>
    %cst_98 = arith.constant 0.000000e+00 : f32
    %419 = vector.shape_cast %418 : vector<1x64xi1> to vector<1x64xi1>
    %420 = vector.broadcast %419 : vector<1x64xi1> to vector<64x64xi1>
    %421 = vector.broadcast %cst_98 : f32 to vector<64x64xf32>
    %422 = arith.select %420, %310, %421 : vector<64x64xi1>, vector<64x64xf32>
    %c32_i32_99 = arith.constant 32 : i32
    %423 = vector.broadcast %c32_i32_99 : i32 to vector<1x64xi32>
    %424 = arith.cmpi slt, %180, %423 : vector<1x64xi32>
    %cst_100 = arith.constant 0.000000e+00 : f32
    %425 = vector.shape_cast %424 : vector<1x64xi1> to vector<1x64xi1>
    %426 = vector.broadcast %425 : vector<1x64xi1> to vector<64x64xi1>
    %427 = vector.broadcast %cst_100 : f32 to vector<64x64xf32>
    %428 = arith.select %426, %427, %310 : vector<64x64xi1>, vector<64x64xf32>
    %429 = tpu.concatenate %422, %428 in 0 : vector<64x64xf32>, vector<64x64xf32> -> vector<128x64xf32>
    %430 = arith.truncf %429 : vector<128x64xf32> to vector<128x64xbf16>
    %431 = arith.truncf %416 : vector<64x128xf32> to vector<64x128xbf16>
    %cst_101 = arith.constant dense<0.000000e+00> : vector<64x64xf32>
    %432 = tpu.matmul %431, %430, %cst_101 {dimension_numbers = #tpu.dot_dimension_numbers<[1], [0], [0], [1], [0, 0, 1, 1], [], []>} : vector<64x128xbf16>, vector<128x64xbf16>, vector<64x64xf32> -> vector<64x64xf32>
    %433 = tpu.concatenate %307, %432 in 0 : vector<64x64xf32>, vector<64x64xf32> -> vector<128x64xf32>
    %434 = arith.addf %433, %178 : vector<128x64xf32>
    %cst_102 = arith.constant 5.000000e-01 : f32
    %435 = vector.broadcast %cst_102 : f32 to vector<128x64xf32>
    %436 = arith.mulf %435, %434 : vector<128x64xf32>
    %437 = arith.mulf %434, %434 : vector<128x64xf32>
    %438 = arith.mulf %437, %434 : vector<128x64xf32>
    %cst_103 = arith.constant 4.471500e-02 : f32
    %439 = vector.broadcast %cst_103 : f32 to vector<128x64xf32>
    %440 = arith.mulf %439, %438 : vector<128x64xf32>
    %441 = arith.addf %434, %440 : vector<128x64xf32>
    %cst_104 = arith.constant 0.797884583 : f32
    %442 = vector.broadcast %cst_104 : f32 to vector<128x64xf32>
    %443 = arith.mulf %442, %441 : vector<128x64xf32>
    %444 = math.tanh %443 : vector<128x64xf32>
    %cst_105 = arith.constant 1.000000e+00 : f32
    %445 = vector.broadcast %cst_105 : f32 to vector<128x64xf32>
    %446 = arith.addf %445, %444 : vector<128x64xf32>
    %447 = arith.mulf %436, %446 : vector<128x64xf32>
    %448 = arith.truncf %447 : vector<128x64xf32> to vector<128x64xbf16>
    %c0_106 = arith.constant 0 : index
    %c0_107 = arith.constant 0 : index
    %449 = vector.load %arg8[%c0_106, %c0_107] : memref<64x64xbf16, #tpu.memory_space<vmem>>, vector<64x64xbf16>
    %cst_108 = arith.constant dense<0.000000e+00> : vector<128x64xf32>
    %450 = tpu.matmul %448, %449, %cst_108 {dimension_numbers = #tpu.dot_dimension_numbers<[1], [0], [0], [1], [0, 0, 1, 1], [], []>} : vector<128x64xbf16>, vector<64x64xbf16>, vector<128x64xf32> -> vector<128x64xf32>
    %c0_109 = arith.constant 0 : index
    %c0_110 = arith.constant 0 : index
    %451 = vector.load %arg9[%c0_109, %c0_110] : memref<1x64xf32, #tpu.memory_space<vmem>>, vector<1x64xf32>
    %452 = vector.broadcast %451 : vector<1x64xf32> to vector<128x64xf32>
    %453 = arith.addf %450, %452 : vector<128x64xf32>
    %c0_111 = arith.constant 0 : index
    %c0_112 = arith.constant 0 : index
    %454 = vector.load %arg10[%c0_111, %c0_112] : memref<1x64xf32, #tpu.memory_space<vmem>>, vector<1x64xf32>
    %455 = vector.broadcast %454 : vector<1x64xf32> to vector<128x64xf32>
    %456 = arith.mulf %455, %453 : vector<128x64xf32>
    %457 = arith.addf %0, %456 : vector<128x64xf32>
    %458 = arith.truncf %457 : vector<128x64xf32> to vector<128x64xbf16>
    %cst_113 = arith.constant 0.000000e+00 : f32
    %459 = vector.broadcast %cst_113 : f32 to vector<128x64xf32>
    %c0_114 = arith.constant 0 : index
    %c0_115 = arith.constant 0 : index
    %460 = vector.load %arg11[%c0_114, %c0_115] : memref<64x256xbf16, #tpu.memory_space<vmem>>, vector<64x128xbf16>
    %cst_116 = arith.constant dense<0.000000e+00> : vector<128x128xf32>
    %461 = tpu.matmul %458, %460, %cst_116 {dimension_numbers = #tpu.dot_dimension_numbers<[1], [0], [0], [1], [0, 0, 1, 1], [], []>} : vector<128x64xbf16>, vector<64x128xbf16>, vector<128x128xf32> -> vector<128x128xf32>
    %c0_117 = arith.constant 0 : index
    %c0_118 = arith.constant 0 : index
    %462 = vector.load %arg12[%c0_117, %c0_118] : memref<1x256xf32, #tpu.memory_space<vmem>>, vector<1x128xf32>
    %463 = vector.broadcast %462 : vector<1x128xf32> to vector<128x128xf32>
    %464 = arith.addf %461, %463 : vector<128x128xf32>
    %cst_119 = arith.constant 5.000000e-01 : f32
    %465 = vector.broadcast %cst_119 : f32 to vector<128x128xf32>
    %466 = arith.mulf %465, %464 : vector<128x128xf32>
    %467 = arith.mulf %464, %464 : vector<128x128xf32>
    %468 = arith.mulf %467, %464 : vector<128x128xf32>
    %cst_120 = arith.constant 4.471500e-02 : f32
    %469 = vector.broadcast %cst_120 : f32 to vector<128x128xf32>
    %470 = arith.mulf %469, %468 : vector<128x128xf32>
    %471 = arith.addf %464, %470 : vector<128x128xf32>
    %cst_121 = arith.constant 0.797884583 : f32
    %472 = vector.broadcast %cst_121 : f32 to vector<128x128xf32>
    %473 = arith.mulf %472, %471 : vector<128x128xf32>
    %474 = math.tanh %473 : vector<128x128xf32>
    %cst_122 = arith.constant 1.000000e+00 : f32
    %475 = vector.broadcast %cst_122 : f32 to vector<128x128xf32>
    %476 = arith.addf %475, %474 : vector<128x128xf32>
    %477 = arith.mulf %466, %476 : vector<128x128xf32>
    %c0_123 = arith.constant 0 : index
    %c0_124 = arith.constant 0 : index
    %478 = vector.load %arg13[%c0_123, %c0_124] : memref<9x256xf32, #tpu.memory_space<vmem>>, vector<9x128xf32>
    %c0_125 = arith.constant 0 : index
    %c0_126 = arith.constant 0 : index
    %479 = vector.load %arg14[%c0_125, %c0_126] : memref<1x256xf32, #tpu.memory_space<vmem>>, vector<1x128xf32>
    %480 = vector.extract_strided_slice %477 {offsets = [0, 0], sizes = [64, 128], strides = [1, 1]} : vector<128x128xf32> to vector<64x128xf32>
    %cst_127 = arith.constant 0.000000e+00 : f32
    %481 = vector.broadcast %cst_127 : f32 to vector<16x128xf32>
    %c0_128 = arith.constant 0 : index
    %c0_129 = arith.constant 0 : index
    %c0_130 = arith.constant 0 : index
    %482 = vector.load %arg20[%c0_128, %c0_129, %c0_130] : memref<2x96x128xf32, #tpu.memory_space<vmem>>, vector<1x16x128xf32>
    %483 = vector.shape_cast %482 : vector<1x16x128xf32> to vector<16x128xf32>
    %484 = vector.shape_cast %481 : vector<16x128xf32> to vector<1x16x128xf32>
    tpu.vector_store %arg20[%c0_128, %c0_129, %c0_130], %484 {strides = array<i32>} : memref<2x96x128xf32, #tpu.memory_space<vmem>>, vector<1x16x128xf32>,
    %cst_131 = arith.constant 0.000000e+00 : f32
    %485 = vector.broadcast %cst_131 : f32 to vector<16x128xf32>
    %c0_132 = arith.constant 0 : index
    %c80_133 = arith.constant 80 : index
    %c0_134 = arith.constant 0 : index
    %486 = vector.load %arg20[%c0_132, %c80_133, %c0_134] : memref<2x96x128xf32, #tpu.memory_space<vmem>>, vector<1x16x128xf32>
    %487 = vector.shape_cast %486 : vector<1x16x128xf32> to vector<16x128xf32>
    %488 = vector.shape_cast %485 : vector<16x128xf32> to vector<1x16x128xf32>
    tpu.vector_store %arg20[%c0_132, %c80_133, %c0_134], %488 {strides = array<i32>} : memref<2x96x128xf32, #tpu.memory_space<vmem>>, vector<1x16x128xf32>,
    %c0_135 = arith.constant 0 : index
    %c16_136 = arith.constant 16 : index
    %c0_137 = arith.constant 0 : index
    %489 = vector.load %arg20[%c0_135, %c16_136, %c0_137] : memref<2x96x128xf32, #tpu.memory_space<vmem>>, vector<1x64x128xf32>
    %490 = vector.shape_cast %489 : vector<1x64x128xf32> to vector<64x128xf32>
    %491 = vector.shape_cast %480 : vector<64x128xf32> to vector<1x64x128xf32>
    tpu.vector_store %arg20[%c0_135, %c16_136, %c0_137], %491 {strides = array<i32>} : memref<2x96x128xf32, #tpu.memory_space<vmem>>, vector<1x64x128xf32>,
    %cst_138 = arith.constant 0.000000e+00 : f32
    %492 = vector.broadcast %cst_138 : f32 to vector<64x128xf32>
    %c0_139 = arith.constant 0 : index
    %c0_140 = arith.constant 0 : index
    %c0_141 = arith.constant 0 : index
    %493 = vector.load %arg20[%c0_139, %c0_140, %c0_141] : memref<2x96x128xf32, #tpu.memory_space<vmem>>, vector<1x80x128xf32>
    %494 = vector.shape_cast %493 : vector<1x80x128xf32> to vector<80x128xf32>
    %495 = vector.extract_strided_slice %494 {offsets = [7, 0], sizes = [64, 128], strides = [1, 1]} : vector<80x128xf32> to vector<64x128xf32>
    %496 = vector.extract_strided_slice %494 {offsets = [8, 0], sizes = [64, 128], strides = [1, 1]} : vector<80x128xf32> to vector<64x128xf32>
    %497 = vector.extract_strided_slice %494 {offsets = [9, 0], sizes = [64, 128], strides = [1, 1]} : vector<80x128xf32> to vector<64x128xf32>
    %498 = vector.extract_strided_slice %478 {offsets = [0, 0], sizes = [1, 128], strides = [1, 1]} : vector<9x128xf32> to vector<1x128xf32>
    %499 = vector.broadcast %498 : vector<1x128xf32> to vector<64x128xf32>
    %500 = arith.mulf %495, %499 : vector<64x128xf32>
    %501 = vector.broadcast %8 : vector<64x1xf32> to vector<64x128xf32>
    %502 = arith.mulf %500, %501 : vector<64x128xf32>
    %503 = arith.addf %492, %502 : vector<64x128xf32>
    %504 = vector.extract_strided_slice %478 {offsets = [1, 0], sizes = [1, 128], strides = [1, 1]} : vector<9x128xf32> to vector<1x128xf32>
    %505 = vector.broadcast %504 : vector<1x128xf32> to vector<64x128xf32>
    %506 = arith.mulf %496, %505 : vector<64x128xf32>
    %507 = arith.addf %503, %506 : vector<64x128xf32>
    %508 = vector.extract_strided_slice %478 {offsets = [2, 0], sizes = [1, 128], strides = [1, 1]} : vector<9x128xf32> to vector<1x128xf32>
    %509 = vector.broadcast %508 : vector<1x128xf32> to vector<64x128xf32>
    %510 = arith.mulf %497, %509 : vector<64x128xf32>
    %511 = vector.broadcast %12 : vector<64x1xf32> to vector<64x128xf32>
    %512 = arith.mulf %510, %511 : vector<64x128xf32>
    %513 = arith.addf %507, %512 : vector<64x128xf32>
    %c0_142 = arith.constant 0 : index
    %c8_143 = arith.constant 8 : index
    %c0_144 = arith.constant 0 : index
    %514 = vector.load %arg20[%c0_142, %c8_143, %c0_144] : memref<2x96x128xf32, #tpu.memory_space<vmem>>, vector<1x80x128xf32>
    %515 = vector.shape_cast %514 : vector<1x80x128xf32> to vector<80x128xf32>
    %516 = vector.extract_strided_slice %515 {offsets = [7, 0], sizes = [64, 128], strides = [1, 1]} : vector<80x128xf32> to vector<64x128xf32>
    %517 = vector.extract_strided_slice %515 {offsets = [8, 0], sizes = [64, 128], strides = [1, 1]} : vector<80x128xf32> to vector<64x128xf32>
    %518 = vector.extract_strided_slice %515 {offsets = [9, 0], sizes = [64, 128], strides = [1, 1]} : vector<80x128xf32> to vector<64x128xf32>
    %519 = vector.extract_strided_slice %478 {offsets = [3, 0], sizes = [1, 128], strides = [1, 1]} : vector<9x128xf32> to vector<1x128xf32>
    %520 = vector.broadcast %519 : vector<1x128xf32> to vector<64x128xf32>
    %521 = arith.mulf %516, %520 : vector<64x128xf32>
    %522 = vector.broadcast %8 : vector<64x1xf32> to vector<64x128xf32>
    %523 = arith.mulf %521, %522 : vector<64x128xf32>
    %524 = arith.addf %513, %523 : vector<64x128xf32>
    %525 = vector.extract_strided_slice %478 {offsets = [4, 0], sizes = [1, 128], strides = [1, 1]} : vector<9x128xf32> to vector<1x128xf32>
    %526 = vector.broadcast %525 : vector<1x128xf32> to vector<64x128xf32>
    %527 = arith.mulf %517, %526 : vector<64x128xf32>
    %528 = arith.addf %524, %527 : vector<64x128xf32>
    %529 = vector.extract_strided_slice %478 {offsets = [5, 0], sizes = [1, 128], strides = [1, 1]} : vector<9x128xf32> to vector<1x128xf32>
    %530 = vector.broadcast %529 : vector<1x128xf32> to vector<64x128xf32>
    %531 = arith.mulf %518, %530 : vector<64x128xf32>
    %532 = vector.broadcast %12 : vector<64x1xf32> to vector<64x128xf32>
    %533 = arith.mulf %531, %532 : vector<64x128xf32>
    %534 = arith.addf %528, %533 : vector<64x128xf32>
    %c0_145 = arith.constant 0 : index
    %c16_146 = arith.constant 16 : index
    %c0_147 = arith.constant 0 : index
    %535 = vector.load %arg20[%c0_145, %c16_146, %c0_147] : memref<2x96x128xf32, #tpu.memory_space<vmem>>, vector<1x80x128xf32>
    %536 = vector.shape_cast %535 : vector<1x80x128xf32> to vector<80x128xf32>
    %537 = vector.extract_strided_slice %536 {offsets = [7, 0], sizes = [64, 128], strides = [1, 1]} : vector<80x128xf32> to vector<64x128xf32>
    %538 = vector.extract_strided_slice %536 {offsets = [8, 0], sizes = [64, 128], strides = [1, 1]} : vector<80x128xf32> to vector<64x128xf32>
    %539 = vector.extract_strided_slice %536 {offsets = [9, 0], sizes = [64, 128], strides = [1, 1]} : vector<80x128xf32> to vector<64x128xf32>
    %540 = vector.extract_strided_slice %478 {offsets = [6, 0], sizes = [1, 128], strides = [1, 1]} : vector<9x128xf32> to vector<1x128xf32>
    %541 = vector.broadcast %540 : vector<1x128xf32> to vector<64x128xf32>
    %542 = arith.mulf %537, %541 : vector<64x128xf32>
    %543 = vector.broadcast %8 : vector<64x1xf32> to vector<64x128xf32>
    %544 = arith.mulf %542, %543 : vector<64x128xf32>
    %545 = arith.addf %534, %544 : vector<64x128xf32>
    %546 = vector.extract_strided_slice %478 {offsets = [7, 0], sizes = [1, 128], strides = [1, 1]} : vector<9x128xf32> to vector<1x128xf32>
    %547 = vector.broadcast %546 : vector<1x128xf32> to vector<64x128xf32>
    %548 = arith.mulf %538, %547 : vector<64x128xf32>
    %549 = arith.addf %545, %548 : vector<64x128xf32>
    %550 = vector.extract_strided_slice %478 {offsets = [8, 0], sizes = [1, 128], strides = [1, 1]} : vector<9x128xf32> to vector<1x128xf32>
    %551 = vector.broadcast %550 : vector<1x128xf32> to vector<64x128xf32>
    %552 = arith.mulf %539, %551 : vector<64x128xf32>
    %553 = vector.broadcast %12 : vector<64x1xf32> to vector<64x128xf32>
    %554 = arith.mulf %552, %553 : vector<64x128xf32>
    %555 = arith.addf %549, %554 : vector<64x128xf32>
    %556 = vector.extract_strided_slice %477 {offsets = [64, 0], sizes = [64, 128], strides = [1, 1]} : vector<128x128xf32> to vector<64x128xf32>
    %cst_148 = arith.constant 0.000000e+00 : f32
    %557 = vector.broadcast %cst_148 : f32 to vector<16x128xf32>
    %c1_149 = arith.constant 1 : index
    %c0_150 = arith.constant 0 : index
    %c0_151 = arith.constant 0 : index
    %558 = vector.load %arg20[%c1_149, %c0_150, %c0_151] : memref<2x96x128xf32, #tpu.memory_space<vmem>>, vector<1x16x128xf32>
    %559 = vector.shape_cast %558 : vector<1x16x128xf32> to vector<16x128xf32>
    %560 = vector.shape_cast %557 : vector<16x128xf32> to vector<1x16x128xf32>
    tpu.vector_store %arg20[%c1_149, %c0_150, %c0_151], %560 {strides = array<i32>} : memref<2x96x128xf32, #tpu.memory_space<vmem>>, vector<1x16x128xf32>,
    %cst_152 = arith.constant 0.000000e+00 : f32
    %561 = vector.broadcast %cst_152 : f32 to vector<16x128xf32>
    %c1_153 = arith.constant 1 : index
    %c80_154 = arith.constant 80 : index
    %c0_155 = arith.constant 0 : index
    %562 = vector.load %arg20[%c1_153, %c80_154, %c0_155] : memref<2x96x128xf32, #tpu.memory_space<vmem>>, vector<1x16x128xf32>
    %563 = vector.shape_cast %562 : vector<1x16x128xf32> to vector<16x128xf32>
    %564 = vector.shape_cast %561 : vector<16x128xf32> to vector<1x16x128xf32>
    tpu.vector_store %arg20[%c1_153, %c80_154, %c0_155], %564 {strides = array<i32>} : memref<2x96x128xf32, #tpu.memory_space<vmem>>, vector<1x16x128xf32>,
    %c1_156 = arith.constant 1 : index
    %c16_157 = arith.constant 16 : index
    %c0_158 = arith.constant 0 : index
    %565 = vector.load %arg20[%c1_156, %c16_157, %c0_158] : memref<2x96x128xf32, #tpu.memory_space<vmem>>, vector<1x64x128xf32>
    %566 = vector.shape_cast %565 : vector<1x64x128xf32> to vector<64x128xf32>
    %567 = vector.shape_cast %556 : vector<64x128xf32> to vector<1x64x128xf32>
    tpu.vector_store %arg20[%c1_156, %c16_157, %c0_158], %567 {strides = array<i32>} : memref<2x96x128xf32, #tpu.memory_space<vmem>>, vector<1x64x128xf32>,
    %cst_159 = arith.constant 0.000000e+00 : f32
    %568 = vector.broadcast %cst_159 : f32 to vector<64x128xf32>
    %c1_160 = arith.constant 1 : index
    %c0_161 = arith.constant 0 : index
    %c0_162 = arith.constant 0 : index
    %569 = vector.load %arg20[%c1_160, %c0_161, %c0_162] : memref<2x96x128xf32, #tpu.memory_space<vmem>>, vector<1x80x128xf32>
    %570 = vector.shape_cast %569 : vector<1x80x128xf32> to vector<80x128xf32>
    %571 = vector.extract_strided_slice %570 {offsets = [7, 0], sizes = [64, 128], strides = [1, 1]} : vector<80x128xf32> to vector<64x128xf32>
    %572 = vector.extract_strided_slice %570 {offsets = [8, 0], sizes = [64, 128], strides = [1, 1]} : vector<80x128xf32> to vector<64x128xf32>
    %573 = vector.extract_strided_slice %570 {offsets = [9, 0], sizes = [64, 128], strides = [1, 1]} : vector<80x128xf32> to vector<64x128xf32>
    %574 = vector.extract_strided_slice %478 {offsets = [0, 0], sizes = [1, 128], strides = [1, 1]} : vector<9x128xf32> to vector<1x128xf32>
    %575 = vector.broadcast %574 : vector<1x128xf32> to vector<64x128xf32>
    %576 = arith.mulf %571, %575 : vector<64x128xf32>
    %577 = vector.broadcast %8 : vector<64x1xf32> to vector<64x128xf32>
    %578 = arith.mulf %576, %577 : vector<64x128xf32>
    %579 = arith.addf %568, %578 : vector<64x128xf32>
    %580 = vector.extract_strided_slice %478 {offsets = [1, 0], sizes = [1, 128], strides = [1, 1]} : vector<9x128xf32> to vector<1x128xf32>
    %581 = vector.broadcast %580 : vector<1x128xf32> to vector<64x128xf32>
    %582 = arith.mulf %572, %581 : vector<64x128xf32>
    %583 = arith.addf %579, %582 : vector<64x128xf32>
    %584 = vector.extract_strided_slice %478 {offsets = [2, 0], sizes = [1, 128], strides = [1, 1]} : vector<9x128xf32> to vector<1x128xf32>
    %585 = vector.broadcast %584 : vector<1x128xf32> to vector<64x128xf32>
    %586 = arith.mulf %573, %585 : vector<64x128xf32>
    %587 = vector.broadcast %12 : vector<64x1xf32> to vector<64x128xf32>
    %588 = arith.mulf %586, %587 : vector<64x128xf32>
    %589 = arith.addf %583, %588 : vector<64x128xf32>
    %c1_163 = arith.constant 1 : index
    %c8_164 = arith.constant 8 : index
    %c0_165 = arith.constant 0 : index
    %590 = vector.load %arg20[%c1_163, %c8_164, %c0_165] : memref<2x96x128xf32, #tpu.memory_space<vmem>>, vector<1x80x128xf32>
    %591 = vector.shape_cast %590 : vector<1x80x128xf32> to vector<80x128xf32>
    %592 = vector.extract_strided_slice %591 {offsets = [7, 0], sizes = [64, 128], strides = [1, 1]} : vector<80x128xf32> to vector<64x128xf32>
    %593 = vector.extract_strided_slice %591 {offsets = [8, 0], sizes = [64, 128], strides = [1, 1]} : vector<80x128xf32> to vector<64x128xf32>
    %594 = vector.extract_strided_slice %591 {offsets = [9, 0], sizes = [64, 128], strides = [1, 1]} : vector<80x128xf32> to vector<64x128xf32>
    %595 = vector.extract_strided_slice %478 {offsets = [3, 0], sizes = [1, 128], strides = [1, 1]} : vector<9x128xf32> to vector<1x128xf32>
    %596 = vector.broadcast %595 : vector<1x128xf32> to vector<64x128xf32>
    %597 = arith.mulf %592, %596 : vector<64x128xf32>
    %598 = vector.broadcast %8 : vector<64x1xf32> to vector<64x128xf32>
    %599 = arith.mulf %597, %598 : vector<64x128xf32>
    %600 = arith.addf %589, %599 : vector<64x128xf32>
    %601 = vector.extract_strided_slice %478 {offsets = [4, 0], sizes = [1, 128], strides = [1, 1]} : vector<9x128xf32> to vector<1x128xf32>
    %602 = vector.broadcast %601 : vector<1x128xf32> to vector<64x128xf32>
    %603 = arith.mulf %593, %602 : vector<64x128xf32>
    %604 = arith.addf %600, %603 : vector<64x128xf32>
    %605 = vector.extract_strided_slice %478 {offsets = [5, 0], sizes = [1, 128], strides = [1, 1]} : vector<9x128xf32> to vector<1x128xf32>
    %606 = vector.broadcast %605 : vector<1x128xf32> to vector<64x128xf32>
    %607 = arith.mulf %594, %606 : vector<64x128xf32>
    %608 = vector.broadcast %12 : vector<64x1xf32> to vector<64x128xf32>
    %609 = arith.mulf %607, %608 : vector<64x128xf32>
    %610 = arith.addf %604, %609 : vector<64x128xf32>
    %c1_166 = arith.constant 1 : index
    %c16_167 = arith.constant 16 : index
    %c0_168 = arith.constant 0 : index
    %611 = vector.load %arg20[%c1_166, %c16_167, %c0_168] : memref<2x96x128xf32, #tpu.memory_space<vmem>>, vector<1x80x128xf32>
    %612 = vector.shape_cast %611 : vector<1x80x128xf32> to vector<80x128xf32>
    %613 = vector.extract_strided_slice %612 {offsets = [7, 0], sizes = [64, 128], strides = [1, 1]} : vector<80x128xf32> to vector<64x128xf32>
    %614 = vector.extract_strided_slice %612 {offsets = [8, 0], sizes = [64, 128], strides = [1, 1]} : vector<80x128xf32> to vector<64x128xf32>
    %615 = vector.extract_strided_slice %612 {offsets = [9, 0], sizes = [64, 128], strides = [1, 1]} : vector<80x128xf32> to vector<64x128xf32>
    %616 = vector.extract_strided_slice %478 {offsets = [6, 0], sizes = [1, 128], strides = [1, 1]} : vector<9x128xf32> to vector<1x128xf32>
    %617 = vector.broadcast %616 : vector<1x128xf32> to vector<64x128xf32>
    %618 = arith.mulf %613, %617 : vector<64x128xf32>
    %619 = vector.broadcast %8 : vector<64x1xf32> to vector<64x128xf32>
    %620 = arith.mulf %618, %619 : vector<64x128xf32>
    %621 = arith.addf %610, %620 : vector<64x128xf32>
    %622 = vector.extract_strided_slice %478 {offsets = [7, 0], sizes = [1, 128], strides = [1, 1]} : vector<9x128xf32> to vector<1x128xf32>
    %623 = vector.broadcast %622 : vector<1x128xf32> to vector<64x128xf32>
    %624 = arith.mulf %614, %623 : vector<64x128xf32>
    %625 = arith.addf %621, %624 : vector<64x128xf32>
    %626 = vector.extract_strided_slice %478 {offsets = [8, 0], sizes = [1, 128], strides = [1, 1]} : vector<9x128xf32> to vector<1x128xf32>
    %627 = vector.broadcast %626 : vector<1x128xf32> to vector<64x128xf32>
    %628 = arith.mulf %615, %627 : vector<64x128xf32>
    %629 = vector.broadcast %12 : vector<64x1xf32> to vector<64x128xf32>
    %630 = arith.mulf %628, %629 : vector<64x128xf32>
    %631 = arith.addf %625, %630 : vector<64x128xf32>
    %632 = tpu.concatenate %555, %631 in 0 : vector<64x128xf32>, vector<64x128xf32> -> vector<128x128xf32>
    %633 = vector.broadcast %479 : vector<1x128xf32> to vector<128x128xf32>
    %634 = arith.addf %632, %633 : vector<128x128xf32>
    %cst_169 = arith.constant 5.000000e-01 : f32
    %635 = vector.broadcast %cst_169 : f32 to vector<128x128xf32>
    %636 = arith.mulf %635, %634 : vector<128x128xf32>
    %637 = arith.mulf %634, %634 : vector<128x128xf32>
    %638 = arith.mulf %637, %634 : vector<128x128xf32>
    %cst_170 = arith.constant 4.471500e-02 : f32
    %639 = vector.broadcast %cst_170 : f32 to vector<128x128xf32>
    %640 = arith.mulf %639, %638 : vector<128x128xf32>
    %641 = arith.addf %634, %640 : vector<128x128xf32>
    %cst_171 = arith.constant 0.797884583 : f32
    %642 = vector.broadcast %cst_171 : f32 to vector<128x128xf32>
    %643 = arith.mulf %642, %641 : vector<128x128xf32>
    %644 = math.tanh %643 : vector<128x128xf32>
    %cst_172 = arith.constant 1.000000e+00 : f32
    %645 = vector.broadcast %cst_172 : f32 to vector<128x128xf32>
    %646 = arith.addf %645, %644 : vector<128x128xf32>
    %647 = arith.mulf %636, %646 : vector<128x128xf32>
    %648 = arith.truncf %647 : vector<128x128xf32> to vector<128x128xbf16>
    %c0_173 = arith.constant 0 : index
    %c0_174 = arith.constant 0 : index
    %649 = vector.load %arg15[%c0_173, %c0_174] : memref<256x64xbf16, #tpu.memory_space<vmem>>, vector<128x64xbf16>
    %cst_175 = arith.constant dense<0.000000e+00> : vector<128x64xf32>
    %650 = tpu.matmul %648, %649, %cst_175 {dimension_numbers = #tpu.dot_dimension_numbers<[1], [0], [0], [1], [0, 0, 1, 1], [], []>} : vector<128x128xbf16>, vector<128x64xbf16>, vector<128x64xf32> -> vector<128x64xf32>
    %651 = arith.addf %459, %650 : vector<128x64xf32>
    %c0_176 = arith.constant 0 : index
    %c128 = arith.constant 128 : index
    %652 = vector.load %arg11[%c0_176, %c128] : memref<64x256xbf16, #tpu.memory_space<vmem>>, vector<64x128xbf16>
    %cst_177 = arith.constant dense<0.000000e+00> : vector<128x128xf32>
    %653 = tpu.matmul %458, %652, %cst_177 {dimension_numbers = #tpu.dot_dimension_numbers<[1], [0], [0], [1], [0, 0, 1, 1], [], []>} : vector<128x64xbf16>, vector<64x128xbf16>, vector<128x128xf32> -> vector<128x128xf32>
    %c0_178 = arith.constant 0 : index
    %c128_179 = arith.constant 128 : index
    %654 = vector.load %arg12[%c0_178, %c128_179] : memref<1x256xf32, #tpu.memory_space<vmem>>, vector<1x128xf32>
    %655 = vector.broadcast %654 : vector<1x128xf32> to vector<128x128xf32>
    %656 = arith.addf %653, %655 : vector<128x128xf32>
    %cst_180 = arith.constant 5.000000e-01 : f32
    %657 = vector.broadcast %cst_180 : f32 to vector<128x128xf32>
    %658 = arith.mulf %657, %656 : vector<128x128xf32>
    %659 = arith.mulf %656, %656 : vector<128x128xf32>
    %660 = arith.mulf %659, %656 : vector<128x128xf32>
    %cst_181 = arith.constant 4.471500e-02 : f32
    %661 = vector.broadcast %cst_181 : f32 to vector<128x128xf32>
    %662 = arith.mulf %661, %660 : vector<128x128xf32>
    %663 = arith.addf %656, %662 : vector<128x128xf32>
    %cst_182 = arith.constant 0.797884583 : f32
    %664 = vector.broadcast %cst_182 : f32 to vector<128x128xf32>
    %665 = arith.mulf %664, %663 : vector<128x128xf32>
    %666 = math.tanh %665 : vector<128x128xf32>
    %cst_183 = arith.constant 1.000000e+00 : f32
    %667 = vector.broadcast %cst_183 : f32 to vector<128x128xf32>
    %668 = arith.addf %667, %666 : vector<128x128xf32>
    %669 = arith.mulf %658, %668 : vector<128x128xf32>
    %c0_184 = arith.constant 0 : index
    %c128_185 = arith.constant 128 : index
    %670 = vector.load %arg13[%c0_184, %c128_185] : memref<9x256xf32, #tpu.memory_space<vmem>>, vector<9x128xf32>
    %c0_186 = arith.constant 0 : index
    %c128_187 = arith.constant 128 : index
    %671 = vector.load %arg14[%c0_186, %c128_187] : memref<1x256xf32, #tpu.memory_space<vmem>>, vector<1x128xf32>
    %672 = vector.extract_strided_slice %669 {offsets = [0, 0], sizes = [64, 128], strides = [1, 1]} : vector<128x128xf32> to vector<64x128xf32>
    %cst_188 = arith.constant 0.000000e+00 : f32
    %673 = vector.broadcast %cst_188 : f32 to vector<16x128xf32>
    %c0_189 = arith.constant 0 : index
    %c0_190 = arith.constant 0 : index
    %c0_191 = arith.constant 0 : index
    %674 = vector.load %arg20[%c0_189, %c0_190, %c0_191] : memref<2x96x128xf32, #tpu.memory_space<vmem>>, vector<1x16x128xf32>
    %675 = vector.shape_cast %674 : vector<1x16x128xf32> to vector<16x128xf32>
    %676 = vector.shape_cast %673 : vector<16x128xf32> to vector<1x16x128xf32>
    tpu.vector_store %arg20[%c0_189, %c0_190, %c0_191], %676 {strides = array<i32>} : memref<2x96x128xf32, #tpu.memory_space<vmem>>, vector<1x16x128xf32>,
    %cst_192 = arith.constant 0.000000e+00 : f32
    %677 = vector.broadcast %cst_192 : f32 to vector<16x128xf32>
    %c0_193 = arith.constant 0 : index
    %c80_194 = arith.constant 80 : index
    %c0_195 = arith.constant 0 : index
    %678 = vector.load %arg20[%c0_193, %c80_194, %c0_195] : memref<2x96x128xf32, #tpu.memory_space<vmem>>, vector<1x16x128xf32>
    %679 = vector.shape_cast %678 : vector<1x16x128xf32> to vector<16x128xf32>
    %680 = vector.shape_cast %677 : vector<16x128xf32> to vector<1x16x128xf32>
    tpu.vector_store %arg20[%c0_193, %c80_194, %c0_195], %680 {strides = array<i32>} : memref<2x96x128xf32, #tpu.memory_space<vmem>>, vector<1x16x128xf32>,
    %c0_196 = arith.constant 0 : index
    %c16_197 = arith.constant 16 : index
    %c0_198 = arith.constant 0 : index
    %681 = vector.load %arg20[%c0_196, %c16_197, %c0_198] : memref<2x96x128xf32, #tpu.memory_space<vmem>>, vector<1x64x128xf32>
    %682 = vector.shape_cast %681 : vector<1x64x128xf32> to vector<64x128xf32>
    %683 = vector.shape_cast %672 : vector<64x128xf32> to vector<1x64x128xf32>
    tpu.vector_store %arg20[%c0_196, %c16_197, %c0_198], %683 {strides = array<i32>} : memref<2x96x128xf32, #tpu.memory_space<vmem>>, vector<1x64x128xf32>,
    %cst_199 = arith.constant 0.000000e+00 : f32
    %684 = vector.broadcast %cst_199 : f32 to vector<64x128xf32>
    %c0_200 = arith.constant 0 : index
    %c0_201 = arith.constant 0 : index
    %c0_202 = arith.constant 0 : index
    %685 = vector.load %arg20[%c0_200, %c0_201, %c0_202] : memref<2x96x128xf32, #tpu.memory_space<vmem>>, vector<1x80x128xf32>
    %686 = vector.shape_cast %685 : vector<1x80x128xf32> to vector<80x128xf32>
    %687 = vector.extract_strided_slice %686 {offsets = [7, 0], sizes = [64, 128], strides = [1, 1]} : vector<80x128xf32> to vector<64x128xf32>
    %688 = vector.extract_strided_slice %686 {offsets = [8, 0], sizes = [64, 128], strides = [1, 1]} : vector<80x128xf32> to vector<64x128xf32>
    %689 = vector.extract_strided_slice %686 {offsets = [9, 0], sizes = [64, 128], strides = [1, 1]} : vector<80x128xf32> to vector<64x128xf32>
    %690 = vector.extract_strided_slice %670 {offsets = [0, 0], sizes = [1, 128], strides = [1, 1]} : vector<9x128xf32> to vector<1x128xf32>
    %691 = vector.broadcast %690 : vector<1x128xf32> to vector<64x128xf32>
    %692 = arith.mulf %687, %691 : vector<64x128xf32>
    %693 = vector.broadcast %8 : vector<64x1xf32> to vector<64x128xf32>
    %694 = arith.mulf %692, %693 : vector<64x128xf32>
    %695 = arith.addf %684, %694 : vector<64x128xf32>
    %696 = vector.extract_strided_slice %670 {offsets = [1, 0], sizes = [1, 128], strides = [1, 1]} : vector<9x128xf32> to vector<1x128xf32>
    %697 = vector.broadcast %696 : vector<1x128xf32> to vector<64x128xf32>
    %698 = arith.mulf %688, %697 : vector<64x128xf32>
    %699 = arith.addf %695, %698 : vector<64x128xf32>
    %700 = vector.extract_strided_slice %670 {offsets = [2, 0], sizes = [1, 128], strides = [1, 1]} : vector<9x128xf32> to vector<1x128xf32>
    %701 = vector.broadcast %700 : vector<1x128xf32> to vector<64x128xf32>
    %702 = arith.mulf %689, %701 : vector<64x128xf32>
    %703 = vector.broadcast %12 : vector<64x1xf32> to vector<64x128xf32>
    %704 = arith.mulf %702, %703 : vector<64x128xf32>
    %705 = arith.addf %699, %704 : vector<64x128xf32>
    %c0_203 = arith.constant 0 : index
    %c8_204 = arith.constant 8 : index
    %c0_205 = arith.constant 0 : index
    %706 = vector.load %arg20[%c0_203, %c8_204, %c0_205] : memref<2x96x128xf32, #tpu.memory_space<vmem>>, vector<1x80x128xf32>
    %707 = vector.shape_cast %706 : vector<1x80x128xf32> to vector<80x128xf32>
    %708 = vector.extract_strided_slice %707 {offsets = [7, 0], sizes = [64, 128], strides = [1, 1]} : vector<80x128xf32> to vector<64x128xf32>
    %709 = vector.extract_strided_slice %707 {offsets = [8, 0], sizes = [64, 128], strides = [1, 1]} : vector<80x128xf32> to vector<64x128xf32>
    %710 = vector.extract_strided_slice %707 {offsets = [9, 0], sizes = [64, 128], strides = [1, 1]} : vector<80x128xf32> to vector<64x128xf32>
    %711 = vector.extract_strided_slice %670 {offsets = [3, 0], sizes = [1, 128], strides = [1, 1]} : vector<9x128xf32> to vector<1x128xf32>
    %712 = vector.broadcast %711 : vector<1x128xf32> to vector<64x128xf32>
    %713 = arith.mulf %708, %712 : vector<64x128xf32>
    %714 = vector.broadcast %8 : vector<64x1xf32> to vector<64x128xf32>
    %715 = arith.mulf %713, %714 : vector<64x128xf32>
    %716 = arith.addf %705, %715 : vector<64x128xf32>
    %717 = vector.extract_strided_slice %670 {offsets = [4, 0], sizes = [1, 128], strides = [1, 1]} : vector<9x128xf32> to vector<1x128xf32>
    %718 = vector.broadcast %717 : vector<1x128xf32> to vector<64x128xf32>
    %719 = arith.mulf %709, %718 : vector<64x128xf32>
    %720 = arith.addf %716, %719 : vector<64x128xf32>
    %721 = vector.extract_strided_slice %670 {offsets = [5, 0], sizes = [1, 128], strides = [1, 1]} : vector<9x128xf32> to vector<1x128xf32>
    %722 = vector.broadcast %721 : vector<1x128xf32> to vector<64x128xf32>
    %723 = arith.mulf %710, %722 : vector<64x128xf32>
    %724 = vector.broadcast %12 : vector<64x1xf32> to vector<64x128xf32>
    %725 = arith.mulf %723, %724 : vector<64x128xf32>
    %726 = arith.addf %720, %725 : vector<64x128xf32>
    %c0_206 = arith.constant 0 : index
    %c16_207 = arith.constant 16 : index
    %c0_208 = arith.constant 0 : index
    %727 = vector.load %arg20[%c0_206, %c16_207, %c0_208] : memref<2x96x128xf32, #tpu.memory_space<vmem>>, vector<1x80x128xf32>
    %728 = vector.shape_cast %727 : vector<1x80x128xf32> to vector<80x128xf32>
    %729 = vector.extract_strided_slice %728 {offsets = [7, 0], sizes = [64, 128], strides = [1, 1]} : vector<80x128xf32> to vector<64x128xf32>
    %730 = vector.extract_strided_slice %728 {offsets = [8, 0], sizes = [64, 128], strides = [1, 1]} : vector<80x128xf32> to vector<64x128xf32>
    %731 = vector.extract_strided_slice %728 {offsets = [9, 0], sizes = [64, 128], strides = [1, 1]} : vector<80x128xf32> to vector<64x128xf32>
    %732 = vector.extract_strided_slice %670 {offsets = [6, 0], sizes = [1, 128], strides = [1, 1]} : vector<9x128xf32> to vector<1x128xf32>
    %733 = vector.broadcast %732 : vector<1x128xf32> to vector<64x128xf32>
    %734 = arith.mulf %729, %733 : vector<64x128xf32>
    %735 = vector.broadcast %8 : vector<64x1xf32> to vector<64x128xf32>
    %736 = arith.mulf %734, %735 : vector<64x128xf32>
    %737 = arith.addf %726, %736 : vector<64x128xf32>
    %738 = vector.extract_strided_slice %670 {offsets = [7, 0], sizes = [1, 128], strides = [1, 1]} : vector<9x128xf32> to vector<1x128xf32>
    %739 = vector.broadcast %738 : vector<1x128xf32> to vector<64x128xf32>
    %740 = arith.mulf %730, %739 : vector<64x128xf32>
    %741 = arith.addf %737, %740 : vector<64x128xf32>
    %742 = vector.extract_strided_slice %670 {offsets = [8, 0], sizes = [1, 128], strides = [1, 1]} : vector<9x128xf32> to vector<1x128xf32>
    %743 = vector.broadcast %742 : vector<1x128xf32> to vector<64x128xf32>
    %744 = arith.mulf %731, %743 : vector<64x128xf32>
    %745 = vector.broadcast %12 : vector<64x1xf32> to vector<64x128xf32>
    %746 = arith.mulf %744, %745 : vector<64x128xf32>
    %747 = arith.addf %741, %746 : vector<64x128xf32>
    %748 = vector.extract_strided_slice %669 {offsets = [64, 0], sizes = [64, 128], strides = [1, 1]} : vector<128x128xf32> to vector<64x128xf32>
    %cst_209 = arith.constant 0.000000e+00 : f32
    %749 = vector.broadcast %cst_209 : f32 to vector<16x128xf32>
    %c1_210 = arith.constant 1 : index
    %c0_211 = arith.constant 0 : index
    %c0_212 = arith.constant 0 : index
    %750 = vector.load %arg20[%c1_210, %c0_211, %c0_212] : memref<2x96x128xf32, #tpu.memory_space<vmem>>, vector<1x16x128xf32>
    %751 = vector.shape_cast %750 : vector<1x16x128xf32> to vector<16x128xf32>
    %752 = vector.shape_cast %749 : vector<16x128xf32> to vector<1x16x128xf32>
    tpu.vector_store %arg20[%c1_210, %c0_211, %c0_212], %752 {strides = array<i32>} : memref<2x96x128xf32, #tpu.memory_space<vmem>>, vector<1x16x128xf32>,
    %cst_213 = arith.constant 0.000000e+00 : f32
    %753 = vector.broadcast %cst_213 : f32 to vector<16x128xf32>
    %c1_214 = arith.constant 1 : index
    %c80_215 = arith.constant 80 : index
    %c0_216 = arith.constant 0 : index
    %754 = vector.load %arg20[%c1_214, %c80_215, %c0_216] : memref<2x96x128xf32, #tpu.memory_space<vmem>>, vector<1x16x128xf32>
    %755 = vector.shape_cast %754 : vector<1x16x128xf32> to vector<16x128xf32>
    %756 = vector.shape_cast %753 : vector<16x128xf32> to vector<1x16x128xf32>
    tpu.vector_store %arg20[%c1_214, %c80_215, %c0_216], %756 {strides = array<i32>} : memref<2x96x128xf32, #tpu.memory_space<vmem>>, vector<1x16x128xf32>,
    %c1_217 = arith.constant 1 : index
    %c16_218 = arith.constant 16 : index
    %c0_219 = arith.constant 0 : index
    %757 = vector.load %arg20[%c1_217, %c16_218, %c0_219] : memref<2x96x128xf32, #tpu.memory_space<vmem>>, vector<1x64x128xf32>
    %758 = vector.shape_cast %757 : vector<1x64x128xf32> to vector<64x128xf32>
    %759 = vector.shape_cast %748 : vector<64x128xf32> to vector<1x64x128xf32>
    tpu.vector_store %arg20[%c1_217, %c16_218, %c0_219], %759 {strides = array<i32>} : memref<2x96x128xf32, #tpu.memory_space<vmem>>, vector<1x64x128xf32>,
    %cst_220 = arith.constant 0.000000e+00 : f32
    %760 = vector.broadcast %cst_220 : f32 to vector<64x128xf32>
    %c1_221 = arith.constant 1 : index
    %c0_222 = arith.constant 0 : index
    %c0_223 = arith.constant 0 : index
    %761 = vector.load %arg20[%c1_221, %c0_222, %c0_223] : memref<2x96x128xf32, #tpu.memory_space<vmem>>, vector<1x80x128xf32>
    %762 = vector.shape_cast %761 : vector<1x80x128xf32> to vector<80x128xf32>
    %763 = vector.extract_strided_slice %762 {offsets = [7, 0], sizes = [64, 128], strides = [1, 1]} : vector<80x128xf32> to vector<64x128xf32>
    %764 = vector.extract_strided_slice %762 {offsets = [8, 0], sizes = [64, 128], strides = [1, 1]} : vector<80x128xf32> to vector<64x128xf32>
    %765 = vector.extract_strided_slice %762 {offsets = [9, 0], sizes = [64, 128], strides = [1, 1]} : vector<80x128xf32> to vector<64x128xf32>
    %766 = vector.extract_strided_slice %670 {offsets = [0, 0], sizes = [1, 128], strides = [1, 1]} : vector<9x128xf32> to vector<1x128xf32>
    %767 = vector.broadcast %766 : vector<1x128xf32> to vector<64x128xf32>
    %768 = arith.mulf %763, %767 : vector<64x128xf32>
    %769 = vector.broadcast %8 : vector<64x1xf32> to vector<64x128xf32>
    %770 = arith.mulf %768, %769 : vector<64x128xf32>
    %771 = arith.addf %760, %770 : vector<64x128xf32>
    %772 = vector.extract_strided_slice %670 {offsets = [1, 0], sizes = [1, 128], strides = [1, 1]} : vector<9x128xf32> to vector<1x128xf32>
    %773 = vector.broadcast %772 : vector<1x128xf32> to vector<64x128xf32>
    %774 = arith.mulf %764, %773 : vector<64x128xf32>
    %775 = arith.addf %771, %774 : vector<64x128xf32>
    %776 = vector.extract_strided_slice %670 {offsets = [2, 0], sizes = [1, 128], strides = [1, 1]} : vector<9x128xf32> to vector<1x128xf32>
    %777 = vector.broadcast %776 : vector<1x128xf32> to vector<64x128xf32>
    %778 = arith.mulf %765, %777 : vector<64x128xf32>
    %779 = vector.broadcast %12 : vector<64x1xf32> to vector<64x128xf32>
    %780 = arith.mulf %778, %779 : vector<64x128xf32>
    %781 = arith.addf %775, %780 : vector<64x128xf32>
    %c1_224 = arith.constant 1 : index
    %c8_225 = arith.constant 8 : index
    %c0_226 = arith.constant 0 : index
    %782 = vector.load %arg20[%c1_224, %c8_225, %c0_226] : memref<2x96x128xf32, #tpu.memory_space<vmem>>, vector<1x80x128xf32>
    %783 = vector.shape_cast %782 : vector<1x80x128xf32> to vector<80x128xf32>
    %784 = vector.extract_strided_slice %783 {offsets = [7, 0], sizes = [64, 128], strides = [1, 1]} : vector<80x128xf32> to vector<64x128xf32>
    %785 = vector.extract_strided_slice %783 {offsets = [8, 0], sizes = [64, 128], strides = [1, 1]} : vector<80x128xf32> to vector<64x128xf32>
    %786 = vector.extract_strided_slice %783 {offsets = [9, 0], sizes = [64, 128], strides = [1, 1]} : vector<80x128xf32> to vector<64x128xf32>
    %787 = vector.extract_strided_slice %670 {offsets = [3, 0], sizes = [1, 128], strides = [1, 1]} : vector<9x128xf32> to vector<1x128xf32>
    %788 = vector.broadcast %787 : vector<1x128xf32> to vector<64x128xf32>
    %789 = arith.mulf %784, %788 : vector<64x128xf32>
    %790 = vector.broadcast %8 : vector<64x1xf32> to vector<64x128xf32>
    %791 = arith.mulf %789, %790 : vector<64x128xf32>
    %792 = arith.addf %781, %791 : vector<64x128xf32>
    %793 = vector.extract_strided_slice %670 {offsets = [4, 0], sizes = [1, 128], strides = [1, 1]} : vector<9x128xf32> to vector<1x128xf32>
    %794 = vector.broadcast %793 : vector<1x128xf32> to vector<64x128xf32>
    %795 = arith.mulf %785, %794 : vector<64x128xf32>
    %796 = arith.addf %792, %795 : vector<64x128xf32>
    %797 = vector.extract_strided_slice %670 {offsets = [5, 0], sizes = [1, 128], strides = [1, 1]} : vector<9x128xf32> to vector<1x128xf32>
    %798 = vector.broadcast %797 : vector<1x128xf32> to vector<64x128xf32>
    %799 = arith.mulf %786, %798 : vector<64x128xf32>
    %800 = vector.broadcast %12 : vector<64x1xf32> to vector<64x128xf32>
    %801 = arith.mulf %799, %800 : vector<64x128xf32>
    %802 = arith.addf %796, %801 : vector<64x128xf32>
    %c1_227 = arith.constant 1 : index
    %c16_228 = arith.constant 16 : index
    %c0_229 = arith.constant 0 : index
    %803 = vector.load %arg20[%c1_227, %c16_228, %c0_229] : memref<2x96x128xf32, #tpu.memory_space<vmem>>, vector<1x80x128xf32>
    %804 = vector.shape_cast %803 : vector<1x80x128xf32> to vector<80x128xf32>
    %805 = vector.extract_strided_slice %804 {offsets = [7, 0], sizes = [64, 128], strides = [1, 1]} : vector<80x128xf32> to vector<64x128xf32>
    %806 = vector.extract_strided_slice %804 {offsets = [8, 0], sizes = [64, 128], strides = [1, 1]} : vector<80x128xf32> to vector<64x128xf32>
    %807 = vector.extract_strided_slice %804 {offsets = [9, 0], sizes = [64, 128], strides = [1, 1]} : vector<80x128xf32> to vector<64x128xf32>
    %808 = vector.extract_strided_slice %670 {offsets = [6, 0], sizes = [1, 128], strides = [1, 1]} : vector<9x128xf32> to vector<1x128xf32>
    %809 = vector.broadcast %808 : vector<1x128xf32> to vector<64x128xf32>
    %810 = arith.mulf %805, %809 : vector<64x128xf32>
    %811 = vector.broadcast %8 : vector<64x1xf32> to vector<64x128xf32>
    %812 = arith.mulf %810, %811 : vector<64x128xf32>
    %813 = arith.addf %802, %812 : vector<64x128xf32>
    %814 = vector.extract_strided_slice %670 {offsets = [7, 0], sizes = [1, 128], strides = [1, 1]} : vector<9x128xf32> to vector<1x128xf32>
    %815 = vector.broadcast %814 : vector<1x128xf32> to vector<64x128xf32>
    %816 = arith.mulf %806, %815 : vector<64x128xf32>
    %817 = arith.addf %813, %816 : vector<64x128xf32>
    %818 = vector.extract_strided_slice %670 {offsets = [8, 0], sizes = [1, 128], strides = [1, 1]} : vector<9x128xf32> to vector<1x128xf32>
    %819 = vector.broadcast %818 : vector<1x128xf32> to vector<64x128xf32>
    %820 = arith.mulf %807, %819 : vector<64x128xf32>
    %821 = vector.broadcast %12 : vector<64x1xf32> to vector<64x128xf32>
    %822 = arith.mulf %820, %821 : vector<64x128xf32>
    %823 = arith.addf %817, %822 : vector<64x128xf32>
    %824 = tpu.concatenate %747, %823 in 0 : vector<64x128xf32>, vector<64x128xf32> -> vector<128x128xf32>
    %825 = vector.broadcast %671 : vector<1x128xf32> to vector<128x128xf32>
    %826 = arith.addf %824, %825 : vector<128x128xf32>
    %cst_230 = arith.constant 5.000000e-01 : f32
    %827 = vector.broadcast %cst_230 : f32 to vector<128x128xf32>
    %828 = arith.mulf %827, %826 : vector<128x128xf32>
    %829 = arith.mulf %826, %826 : vector<128x128xf32>
    %830 = arith.mulf %829, %826 : vector<128x128xf32>
    %cst_231 = arith.constant 4.471500e-02 : f32
    %831 = vector.broadcast %cst_231 : f32 to vector<128x128xf32>
    %832 = arith.mulf %831, %830 : vector<128x128xf32>
    %833 = arith.addf %826, %832 : vector<128x128xf32>
    %cst_232 = arith.constant 0.797884583 : f32
    %834 = vector.broadcast %cst_232 : f32 to vector<128x128xf32>
    %835 = arith.mulf %834, %833 : vector<128x128xf32>
    %836 = math.tanh %835 : vector<128x128xf32>
    %cst_233 = arith.constant 1.000000e+00 : f32
    %837 = vector.broadcast %cst_233 : f32 to vector<128x128xf32>
    %838 = arith.addf %837, %836 : vector<128x128xf32>
    %839 = arith.mulf %828, %838 : vector<128x128xf32>
    %840 = arith.truncf %839 : vector<128x128xf32> to vector<128x128xbf16>
    %c128_234 = arith.constant 128 : index
    %c0_235 = arith.constant 0 : index
    %841 = vector.load %arg15[%c128_234, %c0_235] : memref<256x64xbf16, #tpu.memory_space<vmem>>, vector<128x64xbf16>
    %cst_236 = arith.constant dense<0.000000e+00> : vector<128x64xf32>
    %842 = tpu.matmul %840, %841, %cst_236 {dimension_numbers = #tpu.dot_dimension_numbers<[1], [0], [0], [1], [0, 0, 1, 1], [], []>} : vector<128x128xbf16>, vector<128x64xbf16>, vector<128x64xf32> -> vector<128x64xf32>
    %843 = arith.addf %651, %842 : vector<128x64xf32>
    %c0_237 = arith.constant 0 : index
    %c0_238 = arith.constant 0 : index
    %844 = vector.load %arg16[%c0_237, %c0_238] : memref<1x64xf32, #tpu.memory_space<vmem>>, vector<1x64xf32>
    %845 = vector.broadcast %844 : vector<1x64xf32> to vector<128x64xf32>
    %846 = arith.addf %843, %845 : vector<128x64xf32>
    %c0_239 = arith.constant 0 : index
    %c0_240 = arith.constant 0 : index
    %847 = vector.load %arg17[%c0_239, %c0_240] : memref<1x64xf32, #tpu.memory_space<vmem>>, vector<1x64xf32>
    %848 = vector.broadcast %847 : vector<1x64xf32> to vector<128x64xf32>
    %849 = arith.mulf %848, %846 : vector<128x64xf32>
    %850 = arith.addf %457, %849 : vector<128x64xf32>
    %c0_241 = arith.constant 0 : index
    %c0_242 = arith.constant 0 : index
    %851 = vector.load %arg18[%c0_241, %c0_242] : memref<128x64xf32, #tpu.memory_space<vmem>>, vector<128x64xf32>
    tpu.vector_store %arg18[%c0_241, %c0_242], %850 {strides = array<i32>} : memref<128x64xf32, #tpu.memory_space<vmem>>, vector<128x64xf32>,
    return
  }
  func.func @transform_0(%arg0: i32) -> (i32, i32) {
    %c0_i32 = arith.constant 0 : i32
    %c0_i32_0 = arith.constant 0 : i32
    return %arg0, %c0_i32 : i32, i32
  }
  func.func @transform_1(%arg0: i32) -> (i32, i32) {
    %c0_i32 = arith.constant 0 : i32
    %c0_i32_0 = arith.constant 0 : i32
    %c0_i32_1 = arith.constant 0 : i32
    return %c0_i32, %c0_i32_0 : i32, i32
  }
  func.func @transform_2(%arg0: i32) -> (i32, i32) {
    %c0_i32 = arith.constant 0 : i32
    %c0_i32_0 = arith.constant 0 : i32
    %c0_i32_1 = arith.constant 0 : i32
    return %c0_i32, %c0_i32_0 : i32, i32
  }
  func.func @transform_3(%arg0: i32) -> (i32, i32) {
    %c0_i32 = arith.constant 0 : i32
    %c0_i32_0 = arith.constant 0 : i32
    %c0_i32_1 = arith.constant 0 : i32
    return %c0_i32, %c0_i32_0 : i32, i32
  }
  func.func @transform_4(%arg0: i32) -> (i32, i32) {
    %c0_i32 = arith.constant 0 : i32
    %c0_i32_0 = arith.constant 0 : i32
    %c0_i32_1 = arith.constant 0 : i32
    return %c0_i32, %c0_i32_0 : i32, i32
  }
  func.func @transform_5(%arg0: i32) -> (i32, i32) {
    %c0_i32 = arith.constant 0 : i32
    %c0_i32_0 = arith.constant 0 : i32
    %c0_i32_1 = arith.constant 0 : i32
    return %c0_i32, %c0_i32_0 : i32, i32
  }
  func.func @transform_6(%arg0: i32) -> i32 {
    %c0_i32 = arith.constant 0 : i32
    %c0_i32_0 = arith.constant 0 : i32
    return %c0_i32 : i32
  }
  func.func @transform_7(%arg0: i32) -> (i32, i32) {
    %c0_i32 = arith.constant 0 : i32
    %c0_i32_0 = arith.constant 0 : i32
    %c0_i32_1 = arith.constant 0 : i32
    return %c0_i32, %c0_i32_0 : i32, i32
  }
  func.func @transform_8(%arg0: i32) -> (i32, i32) {
    %c0_i32 = arith.constant 0 : i32
    %c0_i32_0 = arith.constant 0 : i32
    %c0_i32_1 = arith.constant 0 : i32
    return %c0_i32, %c0_i32_0 : i32, i32
  }
  func.func @transform_9(%arg0: i32) -> (i32, i32) {
    %c0_i32 = arith.constant 0 : i32
    %c0_i32_0 = arith.constant 0 : i32
    %c0_i32_1 = arith.constant 0 : i32
    return %c0_i32, %c0_i32_0 : i32, i32
  }
  func.func @transform_10(%arg0: i32) -> (i32, i32) {
    %c0_i32 = arith.constant 0 : i32
    %c0_i32_0 = arith.constant 0 : i32
    %c0_i32_1 = arith.constant 0 : i32
    return %c0_i32, %c0_i32_0 : i32, i32
  }
  func.func @transform_11(%arg0: i32) -> (i32, i32) {
    %c0_i32 = arith.constant 0 : i32
    %c0_i32_0 = arith.constant 0 : i32
    %c0_i32_1 = arith.constant 0 : i32
    return %c0_i32, %c0_i32_0 : i32, i32
  }
  func.func @transform_12(%arg0: i32) -> (i32, i32) {
    %c0_i32 = arith.constant 0 : i32
    %c0_i32_0 = arith.constant 0 : i32
    %c0_i32_1 = arith.constant 0 : i32
    return %c0_i32, %c0_i32_0 : i32, i32
  }
  func.func @transform_13(%arg0: i32) -> (i32, i32) {
    %c0_i32 = arith.constant 0 : i32
    %c0_i32_0 = arith.constant 0 : i32
    %c0_i32_1 = arith.constant 0 : i32
    return %c0_i32, %c0_i32_0 : i32, i32
  }
  func.func @transform_14(%arg0: i32) -> (i32, i32) {
    %c0_i32 = arith.constant 0 : i32
    %c0_i32_0 = arith.constant 0 : i32
    %c0_i32_1 = arith.constant 0 : i32
    return %c0_i32, %c0_i32_0 : i32, i32
  }
  func.func @transform_15(%arg0: i32) -> (i32, i32) {
    %c0_i32 = arith.constant 0 : i32
    %c0_i32_0 = arith.constant 0 : i32
    %c0_i32_1 = arith.constant 0 : i32
    return %c0_i32, %c0_i32_0 : i32, i32
  }
  func.func @transform_16(%arg0: i32) -> (i32, i32) {
    %c0_i32 = arith.constant 0 : i32
    %c0_i32_0 = arith.constant 0 : i32
    %c0_i32_1 = arith.constant 0 : i32
    return %c0_i32, %c0_i32_0 : i32, i32
  }
  func.func @transform_17(%arg0: i32) -> (i32, i32) {
    %c0_i32 = arith.constant 0 : i32
    %c0_i32_0 = arith.constant 0 : i32
    return %arg0, %c0_i32 : i32, i32
  }
}

</mosaic_0001>

<bundles_post_ra>
// kernel: tpu_custom_call.1
= control target key start
LH: loop header
LB: loop body
LE: loop exit
PB: predicated region body
PF: predicated region fallthrough
CT: control target
= control target key end

     0   :  { %s12285_s0 = inlined_call_operand.vmem [shape: f32[128,64], index: 0, kind: input, shape index: {}]   ;;  %s12286_s1 = inlined_call_operand.vmem [shape: bf16[64,128], index: 1, kind: input, shape index: {}]   ;;  %s12287_s2 = inlined_call_operand.vmem [shape: f32[1,128], index: 2, kind: input, shape index: {}]   ;;  %s12288_s3 = inlined_call_operand.vmem [shape: f32[9,64], index: 3, kind: input, shape index: {}]   ;;  %s12289_s4 = inlined_call_operand.vmem [shape: f32[1,64], index: 4, kind: input, shape index: {}]   ;;  %s12290_s5 = inlined_call_operand.vmem [shape: bf16[64,128], index: 5, kind: input, shape index: {}]   ;;  %s12291_s6 = inlined_call_operand.vmem [shape: f32[12], index: 6, kind: input, shape index: {}]   ;;  %s12292_s7 = inlined_call_operand.vmem [shape: bf16[64,64], index: 7, kind: input, shape index: {}]   ;;  %s12293_s8 = inlined_call_operand.vmem [shape: f32[1,64], index: 8, kind: input, shape index: {}]   ;;  %s12294_s9 = inlined_call_operand.vmem [shape: f32[1,64], index: 9, kind: input, shape index: {}]   ;;  %s12295_s10 = inlined_call_operand.vmem [shape: bf16[64,256], index: 10, kind: input, shape index: {}]   ;;  %s12296_s11 = inlined_call_operand.vmem [shape: f32[1,256], index: 11, kind: input, shape index: {}]   ;;  %s12297_s12 = inlined_call_operand.vmem [shape: f32[9,256], index: 12, kind: input, shape index: {}]   ;;  %s12298_s13 = inlined_call_operand.vmem [shape: f32[1,256], index: 13, kind: input, shape index: {}]   ;;  %s12299_s14 = inlined_call_operand.vmem [shape: bf16[256,64], index: 14, kind: input, shape index: {}]   ;;  %s12300_s15 = inlined_call_operand.vmem [shape: f32[1,64], index: 15, kind: input, shape index: {}]   ;;  %s12301_s16 = inlined_call_operand.vmem [shape: f32[1,64], index: 16, kind: input, shape index: {}]   ;;  %s12302_s17 = inlined_call_operand.vmem [shape: f32[128,64], index: 17, kind: output, shape index: {}]  }
   0x1   :  { %12631 = sst [smem:[#allocation92_spill]] %s12285_s0 }
   0x2   :  { %12632 = sst [smem:[#allocation93_spill]] %s12286_s1 }
   0x3   :  { %22 = vsyncpa [#allocation5], 0  ;;  %s41_s26 = sshll.u32 %s12291_s6, 4  ;;  %s42_s26 = int_to_ptr.vmem [resolvable:$true] %s41_s26 }
   0x4   :  { %s7192_s27 = scalar_lea.vmem %s42_s26, 16  ;;  %p7197_p1 = scmp.lt.s32.totalorder %s42_s26, %s42_s26 }
   0x5   :  { %p7193_p0 = scmp.ne.s32.totalorder %s42_s26, %s7192_s27  ;;  %p7198_p2 = scmp.lt.s32.totalorder %s7192_s27, %s7192_s27 }
   0x7   :  { %p7199_p3 = por %p7198_p2, %p7197_p1 }
   0x9   :  { %p7200_p4 = pnand %p7199_p3, %p7193_p0 }
   0xb   :  { %7203 = shalt.err (!%p7200_p4)
}
   0xc   :  { %s7206_s28 = smov [#allocation4]  }
   0xd   :  { %44 = dma.vmem_to_smem %s42_s26, 16, %s7206_s28, [#allocation5]  }
   0xe   :  { %7204 = dma.done.wait [#allocation5], 16  }
   0xf   :  { %7205 = vsyncadd [#allocation5], 4294967280 }
  0x10   :  { %68 = sfence }
  0x11   :  { %s12633_s30 = sld [smem:[#allocation93_spill]]  ;;  %s12634_s22 = sld [smem:[#allocation92_spill]]  ;;  %vm201_vm0 = vcmask 523264   ;;  %v7346_v17 = vld [vmem:[%s12287_s2] ss:$0 sm:$0xff]  ;;  %vm1531_vm1 = vcmask 261120   ;;  %v94_v38 = vlaneseq }
  0x12   :  { %s7207_s2 = smov 96   ;;  %s7209_s0 = smov 64  }
  0x13   :  { %v7388_v39 = vand.u32 127, %v94_v38  ;;  %s1633_s19 = sld [smem:[#allocation4]]  ;;  %s6233_s6 = sld [smem:[#allocation4 + $0x3]] }
  0x14   :  { %s6234_s1 = sld [smem:[#allocation4 + $0x1]]  ;;  %s6237_s20 = sld [smem:[#allocation4 + $0x5]] }
  0x15   :  { %12635 = vst [vmem:[#allocation7_spill] sm:$0xff] %v7388_v39  ;;  %vm1476_vm2 = vcmp.lt.s32.totalorder %v7388_v39, 16  ;;  %vm161_vm3 = vcmp.lt.s32.totalorder %v7388_v39, 64  ;;  %vm1921_vm4 = vcmp.lt.s32.totalorder %v7388_v39, 32  ;;  %s6241_s26 = sld [smem:[#allocation4 + $0x8]]  ;;  %s6238_s27 = sld [smem:[#allocation4 + $0x6]] }
  0x16   :  { %vm7598_vm5 = vmpackc.low %vm1921_vm4, %vm1921_vm4  ;;  %s6239_s28 = sld [smem:[#allocation4 + $0x9]]  ;;  %s6242_s29 = sld [smem:[#allocation4 + $0xa]] }
  0x17   :  { %v6869_v0 = vld [vmem:[%s12633_s30] sm:$0xff]   ;;  %v6870_v1 = vld [vmem:[%s12633_s30 + $0x8] sm:$0xff]   ;;  %v6871_v2 = vld [vmem:[%s12633_s30 + $0x10] sm:$0xff]   ;;  %s6243_s18 = sld [smem:[#allocation4 + $0xb]] }
  0x18   :  { %6521 = vmatprep.subr.bf16.mxu0 %v6869_v0  ;;  %v70_v3 = vld [vmem:[%s12634_s22] sm:$0xff]  ;;  %v71_v4 = vld [vmem:[%s12634_s22 + $0x8] sm:$0xff]  ;;  %v6872_v6 = vld [vmem:[%s12633_s30 + $0x18] sm:$0xff]   ;;  %s6236_s30 = sld [smem:[#allocation4 + $0x4]] }
  0x19   :  { %6522 = vmatpush3.bf16.msra.mxu0 %v6869_v0  ;;  %v86_v5 = vpack.c.bf16 %v71_v4, %v70_v3  ;;  %v72_v7 = vld [vmem:[%s12634_s22 + $0x10] sm:$0xff]  ;;  %v73_v8 = vld [vmem:[%s12634_s22 + $0x18] sm:$0xff]  ;;  %v74_v9 = vld [vmem:[%s12634_s22 + $0x20] sm:$0xff] }
  0x1a   :  { %6523 = vmatprep.subr.bf16.mxu0 %v6870_v1  ;;  %v75_v10 = vld [vmem:[%s12634_s22 + $0x28] sm:$0xff]  ;;  %v87_v11 = vpack.c.bf16 %v73_v8, %v72_v7  ;;  %v76_v13 = vld [vmem:[%s12634_s22 + $0x30] sm:$0xff]  ;;  %v77_v14 = vld [vmem:[%s12634_s22 + $0x38] sm:$0xff] }
  0x1b   :  { %6529 = vmatprep.mubr.msk.bf16.mxu0 %vm201_vm0, %v86_v5  ;;  %v88_v12 = vpack.c.bf16 %v75_v10, %v74_v9  ;;  %v89_v15 = vpack.c.bf16 %v77_v14, %v76_v13  ;;  %vm6256_vm6 = vmneg %vm1921_vm4 }
  0x1c   :  { %vm7835_vm7 = vmpackc.low %vm6256_vm6, %vm6256_vm6 }
  0x1d   :  { %6524 = vmatpush3.bf16.msra.mxu0 %v6870_v1 }
  0x1e   :  { %6525 = vmatprep.subr.bf16.mxu0 %v6871_v2 }
  0x21   :  { %6526 = vmatpush3.bf16.msra.mxu0 %v6871_v2 }
  0x22   :  { %6527 = vmatprep.subr.bf16.mxu0 %v6872_v6 }
  0x25   :  { %6528 = vmatpush3.bf16.msra.mxu0 %v6872_v6 }
  0x28   :  { %6530 = vmatmul.mubr.msk.bf16.vlgmr.msra.gmra.mrb[0].mxu0 %vm201_vm0, %v87_v11 }
  0x29   :  { %6533 = vmatprep.mubr.msk.bf16.mxu0 %vm201_vm0, %v88_v12 }
  0x30   :  { %6534 = vmatmul.mubr.msk.bf16.gmra.mrb[4].mxu0 %vm201_vm0, %v89_v15 }
  0xfb   :  { %v6531_v16 = vpop.f32.mrb[0].mxu0 }
  0xfc   :  { %v260_v18 = vpop.f32.mrb[1].mxu0  ;;  %v7362_v26 = vadd.f32 %v6531_v16, %v7346_v17 }
  0xfd   :  { %v6532_v19 = vpop.f32.mrb[2].mxu0  ;;  %v7349_v21 = vadd.f32 %v7346_v17, %v260_v18 }
  0xfe   :  { %v263_v20 = vpop.f32.mrb[3].mxu0  ;;  %v7355_v23 = vadd.f32 %v6532_v19, %v7346_v17 }
  0xff   :  { %v7352_v22 = vadd.f32 %v7346_v17, %v263_v20 }
 0x100   :  { %v6834_v31 = vpack.i.bf16 %v7355_v23, %v7362_v26 }
 0x101   :  { %v6829_v24 = vpack.i.bf16 %v7352_v22, %v7349_v21  ;;  %v1527_v25 = vpack.c.bf16 %v7352_v22, %v7349_v21 }
 0x103   :  { %6830 = vrot.lane.b32.xlu0 %v6829_v24, %s7207_s2  ;;  %6561 = vmatprep.mubr.msk.bf16.mxu1 %vm1531_vm1, %v1527_v25  ;;  %v6535_v27 = vpop.f32.mrb[4].mxu0  ;;  %v1528_v24 = vpack.c.bf16 %v7355_v23, %v7362_v26 }
 0x104   :  { %v276_v28 = vpop.f32.mrb[5].mxu0  ;;  %v7372_v33 = vadd.f32 %v6535_v27, %v7346_v17 }
 0x105   :  { %v7367_v29 = vadd.f32 %v7346_v17, %v276_v28  ;;  %v6536_v30 = vpop.f32.mrb[6].mxu0  ;;  %v7451_v28 = vld [vmem:[%s12290_s5] sm:$0xff]  }
 0x106   :  { %v279_v32 = vpop.f32.mrb[7].mxu0  ;;  %v7375_v34 = vadd.f32 %v6536_v30, %v7346_v17  ;;  %12636 = vst [vmem:[#allocation8_spill] sm:$0xff] %v7451_v28  ;;  %v12322_v30 = vmov 0.0  }
 0x107   :  { %v7378_v35 = vadd.f32 %v7346_v17, %v279_v32  ;;  %6835 = vrot.lane.b32.xlu0 %v6834_v31, %s7207_s2  ;;  %326 = vst.msk [vmem:[#allocation2] sm:$0xff] %vm201_vm0, %v12322_v30  ;;  %327 = vst.msk [vmem:[#allocation2 + $0x8] sm:$0xff] %vm201_vm0, %v12322_v30  ;;  %v12312_v31 = vunpack.c.l.bf16 %v7451_v28  ;;  %v7473_v32 = vld [vmem:[%s12290_s5 + $0x8] sm:$0xff]  }
 0x108   :  { %v6844_v37 = vpack.i.bf16 %v7375_v34, %v7372_v33  ;;  %v1530_v27 = vpack.c.bf16 %v7375_v34, %v7372_v33  ;;  %328 = vst.msk [vmem:[#allocation2 + $0x50] sm:$0xff] %vm201_vm0, %v12322_v30  ;;  %329 = vst.msk [vmem:[#allocation2 + $0x58] sm:$0xff] %vm201_vm0, %v12322_v30 }
 0x109   :  { %v6839_v36 = vpack.i.bf16 %v7378_v35, %v7367_v29  ;;  %v1529_v25 = vpack.c.bf16 %v7378_v35, %v7367_v29  ;;  %900 = vst.msk [vmem:[#allocation2 + $0x60] sm:$0xff] %vm201_vm0, %v12322_v30  ;;  %901 = vst.msk [vmem:[#allocation2 + $0x68] sm:$0xff] %vm201_vm0, %v12322_v30 }
 0x10a   :  { %902 = vst.msk [vmem:[#allocation2 + $0xb0] sm:$0xff] %vm201_vm0, %v12322_v30  ;;  %903 = vst.msk [vmem:[#allocation2 + $0xb8] sm:$0xff] %vm201_vm0, %v12322_v30 }
 0x10b   :  { %6840 = vrot.lane.b32.xlu1 %v6839_v36, %s7207_s2  ;;  %12637 = vst [vmem:[#allocation9_spill] sm:$0xff] %v7473_v32 }
 0x10f   :  { %6845 = vrot.lane.b32.xlu1 %v6844_v37, %s7207_s2  ;;  %v12311_v37 = vunpack.c.h.bf16 %v7451_v28 }
 0x175   :  { %v6831_v40 = vpop.permute.xlu0 %6830 }
 0x176   :  { %v6833_v41 = vunpack.i.h.bf16 %v6831_v40  ;;  %v6832_v42 = vunpack.i.l.bf16 %v6831_v40 }
 0x178   :  { %v1503_v43 = vsel %vm1476_vm2, %v6832_v42, 0.0  ;;  %v1504_v44 = vsel %vm1476_vm2, %v6833_v41, 0.0  ;;  %v1512_v3 = vsel %vm1476_vm2, 0.0, %v6833_v41  ;;  %v1511_v4 = vsel %vm1476_vm2, 0.0, %v6832_v42 }
 0x179   :  { %v6836_v45 = vpop.permute.xlu0 %6835  ;;  %v1519_v46 = vpack.c.bf16 %v1504_v44, %v1503_v43  ;;  %v1523_v5 = vpack.c.bf16 %v1512_v3, %v1511_v4  ;;  %v12310_v41 = vunpack.c.l.bf16 %v7473_v32 }
 0x17a   :  { %v6838_v47 = vunpack.i.h.bf16 %v6836_v45  ;;  %v6837_v48 = vunpack.i.l.bf16 %v6836_v45  ;;  %v12309_v45 = vunpack.c.h.bf16 %v7473_v32 }
 0x17b   :  { %6809 = vmatprep.subr.msk.bf16.mxu1 %vm1531_vm1, %v1519_v46  ;;  %v1545_v49 = vsel %vm1531_vm1, %v1519_v46, 0  ;;  %v1557_v10 = vsel %vm1531_vm1, %v1523_v5, 0 }
 0x17c   :  { %v1506_v50 = vsel %vm1476_vm2, %v6838_v47, 0.0  ;;  %v1505_v51 = vsel %vm1476_vm2, %v6837_v48, 0.0  ;;  %6546 = vmatpush3.bf16.xpose.msra.mxu1 %v1545_v49  ;;  %v1514_v7 = vsel %vm1476_vm2, 0.0, %v6838_v47  ;;  %v1513_v8 = vsel %vm1476_vm2, 0.0, %v6837_v48  ;;  %v7492_v48 = vld [vmem:[%s12290_s5 + $0x18] sm:$0xff]  }
 0x17d   :  { %v1520_v52 = vpack.c.bf16 %v1506_v50, %v1505_v51  ;;  %v6841_v53 = vpop.permute.xlu1 %6840  ;;  %v1524_v9 = vpack.c.bf16 %v1514_v7, %v1513_v8  ;;  %12638 = vst [vmem:[#allocation10_spill] sm:$0xff] %v7492_v48  ;;  %v1640_v7 = vstv %s6234_s1 }
 0x17e   :  { %v6843_v54 = vunpack.i.h.bf16 %v6841_v53  ;;  %v6842_v55 = vunpack.i.l.bf16 %v6841_v53 }
 0x17f   :  { %6810 = vmatprep.subr.msk.bf16.mxu1 %vm1531_vm1, %v1520_v52  ;;  %v1548_v60 = vsel %vm1531_vm1, %v1520_v52, 0  ;;  %v1560_v14 = vsel %vm1531_vm1, %v1524_v9, 0  ;;  %v12306_v52 = vunpack.c.l.bf16 %v7492_v48 }
 0x180   :  { %v1508_v56 = vsel %vm1476_vm2, %v6843_v54, 0.0  ;;  %v1507_v57 = vsel %vm1476_vm2, %v6842_v55, 0.0  ;;  %v1516_v11 = vsel %vm1476_vm2, 0.0, %v6843_v54  ;;  %v1515_v12 = vsel %vm1476_vm2, 0.0, %v6842_v55  ;;  %v7505_v54 = vld [vmem:[%s12290_s5 + $0x10] sm:$0xff]   ;;  %s6235_s5 = sld [smem:[#allocation4 + $0x2]] }
 0x181   :  { %v1521_v58 = vpack.c.bf16 %v1508_v56, %v1507_v57  ;;  %v6846_v59 = vpop.permute.xlu1 %6845  ;;  %v1525_v13 = vpack.c.bf16 %v1516_v11, %v1515_v12  ;;  %12639 = vst [vmem:[#allocation11_spill] sm:$0xff] %v7505_v54  ;;  %v12308_v57 = vunpack.c.l.bf16 %v7505_v54  ;;  %v1645_v11 = vstv %s6236_s30 }
 0x182   :  { %v6848_v61 = vunpack.i.h.bf16 %v6846_v59  ;;  %v6847_v62 = vunpack.i.l.bf16 %v6846_v59  ;;  %v1646_v12 = vstv %s6237_s20 }
 0x183   :  { %v1551_v2 = vsel %vm1531_vm1, %v1521_v58, 0  ;;  %v1563_v19 = vsel %vm1531_vm1, %v1525_v13, 0 }
 0x184   :  { %6548 = vmatpush3.bf16.xpose.msra.mxu1 %v1548_v60  ;;  %v1510_v63 = vsel %vm1476_vm2, %v6848_v61, 0.0  ;;  %v1509_v0 = vsel %vm1476_vm2, %v6847_v62, 0.0  ;;  %v1518_v15 = vsel %vm1476_vm2, 0.0, %v6848_v61  ;;  %v1517_v16 = vsel %vm1476_vm2, 0.0, %v6847_v62  ;;  %v79_v61 = vld [vmem:[%s12634_s22 + $0x48] sm:$0xff]  ;;  %v80_v62 = vld [vmem:[%s12634_s22 + $0x50] sm:$0xff] }
 0x185   :  { %6811 = vmatprep.subr.msk.bf16.mxu1 %vm1531_vm1, %v1521_v58  ;;  %v1522_v1 = vpack.c.bf16 %v1510_v63, %v1509_v0  ;;  %v1526_v18 = vpack.c.bf16 %v1518_v15, %v1517_v16  ;;  %v12305_v58 = vunpack.c.h.bf16 %v7492_v48  ;;  %v12307_v60 = vunpack.c.h.bf16 %v7505_v54  ;;  %v81_v0 = vld [vmem:[%s12634_s22 + $0x58] sm:$0xff] }
 0x186   :  { %v91_v3 = vpack.c.bf16 %v81_v0, %v80_v62  ;;  %v1641_v8 = vstv %s6235_s5 }
 0x187   :  { %v1554_v6 = vsel %vm1531_vm1, %v1522_v1, 0  ;;  %v1566_v20 = vsel %vm1531_vm1, %v1526_v18, 0 }
 0x18c   :  { %6550 = vmatpush3.bf16.xpose.msra.mxu1 %v1551_v2  ;;  %v83_v2 = vld [vmem:[%s12634_s22 + $0x68] sm:$0xff] }
 0x18d   :  { %6812 = vmatprep.subr.msk.bf16.mxu1 %vm1531_vm1, %v1522_v1  ;;  %v82_v1 = vld [vmem:[%s12634_s22 + $0x60] sm:$0xff] }
 0x18e   :  { %v92_v4 = vpack.c.bf16 %v83_v2, %v82_v1 }
 0x194   :  { %6552 = vmatpush3.bf16.xpose.msra.mxu1 %v1554_v6  ;;  %v1636_v6 = vstv %s6233_s6 }
 0x195   :  { %6813 = vmatprep.subr.msk.bf16.mxu1 %vm1531_vm1, %v1523_v5  ;;  %v1635_v5 = vstv %s1633_s19 }
 0x19c   :  { %6554 = vmatpush3.bf16.xpose.msra.mxu1 %v1557_v10  ;;  %v7568_v10 = vsel %vm161_vm3, %v1640_v7, %v1641_v8 }
 0x19d   :  { %6814 = vmatprep.subr.msk.bf16.mxu1 %vm1531_vm1, %v1524_v9  ;;  %v7564_v9 = vsel %vm161_vm3, %v1635_v5, %v1636_v6  ;;  %12641 = vst [vmem:[#allocation13_spill] sm:$0xff] %v7568_v10 }
 0x19e   :  { %12640 = vst [vmem:[#allocation12_spill] sm:$0xff] %v7564_v9 }
 0x1a4   :  { %6556 = vmatpush3.bf16.xpose.msra.mxu1 %v1560_v14 }
 0x1a5   :  { %6815 = vmatprep.subr.msk.bf16.mxu1 %vm1531_vm1, %v1525_v13 }
 0x1ac   :  { %6558 = vmatpush3.bf16.xpose.msra.mxu1 %v1563_v19 }
 0x1ad   :  { %6816 = vmatprep.subr.msk.bf16.mxu1 %vm1531_vm1, %v1526_v18  ;;  %v7574_v18 = vsel %vm161_vm3, %v1645_v11, %v1646_v12 }
 0x1ae   :  { %12642 = vst [vmem:[#allocation14_spill] sm:$0xff] %v7574_v18 }
 0x1b4   :  { %6560 = vmatpush3.bf16.xpose.msra.mxu1 %v1566_v20 }
 0x1bb   :  { %6562 = vmatmul.mubr.msk.bf16.vlgmr.msra.gmra.mrb[0].mxu1 %vm1531_vm1, %v1528_v24 }
 0x1bc   :  { %6565 = vmatprep.mubr.msk.bf16.mxu1 %vm1531_vm1, %v1529_v25 }
 0x1c3   :  { %6566 = vmatmul.mubr.msk.bf16.gmra.mrb[4].mxu1 %vm1531_vm1, %v1530_v27 }
 0x28e   :  { %v6563_v36 = vpop.f32.mrb[0].mxu1 }
 0x28f   :  { %v1602_v40 = vpop.f32.mrb[1].mxu1  ;;  %v1611_v47 = vadd.f32 %v6563_v36, %v12310_v41 }
 0x290   :  { %v1603_v42 = vadd.f32 %v12312_v31, %v1602_v40  ;;  %v6564_v43 = vpop.f32.mrb[2].mxu1 }
 0x291   :  { %v1605_v44 = vpop.f32.mrb[3].mxu1  ;;  %v7496_v49 = vadd.f32 %v6564_v43, %v12309_v45  ;;  %v1666_v24 = vmul.f32 %v7564_v9, %v1611_v47 }
 0x292   :  { %v7482_v46 = vadd.f32 %v12311_v37, %v1605_v44  ;;  %1648 = vrot.lane.b32.xlu0 %v1603_v42, %s7209_s0  ;;  %v1664_v14 = vmul.f32 %v7564_v9, %v1603_v42 }
 0x293   :  { %v1667_v42 = vmul.f32 %v7564_v9, %v7496_v49 }
 0x294   :  { %1650 = vrot.lane.b32.xlu1 %v7482_v46, %s7209_s0 }
 0x296   :  { %v6567_v50 = vpop.f32.mrb[4].mxu1  ;;  %1652 = vrot.lane.b32.xlu0 %v1611_v47, %s7209_s0 }
 0x297   :  { %v1618_v51 = vpop.f32.mrb[5].mxu1  ;;  %v7511_v56 = vadd.f32 %v6567_v50, %v12306_v52  ;;  %v1665_v50 = vmul.f32 %v7564_v9, %v7482_v46 }
 0x298   :  { %v6568_v53 = vpop.f32.mrb[6].mxu1  ;;  %1654 = vrot.lane.b32.xlu1 %v7496_v49, %s7209_s0  ;;  %v7521_v59 = vadd.f32 %v12308_v57, %v1618_v51 }
 0x299   :  { %v1621_v55 = vpop.f32.mrb[7].mxu1  ;;  %v1670_v2 = vmul.f32 %v7564_v9, %v7511_v56 }
 0x29a   :  { %340 = vrot.lane.b32.xlu0 %v7352_v22, %s7209_s0  ;;  %v7527_v22 = vadd.f32 %v6568_v53, %v12305_v58 }
 0x29c   :  { %338 = vrot.lane.b32.xlu1 %v7349_v21, %s7209_s0  ;;  %v7536_v21 = vadd.f32 %v12307_v60, %v1621_v55  ;;  %v1671_v11 = vmul.f32 %v7564_v9, %v7527_v22 }
 0x29e   :  { %1660 = vrot.lane.b32.xlu0 %v7511_v56, %s7209_s0 }
 0x2a0   :  { %342 = vrot.lane.b32.xlu1 %v7362_v26, %s7209_s0  ;;  %v78_v26 = vld [vmem:[%s12634_s22 + $0x40] sm:$0xff] }
 0x2a1   :  { %v90_v63 = vpack.c.bf16 %v79_v61, %v78_v26  ;;  %v12643_v61 = vmov 0 }
 0x2a2   :  { %1656 = vrot.lane.b32.xlu0 %v7521_v59, %s7209_s0  ;;  %v12644_v61 = vsel %vm7598_vm5, 4294967295, %v12643_v61 }
 0x2a3   :  { %6537 = vmatprep.mubr.msk.bf16.mxu0 %vm201_vm0, %v90_v63  ;;  %12645 = vst [vmem:[#allocation15_spill] sm:$0xff] %v12644_v61 }
 0x2a4   :  { %1662 = vrot.lane.b32.xlu1 %v7527_v22, %s7209_s0  ;;  %6538 = vmatmul.mubr.msk.bf16.gmra.mrb[8].mxu0 %vm201_vm0, %v91_v3  ;;  %v84_v22 = vld [vmem:[%s12634_s22 + $0x70] sm:$0xff] }
 0x2a5   :  { %6541 = vmatprep.mubr.msk.bf16.mxu0 %vm201_vm0, %v92_v4 }
 0x2a8   :  { %1658 = vrot.lane.b32.xlu1 %v7536_v21, %s7209_s0 }
 0x304   :  { %v1649_v13 = vpop.permute.xlu0 %1648 }
 0x305   :  { %v1672_v15 = vmul.f32 %v1649_v13, %v7568_v10 }
 0x306   :  { %v1651_v16 = vpop.permute.xlu1 %1650 }
 0x307   :  { %v1680_v19 = vadd.f32 %v1672_v15, %v1664_v14  ;;  %v1673_v36 = vmul.f32 %v1651_v16, %v7568_v10 }
 0x308   :  { %v1653_v20 = vpop.permute.xlu0 %1652 }
 0x309   :  { %v1674_v25 = vmul.f32 %v1653_v20, %v7568_v10  ;;  %v7579_v27 = vadd.f32 %v1680_v19, %v7574_v18  ;;  %v1681_v26 = vadd.f32 %v1673_v36, %v1665_v50  ;;  %v85_v20 = vld [vmem:[%s12634_s22 + $0x78] sm:$0xff] }
 0x30a   :  { %v1655_v40 = vpop.permute.xlu1 %1654  ;;  %v93_v36 = vpack.c.bf16 %v85_v20, %v84_v22 }
 0x30b   :  { %v1682_v43 = vadd.f32 %v1674_v25, %v1666_v24  ;;  %v1675_v44 = vmul.f32 %v1655_v40, %v7568_v10  ;;  %v1698_v47 = vsel %vm161_vm3, %v7579_v27, -1e+30  ;;  %v1722_v63 = vsel %vm161_vm3, -1e+30, %v7579_v27 }
 0x30c   :  { %v341_v51 = vpop.permute.xlu0 %340  ;;  %1706 = vmax.xlane.f32.xlu0 %v1698_v47  ;;  %v7626_v5 = vadd.f32 %v1681_v26, %v7574_v18  ;;  %v1668_v24 = vmul.f32 %v7564_v9, %v7521_v59  ;;  %6542 = vmatmul.mubr.msk.bf16.gmra.mrb[12].mxu0 %vm201_vm0, %v93_v36  ;;  %v1669_v59 = vmul.f32 %v7564_v9, %v7536_v21 }
 0x30d   :  { %v1683_v53 = vadd.f32 %v1675_v44, %v1667_v42  ;;  %363 = vst.msk [vmem:[#allocation2 + $0x18] sm:$0xff] %vm201_vm0, %v341_v51  ;;  %v7593_v55 = vadd.f32 %v1682_v43, %v7574_v18 }
 0x30e   :  { %v339_v49 = vpop.permute.xlu1 %338  ;;  %v1699_v13 = vsel %vm161_vm3, %v7626_v5, -1e+30  ;;  %v1723_v42 = vsel %vm161_vm3, -1e+30, %v7626_v5 }
 0x30f   :  { %362 = vst.msk [vmem:[#allocation2 + $0x10] sm:$0xff] %vm201_vm0, %v339_v49  ;;  %v7603_v46 = vpack.c.bf16 %v341_v51, %v339_v49  ;;  %v1700_v62 = vsel %vm161_vm3, %v7593_v55, -1e+30  ;;  %v7612_v0 = vadd.f32 %v1683_v53, %v7574_v18  ;;  %v1724_v56 = vsel %vm161_vm3, -1e+30, %v7593_v55 }
 0x310   :  { %1710 = vmax.xlane.f32.xlu1 %v1700_v62  ;;  %v1661_v1 = vpop.permute.xlu0 %1660  ;;  %1730 = vmax.xlane.f32.xlu0 %v1722_v63 }
 0x311   :  { %v1678_v3 = vmul.f32 %v1661_v1, %v7568_v10  ;;  %6569 = vmatprep.subr.msk.bf16.mxu0 %vm7598_vm5, %v7603_v46  ;;  %v1701_v7 = vsel %vm161_vm3, %v7612_v0, -1e+30  ;;  %v1725_v16 = vsel %vm161_vm3, -1e+30, %v7612_v0 }
 0x312   :  { %v7620_v4 = vpop.permute.xlu1 %342  ;;  %6570 = vmatpush3.bf16.msk.msra.mxu0 %vm7598_vm5, %v7603_v46 }
 0x313   :  { %v1686_v6 = vadd.f32 %v1678_v3, %v1670_v2  ;;  %364 = vst.msk [vmem:[#allocation2 + $0x20] sm:$0xff] %vm201_vm0, %v7620_v4 }
 0x314   :  { %1734 = vmax.xlane.f32.xlu1 %v1724_v56  ;;  %v1657_v8 = vpop.permute.xlu0 %1656  ;;  %1712 = vmax.xlane.f32.xlu0 %v1701_v7  ;;  %v8178_v60 = vld [vmem:[#allocation2 + $0x18] sm:$0xff] }
 0x315   :  { %v1676_v14 = vmul.f32 %v1657_v8, %v7568_v10  ;;  %v7647_v19 = vadd.f32 %v1686_v6, %v7574_v18 }
 0x316   :  { %v1663_v12 = vpop.permute.xlu1 %1662 }
 0x317   :  { %v1679_v15 = vmul.f32 %v1663_v12, %v7568_v10  ;;  %v1684_v43 = vadd.f32 %v1676_v14, %v1668_v24  ;;  %v1704_v47 = vsel %vm161_vm3, %v7647_v19, -1e+30  ;;  %v1728_v53 = vsel %vm161_vm3, -1e+30, %v7647_v19 }
 0x318   :  { %1708 = vmax.xlane.f32.xlu1 %v1699_v13  ;;  %1736 = vmax.xlane.f32.xlu0 %v1725_v16 }
 0x319   :  { %v1687_v25 = vadd.f32 %v1679_v15, %v1671_v11  ;;  %v7677_v49 = vadd.f32 %v1684_v43, %v7574_v18 }
 0x31a   :  { %v1659_v40 = vpop.permute.xlu1 %1658 }
 0x31b   :  { %v1677_v44 = vmul.f32 %v1659_v40, %v7568_v10  ;;  %v7665_v50 = vadd.f32 %v1687_v25, %v7574_v18  ;;  %v1702_v62 = vsel %vm161_vm3, %v7677_v49, -1e+30  ;;  %v1726_v1 = vsel %vm161_vm3, -1e+30, %v7677_v49 }
 0x31c   :  { %1718 = vmax.xlane.f32.xlu1 %v1704_v47  ;;  %1732 = vmax.xlane.f32.xlu0 %v1723_v42 }
 0x31d   :  { %v1685_v51 = vadd.f32 %v1677_v44, %v1669_v59  ;;  %v1705_v26 = vsel %vm161_vm3, %v7665_v50, -1e+30  ;;  %v1729_v21 = vsel %vm161_vm3, -1e+30, %v7665_v50 }
 0x31f   :  { %v7686_v63 = vadd.f32 %v1685_v51, %v7574_v18 }
 0x320   :  { %1742 = vmax.xlane.f32.xlu1 %v1728_v53  ;;  %1720 = vmax.xlane.f32.xlu0 %v1705_v26 }
 0x321   :  { %v1703_v2 = vsel %vm161_vm3, %v7686_v63, -1e+30  ;;  %v1727_v3 = vsel %vm161_vm3, -1e+30, %v7686_v63 }
 0x324   :  { %1714 = vmax.xlane.f32.xlu1 %v1702_v62  ;;  %1744 = vmax.xlane.f32.xlu0 %v1729_v21 }
 0x328   :  { %1738 = vmax.xlane.f32.xlu1 %v1726_v1  ;;  %1716 = vmax.xlane.f32.xlu0 %v1703_v2 }
 0x32c   :  { %1740 = vmax.xlane.f32.xlu0 %v1727_v3 }
 0x339   :  { %346 = vrot.lane.b32.xlu1 %v7367_v29, %s7209_s0 }
 0x33d   :  { %348 = vrot.lane.b32.xlu1 %v7378_v35, %s7209_s0 }
 0x342   :  { %344 = vrot.lane.b32.xlu0 %v7355_v23, %s7209_s0 }
 0x399   :  { %v1707_v6 = vpop.xlane.xlu0 %1706 }
 0x39d   :  { %v1711_v56 = vpop.xlane.xlu1 %1710  ;;  %v1731_v7 = vpop.xlane.xlu0 %1730 }
 0x39e   :  { %v1746_v12 = vsel %vm161_vm3, %v1707_v6, %v1731_v7 }
 0x39f   :  { %v1754_v29 = vsub.f32 %v7579_v27, %v1746_v12 }
 0x3a1   :  { %v1735_v8 = vpop.xlane.xlu1 %1734  ;;  %v1713_v11 = vpop.xlane.xlu0 %1712  ;;  %v1762_v20 = vmul.f32 1.442695, %v1754_v29 }
 0x3a2   :  { %v1748_v13 = vsel %vm161_vm3, %v1711_v56, %v1735_v8 }
 0x3a3   :  { %v1756_v14 = vsub.f32 %v7593_v55, %v1748_v13 }
 0x3a5   :  { %v1766_v15 = vmul.f32 1.442695, %v1756_v14  ;;  %v1709_v35 = vpop.xlane.xlu1 %1708  ;;  %v1737_v16 = vpop.xlane.xlu0 %1736 }
 0x3a6   :  { %v1749_v23 = vsel %vm161_vm3, %v1713_v11, %v1737_v16 }
 0x3a7   :  { %6901 = vpow2.f32 %v1766_v15  ;;  %v1757_v22 = vsub.f32 %v7612_v0, %v1749_v23  ;;  %v7773_v15 = vpop.f32.mrb[8].mxu0 }
 0x3a9   :  { %v1768_v24 = vmul.f32 1.442695, %v1757_v22  ;;  %v1719_v25 = vpop.xlane.xlu1 %1718  ;;  %v1733_v36 = vpop.xlane.xlu0 %1732 }
 0x3aa   :  { %v1747_v40 = vsel %vm161_vm3, %v1709_v35, %v1733_v36  ;;  %v7775_v35 = vpop.f32.mrb[9].mxu0 }
 0x3ab   :  { %6903 = vpow2.f32 %v1768_v24  ;;  %v1755_v55 = vsub.f32 %v7626_v5, %v1747_v40  ;;  %v7778_v23 = vpop.f32.mrb[10].mxu0 }
 0x3ac   :  { %6905 = vpow2.f32 %v1762_v20  ;;  %v7782_v20 = vpop.f32.mrb[11].mxu0 }
 0x3ad   :  { %v1764_v27 = vmul.f32 1.442695, %v1755_v55  ;;  %v1743_v42 = vpop.xlane.xlu1 %1742  ;;  %v1721_v43 = vpop.xlane.xlu0 %1720 }
 0x3ae   :  { %v1752_v29 = vsel %vm161_vm3, %v1719_v25, %v1743_v42 }
 0x3af   :  { %6907 = vpow2.f32 %v1764_v27  ;;  %v1760_v16 = vsub.f32 %v7647_v19, %v1752_v29 }
 0x3b1   :  { %v7715_v44 = vpop.eup %6901  ;;  %v1715_v47 = vpop.xlane.xlu1 %1714 }
 0x3b2   :  { %v1745_v59 = vpop.xlane.xlu0 %1744  ;;  %v1780_v0 = vsel %vm161_vm3, %v7715_v44, 0.0  ;;  %v1804_v5 = vsel %vm161_vm3, 0.0, %v7715_v44 }
 0x3b3   :  { %1790 = vadd.xlane.f32.xlu1 %v1780_v0  ;;  %v1753_v22 = vsel %vm161_vm3, %v1721_v43, %v1745_v59 }
 0x3b4   :  { %v1761_v24 = vsub.f32 %v7665_v50, %v1753_v22 }
 0x3b5   :  { %v7720_v51 = vpop.eup %6903  ;;  %v1739_v53 = vpop.xlane.xlu1 %1738 }
 0x3b6   :  { %v1717_v26 = vpop.xlane.xlu0 %1716  ;;  %v1781_v62 = vsel %vm161_vm3, %v7720_v51, 0.0  ;;  %v7728_v21 = vpop.eup %6905  ;;  %v1805_v6 = vsel %vm161_vm3, 0.0, %v7720_v51  ;;  %v1776_v25 = vmul.f32 1.442695, %v1761_v24 }
 0x3b7   :  { %1814 = vadd.xlane.f32.xlu1 %v1804_v5  ;;  %1792 = vadd.xlane.f32.xlu0 %v1781_v62  ;;  %v1778_v3 = vsel %vm161_vm3, %v7728_v21, 0.0  ;;  %v1802_v12 = vsel %vm161_vm3, 0.0, %v7728_v21 }
 0x3b9   :  { %v347_v1 = vpop.permute.xlu1 %346  ;;  %v7737_v56 = vpop.eup %6907 }
 0x3ba   :  { %v1741_v2 = vpop.xlane.xlu0 %1740  ;;  %366 = vst.msk [vmem:[#allocation2 + $0x30] sm:$0xff] %vm201_vm0, %v347_v1  ;;  %v1779_v13 = vsel %vm161_vm3, %v7737_v56, 0.0 }
 0x3bb   :  { %1786 = vadd.xlane.f32.xlu1 %v1778_v3  ;;  %1816 = vadd.xlane.f32.xlu0 %v1805_v6  ;;  %v1751_v19 = vsel %vm161_vm3, %v1717_v26, %v1741_v2 }
 0x3bc   :  { %v1759_v55 = vsub.f32 %v7686_v63, %v1751_v19  ;;  %v12646_v19 = vmov 0 }
 0x3bd   :  { %v349_v7 = vpop.permute.xlu1 %348  ;;  %v12647_v19 = vsel %vm7835_vm7, 4294967295, %v12646_v19 }
 0x3be   :  { %v345_v8 = vpop.permute.xlu0 %344  ;;  %367 = vst.msk [vmem:[#allocation2 + $0x38] sm:$0xff] %vm201_vm0, %v349_v7  ;;  %v7750_v14 = vpack.c.bf16 %v349_v7, %v347_v1  ;;  %v1772_v27 = vmul.f32 1.442695, %v1759_v55  ;;  %12648 = vst [vmem:[#allocation16_spill] sm:$0xff] %v12647_v19 }
 0x3bf   :  { %365 = vst.msk [vmem:[#allocation2 + $0x28] sm:$0xff] %vm201_vm0, %v345_v8  ;;  %v7742_v11 = vpack.c.bf16 %v345_v8, %v7620_v4  ;;  %1810 = vadd.xlane.f32.xlu1 %v1802_v12  ;;  %1788 = vadd.xlane.f32.xlu0 %v1779_v13  ;;  %v1803_v4 = vsel %vm161_vm3, 0.0, %v7737_v56 }
 0x3c1   :  { %6571 = vmatprep.subr.msk.bf16.mxu0 %vm7598_vm5, %v7742_v11 }
 0x3c2   :  { %6572 = vmatpush3.bf16.msk.msra.mxu0 %vm7598_vm5, %v7742_v11 }
 0x3c3   :  { %6573 = vmatprep.subr.msk.bf16.mxu0 %vm7598_vm5, %v7750_v14  ;;  %1812 = vadd.xlane.f32.xlu0 %v1803_v4 }
 0x3c6   :  { %6574 = vmatpush3.bf16.msk.msra.mxu0 %vm7598_vm5, %v7750_v14  ;;  %v8209_v31 = vld [vmem:[#allocation2 + $0x28] sm:$0xff] }
 0x3d0   :  { %352 = vrot.lane.b32.xlu1 %v7375_v34, %s7209_s0  ;;  %v1774_v34 = vmul.f32 1.442695, %v1760_v16 }
 0x3d2   :  { %6909 = vpow2.f32 %v1774_v34 }
 0x3d3   :  { %6911 = vpow2.f32 %v1776_v25 }
 0x3d9   :  { %350 = vrot.lane.b32.xlu0 %v7372_v33, %s7209_s0  ;;  %v1750_v33 = vsel %vm161_vm3, %v1715_v47, %v1739_v53 }
 0x3da   :  { %v1758_v36 = vsub.f32 %v7677_v49, %v1750_v33 }
 0x3dc   :  { %v1770_v40 = vmul.f32 1.442695, %v1758_v36  ;;  %v7795_v50 = vpop.eup %6909 }
 0x3dd   :  { %v1784_v49 = vsel %vm161_vm3, %v7795_v50, 0.0  ;;  %v7804_v0 = vpop.eup %6911  ;;  %v1808_v63 = vsel %vm161_vm3, 0.0, %v7795_v50 }
 0x3de   :  { %6913 = vpow2.f32 %v1770_v40  ;;  %v1785_v53 = vsel %vm161_vm3, %v7804_v0, 0.0  ;;  %v1809_v62 = vsel %vm161_vm3, 0.0, %v7804_v0 }
 0x3df   :  { %v7791_v42 = vpop.f32.mrb[12].mxu0  ;;  %6915 = vpow2.f32 %v1772_v27 }
 0x3e0   :  { %v7793_v43 = vpop.f32.mrb[13].mxu0 }
 0x3e1   :  { %v7797_v47 = vpop.f32.mrb[14].mxu0 }
 0x3e2   :  { %v7799_v59 = vpop.f32.mrb[15].mxu0 }
 0x3e8   :  { %v7812_v26 = vpop.eup %6913 }
 0x3e9   :  { %v1782_v5 = vsel %vm161_vm3, %v7812_v26, 0.0  ;;  %v7820_v1 = vpop.eup %6915  ;;  %v1806_v2 = vsel %vm161_vm3, 0.0, %v7812_v26 }
 0x3ea   :  { %v1783_v3 = vsel %vm161_vm3, %v7820_v1, 0.0  ;;  %v1807_v6 = vsel %vm161_vm3, 0.0, %v7820_v1 }
 0x3f4   :  { %1798 = vadd.xlane.f32.xlu1 %v1784_v49 }
 0x3f8   :  { %1822 = vadd.xlane.f32.xlu1 %v1808_v63  ;;  %1800 = vadd.xlane.f32.xlu0 %v1785_v53 }
 0x3fc   :  { %1794 = vadd.xlane.f32.xlu1 %v1782_v5  ;;  %1824 = vadd.xlane.f32.xlu0 %v1809_v62 }
 0x400   :  { %1818 = vadd.xlane.f32.xlu1 %v1806_v2  ;;  %1796 = vadd.xlane.f32.xlu0 %v1783_v3  ;;  %v7857_v2 = vadd.f32 %v7346_v17, %v7775_v35  ;;  %v7861_v3 = vadd.f32 %v7346_v17, %v7782_v20  ;;  %v7879_v20 = vadd.f32 %v7773_v15, %v7346_v17 }
 0x401   :  { %v7899_v15 = vadd.f32 %v7346_v17, %v7799_v59 }
 0x402   :  { %12649 = vst [vmem:[#allocation17_spill] sm:$0xff] %v7857_v2  ;;  %12650 = vst [vmem:[#allocation18_spill] sm:$0xff] %v7861_v3 }
 0x403   :  { %12651 = vst [vmem:[#allocation19_spill] sm:$0xff] %v7879_v20  ;;  %12654 = vst [vmem:[#allocation22_spill] sm:$0xff] %v7899_v15 }
 0x404   :  { %1820 = vadd.xlane.f32.xlu0 %v1807_v6 }
 0x440   :  { %v1791_v7 = vpop.xlane.xlu1 %1790 }
 0x444   :  { %v1815_v8 = vpop.xlane.xlu1 %1814  ;;  %v1793_v12 = vpop.xlane.xlu0 %1792 }
 0x445   :  { %6917 = vrcp.f32 %v1815_v8 }
 0x448   :  { %v1787_v13 = vpop.xlane.xlu1 %1786  ;;  %v1817_v4 = vpop.xlane.xlu0 %1816 }
 0x449   :  { %6919 = vrcp.f32 %v1787_v13 }
 0x44c   :  { %v1811_v29 = vpop.xlane.xlu1 %1810  ;;  %v1789_v16 = vpop.xlane.xlu0 %1788 }
 0x44d   :  { %6921 = vrcp.f32 %v1811_v29 }
 0x44e   :  { %6923 = vrcp.f32 %v1791_v7 }
 0x44f   :  { %6925 = vrcp.f32 %v1817_v4  ;;  %v6918_v33 = vpop.eup %6917 }
 0x450   :  { %6927 = vrcp.f32 %v1789_v16  ;;  %v353_v22 = vpop.permute.xlu1 %352  ;;  %v1813_v34 = vpop.xlane.xlu0 %1812 }
 0x451   :  { %369 = vst.msk [vmem:[#allocation2 + $0x48] sm:$0xff] %vm201_vm0, %v353_v22  ;;  %6929 = vrcp.f32 %v1813_v34 }
 0x452   :  { %6931 = vrcp.f32 %v1793_v12 }
 0x453   :  { %v6920_v36 = vpop.eup %6919 }
 0x454   :  { %v351_v24 = vpop.permute.xlu0 %350 }
 0x455   :  { %368 = vst.msk [vmem:[#allocation2 + $0x40] sm:$0xff] %vm201_vm0, %v351_v24  ;;  %v6254_v25 = vpack.c.bf16 %v353_v22, %v351_v24 }
 0x457   :  { %v6922_v40 = vpop.eup %6921  ;;  %6575 = vmatprep.subr.msk.bf16.mxu0 %vm7598_vm5, %v6254_v25 }
 0x458   :  { %v6924_v55 = vpop.eup %6923  ;;  %6576 = vmatpush3.bf16.msk.msra.mxu0 %vm7598_vm5, %v6254_v25  ;;  %v1842_v27 = vsel %vm161_vm3, %v6920_v36, %v6922_v40 }
 0x459   :  { %v6926_v49 = vpop.eup %6925  ;;  %6577 = vmatprep.subr.msk.bf16.mxu0 %vm7835_vm7, %v7603_v46  ;;  %v7849_v63 = vmul.f32 %v7728_v21, %v1842_v27  ;;  %v1844_v5 = vsel %vm161_vm3, %v6924_v55, %v6918_v33 }
 0x45a   :  { %v6928_v53 = vpop.eup %6927  ;;  %v7872_v7 = vmul.f32 %v7715_v44, %v1844_v5  ;;  %v6849_v44 = vpack.i.bf16 %v7861_v3, %v7857_v2 }
 0x45b   :  { %v6930_v62 = vpop.eup %6929  ;;  %1873 = vrot.lane.b32.xlu0 %v7849_v63, %s7209_s0 }
 0x45c   :  { %6578 = vmatpush3.bf16.msk.msra.mxu0 %vm7835_vm7, %v7603_v46  ;;  %v1843_v21 = vsel %vm161_vm3, %v6928_v53, %v6930_v62  ;;  %v6932_v6 = vpop.eup %6931  ;;  %v7883_v46 = vadd.f32 %v7778_v23, %v7346_v17 }
 0x45d   :  { %6579 = vmatprep.subr.msk.bf16.mxu0 %vm7835_vm7, %v7742_v11  ;;  %v7875_v35 = vmul.f32 %v7737_v56, %v1843_v21  ;;  %v1845_v8 = vsel %vm161_vm3, %v6932_v6, %v6926_v49  ;;  %v7895_v56 = vadd.f32 %v7346_v17, %v7793_v43  ;;  %v7917_v43 = vadd.f32 %v7791_v42, %v7346_v17 }
 0x45e   :  { %12652 = vst [vmem:[#allocation20_spill] sm:$0xff] %v7883_v46  ;;  %v7908_v23 = vmul.f32 %v7720_v51, %v1845_v8  ;;  %v6854_v12 = vpack.i.bf16 %v7883_v46, %v7879_v20  ;;  %v1860_v8 = vstv %s6238_s27 }
 0x45f   :  { %1877 = vrot.lane.b32.xlu0 %v7872_v7, %s7209_s0  ;;  %1875 = vrot.lane.b32.xlu1 %v7875_v35, %s7209_s0  ;;  %12653 = vst [vmem:[#allocation21_spill] sm:$0xff] %v7895_v56  ;;  %12655 = vst [vmem:[#allocation23_spill] sm:$0xff] %v7917_v43  ;;  %v6859_v51 = vpack.i.bf16 %v7899_v15, %v7895_v56 }
 0x460   :  { %6580 = vmatpush3.bf16.msk.msra.mxu0 %vm7835_vm7, %v7742_v11  ;;  %v7921_v11 = vadd.f32 %v7797_v47, %v7346_v17 }
 0x461   :  { %6581 = vmatprep.subr.msk.bf16.mxu0 %vm7835_vm7, %v7750_v14 }
 0x462   :  { %12656 = vst [vmem:[#allocation24_spill] sm:$0xff] %v7921_v11  ;;  %v6864_v42 = vpack.i.bf16 %v7921_v11, %v7917_v43 }
 0x463   :  { %1879 = vrot.lane.b32.xlu1 %v7908_v23, %s7209_s0  ;;  %6850 = vrot.lane.b32.xlu0 %v6849_v44, %s7207_s2  ;;  %v1861_v44 = vstv %s6239_s28 }
 0x464   :  { %6582 = vmatpush3.bf16.msk.msra.mxu0 %vm7835_vm7, %v7750_v14 }
 0x465   :  { %6583 = vmatprep.subr.msk.bf16.mxu0 %vm7835_vm7, %v6254_v25 }
 0x467   :  { %6855 = vrot.lane.b32.xlu1 %v6854_v12, %s7207_s2  ;;  %6860 = vrot.lane.b32.xlu0 %v6859_v51, %s7207_s2 }
 0x468   :  { %6584 = vmatpush3.bf16.msk.msra.mxu0 %vm7835_vm7, %v6254_v25 }
 0x46b   :  { %6865 = vrot.lane.b32.xlu1 %v6864_v42, %s7207_s2  ;;  %s6240_s2 = sld [smem:[#allocation4 + $0x7]] }
 0x481   :  { %v1799_v17 = vpop.xlane.xlu1 %1798 }
 0x485   :  { %v1823_v47 = vpop.xlane.xlu1 %1822  ;;  %v1801_v59 = vpop.xlane.xlu0 %1800 }
 0x486   :  { %6933 = vrcp.f32 %v1823_v47  ;;  %v1871_v47 = vstv %s6243_s18 }
 0x489   :  { %v1795_v13 = vpop.xlane.xlu1 %1794  ;;  %v1825_v14 = vpop.xlane.xlu0 %1824 }
 0x48a   :  { %6935 = vrcp.f32 %v1795_v13 }
 0x48d   :  { %v1819_v4 = vpop.xlane.xlu1 %1818  ;;  %v1797_v29 = vpop.xlane.xlu0 %1796 }
 0x48e   :  { %6937 = vrcp.f32 %v1819_v4 }
 0x48f   :  { %6939 = vrcp.f32 %v1799_v17  ;;  %v1870_v17 = vstv %s6242_s29 }
 0x490   :  { %6941 = vrcp.f32 %v1825_v14  ;;  %v6934_v22 = vpop.eup %6933 }
 0x491   :  { %6943 = vrcp.f32 %v1797_v29  ;;  %v1821_v16 = vpop.xlane.xlu0 %1820  ;;  %v7978_v29 = vsel %vm161_vm3, %v1870_v17, %v1871_v47 }
 0x492   :  { %6945 = vrcp.f32 %v1821_v16  ;;  %12659 = vst [vmem:[#allocation27_spill] sm:$0xff] %v7978_v29 }
 0x493   :  { %6947 = vrcp.f32 %v1801_v59 }
 0x494   :  { %v6936_v34 = vpop.eup %6935 }
 0x498   :  { %v6938_v24 = vpop.eup %6937 }
 0x499   :  { %v6940_v33 = vpop.eup %6939  ;;  %v1846_v25 = vsel %vm161_vm3, %v6936_v34, %v6938_v24 }
 0x49a   :  { %v6942_v36 = vpop.eup %6941  ;;  %v7940_v40 = vmul.f32 %v7812_v26, %v1846_v25  ;;  %v1848_v27 = vsel %vm161_vm3, %v6940_v33, %v6934_v22 }
 0x49b   :  { %v6944_v55 = vpop.eup %6943  ;;  %v7949_v62 = vmul.f32 %v7795_v50, %v1848_v27  ;;  %v1865_v50 = vstv %s6240_s2 }
 0x49c   :  { %v6946_v49 = vpop.eup %6945  ;;  %1881 = vrot.lane.b32.xlu0 %v7940_v40, %s7209_s0 }
 0x49d   :  { %v1847_v53 = vsel %vm161_vm3, %v6944_v55, %v6946_v49  ;;  %v6948_v5 = vpop.eup %6947 }
 0x49e   :  { %v7952_v21 = vmul.f32 %v7820_v1, %v1847_v53  ;;  %v1849_v26 = vsel %vm161_vm3, %v6948_v5, %v6942_v36  ;;  %v1866_v1 = vstv %s6241_s26 }
 0x49f   :  { %v7961_v6 = vmul.f32 %v7804_v0, %v1849_v26  ;;  %v7967_v12 = vsel %vm161_vm3, %v1865_v50, %v1866_v1  ;;  %v7971_v0 = vsel %vm161_vm3, %v1860_v8, %v1861_v44 }
 0x4a0   :  { %1885 = vrot.lane.b32.xlu0 %v7949_v62, %s7209_s0  ;;  %1883 = vrot.lane.b32.xlu1 %v7952_v21, %s7209_s0  ;;  %12657 = vst [vmem:[#allocation25_spill] sm:$0xff] %v7967_v12  ;;  %12658 = vst [vmem:[#allocation26_spill] sm:$0xff] %v7971_v0  ;;  %v1889_v59 = vmul.f32 %v7971_v0, %v7849_v63  ;;  %v1890_v16 = vmul.f32 %v7971_v0, %v7875_v35 }
 0x4a1   :  { %v1891_v33 = vmul.f32 %v7971_v0, %v7872_v7  ;;  %v1892_v25 = vmul.f32 %v7971_v0, %v7908_v23 }
 0x4a4   :  { %1887 = vrot.lane.b32.xlu1 %v7961_v6, %s7209_s0 }
 0x4cd   :  { %v1874_v51 = vpop.permute.xlu0 %1873 }
 0x4ce   :  { %v1897_v42 = vmul.f32 %v1874_v51, %v7967_v12 }
 0x4d0   :  { %v1905_v13 = vadd.f32 %v1897_v42, %v1889_v59 }
 0x4d1   :  { %v1876_v14 = vpop.permute.xlu1 %1875  ;;  %v1878_v4 = vpop.permute.xlu0 %1877 }
 0x4d2   :  { %v1898_v22 = vmul.f32 %v1876_v14, %v7967_v12  ;;  %v1899_v34 = vmul.f32 %v1878_v4, %v7967_v12  ;;  %v1913_v63 = vadd.f32 %v1905_v13, %v7978_v29 }
 0x4d4   :  { %v1906_v24 = vadd.f32 %v1898_v22, %v1890_v16  ;;  %v1907_v49 = vadd.f32 %v1899_v34, %v1891_v33 }
 0x4d5   :  { %v1880_v36 = vpop.permute.xlu1 %1879  ;;  %v6851_v55 = vpop.permute.xlu0 %6850 }
 0x4d6   :  { %v1914_v27 = vadd.f32 %v1906_v24, %v7978_v29  ;;  %v1900_v35 = vmul.f32 %v1880_v36, %v7967_v12  ;;  %v6853_v53 = vunpack.i.h.bf16 %v6851_v55  ;;  %v6852_v5 = vunpack.i.l.bf16 %v6851_v55 }
 0x4d7   :  { %v1915_v23 = vadd.f32 %v1907_v49, %v7978_v29 }
 0x4d8   :  { %v1908_v26 = vadd.f32 %v1900_v35, %v1892_v25  ;;  %v2042_v50 = vsel %vm1476_vm2, %v6853_v53, 0.0  ;;  %v1948_v1 = vpack.c.bf16 %v1914_v27, %v1913_v63  ;;  %v2041_v7 = vsel %vm1476_vm2, %v6852_v5, 0.0 }
 0x4d9   :  { %v6856_v8 = vpop.permute.xlu1 %6855  ;;  %v2057_v51 = vpack.c.bf16 %v2042_v50, %v2041_v7  ;;  %v6861_v17 = vpop.permute.xlu0 %6860  ;;  %v2049_v7 = vsel %vm1476_vm2, 0.0, %v6852_v5 }
 0x4da   :  { %v1916_v44 = vadd.f32 %v1908_v26, %v7978_v29  ;;  %6585 = vmatprep.mubr.bf16.mxu0 %v1948_v1  ;;  %v6858_v42 = vunpack.i.h.bf16 %v6856_v8  ;;  %v6857_v47 = vunpack.i.l.bf16 %v6856_v8  ;;  %v6863_v16 = vunpack.i.h.bf16 %v6861_v17 }
 0x4db   :  { %6817 = vmatprep.subr.msk.bf16.mxu0 %vm1531_vm1, %v2057_v51  ;;  %v2082_v14 = vsel %vm1531_vm1, %v2057_v51, 0  ;;  %v6862_v22 = vunpack.i.l.bf16 %v6861_v17  ;;  %v2050_v1 = vsel %vm1476_vm2, 0.0, %v6853_v53 }
 0x4dc   :  { %v1949_v59 = vpack.c.bf16 %v1916_v44, %v1915_v23  ;;  %v2044_v13 = vsel %vm1476_vm2, %v6858_v42, 0.0  ;;  %v2043_v4 = vsel %vm1476_vm2, %v6857_v47, 0.0  ;;  %v2046_v24 = vsel %vm1476_vm2, %v6863_v16, 0.0 }
 0x4dd   :  { %v2058_v34 = vpack.c.bf16 %v2044_v13, %v2043_v4  ;;  %v2045_v33 = vsel %vm1476_vm2, %v6862_v22, 0.0  ;;  %v6866_v63 = vpop.permute.xlu1 %6865  ;;  %v2061_v23 = vpack.c.bf16 %v2050_v1, %v2049_v7  ;;  %v2052_v44 = vsel %vm1476_vm2, 0.0, %v6858_v42 }
 0x4de   :  { %6586 = vmatmul.mubr.bf16.vlgmr.msra.gmra.mrb[16].mxu0 %v1949_v59  ;;  %v2059_v36 = vpack.c.bf16 %v2046_v24, %v2045_v33  ;;  %v6868_v55 = vunpack.i.h.bf16 %v6866_v63  ;;  %v6867_v27 = vunpack.i.l.bf16 %v6866_v63  ;;  %v2051_v51 = vsel %vm1476_vm2, 0.0, %v6857_v47 }
 0x4df   :  { %6594 = vmatpush3.bf16.xpose.msra.mxu0 %v2082_v14  ;;  %v2085_v25 = vsel %vm1531_vm1, %v2058_v34, 0  ;;  %v2062_v17 = vpack.c.bf16 %v2052_v44, %v2051_v51  ;;  %v2094_v59 = vsel %vm1531_vm1, %v2061_v23, 0  ;;  %v2054_v53 = vsel %vm1476_vm2, 0.0, %v6863_v16 }
 0x4e0   :  { %6818 = vmatprep.subr.msk.bf16.mxu0 %vm1531_vm1, %v2058_v34  ;;  %v2048_v49 = vsel %vm1476_vm2, %v6868_v55, 0.0  ;;  %v2047_v35 = vsel %vm1476_vm2, %v6867_v27, 0.0  ;;  %v2088_v50 = vsel %vm1531_vm1, %v2059_v36, 0  ;;  %v2053_v5 = vsel %vm1476_vm2, 0.0, %v6862_v22 }
 0x4e1   :  { %v2060_v26 = vpack.c.bf16 %v2048_v49, %v2047_v35  ;;  %v2063_v13 = vpack.c.bf16 %v2054_v53, %v2053_v5  ;;  %v2097_v14 = vsel %vm1531_vm1, %v2062_v17, 0  ;;  %v2056_v42 = vsel %vm1476_vm2, 0.0, %v6868_v55 }
 0x4e2   :  { %v2055_v47 = vsel %vm1476_vm2, 0.0, %v6867_v27  ;;  %v1893_v22 = vmul.f32 %v7971_v0, %v7940_v40  ;;  %v1895_v35 = vmul.f32 %v7971_v0, %v7949_v62  ;;  %v2067_v53 = vpack.c.bf16 %v7899_v15, %v7895_v56 }
 0x4e3   :  { %v2091_v8 = vsel %vm1531_vm1, %v2060_v26, 0  ;;  %v2064_v4 = vpack.c.bf16 %v2056_v42, %v2055_v47  ;;  %v2100_v24 = vsel %vm1531_vm1, %v2063_v13, 0  ;;  %v2068_v5 = vpack.c.bf16 %v7921_v11, %v7917_v43 }
 0x4e4   :  { %vm518_vm2 = vcmask 1040384  }
 0x4e5   :  { %v2103_v40 = vsel %vm1531_vm1, %v2064_v4, 0 }
 0x4e7   :  { %6596 = vmatpush3.bf16.xpose.msra.mxu0 %v2085_v25 }
 0x4e8   :  { %6819 = vmatprep.subr.msk.bf16.mxu0 %vm1531_vm1, %v2059_v36  ;;  %v1894_v36 = vmul.f32 %v7971_v0, %v7952_v21 }
 0x4ef   :  { %6598 = vmatpush3.bf16.xpose.msra.mxu0 %v2088_v50 }
 0x4f0   :  { %6820 = vmatprep.subr.msk.bf16.mxu0 %vm1531_vm1, %v2060_v26  ;;  %v1896_v26 = vmul.f32 %v7971_v0, %v7961_v6  ;;  %v2065_v6 = vpack.c.bf16 %v7861_v3, %v7857_v2 }
 0x4f7   :  { %6600 = vmatpush3.bf16.xpose.msra.mxu0 %v2091_v8 }
 0x4f8   :  { %6821 = vmatprep.subr.msk.bf16.mxu0 %vm1531_vm1, %v2061_v23 }
 0x4ff   :  { %6602 = vmatpush3.bf16.xpose.msra.mxu0 %v2094_v59  ;;  %v2066_v59 = vpack.c.bf16 %v7883_v46, %v7879_v20 }
 0x500   :  { %6822 = vmatprep.subr.msk.bf16.mxu0 %vm1531_vm1, %v2062_v17 }
 0x507   :  { %6604 = vmatpush3.bf16.xpose.msra.mxu0 %v2097_v14 }
 0x508   :  { %6823 = vmatprep.subr.msk.bf16.mxu0 %vm1531_vm1, %v2063_v13  ;;  %v8070_v13 = vshrl.u32 %v94_v38, 7 }
 0x50a   :  { %v96_v14 = vadd.s32 8, %v8070_v13  ;;  %v97_v42 = vadd.s32 16, %v8070_v13  ;;  %v103_v47 = vand.u32 7, %v8070_v13  ;;  %v8085_v38 = vsub.s32 1, %v8070_v13 }
 0x50c   :  { %12661 = vst [vmem:[#allocation29_spill] sm:$0xff] %v8085_v38  ;;  %vm135_vm8 = vcmp.le.s32.totalorder %v103_v47, 6  ;;  %vm111_vm9 = vcmp.ge.s32.totalorder %v103_v47, 1 }
 0x50e   :  { %v1882_v34 = vpop.permute.xlu0 %1881 }
 0x50f   :  { %v1901_v16 = vmul.f32 %v1882_v34, %v7967_v12  ;;  %6606 = vmatpush3.bf16.xpose.msra.mxu0 %v2100_v24  ;;  %v104_v34 = vand.u32 7, %v96_v14  ;;  %v105_v24 = vand.u32 7, %v97_v42 }
 0x510   :  { %6824 = vmatprep.subr.msk.bf16.mxu0 %vm1531_vm1, %v2064_v4  ;;  %v98_v4 = vadd.s32 24, %v8070_v13 }
 0x511   :  { %v1909_v25 = vadd.f32 %v1901_v16, %v1893_v22  ;;  %v8077_v16 = vsub.s32 0, %v8070_v13  ;;  %v8082_v22 = vld [vmem:[%s12288_s3] sm:$0xff]  ;;  %vm112_vm10 = vcmp.ge.s32.totalorder %v104_v34, 1  ;;  %vm113_vm11 = vcmp.ge.s32.totalorder %v105_v24, 1 }
 0x512   :  { %v1884_v33 = vpop.permute.xlu1 %1883  ;;  %v1886_v63 = vpop.permute.xlu0 %1885  ;;  %vm8103_vm12 = vcmp.le.s32.totalorder %v104_v34, 6  ;;  %vm137_vm14 = vcmp.le.s32.totalorder %v105_v24, 6 }
 0x513   :  { %v1902_v55 = vmul.f32 %v1884_v33, %v7967_v12  ;;  %v1903_v27 = vmul.f32 %v1886_v63, %v7967_v12  ;;  %v1917_v1 = vadd.f32 %v1909_v25, %v7978_v29  ;;  %12660 = vst [vmem:[#allocation28_spill] sm:$0xff] %v8077_v16  ;;  %v8088_v33 = vsub.s32 2, %v8070_v13 }
 0x514   :  { %v106_v63 = vand.u32 7, %v98_v4  ;;  %v8092_v25 = vrot.slane %v8082_v22, %v8077_v16 }
 0x515   :  { %v1910_v49 = vadd.f32 %v1902_v55, %v1894_v36  ;;  %v1911_v8 = vadd.f32 %v1903_v27, %v1895_v35  ;;  %12662 = vst [vmem:[#allocation30_spill] sm:$0xff] %v8088_v33  ;;  %v6206_v36 = vsel %vm135_vm8, 1.0, %v12322_v30  ;;  %v8097_v55 = vrot.slane %v8082_v22, %v8085_v38 }
 0x516   :  { %v1888_v50 = vpop.permute.xlu1 %1887  ;;  %v8101_v27 = vrot.slane %v8082_v22, %v8088_v33  ;;  %vm114_vm13 = vcmp.ge.s32.totalorder %v106_v63, 1  ;;  %vm138_vm15 = vcmp.le.s32.totalorder %v106_v63, 6  ;;  %vm561_vm8 = vcmask 1045504  }
 0x517   :  { %v1918_v7 = vadd.f32 %v1910_v49, %v7978_v29  ;;  %v1904_v21 = vmul.f32 %v1888_v50, %v7967_v12  ;;  %6608 = vmatpush3.bf16.xpose.msra.mxu0 %v2103_v40  ;;  %v1919_v51 = vadd.f32 %v1911_v8, %v7978_v29  ;;  %v370_v49 = vld [vmem:[#allocation2] sm:$0xff]  ;;  %v371_v50 = vld [vmem:[#allocation2 + $0x8] sm:$0xff]  ;;  %v8109_v40 = vsel %vm112_vm10, 1.0, %v12322_v30 }
 0x518   :  { %v8115_v8 = vsub.s32 3, %v8070_v13  ;;  %v8235_v38 = vmul.f32 %v8097_v55, %v8209_v31  ;;  %v505_v16 = vmul.f32 %v8101_v27, %v8209_v31 }
 0x519   :  { %v1912_v23 = vadd.f32 %v1904_v21, %v1896_v26  ;;  %v1950_v44 = vpack.c.bf16 %v1918_v7, %v1917_v1  ;;  %v6198_v26 = vsel %vm111_vm9, 1.0, %v12322_v30  ;;  %v6200_v1 = vsel %vm113_vm11, 1.0, %v12322_v30 }
 0x51a   :  { %v8112_v7 = vrot.slane %v6206_v36, 7  ;;  %12666 = vst [vmem:[#allocation32_spill] sm:$0xff] %v8115_v8  ;;  %v384_v21 = vmul.f32 %v8092_v25, %v370_v49  ;;  %v405_v14 = vrot.slane %v6200_v1, 1  ;;  %v8138_v42 = vrot.slane %v8082_v22, %v8115_v8 }
 0x51b   :  { %v1920_v62 = vadd.f32 %v1912_v23, %v7978_v29  ;;  %6589 = vmatprep.mubr.bf16.mxu0 %v1950_v44  ;;  %v8118_v23 = vrot.slane %v6198_v26, 1  ;;  %v8121_v44 = vmul.f32 %v8097_v55, %v371_v50  ;;  %v8148_v26 = vsub.s32 4, %v8070_v13 }
 0x51c   :  { %12665 = vst [vmem:[#allocation31_spill] sm:$0xff] %v8112_v7  ;;  %v8154_v1 = vsub.s32 6, %v8070_v13  ;;  %v387_v29 = vmul.f32 %v8092_v25, %v8178_v60  ;;  %v604_v19 = vmul.f32 %v8138_v42, %v8178_v60 }
 0x51d   :  { %v1951_v17 = vpack.c.bf16 %v1920_v62, %v1919_v51  ;;  %12667 = vst [vmem:[#allocation33_spill] sm:$0xff] %v8118_v23  ;;  %v501_v51 = vmul.f32 %v8101_v27, %v371_v50  ;;  %v99_v62 = vadd.s32 32, %v8070_v13  ;;  %v426_v47 = vmul.f32 %v8118_v23, %v384_v21  ;;  %12668 = vst [vmem:[#allocation34_spill] sm:$0xff] %v8148_v26 }
 0x51e   :  { %v12313_v4 = vrot.slane %v8121_v44, 1  ;;  %12670 = vst [vmem:[#allocation36_spill] sm:$0xff] %v8154_v1  ;;  %v8157_v21 = vsub.s32 7, %v8070_v13  ;;  %v8195_v45 = vrot.slane %v8082_v22, %v8154_v1  ;;  %v12683_v15 = vrot.slane %v8121_v44, 1 }
 0x51f   :  { %6590 = vmatmul.mubr.bf16.gmra.mrb[20].mxu0 %v1951_v17  ;;  %v8126_v17 = vsel %vm114_vm13, 1.0, %v12322_v30  ;;  %v8143_v34 = vmul.f32 %v8112_v7, %v501_v51  ;;  %v107_v24 = vand.u32 7, %v99_v62  ;;  %v602_v51 = vmul.f32 %v8138_v42, %v371_v50  ;;  %v8160_v62 = vld [vmem:[#allocation2 + $0x10] sm:$0xff] }
 0x520   :  { %6609 = vmatprep.mubr.msk.bf16.mxu0 %vm1531_vm1, %v2065_v6  ;;  %v6207_v6 = vsel %vm8103_vm12, 1.0, %v12322_v30  ;;  %v407_v63 = vrot.slane %v8126_v17, 1  ;;  %12671 = vst [vmem:[#allocation37_spill] sm:$0xff] %v8157_v21  ;;  %v488_v17 = vadd.f32 %v12313_v4, %v426_v47  ;;  %v8180_v47 = vld [vmem:[#allocation2 + $0x20] sm:$0xff]  ;;  %v8201_v41 = vrot.slane %v8082_v22, %v8157_v21 }
 0x521   :  { %v520_v36 = vrot.slane %v6207_v6, 7  ;;  %vm115_vm4 = vcmp.ge.s32.totalorder %v107_v24, 1  ;;  %vm139_vm6 = vcmp.le.s32.totalorder %v107_v24, 6  ;;  %v8187_v24 = vrot.slane %v8082_v22, %v8148_v26 }
 0x522   :  { %v8207_v37 = vsel %vm139_vm6, 1.0, %v12322_v30  ;;  %v502_v4 = vmul.f32 %v8101_v27, %v8160_v62  ;;  %v385_v6 = vmul.f32 %v8092_v25, %v371_v50  ;;  %v12677_v26 = vrot.slane %v8143_v34, 2 }
 0x523   :  { %v8173_v58 = vsel %vm518_vm2, %v8112_v7, %v520_v36  ;;  %v611_v8 = vmul.f32 %v602_v51, %v8118_v23  ;;  %v451_v21 = vmul.f32 %v8097_v55, %v8180_v47  ;;  %v504_v50 = vmul.f32 %v8101_v27, %v8180_v47 }
 0x524   :  { %12674 = vst [vmem:[#allocation40_spill] sm:$0xff] %v8173_v58  ;;  %v588_v1 = vadd.f32 %v12677_v26, %v488_v17  ;;  %v544_v0 = vmul.f32 %v8173_v58, %v502_v4  ;;  %v12681_v4 = vrot.slane %v8207_v37, 7  ;;  %v635_v46 = vmul.f32 %v8187_v24, %v8180_v47 }
 0x525   :  { %v469_v12 = vrot.slane %v451_v21, 1  ;;  %v12685_v2 = vrot.slane %v8143_v34, 2  ;;  %v8312_v34 = vld [vmem:[#allocation2 + $0x30] sm:$0xff]  ;;  %v8319_v9 = vmul.f32 %v8201_v41, %v8180_v47 }
 0x526   :  { %v8243_v51 = vadd.f32 %v611_v8, %v588_v1 }
 0x527   :  { %6610 = vmatmul.mubr.msk.bf16.vlgmr.msra.gmra.mrb[24].mxu0 %vm1531_vm1, %v2066_v59  ;;  %v6208_v59 = vsel %vm137_vm14, 1.0, %v12322_v30 }
 0x528   :  { %6613 = vmatprep.mubr.msk.bf16.mxu0 %vm1531_vm1, %v2067_v53  ;;  %v403_v53 = vrot.slane %v8109_v40, 1  ;;  %v522_v49 = vrot.slane %v6208_v59, 7  ;;  %v8151_v40 = vsub.s32 5, %v8070_v13 }
 0x52a   :  { %12669 = vst [vmem:[#allocation35_spill] sm:$0xff] %v8151_v40  ;;  %v8176_v52 = vsel %vm518_vm2, %v520_v36, %v522_v49  ;;  %v449_v36 = vmul.f32 %v8097_v55, %v8160_v62 }
 0x52b   :  { %12675 = vst [vmem:[#allocation41_spill] sm:$0xff] %v8176_v52 }
 0x52c   :  { %v465_v17 = vrot.slane %v449_v36, 1 }
 0x52f   :  { %6614 = vmatmul.mubr.msk.bf16.gmra.mrb[28].mxu0 %vm1531_vm1, %v2068_v5  ;;  %v8134_v5 = vsel %vm138_vm15, 1.0, %v12322_v30  ;;  %vm401_vm1 = vcmask 1046528  }
 0x530   :  { %v524_v35 = vrot.slane %v8134_v5, 7  ;;  %v8166_v59 = vsel %vm401_vm1, %v403_v53, %v405_v14  ;;  %v8169_v5 = vsel %vm401_vm1, %v405_v14, %v407_v63  ;;  %v8191_v14 = vrot.slane %v8082_v22, %v8151_v40 }
 0x531   :  { %12672 = vst [vmem:[#allocation38_spill] sm:$0xff] %v8166_v59  ;;  %12673 = vst [vmem:[#allocation39_spill] sm:$0xff] %v8169_v5  ;;  %v450_v22 = vmul.f32 %v8097_v55, %v8178_v60  ;;  %v386_v40 = vmul.f32 %v8092_v25, %v8160_v62  ;;  %v8231_v33 = vsel %vm401_vm1, %v8118_v23, %v403_v53 }
 0x532   :  { %v8183_v57 = vsel %vm518_vm2, %v522_v49, %v524_v35  ;;  %v8204_v49 = vsel %vm115_vm4, 1.0, %v12322_v30  ;;  %v503_v30 = vmul.f32 %v8101_v27, %v8178_v60  ;;  %12678 = vst [vmem:[#allocation43_spill] sm:$0xff] %v8231_v33  ;;  %v427_v26 = vmul.f32 %v8231_v33, %v385_v6 }
 0x533   :  { %12676 = vst [vmem:[#allocation42_spill] sm:$0xff] %v8183_v57  ;;  %v467_v36 = vrot.slane %v450_v22, 1  ;;  %v428_v61 = vmul.f32 %v8166_v59, %v386_v40  ;;  %v546_v43 = vmul.f32 %v8183_v57, %v504_v50  ;;  %v12679_v11 = vrot.slane %v8204_v49, 1 }
 0x534   :  { %v545_v53 = vmul.f32 %v8176_v52, %v503_v30  ;;  %v8258_v8 = vsel %vm518_vm2, %v524_v35, %v12681_v4  ;;  %v8263_v30 = vmul.f32 %v8187_v24, %v8178_v60  ;;  %v429_v6 = vmul.f32 %v8169_v5, %v387_v29 }
 0x535   :  { %v8253_v56 = vsel %vm401_vm1, %v407_v63, %v12679_v11  ;;  %12682 = vst [vmem:[#allocation45_spill] sm:$0xff] %v8258_v8  ;;  %v468_v1 = vsel %vm401_vm1, %v465_v17, %v467_v36  ;;  %v8267_v21 = vmul.f32 %v8258_v8, %v505_v16  ;;  %v563_v11 = vrot.slane %v544_v0, 2 }
 0x536   :  { %12680 = vst [vmem:[#allocation44_spill] sm:$0xff] %v8253_v56  ;;  %v687_v63 = vmul.f32 %v8191_v14, %v8178_v60  ;;  %v388_v35 = vmul.f32 %v8092_v25, %v8180_v47  ;;  %v470_v22 = vsel %vm401_vm1, %v467_v36, %v469_v12  ;;  %v565_v50 = vrot.slane %v545_v53, 2 }
 0x537   :  { %v613_v4 = vmul.f32 %v604_v19, %v8166_v59  ;;  %v466_v40 = vsel %vm401_vm1, %v12683_v15, %v465_v17  ;;  %v490_v16 = vadd.f32 %v468_v1, %v428_v61  ;;  %v567_v3 = vrot.slane %v546_v43, 2 }
 0x538   :  { %v605_v0 = vmul.f32 %v8138_v42, %v8180_v47  ;;  %v688_v29 = vmul.f32 %v8191_v14, %v8180_v47  ;;  %v650_v36 = vrot.slane %v8263_v30, 1  ;;  %v12684_v53 = vrot.slane %v8235_v38, 1 }
 0x539   :  { %v12358_v44 = vrot.slane %v8267_v21, 2  ;;  %v491_v15 = vadd.f32 %v470_v22, %v429_v6  ;;  %v566_v61 = vsel %vm561_vm8, %v563_v11, %v565_v50  ;;  %v489_v43 = vadd.f32 %v466_v40, %v427_v26 }
 0x53a   :  { %v472_v19 = vsel %vm401_vm1, %v469_v12, %v12684_v53  ;;  %v430_v17 = vmul.f32 %v8253_v56, %v388_v35  ;;  %v636_v1 = vmul.f32 %v8187_v24, %v8209_v31  ;;  %v689_v20 = vmul.f32 %v8191_v14, %v8209_v31 }
 0x53b   :  { %v696_v30 = vmul.f32 %v687_v63, %v8173_v58  ;;  %v564_v12 = vsel %vm561_vm8, %v12685_v2, %v563_v11  ;;  %v568_v53 = vsel %vm561_vm8, %v565_v50, %v567_v3  ;;  %v697_v6 = vmul.f32 %v688_v29, %v8176_v52 }
 0x53c   :  { %v603_v26 = vmul.f32 %v8138_v42, %v8160_v62  ;;  %v492_v40 = vadd.f32 %v472_v19, %v430_v17  ;;  %v614_v35 = vmul.f32 %v605_v0, %v8169_v5  ;;  %v633_v22 = vmul.f32 %v8187_v24, %v8160_v62 }
 0x53d   :  { %v686_v63 = vmul.f32 %v8191_v14, %v8160_v62  ;;  %v570_v2 = vsel %vm561_vm8, %v567_v3, %v12358_v44  ;;  %v590_v11 = vadd.f32 %v566_v61, %v490_v16  ;;  %v652_v50 = vrot.slane %v635_v46, 1  ;;  %v8325_v46 = vld [vmem:[%s12288_s3 + $0x8] ss:$0 sm:$0xff] }
 0x53e   :  { %v589_v29 = vadd.f32 %v564_v12, %v489_v43  ;;  %v606_v19 = vmul.f32 %v8138_v42, %v8209_v31  ;;  %v591_v17 = vadd.f32 %v568_v53, %v491_v15  ;;  %v654_v0 = vrot.slane %v636_v1, 1 }
 0x53f   :  { %v698_v39 = vmul.f32 %v689_v20, %v8183_v57  ;;  %v714_v18 = vrot.slane %v696_v30, 2  ;;  %v716_v10 = vrot.slane %v697_v6, 2  ;;  %v612_v3 = vmul.f32 %v603_v26, %v8231_v33 }
 0x540   :  { %v592_v44 = vadd.f32 %v570_v2, %v492_v40  ;;  %v649_v16 = vrot.slane %v633_v22, 1  ;;  %v695_v15 = vmul.f32 %v686_v63, %v8112_v7  ;;  %v8330_v20 = vmul.f32 %v8187_v24, %v8312_v34 }
 0x541   :  { %v690_v61 = vmul.f32 %v8191_v14, %v8312_v34  ;;  %v622_v43 = vadd.f32 %v613_v4, %v590_v11  ;;  %v838_v1 = vmul.f32 %v8325_v46, %v8180_v47  ;;  %v621_v30 = vadd.f32 %v612_v3, %v589_v29 }
 0x542   :  { %v615_v12 = vmul.f32 %v606_v19, %v8253_v56  ;;  %v653_v53 = vsel %vm401_vm1, %v650_v36, %v652_v50  ;;  %v655_v6 = vsel %vm401_vm1, %v652_v50, %v654_v0  ;;  %v718_v26 = vrot.slane %v698_v39, 2 }
 0x543   :  { %v755_v40 = vmul.f32 %v8195_v45, %v8180_v47  ;;  %v623_v22 = vadd.f32 %v614_v35, %v591_v17  ;;  %v717_v63 = vsel %vm561_vm8, %v714_v18, %v716_v10  ;;  %v801_v2 = vrot.slane %v8319_v9, 1  ;;  %v8359_v17 = vld [vmem:[#allocation2 + $0x38] sm:$0xff] }
 0x544   :  { %v624_v4 = vadd.f32 %v615_v12, %v592_v44  ;;  %v651_v11 = vsel %vm401_vm1, %v649_v16, %v650_v36  ;;  %v713_v48 = vrot.slane %v695_v15, 2  ;;  %v12361_v29 = vrot.slane %v8330_v20, 1 }
 0x545   :  { %v8346_v19 = vmul.f32 %v690_v61, %v8258_v8  ;;  %v675_v3 = vadd.f32 %v653_v53, %v622_v43  ;;  %v676_v50 = vadd.f32 %v655_v6, %v623_v22  ;;  %v8349_v39 = vmul.f32 %v838_v1, %v8173_v58 }
 0x546   :  { %v674_v47 = vadd.f32 %v651_v11, %v621_v30  ;;  %v719_v35 = vsel %vm561_vm8, %v716_v10, %v718_v26  ;;  %v753_v9 = vmul.f32 %v8195_v45, %v8160_v62  ;;  %v754_v36 = vmul.f32 %v8195_v45, %v8178_v60 }
 0x547   :  { %v657_v44 = vsel %vm401_vm1, %v654_v0, %v12361_v29  ;;  %v756_v15 = vmul.f32 %v8195_v45, %v8209_v31  ;;  %v673_v61 = vadd.f32 %v649_v16, %v8243_v51  ;;  %v784_v10 = vmul.f32 %v8201_v41, %v8178_v60 }
 0x548   :  { %v677_v43 = vadd.f32 %v657_v44, %v624_v4  ;;  %v786_v62 = vmul.f32 %v8201_v41, %v8209_v31  ;;  %v839_v1 = vmul.f32 %v8325_v46, %v8209_v31  ;;  %v715_v30 = vsel %vm561_vm8, %v713_v48, %v714_v18 }
 0x549   :  { %v12362_v0 = vrot.slane %v8346_v19, 2  ;;  %v742_v12 = vadd.f32 %v719_v35, %v676_v50  ;;  %v787_v53 = vmul.f32 %v8201_v41, %v8312_v34  ;;  %v740_v6 = vadd.f32 %v715_v30, %v674_v47 }
 0x54a   :  { %v757_v51 = vmul.f32 %v8195_v45, %v8312_v34  ;;  %v840_v16 = vmul.f32 %v8325_v46, %v8312_v34  ;;  %v8383_v18 = vmul.f32 %v8201_v41, %v8359_v17  ;;  %v841_v4 = vmul.f32 %v8325_v46, %v8359_v17 }
 0x54b   :  { %v721_v22 = vsel %vm561_vm8, %v718_v26, %v12362_v0  ;;  %v765_v11 = vmul.f32 %v756_v15, %v8169_v5  ;;  %v763_v50 = vmul.f32 %v754_v36, %v8231_v33  ;;  %v837_v47 = vmul.f32 %v8325_v46, %v8178_v60 }
 0x54c   :  { %v743_v35 = vadd.f32 %v721_v22, %v677_v43  ;;  %v741_v44 = vadd.f32 %v717_v63, %v675_v3  ;;  %v803_v30 = vrot.slane %v786_v62, 1  ;;  %v848_v29 = vmul.f32 %v839_v1, %v8176_v52 }
 0x54d   :  { %v739_v26 = vadd.f32 %v713_v48, %v673_v61  ;;  %v774_v0 = vadd.f32 %v765_v11, %v742_v12  ;;  %v762_v58 = vmul.f32 %v753_v9, %v8118_v23  ;;  %v772_v54 = vadd.f32 %v763_v50, %v740_v6 }
 0x54e   :  { %v766_v32 = vmul.f32 %v757_v51, %v8253_v56  ;;  %v805_v28 = vrot.slane %v787_v53, 1  ;;  %v849_v15 = vmul.f32 %v840_v16, %v8183_v57  ;;  %v12375_v36 = vrot.slane %v8383_v18, 1 }
 0x54f   :  { %v8397_v33 = vmul.f32 %v841_v4, %v8258_v8  ;;  %v764_v60 = vmul.f32 %v755_v40, %v8166_v59  ;;  %v800_v63 = vrot.slane %v784_v10, 1  ;;  %v846_v3 = vmul.f32 %v837_v47, %v8112_v7 }
 0x550   :  { %v775_v48 = vadd.f32 %v766_v32, %v743_v35  ;;  %v804_v61 = vsel %vm401_vm1, %v801_v2, %v803_v30  ;;  %v806_v9 = vsel %vm401_vm1, %v803_v30, %v805_v28  ;;  %v867_v43 = vrot.slane %v848_v29, 2 }
 0x551   :  { %v771_v62 = vadd.f32 %v762_v58, %v739_v26  ;;  %v773_v1 = vadd.f32 %v764_v60, %v741_v44  ;;  %v827_v12 = vadd.f32 %v806_v9, %v774_v0  ;;  %v865_v53 = vrot.slane %v8349_v39, 2 }
 0x552   :  { %v802_v6 = vsel %vm401_vm1, %v800_v63, %v801_v2  ;;  %v869_v51 = vrot.slane %v849_v15, 2  ;;  %v808_v40 = vsel %vm401_vm1, %v805_v28, %v12375_v36  ;;  %v12374_v32 = vrot.slane %v8397_v33, 2 }
 0x553   :  { %v825_v16 = vadd.f32 %v802_v6, %v772_v54  ;;  %v826_v10 = vadd.f32 %v804_v61, %v773_v1  ;;  %v864_v22 = vrot.slane %v846_v3, 2  ;;  %v828_v4 = vadd.f32 %v808_v40, %v775_v48 }
 0x554   :  { %v100_v29 = vadd.s32 40, %v8070_v13  ;;  %v868_v58 = vsel %vm561_vm8, %v865_v53, %v867_v43  ;;  %v870_v0 = vsel %vm561_vm8, %v867_v43, %v869_v51  ;;  %v824_v39 = vadd.f32 %v800_v63, %v771_v62  ;;  %v8425_v43 = vld [vmem:[%s12289_s4] ss:$0 sm:$0xff] }
 0x555   :  { %v101_v2 = vadd.s32 48, %v8070_v13  ;;  %v893_v11 = vadd.f32 %v870_v0, %v827_v12  ;;  %v866_v54 = vsel %vm561_vm8, %v864_v22, %v865_v53  ;;  %v872_v28 = vsel %vm561_vm8, %v869_v51, %v12374_v32 }
 0x556   :  { %v891_v50 = vadd.f32 %v866_v54, %v825_v16  ;;  %v892_v47 = vadd.f32 %v868_v58, %v826_v10  ;;  %v8417_v35 = vadd.f32 %v872_v28, %v828_v4  ;;  %v108_v44 = vand.u32 7, %v100_v29 }
 0x557   :  { %v890_v30 = vadd.f32 %v864_v22, %v824_v39  ;;  %v109_v26 = vand.u32 7, %v101_v2  ;;  %v1384_v15 = vrot.slane %v893_v11, 7  ;;  %v102_v48 = vadd.s32 56, %v8070_v13 }
 0x558   :  { %v1380_v60 = vrot.slane %v891_v50, 7  ;;  %v1382_v3 = vrot.slane %v892_v47, 7  ;;  %v12373_v63 = vrot.slane %v8417_v35, 7  ;;  %vm116_vm9 = vcmp.ge.s32.totalorder %v108_v44, 1 }
 0x559   :  { %v1379_v61 = vrot.slane %v890_v30, 7  ;;  %vm117_vm10 = vcmp.ge.s32.totalorder %v109_v26, 1  ;;  %vm140_vm11 = vcmp.le.s32.totalorder %v108_v44, 6  ;;  %v12686_v1 = vmov 0.0  }
 0x55a   :  { %v1385_v9 = vsel %vm518_vm2, %v1382_v3, %v1384_v15  ;;  %v8429_v12 = vsel %vm116_vm9, 1.0, %v12686_v1  ;;  %v1387_v13 = vsel %vm518_vm2, %v1384_v15, %v12373_v63  ;;  %v110_v53 = vand.u32 7, %v102_v48 }
 0x55b   :  { %v1381_v62 = vsel %vm518_vm2, %v1379_v61, %v1380_v60  ;;  %v8435_v6 = vsel %vm117_vm10, 1.0, %v12686_v1  ;;  %vm141_vm12 = vcmp.le.s32.totalorder %v109_v26, 6  ;;  %v1446_v51 = vadd.f32 %v8425_v43, %v1385_v9 }
 0x55c   :  { %v1383_v16 = vsel %vm518_vm2, %v1380_v60, %v1382_v3  ;;  %v6211_v40 = vsel %vm140_vm11, 1.0, %v12686_v1  ;;  %v1444_v22 = vadd.f32 %v8425_v43, %v1381_v62  ;;  %v411_v4 = vrot.slane %v8429_v12, 1 }
 0x55d   :  { %v1447_v0 = vadd.f32 %v8425_v43, %v1387_v13  ;;  %v6212_v39 = vsel %vm141_vm12, 1.0, %v12686_v1  ;;  %v413_v2 = vrot.slane %v8435_v6, 1  ;;  %v1445_v50 = vadd.f32 %v8425_v43, %v1383_v16 }
 0x55e   :  { %vm118_vm13 = vcmp.ge.s32.totalorder %v110_v53, 1  ;;  %v528_v28 = vrot.slane %v6211_v40, 7  ;;  %v530_v60 = vrot.slane %v6212_v39, 7  ;;  %vm142_vm14 = vcmp.le.s32.totalorder %v110_v53, 6 }
 0x55f   :  { %v6205_v61 = vsel %vm118_vm13, 1.0, %v12686_v1  ;;  %v8465_v9 = vsel %vm401_vm1, %v411_v4, %v413_v2  ;;  %v12688_v6 = vrot.slane %v8207_v37, 7 }
 0x560   :  { %12687 = vst [vmem:[#allocation46_spill] sm:$0xff] %v8465_v9  ;;  %v8481_v39 = vrot.slane %v6205_v61, 1  ;;  %v8484_v53 = vsel %vm518_vm2, %v528_v28, %v530_v60 }
 0x561   :  { %12691 = vst [vmem:[#allocation49_spill] sm:$0xff] %v8484_v53 }
 0x562   :  { %12690 = vst [vmem:[#allocation48_spill] sm:$0xff] %v8481_v39 }
 0x5b1   :  { %v6587_v10 = vpop.f32.mrb[16].mxu0 }
 0x5b2   :  { %v8442_v29 = vadd.f32 %v6587_v10, %v1446_v51  ;;  %v1986_v58 = vpop.f32.mrb[17].mxu0  ;;  %v8473_v51 = vsel %vm518_vm2, %v12688_v6, %v528_v28  ;;  %v454_v10 = vmul.f32 %v8097_v55, %v8359_v17  ;;  %v506_v28 = vmul.f32 %v8101_v27, %v8312_v34 }
 0x5b3   :  { %v8447_v11 = vadd.f32 %v1986_v58, %v1444_v22  ;;  %v6588_v54 = vpop.f32.mrb[18].mxu0  ;;  %12689 = vst [vmem:[#allocation47_spill] sm:$0xff] %v8473_v51  ;;  %v507_v22 = vmul.f32 %v8101_v27, %v8359_v17 }
 0x5b4   :  { %v2553_v47 = vmul.f32 %v8442_v29, %v8442_v29  ;;  %v8452_v44 = vadd.f32 %v6588_v54, %v1447_v0  ;;  %v1989_v30 = vpop.f32.mrb[19].mxu0 }
 0x5b5   :  { %v2551_v26 = vmul.f32 %v8447_v11, %v8447_v11  ;;  %v8456_v15 = vadd.f32 %v1989_v30, %v1445_v50  ;;  %v6213_v50 = vsel %vm142_vm14, 1.0, %v12686_v1  ;;  %v8490_v30 = vld [vmem:[#allocation2 + $0x40] sm:$0xff]  ;;  %v549_v1 = vmul.f32 %v8484_v53, %v507_v22 }
 0x5b6   :  { %v2569_v3 = vmul.f32 %v2553_v47, %v8442_v29  ;;  %v2554_v48 = vmul.f32 %v8452_v44, %v8452_v44  ;;  %v453_v47 = vmul.f32 %v8097_v55, %v8312_v34  ;;  %v508_v32 = vmul.f32 %v8101_v27, %v8490_v30 }
 0x5b7   :  { %v2567_v62 = vmul.f32 %v2551_v26, %v8447_v11  ;;  %v2552_v13 = vmul.f32 %v8456_v15, %v8456_v15  ;;  %v548_v22 = vmul.f32 %v8473_v51, %v506_v28  ;;  %v573_v28 = vrot.slane %v549_v1, 2 }
 0x5b8   :  { %v2585_v16 = vmul.f32 0.044715, %v2569_v3  ;;  %v2570_v40 = vmul.f32 %v2554_v48, %v8452_v44  ;;  %v390_v48 = vmul.f32 %v8092_v25, %v8312_v34  ;;  %v473_v63 = vrot.slane %v453_v47, 1 }
 0x5b9   :  { %v2583_v58 = vmul.f32 0.044715, %v2567_v62  ;;  %v2568_v0 = vmul.f32 %v2552_v13, %v8456_v15  ;;  %v475_v13 = vrot.slane %v454_v10, 1  ;;  %v455_v10 = vmul.f32 %v8097_v55, %v8490_v30 }
 0x5ba   :  { %v2601_v37 = vadd.f32 %v2585_v16, %v8442_v29  ;;  %v2586_v54 = vmul.f32 0.044715, %v2570_v40  ;;  %v8500_v40 = vrot.slane %v6213_v50, 7  ;;  %v8513_v50 = vsel %vm401_vm1, %v413_v2, %v8481_v39 }
 0x5bb   :  { %v2599_v26 = vadd.f32 %v2583_v58, %v8447_v11  ;;  %v2584_v3 = vmul.f32 0.044715, %v2568_v0  ;;  %v389_v58 = vmul.f32 %v8092_v25, %v8209_v31  ;;  %12693 = vst [vmem:[#allocation51_spill] sm:$0xff] %v8513_v50  ;;  %v476_v31 = vsel %vm401_vm1, %v473_v63, %v475_v13 }
 0x5bc   :  { %v2617_v61 = vmul.f32 0.7978846, %v2601_v37  ;;  %v2602_v62 = vadd.f32 %v2586_v54, %v8452_v44  ;;  %12692 = vst [vmem:[#allocation50_spill] sm:$0xff] %v8500_v40  ;;  %v8509_v54 = vld [vmem:[#allocation2 + $0x48] sm:$0xff]  ;;  %v12694_v47 = vrot.slane %v8204_v49, 1  ;;  %v391_v2 = vmul.f32 %v8092_v25, %v8359_v17 }
 0x5bd   :  { %v2615_v6 = vmul.f32 0.7978846, %v2599_v26  ;;  %v2600_v16 = vadd.f32 %v2584_v3, %v8456_v15  ;;  %v8525_v3 = vsel %vm518_vm2, %v530_v60, %v8500_v40  ;;  %v12697_v49 = vrot.slane %v8235_v38, 1 }
 0x5be   :  { %6949 = vtanh.f32 %v2617_v61  ;;  %v2618_v0 = vmul.f32 0.7978846, %v2602_v62  ;;  %v8521_v26 = vsel %vm401_vm1, %v12694_v47, %v411_v4  ;;  %12696 = vst [vmem:[#allocation53_spill] sm:$0xff] %v8525_v3  ;;  %v432_v62 = vmul.f32 %v8465_v9, %v390_v48 }
 0x5bf   :  { %6951 = vtanh.f32 %v2615_v6  ;;  %v2616_v37 = vmul.f32 0.7978846, %v2600_v16  ;;  %12695 = vst [vmem:[#allocation52_spill] sm:$0xff] %v8521_v26  ;;  %v431_v61 = vmul.f32 %v8521_v26, %v389_v58  ;;  %v550_v12 = vmul.f32 %v8525_v3, %v508_v32 }
 0x5c0   :  { %6953 = vtanh.f32 %v2618_v0  ;;  %v474_v4 = vsel %vm401_vm1, %v12697_v49, %v473_v63  ;;  %v477_v6 = vrot.slane %v455_v10, 1  ;;  %v571_v16 = vrot.slane %v548_v22, 2  ;;  %v8547_v10 = vld [vmem:[#allocation2 + $0x50] sm:$0xff] }
 0x5c1   :  { %6955 = vtanh.f32 %v2616_v37  ;;  %v8537_v60 = vmul.f32 %v8187_v24, %v8359_v17  ;;  %v509_v1 = vmul.f32 %v8101_v27, %v8509_v54  ;;  %v494_v58 = vadd.f32 %v476_v31, %v432_v62 }
 0x5c2   :  { %v691_v0 = vmul.f32 %v8191_v14, %v8359_v17  ;;  %v392_v32 = vmul.f32 %v8092_v25, %v8490_v30  ;;  %v574_v38 = vsel %vm561_vm8, %v571_v16, %v573_v28  ;;  %v493_v48 = vadd.f32 %v474_v4, %v431_v61 }
 0x5c3   :  { %v433_v63 = vmul.f32 %v8513_v50, %v391_v2  ;;  %v575_v37 = vrot.slane %v550_v12, 2  ;;  %v12698_v22 = vrot.slane %v8267_v21, 2  ;;  %v478_v31 = vsel %vm401_vm1, %v475_v13, %v477_v6 }
 0x5c4   :  { %v608_v62 = vmul.f32 %v8138_v42, %v8359_v17  ;;  %v658_v49 = vrot.slane %v8537_v60, 1  ;;  %v551_v36 = vmul.f32 %v8500_v40, %v509_v1  ;;  %v594_v61 = vadd.f32 %v574_v38, %v494_v58 }
 0x5c5   :  { %v572_v47 = vsel %vm561_vm8, %v12698_v22, %v571_v16  ;;  %v8558_v2 = vmul.f32 %v691_v0, %v8473_v51  ;;  %v607_v12 = vmul.f32 %v8138_v42, %v8312_v34  ;;  %v434_v21 = vmul.f32 %v8481_v39, %v392_v32 }
 0x5c6   :  { %v609_v13 = vmul.f32 %v8138_v42, %v8490_v30  ;;  %v593_v22 = vadd.f32 %v572_v47, %v493_v48  ;;  %v694_v60 = vmul.f32 %v8191_v14, %v8547_v10  ;;  %v495_v8 = vadd.f32 %v478_v31, %v433_v63 }
 0x5c7   :  { %v576_v58 = vsel %vm561_vm8, %v573_v28, %v575_v37  ;;  %v639_v0 = vmul.f32 %v8187_v24, %v8490_v30  ;;  %v2537_v32 = vmul.f32 0.5, %v8442_v29  ;;  %v577_v23 = vrot.slane %v551_v36, 2 }
 0x5c8   :  { %v6950_v56 = vpop.eup %6949  ;;  %v2535_v48 = vmul.f32 0.5, %v8447_v11  ;;  %v2536_v47 = vmul.f32 0.5, %v8456_v15  ;;  %v496_v59 = vadd.f32 %v477_v6, %v434_v21  ;;  %v692_v31 = vmul.f32 %v8191_v14, %v8490_v30 }
 0x5c9   :  { %v6952_v4 = vpop.eup %6951  ;;  %v2649_v16 = vadd.f32 1.0, %v6950_v56  ;;  %v2538_v56 = vmul.f32 0.5, %v8452_v44  ;;  %v595_v29 = vadd.f32 %v576_v58, %v495_v8  ;;  %v610_v44 = vmul.f32 %v8138_v42, %v8509_v54 }
 0x5ca   :  { %v6954_v1 = vpop.eup %6953  ;;  %v2647_v38 = vadd.f32 1.0, %v6952_v4  ;;  %v578_v4 = vsel %vm561_vm8, %v575_v37, %v577_v23  ;;  %v693_v6 = vmul.f32 %v8191_v14, %v8509_v54  ;;  %v616_v21 = vmul.f32 %v607_v12, %v8521_v26 }
 0x5cb   :  { %v6956_v34 = vpop.eup %6955  ;;  %v2650_v7 = vadd.f32 1.0, %v6954_v1  ;;  %v8574_v63 = vmul.f32 %v2649_v16, %v2537_v32  ;;  %v618_v23 = vmul.f32 %v609_v13, %v8513_v50  ;;  %v722_v8 = vrot.slane %v8558_v2, 2 }
 0x5cc   :  { %v2648_v5 = vadd.f32 1.0, %v6956_v34  ;;  %v8583_v36 = vmul.f32 %v2647_v38, %v2535_v48  ;;  %v596_v37 = vadd.f32 %v578_v4, %v496_v59  ;;  %v660_v16 = vrot.slane %v639_v0, 1 }
 0x5cd   :  { %v8576_v28 = vmul.f32 %v2650_v7, %v2538_v56  ;;  %v640_v7 = vmul.f32 %v8187_v24, %v8509_v54  ;;  %v701_v1 = vmul.f32 %v692_v31, %v8484_v53  ;;  %v625_v58 = vadd.f32 %v616_v21, %v593_v22  ;;  %v748_v31 = vld [vmem:[#allocation2 + $0x58] sm:$0xff] }
 0x5ce   :  { %v8585_v11 = vmul.f32 %v2648_v5, %v2536_v47  ;;  %v617_v38 = vmul.f32 %v608_v62, %v8465_v9  ;;  %v627_v34 = vadd.f32 %v618_v23, %v595_v29  ;;  %v619_v32 = vmul.f32 %v610_v44, %v8481_v39 }
 0x5cf   :  { %v2680_v15 = vpack.c.bf16 %v8576_v28, %v8574_v63  ;;  %v703_v56 = vmul.f32 %v694_v60, %v8500_v40  ;;  %v662_v12 = vrot.slane %v640_v7, 1  ;;  %v702_v13 = vmul.f32 %v693_v6, %v8525_v3  ;;  %v6878_v63 = vld [vmem:[%s12295_s10 + $0x10] ss:$8 sps:$4 sm:$0xff]   ;;  %v6879_v28 = vld [vmem:[%s12295_s10 + $0x20] ss:$8 sps:$4 sm:$0xff]  }
 0x5d0   :  { %v2679_v5 = vpack.c.bf16 %v8585_v11, %v8583_v36  ;;  %v12699_v2 = vrot.slane %v8330_v20, 1  ;;  %v626_v48 = vadd.f32 %v617_v38, %v594_v61  ;;  %v12700_v0 = vrot.slane %v8346_v19, 2  ;;  %v6877_v36 = vld [vmem:[%s12295_s10] ss:$8 sps:$4 sm:$0xff]   ;;  %v6880_v11 = vld [vmem:[%s12295_s10 + $0x30] ss:$8 sps:$4 sm:$0xff]  }
 0x5d1   :  { %v758_v62 = vmul.f32 %v8195_v45, %v8359_v17  ;;  %v628_v22 = vadd.f32 %v619_v32, %v596_v37  ;;  %v661_v4 = vsel %vm401_vm1, %v658_v49, %v660_v16  ;;  %v663_v60 = vsel %vm401_vm1, %v660_v16, %v662_v12  ;;  %6665 = vmatprep.subr.bf16.mxu0 %v6877_v36 }
 0x5d2   :  { %v659_v59 = vsel %vm401_vm1, %v12699_v2, %v658_v49  ;;  %v723_v47 = vsel %vm561_vm8, %v12700_v0, %v722_v8  ;;  %v724_v29 = vrot.slane %v701_v1, 2  ;;  %v680_v7 = vadd.f32 %v663_v60, %v627_v34  ;;  %6666 = vmatpush3.bf16.msra.mxu0 %v6877_v36 }
 0x5d3   :  { %v678_v44 = vadd.f32 %v659_v59, %v625_v58  ;;  %v791_v20 = vmul.f32 %v8201_v41, %v8547_v10  ;;  %v844_v19 = vmul.f32 %v8325_v46, %v8547_v10  ;;  %v728_v61 = vrot.slane %v703_v56, 2  ;;  %6667 = vmatprep.subr.bf16.mxu0 %v6878_v63 }
 0x5d4   :  { %v726_v6 = vrot.slane %v702_v13, 2  ;;  %v760_v17 = vmul.f32 %v8195_v45, %v8509_v54  ;;  %v761_v21 = vmul.f32 %v8195_v45, %v8547_v10  ;;  %v845_v49 = vmul.f32 %v8325_v46, %v748_v31 }
 0x5d5   :  { %v679_v23 = vadd.f32 %v661_v4, %v626_v48  ;;  %v789_v37 = vmul.f32 %v8201_v41, %v8490_v30  ;;  %v842_v16 = vmul.f32 %v8325_v46, %v8490_v30  ;;  %v681_v1 = vadd.f32 %v662_v12, %v628_v22 }
 0x5d6   :  { %v725_v58 = vsel %vm561_vm8, %v722_v8, %v724_v29  ;;  %v727_v38 = vsel %vm561_vm8, %v724_v29, %v726_v6  ;;  %v790_v34 = vmul.f32 %v8201_v41, %v8509_v54  ;;  %v843_v10 = vmul.f32 %v8325_v46, %v8509_v54  ;;  %6668 = vmatpush3.bf16.msra.mxu0 %v6878_v63 }
 0x5d7   :  { %v746_v32 = vadd.f32 %v727_v38, %v680_v7  ;;  %v759_v56 = vmul.f32 %v8195_v45, %v8490_v30  ;;  %v744_v13 = vadd.f32 %v723_v47, %v678_v44  ;;  %v767_v2 = vmul.f32 %v758_v62, %v8521_v26  ;;  %6669 = vmatprep.subr.bf16.mxu0 %v6879_v28 }
 0x5d8   :  { %v769_v59 = vmul.f32 %v760_v17, %v8513_v50  ;;  %v813_v12 = vrot.slane %v791_v20, 1  ;;  %v729_v8 = vsel %vm561_vm8, %v726_v6, %v728_v61  ;;  %v770_v48 = vmul.f32 %v761_v21, %v8481_v39 }
 0x5d9   :  { %v745_v0 = vadd.f32 %v725_v58, %v679_v23  ;;  %v809_v22 = vrot.slane %v789_v37, 1  ;;  %v851_v31 = vmul.f32 %v842_v16, %v8473_v51  ;;  %v747_v4 = vadd.f32 %v729_v8, %v681_v1 }
 0x5da   :  { %v811_v46 = vrot.slane %v790_v34, 1  ;;  %v852_v54 = vmul.f32 %v843_v10, %v8484_v53  ;;  %v853_v30 = vmul.f32 %v844_v19, %v8525_v3  ;;  %v854_v47 = vmul.f32 %v845_v49, %v8500_v40  ;;  %6670 = vmatpush3.bf16.msra.mxu0 %v6879_v28  ;;  %v12737_v28 = vld [vmem:[#allocation31_spill] sm:$0xff] }
 0x5db   :  { %v768_v62 = vmul.f32 %v759_v56, %v8465_v9  ;;  %v778_v60 = vadd.f32 %v769_v59, %v746_v32  ;;  %v776_v29 = vadd.f32 %v767_v2, %v744_v13  ;;  %v873_v7 = vrot.slane %v851_v31, 2  ;;  %6671 = vmatprep.subr.bf16.mxu0 %v6880_v11 }
 0x5dc   :  { %v12701_v20 = vrot.slane %v8383_v18, 1  ;;  %v779_v6 = vadd.f32 %v770_v48, %v747_v4  ;;  %v814_v17 = vsel %vm401_vm1, %v811_v46, %v813_v12  ;;  %v875_v21 = vrot.slane %v852_v54, 2 }
 0x5dd   :  { %v777_v44 = vadd.f32 %v768_v62, %v745_v0  ;;  %v877_v23 = vrot.slane %v853_v30, 2  ;;  %v879_v37 = vrot.slane %v854_v47, 2  ;;  %v831_v16 = vadd.f32 %v814_v17, %v778_v60 }
 0x5de   :  { %v810_v61 = vsel %vm401_vm1, %v12701_v20, %v809_v22  ;;  %v812_v19 = vsel %vm401_vm1, %v809_v22, %v811_v46  ;;  %v12702_v58 = vrot.slane %v8397_v33, 2  ;;  %v832_v34 = vadd.f32 %v813_v12, %v779_v6  ;;  %6672 = vmatpush3.bf16.msra.mxu0 %v6880_v11 }
 0x5df   :  { %v829_v49 = vadd.f32 %v810_v61, %v776_v29  ;;  %v830_v1 = vadd.f32 %v812_v19, %v777_v44  ;;  %v878_v18 = vsel %vm561_vm8, %v875_v21, %v877_v23  ;;  %v880_v10 = vsel %vm561_vm8, %v877_v23, %v879_v37 }
 0x5e0   :  { %v874_v38 = vsel %vm561_vm8, %v12702_v58, %v873_v7  ;;  %v897_v32 = vadd.f32 %v878_v18, %v831_v16  ;;  %v876_v56 = vsel %vm561_vm8, %v873_v7, %v875_v21  ;;  %v898_v59 = vadd.f32 %v880_v10, %v832_v34 }
 0x5e1   :  { %v895_v13 = vadd.f32 %v874_v38, %v829_v49  ;;  %v896_v2 = vadd.f32 %v876_v56, %v830_v1  ;;  %v12703_v33 = vrot.slane %v8417_v35, 7 }
 0x5e2   :  { %v1392_v8 = vrot.slane %v897_v32, 7  ;;  %v1394_v22 = vrot.slane %v898_v59, 7 }
 0x5e3   :  { %v1388_v48 = vrot.slane %v895_v13, 7  ;;  %v1390_v0 = vrot.slane %v896_v2, 7 }
 0x5e4   :  { %v1395_v4 = vsel %vm518_vm2, %v1392_v8, %v1394_v22 }
 0x5e5   :  { %v1393_v31 = vsel %vm518_vm2, %v1390_v0, %v1392_v8  ;;  %v1389_v12 = vsel %vm518_vm2, %v12703_v33, %v1388_v48  ;;  %v1391_v54 = vsel %vm518_vm2, %v1388_v48, %v1390_v0  ;;  %v1451_v29 = vadd.f32 %v8425_v43, %v1395_v4 }
 0x5e6   :  { %v1450_v46 = vadd.f32 %v8425_v43, %v1393_v31  ;;  %v1448_v47 = vadd.f32 %v8425_v43, %v1389_v12  ;;  %v1449_v20 = vadd.f32 %v8425_v43, %v1391_v54  ;;  %v12704_v43 = vld [vmem:[#allocation8_spill] sm:$0xff] }
 0x5e7   :  { %v12705_v2 = vunpack.c.l.bf16 %v12704_v43  ;;  %v12706_v12 = vunpack.c.h.bf16 %v12704_v43 }
 0x5f2   :  { %v6591_v30 = vpop.f32.mrb[20].mxu0 }
 0x5f3   :  { %v2525_v62 = vadd.f32 %v6591_v30, %v1450_v46  ;;  %v2002_v60 = vpop.f32.mrb[21].mxu0  ;;  %v12707_v30 = vld [vmem:[#allocation9_spill] sm:$0xff] }
 0x5f4   :  { %v2523_v44 = vadd.f32 %v2002_v60, %v1448_v47  ;;  %v6592_v7 = vpop.f32.mrb[22].mxu0  ;;  %v12708_v47 = vunpack.c.l.bf16 %v12707_v30 }
 0x5f5   :  { %v2557_v35 = vmul.f32 %v2525_v62, %v2525_v62  ;;  %v2526_v61 = vadd.f32 %v6592_v7, %v1451_v29  ;;  %v2005_v6 = vpop.f32.mrb[23].mxu0  ;;  %v12709_v29 = vunpack.c.h.bf16 %v12707_v30 }
 0x5f6   :  { %v2555_v17 = vmul.f32 %v2523_v44, %v2523_v44  ;;  %v2524_v21 = vadd.f32 %v2005_v6, %v1449_v20  ;;  %v12710_v6 = vld [vmem:[#allocation11_spill] sm:$0xff] }
 0x5f7   :  { %v2573_v23 = vmul.f32 %v2557_v35, %v2525_v62  ;;  %v2558_v37 = vmul.f32 %v2526_v61, %v2526_v61 }
 0x5f8   :  { %v2571_v16 = vmul.f32 %v2555_v17, %v2523_v44  ;;  %v2556_v19 = vmul.f32 %v2524_v21, %v2524_v21  ;;  %v12711_v17 = vunpack.c.l.bf16 %v12710_v6 }
 0x5f9   :  { %v2589_v49 = vmul.f32 0.044715, %v2573_v23  ;;  %v2574_v1 = vmul.f32 %v2558_v37, %v2526_v61 }
 0x5fa   :  { %v2587_v58 = vmul.f32 0.044715, %v2571_v16  ;;  %v2572_v38 = vmul.f32 %v2556_v19, %v2524_v21  ;;  %v6611_v34 = vpop.f32.mrb[24].mxu0  ;;  %v12712_v19 = vunpack.c.h.bf16 %v12710_v6 }
 0x5fb   :  { %v2605_v18 = vadd.f32 %v2589_v49, %v2525_v62  ;;  %v2590_v10 = vmul.f32 0.044715, %v2574_v1  ;;  %v2139_v32 = vpop.f32.mrb[25].mxu0  ;;  %v2148_v60 = vadd.f32 %v6611_v34, %v12708_v47  ;;  %v12713_v1 = vld [vmem:[#allocation10_spill] sm:$0xff] }
 0x5fc   :  { %v2603_v56 = vadd.f32 %v2587_v58, %v2523_v44  ;;  %v2588_v13 = vmul.f32 0.044715, %v2572_v38  ;;  %v2140_v59 = vadd.f32 %v12705_v2, %v2139_v32  ;;  %v6612_v8 = vpop.f32.mrb[26].mxu0  ;;  %v12714_v58 = vunpack.c.l.bf16 %v12713_v1 }
 0x5fd   :  { %v2621_v48 = vmul.f32 0.7978846, %v2605_v18  ;;  %v2606_v0 = vadd.f32 %v2590_v10, %v2526_v61  ;;  %v2142_v22 = vpop.f32.mrb[27].mxu0  ;;  %v2151_v7 = vadd.f32 %v6612_v8, %v12709_v29  ;;  %v12715_v10 = vunpack.c.h.bf16 %v12713_v1  ;;  %v12716_v29 = vld [vmem:[#allocation12_spill] sm:$0xff] }
 0x5fe   :  { %v2619_v31 = vmul.f32 0.7978846, %v2603_v56  ;;  %v2604_v33 = vadd.f32 %v2588_v13, %v2524_v21  ;;  %v2143_v4 = vadd.f32 %v12706_v12, %v2142_v22  ;;  %2170 = vrot.lane.b32.xlu0 %v2140_v59, %s7209_s0  ;;  %v2541_v8 = vmul.f32 0.5, %v2525_v62 }
 0x5ff   :  { %6957 = vtanh.f32 %v2621_v48  ;;  %v2622_v46 = vmul.f32 0.7978846, %v2606_v0  ;;  %v2542_v48 = vmul.f32 0.5, %v2526_v61  ;;  %v2539_v22 = vmul.f32 0.5, %v2523_v44  ;;  %v12717_v44 = vld [vmem:[#allocation13_spill] sm:$0xff] }
 0x600   :  { %6959 = vtanh.f32 %v2619_v31  ;;  %v2620_v54 = vmul.f32 0.7978846, %v2604_v33  ;;  %2172 = vrot.lane.b32.xlu1 %v2143_v4, %s7209_s0  ;;  %v2540_v31 = vmul.f32 0.5, %v2524_v21 }
 0x601   :  { %6961 = vtanh.f32 %v2622_v46 }
 0x602   :  { %6963 = vtanh.f32 %v2620_v54  ;;  %v6615_v20 = vpop.f32.mrb[28].mxu0  ;;  %2174 = vrot.lane.b32.xlu0 %v2148_v60, %s7209_s0 }
 0x603   :  { %v2155_v35 = vpop.f32.mrb[29].mxu0  ;;  %v2164_v38 = vadd.f32 %v6615_v20, %v12714_v58  ;;  %v2186_v20 = vmul.f32 %v2140_v59, %v12716_v29 }
 0x604   :  { %v8677_v23 = vadd.f32 %v12711_v17, %v2155_v35  ;;  %v6616_v37 = vpop.f32.mrb[30].mxu0  ;;  %2176 = vrot.lane.b32.xlu1 %v2151_v7, %s7209_s0 }
 0x605   :  { %v2158_v16 = vpop.f32.mrb[31].mxu0  ;;  %v2167_v32 = vadd.f32 %v6616_v37, %v12715_v10  ;;  %v2188_v37 = vmul.f32 %v2148_v60, %v12716_v29 }
 0x606   :  { %v8682_v49 = vadd.f32 %v12712_v19, %v2158_v16  ;;  %2178 = vrot.lane.b32.xlu0 %v8677_v23, %s7209_s0  ;;  %v12718_v16 = vld [vmem:[#allocation14_spill] sm:$0xff] }
 0x608   :  { %2180 = vrot.lane.b32.xlu1 %v8682_v49, %s7209_s0 }
 0x609   :  { %v6958_v34 = vpop.eup %6957 }
 0x60a   :  { %v6960_v18 = vpop.eup %6959  ;;  %2182 = vrot.lane.b32.xlu0 %v2164_v38, %s7209_s0  ;;  %v2653_v56 = vadd.f32 1.0, %v6958_v34 }
 0x60b   :  { %v6962_v13 = vpop.eup %6961  ;;  %v2651_v43 = vadd.f32 1.0, %v6960_v18  ;;  %v2189_v18 = vmul.f32 %v2151_v7, %v12716_v29 }
 0x60c   :  { %v6964_v2 = vpop.eup %6963  ;;  %2184 = vrot.lane.b32.xlu1 %v2167_v32, %s7209_s0  ;;  %v2654_v0 = vadd.f32 1.0, %v6962_v13  ;;  %v8694_v12 = vmul.f32 %v2653_v56, %v2541_v8 }
 0x60d   :  { %v2652_v33 = vadd.f32 1.0, %v6964_v2  ;;  %v8698_v54 = vmul.f32 %v2651_v43, %v2539_v22  ;;  %v2187_v43 = vmul.f32 %v2143_v4, %v12716_v29 }
 0x60e   :  { %v8696_v46 = vmul.f32 %v2654_v0, %v2542_v48 }
 0x60f   :  { %v8700_v30 = vmul.f32 %v2652_v33, %v2540_v31  ;;  %v2192_v33 = vmul.f32 %v2164_v38, %v12716_v29  ;;  %v2190_v38 = vmul.f32 %v8677_v23, %v12716_v29  ;;  %v2191_v23 = vmul.f32 %v8682_v49, %v12716_v29 }
 0x610   :  { %v2682_v47 = vpack.c.bf16 %v8696_v46, %v8694_v12  ;;  %v6881_v12 = vld [vmem:[%s12295_s10 + $0x4] ss:$8 sps:$4 sm:$0xff]  }
 0x611   :  { %v2681_v62 = vpack.c.bf16 %v8700_v30, %v8698_v54 }
 0x670   :  { %v2171_v61 = vpop.permute.xlu0 %2170 }
 0x671   :  { %v2194_v21 = vmul.f32 %v2171_v61, %v12717_v44 }
 0x672   :  { %v2173_v35 = vpop.permute.xlu1 %2172 }
 0x673   :  { %v2202_v6 = vadd.f32 %v2194_v21, %v2186_v20  ;;  %v2195_v58 = vmul.f32 %v2173_v35, %v12717_v44 }
 0x674   :  { %v2175_v17 = vpop.permute.xlu0 %2174 }
 0x675   :  { %v8710_v19 = vadd.f32 %v2202_v6, %v12718_v16  ;;  %v2196_v1 = vmul.f32 %v2175_v17, %v12717_v44  ;;  %v2203_v48 = vadd.f32 %v2195_v58, %v2187_v43  ;;  %v2193_v58 = vmul.f32 %v2167_v32, %v12716_v29 }
 0x676   :  { %v2177_v34 = vpop.permute.xlu1 %2176 }
 0x677   :  { %v2204_v10 = vadd.f32 %v2196_v1, %v2188_v37  ;;  %v2197_v59 = vmul.f32 %v2177_v34, %v12717_v44  ;;  %v2218_v13 = vsel %vm161_vm3, %v8710_v19, -1e+30  ;;  %v2242_v31 = vsel %vm161_vm3, -1e+30, %v8710_v19 }
 0x678   :  { %v2179_v60 = vpop.permute.xlu0 %2178  ;;  %2226 = vmax.xlane.f32.xlu0 %v2218_v13  ;;  %v8735_v20 = vadd.f32 %v2203_v48, %v12718_v16 }
 0x679   :  { %v8721_v2 = vadd.f32 %v2204_v10, %v12718_v16  ;;  %v2205_v8 = vadd.f32 %v2197_v59, %v2189_v18  ;;  %v2198_v21 = vmul.f32 %v2179_v60, %v12717_v44 }
 0x67a   :  { %v2181_v0 = vpop.permute.xlu1 %2180  ;;  %v2219_v18 = vsel %vm161_vm3, %v8735_v20, -1e+30  ;;  %v2243_v32 = vsel %vm161_vm3, -1e+30, %v8735_v20 }
 0x67b   :  { %v8724_v22 = vadd.f32 %v2205_v8, %v12718_v16  ;;  %v2220_v7 = vsel %vm161_vm3, %v8721_v2, -1e+30  ;;  %v2244_v37 = vsel %vm161_vm3, -1e+30, %v8721_v2  ;;  %v2206_v34 = vadd.f32 %v2198_v21, %v2190_v38 }
 0x67c   :  { %2230 = vmax.xlane.f32.xlu1 %v2220_v7  ;;  %v2183_v4 = vpop.permute.xlu0 %2182  ;;  %2250 = vmax.xlane.f32.xlu0 %v2242_v31  ;;  %v2199_v10 = vmul.f32 %v2181_v0, %v12717_v44 }
 0x67d   :  { %v2200_v61 = vmul.f32 %v2183_v4, %v12717_v44  ;;  %v2221_v1 = vsel %vm161_vm3, %v8724_v22, -1e+30  ;;  %v2245_v43 = vsel %vm161_vm3, -1e+30, %v8724_v22  ;;  %v8764_v60 = vadd.f32 %v2206_v34, %v12718_v16 }
 0x67e   :  { %v2185_v35 = vpop.permute.xlu1 %2184 }
 0x67f   :  { %v2208_v6 = vadd.f32 %v2200_v61, %v2192_v33  ;;  %v2201_v17 = vmul.f32 %v2185_v35, %v12717_v44  ;;  %v2207_v44 = vadd.f32 %v2199_v10, %v2191_v23  ;;  %v2222_v49 = vsel %vm161_vm3, %v8764_v60, -1e+30 }
 0x680   :  { %2254 = vmax.xlane.f32.xlu1 %v2244_v37  ;;  %2232 = vmax.xlane.f32.xlu0 %v2221_v1  ;;  %v2246_v7 = vsel %vm161_vm3, -1e+30, %v8764_v60 }
 0x681   :  { %v8753_v59 = vadd.f32 %v2208_v6, %v12718_v16  ;;  %v2209_v13 = vadd.f32 %v2201_v17, %v2193_v58  ;;  %v8773_v0 = vadd.f32 %v2207_v44, %v12718_v16 }
 0x683   :  { %v8767_v8 = vadd.f32 %v2209_v13, %v12718_v16  ;;  %v2224_v48 = vsel %vm161_vm3, %v8753_v59, -1e+30  ;;  %v2223_v31 = vsel %vm161_vm3, %v8773_v0, -1e+30  ;;  %v2248_v16 = vsel %vm161_vm3, -1e+30, %v8753_v59 }
 0x684   :  { %2228 = vmax.xlane.f32.xlu1 %v2219_v18  ;;  %2256 = vmax.xlane.f32.xlu0 %v2245_v43  ;;  %v2247_v4 = vsel %vm161_vm3, -1e+30, %v8773_v0 }
 0x685   :  { %v2225_v29 = vsel %vm161_vm3, %v8767_v8, -1e+30  ;;  %v2249_v33 = vsel %vm161_vm3, -1e+30, %v8767_v8 }
 0x688   :  { %2238 = vmax.xlane.f32.xlu1 %v2224_v48  ;;  %2252 = vmax.xlane.f32.xlu0 %v2243_v32 }
 0x68c   :  { %2234 = vmax.xlane.f32.xlu1 %v2222_v49  ;;  %2240 = vmax.xlane.f32.xlu0 %v2225_v29 }
 0x690   :  { %2258 = vmax.xlane.f32.xlu1 %v2246_v7  ;;  %2236 = vmax.xlane.f32.xlu0 %v2223_v31 }
 0x694   :  { %2262 = vmax.xlane.f32.xlu1 %v2248_v16  ;;  %2260 = vmax.xlane.f32.xlu0 %v2247_v4 }
 0x698   :  { %2264 = vmax.xlane.f32.xlu0 %v2249_v33 }
 0x705   :  { %v2227_v61 = vpop.xlane.xlu0 %2226 }
 0x709   :  { %v2231_v21 = vpop.xlane.xlu1 %2230  ;;  %v2251_v35 = vpop.xlane.xlu0 %2250 }
 0x70a   :  { %v2266_v37 = vsel %vm161_vm3, %v2227_v61, %v2251_v35 }
 0x70b   :  { %v2274_v58 = vsub.f32 %v8710_v19, %v2266_v37 }
 0x70d   :  { %v2255_v6 = vpop.xlane.xlu1 %2254  ;;  %v2233_v17 = vpop.xlane.xlu0 %2232  ;;  %v2282_v23 = vmul.f32 1.442695, %v2274_v58 }
 0x70e   :  { %v2268_v1 = vsel %vm161_vm3, %v2231_v21, %v2255_v6 }
 0x70f   :  { %v2276_v38 = vsub.f32 %v8721_v2, %v2268_v1 }
 0x711   :  { %v2286_v34 = vmul.f32 1.442695, %v2276_v38  ;;  %v2229_v18 = vpop.xlane.xlu1 %2228  ;;  %v2257_v10 = vpop.xlane.xlu0 %2256 }
 0x712   :  { %v2269_v13 = vsel %vm161_vm3, %v2233_v17, %v2257_v10 }
 0x713   :  { %6965 = vpow2.f32 %v2286_v34  ;;  %v2277_v43 = vsub.f32 %v8724_v22, %v2269_v13 }
 0x715   :  { %v2288_v32 = vmul.f32 1.442695, %v2277_v43  ;;  %v2239_v44 = vpop.xlane.xlu1 %2238  ;;  %v2253_v48 = vpop.xlane.xlu0 %2252 }
 0x716   :  { %v2267_v49 = vsel %vm161_vm3, %v2229_v18, %v2253_v48 }
 0x717   :  { %6967 = vpow2.f32 %v2288_v32  ;;  %v2275_v2 = vsub.f32 %v8735_v20, %v2267_v49 }
 0x718   :  { %6969 = vpow2.f32 %v2282_v23 }
 0x719   :  { %v2284_v19 = vmul.f32 1.442695, %v2275_v2  ;;  %v2235_v29 = vpop.xlane.xlu1 %2234  ;;  %v2241_v7 = vpop.xlane.xlu0 %2240 }
 0x71b   :  { %6971 = vpow2.f32 %v2284_v19 }
 0x71d   :  { %v8808_v31 = vpop.eup %6965  ;;  %v2259_v16 = vpop.xlane.xlu1 %2258 }
 0x71e   :  { %v2237_v4 = vpop.xlane.xlu0 %2236  ;;  %v2270_v22 = vsel %vm161_vm3, %v2235_v29, %v2259_v16  ;;  %v2300_v33 = vsel %vm161_vm3, %v8808_v31, 0.0  ;;  %v2324_v37 = vsel %vm161_vm3, 0.0, %v8808_v31 }
 0x71f   :  { %2310 = vadd.xlane.f32.xlu1 %v2300_v33  ;;  %v2278_v20 = vsub.f32 %v8764_v60, %v2270_v22 }
 0x721   :  { %v8815_v61 = vpop.eup %6967  ;;  %v2263_v21 = vpop.xlane.xlu1 %2262  ;;  %v2290_v58 = vmul.f32 1.442695, %v2278_v20 }
 0x722   :  { %v2261_v35 = vpop.xlane.xlu0 %2260  ;;  %v2272_v6 = vsel %vm161_vm3, %v2239_v44, %v2263_v21  ;;  %v2301_v1 = vsel %vm161_vm3, %v8815_v61, 0.0  ;;  %v8828_v38 = vpop.eup %6969  ;;  %v2325_v23 = vsel %vm161_vm3, 0.0, %v8815_v61 }
 0x723   :  { %v2271_v17 = vsel %vm161_vm3, %v2237_v4, %v2261_v35  ;;  %v2280_v60 = vsub.f32 %v8753_v59, %v2272_v6  ;;  %2334 = vadd.xlane.f32.xlu1 %v2324_v37  ;;  %2312 = vadd.xlane.f32.xlu0 %v2301_v1  ;;  %v2298_v43 = vsel %vm161_vm3, %v8828_v38, 0.0  ;;  %v2322_v48 = vsel %vm161_vm3, 0.0, %v8828_v38  ;;  %v12721_v37 = vld [vmem:[#allocation19_spill] sm:$0xff]  ;;  %v12722_v1 = vld [vmem:[#allocation20_spill] sm:$0xff] }
 0x724   :  { %v2279_v18 = vsub.f32 %v8773_v0, %v2271_v17  ;;  %v12720_v17 = vld [vmem:[#allocation17_spill] sm:$0xff] }
 0x725   :  { %v2294_v34 = vmul.f32 1.442695, %v2280_v60  ;;  %v8840_v32 = vpop.eup %6971  ;;  %v12723_v60 = vld [vmem:[#allocation18_spill] sm:$0xff] }
 0x726   :  { %v2265_v10 = vpop.xlane.xlu0 %2264  ;;  %v2292_v0 = vmul.f32 1.442695, %v2279_v18  ;;  %v2299_v49 = vsel %vm161_vm3, %v8840_v32, 0.0  ;;  %v12726_v18 = vld [vmem:[#allocation24_spill] sm:$0xff] }
 0x727   :  { %v2273_v13 = vsel %vm161_vm3, %v2241_v7, %v2265_v10  ;;  %6973 = vpow2.f32 %v2294_v34  ;;  %2306 = vadd.xlane.f32.xlu1 %v2298_v43  ;;  %2336 = vadd.xlane.f32.xlu0 %v2325_v23  ;;  %v12725_v34 = vld [vmem:[#allocation21_spill] sm:$0xff]  ;;  %v12727_v10 = vld [vmem:[#allocation23_spill] sm:$0xff] }
 0x728   :  { %v2281_v59 = vsub.f32 %v8767_v8, %v2273_v13  ;;  %6975 = vpow2.f32 %v2290_v58  ;;  %v2323_v8 = vsel %vm161_vm3, 0.0, %v8840_v32  ;;  %v12724_v58 = vld [vmem:[#allocation22_spill] sm:$0xff] }
 0x72a   :  { %v2296_v44 = vmul.f32 1.442695, %v2281_v59 }
 0x72b   :  { %2330 = vadd.xlane.f32.xlu1 %v2322_v48  ;;  %2308 = vadd.xlane.f32.xlu0 %v2299_v49 }
 0x72c   :  { %6977 = vpow2.f32 %v2296_v44 }
 0x72d   :  { %6979 = vpow2.f32 %v2292_v0 }
 0x72f   :  { %2332 = vadd.xlane.f32.xlu0 %v2323_v8 }
 0x731   :  { %v8852_v2 = vpop.eup %6973 }
 0x732   :  { %v2304_v19 = vsel %vm161_vm3, %v8852_v2, 0.0  ;;  %v8857_v29 = vpop.eup %6975  ;;  %v2328_v21 = vsel %vm161_vm3, 0.0, %v8852_v2 }
 0x733   :  { %2318 = vadd.xlane.f32.xlu1 %v2304_v19  ;;  %v2302_v16 = vsel %vm161_vm3, %v8857_v29, 0.0  ;;  %v2326_v33 = vsel %vm161_vm3, 0.0, %v8857_v29 }
 0x736   :  { %v8859_v7 = vpop.eup %6977 }
 0x737   :  { %v2305_v4 = vsel %vm161_vm3, %v8859_v7, 0.0  ;;  %v8867_v22 = vpop.eup %6979  ;;  %2314 = vadd.xlane.f32.xlu1 %v2302_v16  ;;  %v2329_v6 = vsel %vm161_vm3, 0.0, %v8859_v7 }
 0x738   :  { %2320 = vadd.xlane.f32.xlu0 %v2305_v4  ;;  %v2303_v20 = vsel %vm161_vm3, %v8867_v22, 0.0  ;;  %v2327_v35 = vsel %vm161_vm3, 0.0, %v8867_v22 }
 0x73b   :  { %2338 = vadd.xlane.f32.xlu1 %v2326_v33 }
 0x73c   :  { %2316 = vadd.xlane.f32.xlu0 %v2303_v20 }
 0x73f   :  { %2342 = vadd.xlane.f32.xlu1 %v2328_v21 }
 0x740   :  { %2340 = vadd.xlane.f32.xlu0 %v2327_v35 }
 0x744   :  { %2344 = vadd.xlane.f32.xlu0 %v2329_v6 }
 0x750   :  { %912 = vrot.lane.b32.xlu1 %v12720_v17, %s7209_s0 }
 0x754   :  { %916 = vrot.lane.b32.xlu1 %v12721_v37, %s7209_s0 }
 0x758   :  { %918 = vrot.lane.b32.xlu1 %v12722_v1, %s7209_s0 }
 0x75a   :  { %914 = vrot.lane.b32.xlu0 %v12723_v60, %s7209_s0 }
 0x75c   :  { %922 = vrot.lane.b32.xlu1 %v12724_v58, %s7209_s0 }
 0x75e   :  { %920 = vrot.lane.b32.xlu0 %v12725_v34, %s7209_s0 }
 0x760   :  { %926 = vrot.lane.b32.xlu1 %v12726_v18, %s7209_s0 }
 0x762   :  { %924 = vrot.lane.b32.xlu0 %v12727_v10, %s7209_s0 }
 0x7ac   :  { %v2311_v13 = vpop.xlane.xlu1 %2310 }
 0x7b0   :  { %v2335_v43 = vpop.xlane.xlu1 %2334  ;;  %v2313_v23 = vpop.xlane.xlu0 %2312 }
 0x7b1   :  { %6981 = vrcp.f32 %v2335_v43 }
 0x7b4   :  { %v2307_v59 = vpop.xlane.xlu1 %2306  ;;  %v2337_v0 = vpop.xlane.xlu0 %2336 }
 0x7b5   :  { %6983 = vrcp.f32 %v2307_v59 }
 0x7b8   :  { %v2331_v44 = vpop.xlane.xlu1 %2330  ;;  %v2309_v48 = vpop.xlane.xlu0 %2308 }
 0x7b9   :  { %6985 = vrcp.f32 %v2331_v44 }
 0x7ba   :  { %6987 = vrcp.f32 %v2311_v13 }
 0x7bb   :  { %6989 = vrcp.f32 %v2337_v0  ;;  %v6982_v19 = vpop.eup %6981 }
 0x7bc   :  { %6991 = vrcp.f32 %v2309_v48  ;;  %v2333_v49 = vpop.xlane.xlu0 %2332 }
 0x7bd   :  { %6993 = vrcp.f32 %v2333_v49 }
 0x7be   :  { %6995 = vrcp.f32 %v2313_v23 }
 0x7bf   :  { %v6984_v16 = vpop.eup %6983 }
 0x7c0   :  { %v2319_v8 = vpop.xlane.xlu1 %2318 }
 0x7c3   :  { %v6986_v4 = vpop.eup %6985 }
 0x7c4   :  { %v6988_v33 = vpop.eup %6987  ;;  %v2315_v20 = vpop.xlane.xlu1 %2314  ;;  %v2362_v35 = vsel %vm161_vm3, %v6984_v16, %v6986_v4 }
 0x7c5   :  { %v2321_v21 = vpop.xlane.xlu0 %2320  ;;  %v6990_v6 = vpop.eup %6989  ;;  %v8903_v17 = vmul.f32 %v8828_v38, %v2362_v35  ;;  %v2364_v1 = vsel %vm161_vm3, %v6988_v33, %v6982_v19  ;;  %6997 = vrcp.f32 %v2315_v20 }
 0x7c6   :  { %v6992_v37 = vpop.eup %6991  ;;  %v8912_v13 = vmul.f32 %v8808_v31, %v2364_v1 }
 0x7c7   :  { %v6994_v60 = vpop.eup %6993  ;;  %2378 = vrot.lane.b32.xlu0 %v8903_v17, %s7209_s0 }
 0x7c8   :  { %v2339_v58 = vpop.xlane.xlu1 %2338  ;;  %v2363_v18 = vsel %vm161_vm3, %v6992_v37, %v6994_v60  ;;  %v6996_v10 = vpop.eup %6995 }
 0x7c9   :  { %v2317_v34 = vpop.xlane.xlu0 %2316  ;;  %6999 = vrcp.f32 %v2339_v58  ;;  %v8915_v38 = vmul.f32 %v8840_v32, %v2363_v18  ;;  %v2365_v43 = vsel %vm161_vm3, %v6996_v10, %v6990_v6 }
 0x7ca   :  { %7001 = vrcp.f32 %v2319_v8  ;;  %v8924_v31 = vmul.f32 %v8815_v61, %v2365_v43 }
 0x7cb   :  { %2382 = vrot.lane.b32.xlu0 %v8912_v13, %s7209_s0  ;;  %2380 = vrot.lane.b32.xlu1 %v8915_v38, %s7209_s0  ;;  %7003 = vrcp.f32 %v2317_v34 }
 0x7cc   :  { %v2343_v23 = vpop.xlane.xlu1 %2342 }
 0x7cd   :  { %v2341_v59 = vpop.xlane.xlu0 %2340  ;;  %7005 = vrcp.f32 %v2343_v23 }
 0x7ce   :  { %7007 = vrcp.f32 %v2341_v59 }
 0x7cf   :  { %2384 = vrot.lane.b32.xlu1 %v8924_v31, %s7209_s0  ;;  %7009 = vrcp.f32 %v2321_v21  ;;  %v6998_v44 = vpop.eup %6997 }
 0x7d0   :  { %v913_v32 = vpop.permute.xlu1 %912 }
 0x7d1   :  { %v2345_v0 = vpop.xlane.xlu0 %2344  ;;  %936 = vst.msk [vmem:[#allocation2 + $0x70] sm:$0xff] %vm201_vm0, %v913_v32 }
 0x7d2   :  { %7011 = vrcp.f32 %v2345_v0  ;;  %v6875_v0 = vld [vmem:[%s12292_s7 + $0x10] sm:$0xff]  }
 0x7d3   :  { %v7000_v48 = vpop.eup %6999 }
 0x7d4   :  { %v917_v49 = vpop.permute.xlu1 %916  ;;  %v2366_v19 = vsel %vm161_vm3, %v6998_v44, %v7000_v48  ;;  %v7002_v16 = vpop.eup %7001  ;;  %v12730_v48 = vld [vmem:[#allocation25_spill] sm:$0xff] }
 0x7d5   :  { %v915_v8 = vpop.permute.xlu0 %914  ;;  %938 = vst.msk [vmem:[#allocation2 + $0x80] sm:$0xff] %vm201_vm0, %v917_v49  ;;  %v8934_v4 = vmul.f32 %v8857_v29, %v2366_v19  ;;  %v7004_v33 = vpop.eup %7003 }
 0x7d6   :  { %937 = vst.msk [vmem:[#allocation2 + $0x78] sm:$0xff] %vm201_vm0, %v915_v8  ;;  %v6281_v61 = vpack.c.bf16 %v915_v8, %v913_v32  ;;  %v12731_v8 = vld [vmem:[#allocation26_spill] sm:$0xff] }
 0x7d7   :  { %v7006_v20 = vpop.eup %7005  ;;  %2386 = vrot.lane.b32.xlu0 %v8934_v4, %s7209_s0  ;;  %v2394_v19 = vmul.f32 %v8903_v17, %v12731_v8 }
 0x7d8   :  { %6617 = vmatprep.subr.msk.bf16.mxu1 %vm7598_vm5, %v6281_v61  ;;  %v7008_v35 = vpop.eup %7007  ;;  %v919_v6 = vpop.permute.xlu1 %918  ;;  %v2368_v1 = vsel %vm161_vm3, %v7002_v16, %v7006_v20  ;;  %v2395_v20 = vmul.f32 %v8915_v38, %v12731_v8  ;;  %v9071_v46 = vld [vmem:[#allocation2 + $0x70] sm:$0xff] }
 0x7d9   :  { %6618 = vmatpush3.bf16.msk.msra.mxu1 %vm7598_vm5, %v6281_v61  ;;  %v921_v37 = vpop.permute.xlu0 %920  ;;  %939 = vst.msk [vmem:[#allocation2 + $0x88] sm:$0xff] %vm201_vm0, %v919_v6  ;;  %v6284_v29 = vpack.c.bf16 %v919_v6, %v917_v49  ;;  %v8947_v60 = vmul.f32 %v8852_v2, %v2368_v1  ;;  %v2367_v58 = vsel %vm161_vm3, %v7004_v33, %v7008_v35  ;;  %v7010_v34 = vpop.eup %7009 }
 0x7da   :  { %940 = vst.msk [vmem:[#allocation2 + $0x90] sm:$0xff] %vm201_vm0, %v921_v37  ;;  %v8952_v18 = vmul.f32 %v8867_v22, %v2367_v58  ;;  %v2397_v1 = vmul.f32 %v8924_v31, %v12731_v8  ;;  %v12732_v58 = vld [vmem:[#allocation27_spill] sm:$0xff] }
 0x7db   :  { %2390 = vrot.lane.b32.xlu0 %v8947_v60, %s7209_s0  ;;  %6619 = vmatprep.subr.msk.bf16.mxu1 %vm7598_vm5, %v6284_v29 }
 0x7dc   :  { %v7012_v10 = vpop.eup %7011  ;;  %2388 = vrot.lane.b32.xlu1 %v8952_v18, %s7209_s0  ;;  %v923_v43 = vpop.permute.xlu1 %922 }
 0x7dd   :  { %6620 = vmatpush3.bf16.msk.msra.mxu1 %vm7598_vm5, %v6284_v29  ;;  %v925_v2 = vpop.permute.xlu0 %924  ;;  %v2369_v23 = vsel %vm161_vm3, %v7010_v34, %v7012_v10  ;;  %941 = vst.msk [vmem:[#allocation2 + $0x98] sm:$0xff] %vm201_vm0, %v923_v43  ;;  %v6287_v22 = vpack.c.bf16 %v923_v43, %v921_v37  ;;  %v2396_v37 = vmul.f32 %v8912_v13, %v12731_v8  ;;  %v6874_v13 = vld [vmem:[%s12292_s7 + $0x8] sm:$0xff]  }
 0x7de   :  { %942 = vst.msk [vmem:[#allocation2 + $0xa0] sm:$0xff] %vm201_vm0, %v925_v2  ;;  %v2377_v59 = vmul.f32 %v8859_v7, %v2369_v23  ;;  %v6873_v7 = vld [vmem:[%s12292_s7] sm:$0xff]  }
 0x7df   :  { %6621 = vmatprep.subr.msk.bf16.mxu1 %vm7598_vm5, %v6287_v22 }
 0x7e0   :  { %2392 = vrot.lane.b32.xlu1 %v2377_v59, %s7209_s0  ;;  %v927_v32 = vpop.permute.xlu1 %926 }
 0x7e1   :  { %6622 = vmatpush3.bf16.msk.msra.mxu1 %vm7598_vm5, %v6287_v22  ;;  %943 = vst.msk [vmem:[#allocation2 + $0xa8] sm:$0xff] %vm201_vm0, %v927_v32  ;;  %v6290_v56 = vpack.c.bf16 %v927_v32, %v925_v2 }
 0x7e3   :  { %6623 = vmatprep.subr.msk.bf16.mxu1 %vm7598_vm5, %v6290_v56 }
 0x7e5   :  { %6624 = vmatpush3.bf16.msk.msra.mxu1 %vm7598_vm5, %v6290_v56 }
 0x7e6   :  { %6625 = vmatprep.subr.msk.bf16.mxu1 %vm7835_vm7, %v6281_v61 }
 0x7e9   :  { %6626 = vmatpush3.bf16.msk.msra.mxu1 %vm7835_vm7, %v6281_v61 }
 0x7ea   :  { %6627 = vmatprep.subr.msk.bf16.mxu1 %vm7835_vm7, %v6284_v29 }
 0x7ed   :  { %6628 = vmatpush3.bf16.msk.msra.mxu1 %vm7835_vm7, %v6284_v29 }
 0x7ee   :  { %6629 = vmatprep.subr.msk.bf16.mxu1 %vm7835_vm7, %v6287_v22 }
 0x7f1   :  { %6630 = vmatpush3.bf16.msk.msra.mxu1 %vm7835_vm7, %v6287_v22 }
 0x7f2   :  { %6631 = vmatprep.subr.msk.bf16.mxu1 %vm7835_vm7, %v6290_v56 }
 0x7f5   :  { %6632 = vmatpush3.bf16.msk.msra.mxu1 %vm7835_vm7, %v6290_v56 }
 0x7f6   :  { %6641 = vmatprep.subr.bf16.mxu1 %v6873_v7 }
 0x839   :  { %v2379_v44 = vpop.permute.xlu0 %2378 }
 0x83a   :  { %v2402_v49 = vmul.f32 %v2379_v44, %v12730_v48  ;;  %v2398_v44 = vmul.f32 %v8934_v4, %v12731_v8  ;;  %v2400_v4 = vmul.f32 %v8947_v60, %v12731_v8 }
 0x83c   :  { %v2410_v33 = vadd.f32 %v2402_v49, %v2394_v19 }
 0x83d   :  { %v2381_v16 = vpop.permute.xlu1 %2380  ;;  %v2383_v61 = vpop.permute.xlu0 %2382 }
 0x83e   :  { %v2403_v21 = vmul.f32 %v2381_v16, %v12730_v48  ;;  %v2404_v35 = vmul.f32 %v2383_v61, %v12730_v48  ;;  %v2418_v17 = vadd.f32 %v2410_v33, %v12732_v58  ;;  %v2399_v61 = vmul.f32 %v8952_v18, %v12731_v8 }
 0x840   :  { %v2411_v6 = vadd.f32 %v2403_v21, %v2395_v20  ;;  %v2412_v10 = vadd.f32 %v2404_v35, %v2396_v37 }
 0x841   :  { %v2385_v29 = vpop.permute.xlu1 %2384 }
 0x842   :  { %v2419_v34 = vadd.f32 %v2411_v6, %v12732_v58  ;;  %v2405_v43 = vmul.f32 %v2385_v29, %v12730_v48  ;;  %v2420_v23 = vadd.f32 %v2412_v10, %v12732_v58  ;;  %v2401_v6 = vmul.f32 %v2377_v59, %v12731_v8  ;;  %v6882_v59 = vld [vmem:[%s12295_s10 + $0x14] ss:$8 sps:$4 sm:$0xff]  }
 0x843   :  { %v1031_v8 = vmul.f32 %v9071_v46, %v8101_v27 }
 0x844   :  { %v2413_v38 = vadd.f32 %v2405_v43, %v2397_v1  ;;  %v2450_v2 = vpack.c.bf16 %v2419_v34, %v2418_v17 }
 0x846   :  { %v2421_v22 = vadd.f32 %v2413_v38, %v12732_v58  ;;  %6633 = vmatprep.mubr.bf16.mxu1 %v2450_v2 }
 0x848   :  { %v2451_v32 = vpack.c.bf16 %v2421_v22, %v2420_v23 }
 0x849   :  { %v2387_v31 = vpop.permute.xlu0 %2386 }
 0x84a   :  { %6634 = vmatmul.mubr.bf16.vlgmr.msra.gmra.mrb[8].mxu1 %v2451_v32  ;;  %v2406_v56 = vmul.f32 %v2387_v31, %v12730_v48  ;;  %v944_v32 = vld [vmem:[#allocation2 + $0x60] sm:$0xff]  ;;  %v956_v31 = vmul.f32 %v9071_v46, %v8092_v25 }
 0x84b   :  { %6642 = vmatpush3.bf16.msra.mxu1 %v6873_v7  ;;  %v6876_v7 = vld [vmem:[%s12292_s7 + $0x18] sm:$0xff]  }
 0x84c   :  { %6643 = vmatprep.subr.bf16.mxu1 %v6874_v13  ;;  %v2414_v16 = vadd.f32 %v2406_v56, %v2398_v44  ;;  %v6883_v56 = vld [vmem:[%s12295_s10 + $0x24] ss:$8 sps:$4 sm:$0xff]  }
 0x84d   :  { %v2391_v49 = vpop.permute.xlu0 %2390  ;;  %v12733_v44 = vld [vmem:[#allocation40_spill] sm:$0xff] }
 0x84e   :  { %v2389_v19 = vpop.permute.xlu1 %2388  ;;  %v2408_v20 = vmul.f32 %v2391_v49, %v12730_v48  ;;  %v2422_v37 = vadd.f32 %v2414_v16, %v12732_v58  ;;  %v9106_v49 = vmul.f32 %v1031_v8, %v12733_v44  ;;  %v12734_v16 = vld [vmem:[#allocation39_spill] sm:$0xff] }
 0x84f   :  { %v2407_v33 = vmul.f32 %v2389_v19, %v12730_v48  ;;  %6644 = vmatpush3.bf16.msra.mxu1 %v6874_v13  ;;  %v945_v13 = vld [vmem:[#allocation2 + $0x68] sm:$0xff]  ;;  %v6884_v19 = vld [vmem:[%s12295_s10 + $0x34] ss:$8 sps:$4 sm:$0xff]  }
 0x850   :  { %6645 = vmatprep.subr.bf16.mxu1 %v6875_v0  ;;  %v2416_v1 = vadd.f32 %v2408_v20, %v2400_v4  ;;  %v981_v20 = vmul.f32 %v945_v13, %v8097_v55 }
 0x851   :  { %v2415_v21 = vadd.f32 %v2407_v33, %v2399_v61  ;;  %v954_v33 = vmul.f32 %v944_v32, %v8092_v25 }
 0x852   :  { %v2393_v35 = vpop.permute.xlu1 %2392  ;;  %v2424_v10 = vadd.f32 %v2416_v1, %v12732_v58  ;;  %v1058_v1 = vrot.slane %v9106_v49, 2  ;;  %v997_v63 = vrot.slane %v981_v20, 1 }
 0x853   :  { %v2423_v18 = vadd.f32 %v2415_v21, %v12732_v58  ;;  %v2409_v29 = vmul.f32 %v2393_v35, %v12730_v48  ;;  %6646 = vmatpush3.bf16.msra.mxu1 %v6875_v0  ;;  %v9088_v48 = vmul.f32 %v9071_v46, %v8097_v55 }
 0x854   :  { %6647 = vmatprep.subr.bf16.mxu1 %v6876_v7 }
 0x855   :  { %v2417_v17 = vadd.f32 %v2409_v29, %v2401_v6  ;;  %v2452_v34 = vpack.c.bf16 %v2423_v18, %v2422_v37  ;;  %v998_v0 = vrot.slane %v9088_v48, 1  ;;  %v12735_v37 = vld [vmem:[#allocation38_spill] sm:$0xff]  ;;  %v9122_v29 = vld [vmem:[#allocation2 + $0x88] sm:$0xff] }
 0x856   :  { %v965_v18 = vmul.f32 %v956_v31, %v12735_v37 }
 0x857   :  { %v2425_v43 = vadd.f32 %v2417_v17, %v12732_v58  ;;  %6637 = vmatprep.mubr.bf16.mxu1 %v2452_v34  ;;  %6648 = vmatpush3.bf16.msra.mxu1 %v6876_v7  ;;  %v1030_v7 = vmul.f32 %v945_v13, %v8101_v27 }
 0x858   :  { %6689 = vmatprep.subr.bf16.mxu1 %v6881_v12 }
 0x859   :  { %v2453_v60 = vpack.c.bf16 %v2425_v43, %v2424_v10  ;;  %v12736_v10 = vld [vmem:[#allocation33_spill] sm:$0xff]  ;;  %v1039_v11 = vmul.f32 %v1030_v7, %v12737_v28 }
 0x85a   :  { %v963_v43 = vmul.f32 %v954_v33, %v12736_v10 }
 0x85b   :  { %6638 = vmatmul.mubr.bf16.gmra.mrb[12].mxu1 %v2453_v60  ;;  %v1057_v31 = vrot.slane %v1039_v11, 2 }
 0x85c   :  { %6649 = vmatprep.mubr.msk.bf16.mxu1 %vm201_vm0, %v2679_v5  ;;  %v9066_v5 = vld [vmem:[#allocation2 + $0x78] sm:$0xff]  ;;  %v1021_v32 = vadd.f32 %v997_v63, %v963_v43 }
 0x85d   :  { %v983_v54 = vmul.f32 %v9066_v5, %v8097_v55  ;;  %v957_v58 = vmul.f32 %v9066_v5, %v8092_v25  ;;  %v1170_v48 = vmul.f32 %v9066_v5, %v8191_v14 }
 0x85f   :  { %v1000_v38 = vrot.slane %v983_v54, 1  ;;  %v966_v61 = vmul.f32 %v957_v58, %v12734_v16  ;;  %v1172_v58 = vmul.f32 %v9122_v29, %v8191_v14  ;;  %v9156_v7 = vmul.f32 %v1170_v48, %v12733_v44 }
 0x861   :  { %v1001_v21 = vsel %vm401_vm1, %v998_v0, %v1000_v38 }
 0x862   :  { %v1023_v17 = vadd.f32 %v1001_v21, %v965_v18 }
 0x863   :  { %6650 = vmatmul.mubr.msk.bf16.vlgmr.msra.gmra.mrb[16].mxu1 %vm201_vm0, %v2680_v15  ;;  %v9064_v15 = vld [vmem:[#allocation2 + $0x80] sm:$0xff] }
 0x864   :  { %6653 = vmatprep.mubr.msk.bf16.mxu1 %vm201_vm0, %v2681_v62  ;;  %v9077_v30 = vmul.f32 %v9064_v15, %v8097_v55  ;;  %v1033_v62 = vmul.f32 %v9064_v15, %v8101_v27  ;;  %6690 = vmatpush3.bf16.msra.mxu1 %v6881_v12  ;;  %v1095_v12 = vmul.f32 %v9066_v5, %v8138_v42 }
 0x865   :  { %6691 = vmatprep.subr.bf16.mxu1 %v6882_v59  ;;  %v1096_v54 = vmul.f32 %v9064_v15, %v8138_v42  ;;  %v1171_v8 = vmul.f32 %v9064_v15, %v8191_v14 }
 0x866   :  { %v12393_v2 = vrot.slane %v9077_v30, 1  ;;  %v9097_v22 = vmul.f32 %v1033_v62, %v8183_v57  ;;  %v1122_v62 = vmul.f32 %v9064_v15, %v8187_v24  ;;  %v1104_v49 = vmul.f32 %v1095_v12, %v12735_v37 }
 0x867   :  { %v1180_v21 = vmul.f32 %v1171_v8, %v8176_v52  ;;  %v12390_v12 = vrot.slane %v9156_v7, 2  ;;  %v12738_v8 = vld [vmem:[#allocation43_spill] sm:$0xff] }
 0x868   :  { %6692 = vmatpush3.bf16.msra.mxu1 %v6882_v59  ;;  %v1003_v4 = vsel %vm401_vm1, %v1000_v38, %v12393_v2  ;;  %v12391_v6 = vrot.slane %v9097_v22, 2  ;;  %v9142_v59 = vmul.f32 %v9122_v29, %v8187_v24  ;;  %v1139_v33 = vrot.slane %v1122_v62, 1 }
 0x869   :  { %6693 = vmatprep.subr.bf16.mxu1 %v6883_v56  ;;  %v1024_v34 = vadd.f32 %v1003_v4, %v966_v61  ;;  %v9160_v4 = vmul.f32 %v1172_v58, %v8183_v57  ;;  %v1169_v2 = vmul.f32 %v9071_v46, %v8191_v14 }
 0x86a   :  { %v12389_v20 = vrot.slane %v9142_v59, 1 }
 0x86b   :  { %6654 = vmatmul.mubr.msk.bf16.gmra.mrb[20].mxu1 %vm201_vm0, %v2682_v47  ;;  %v1032_v47 = vmul.f32 %v9066_v5, %v8101_v27  ;;  %v12388_v62 = vrot.slane %v9160_v4, 2 }
 0x86c   :  { %6694 = vmatpush3.bf16.msra.mxu1 %v6883_v56  ;;  %v1093_v56 = vmul.f32 %v945_v13, %v8138_v42  ;;  %v1142_v11 = vsel %vm401_vm1, %v1139_v33, %v12389_v20  ;;  %v1092_v20 = vld [vmem:[#allocation2 + $0xb0] sm:$0xff] }
 0x86d   :  { %v1041_v23 = vmul.f32 %v1032_v47, %v8176_v52  ;;  %6695 = vmatprep.subr.bf16.mxu1 %v6884_v19  ;;  %v9136_v47 = vmul.f32 %v9066_v5, %v8187_v24 }
 0x86e   :  { %v1102_v43 = vmul.f32 %v1093_v56, %v12736_v10  ;;  %v1235_v56 = vmul.f32 %v9122_v29, %v8195_v45 }
 0x86f   :  { %v1060_v35 = vrot.slane %v1041_v23, 2  ;;  %v12392_v61 = vrot.slane %v9136_v47, 1 }
 0x870   :  { %6696 = vmatpush3.bf16.msra.mxu1 %v6884_v19  ;;  %v1105_v19 = vmul.f32 %v1096_v54, %v12734_v16  ;;  %v1199_v54 = vrot.slane %v1180_v21, 2 }
 0x871   :  { %v1061_v60 = vsel %vm561_vm8, %v1058_v1, %v1060_v35  ;;  %v1063_v36 = vsel %vm561_vm8, %v1060_v35, %v12391_v6 }
 0x872   :  { %v1085_v38 = vadd.f32 %v1061_v60, %v1023_v17  ;;  %v1086_v23 = vadd.f32 %v1063_v36, %v1024_v34  ;;  %v955_v17 = vmul.f32 %v945_v13, %v8092_v25  ;;  %v1083_v34 = vadd.f32 %v1057_v31, %v1021_v32  ;;  %v9167_v36 = vld [vmem:[#allocation2 + $0x90] sm:$0xff] }
 0x873   :  { %v1140_v60 = vsel %vm401_vm1, %v12392_v61, %v1139_v33  ;;  %v1234_v32 = vmul.f32 %v9064_v15, %v8195_v45  ;;  %v1200_v33 = vsel %vm561_vm8, %v12390_v12, %v1199_v54 }
 0x874   :  { %v1113_v35 = vadd.f32 %v1104_v49, %v1085_v38  ;;  %v1114_v18 = vadd.f32 %v1105_v19, %v1086_v23  ;;  %v964_v58 = vmul.f32 %v955_v17, %v12738_v8  ;;  %v999_v38 = vsel %vm401_vm1, %v997_v63, %v998_v0  ;;  %v9197_v63 = vld [vmem:[%s12288_s3 + $0x8] ss:$0 sm:$0xff] }
 0x875   :  { %v9176_v23 = vadd.f32 %v1102_v43, %v1083_v34  ;;  %v1261_v49 = vmul.f32 %v9122_v29, %v8201_v41  ;;  %v9186_v19 = vmul.f32 %v9167_v36, %v8201_v41  ;;  %v1202_v0 = vsel %vm561_vm8, %v1199_v54, %v12388_v62 }
 0x876   :  { %v1162_v48 = vadd.f32 %v1140_v60, %v1113_v35  ;;  %v1163_v13 = vadd.f32 %v1142_v11, %v1114_v18  ;;  %v1309_v21 = vmul.f32 %v9197_v63, %v9064_v15  ;;  %v1310_v35 = vmul.f32 %v9197_v63, %v9122_v29 }
 0x877   :  { %v1311_v34 = vmul.f32 %v9197_v63, %v9167_v36  ;;  %v1022_v43 = vadd.f32 %v999_v38, %v964_v58  ;;  %v9207_v60 = vmul.f32 %v9064_v15, %v8201_v41  ;;  %v1059_v11 = vsel %vm561_vm8, %v1057_v31, %v1058_v1  ;;  %v12739_v1 = vld [vmem:[#allocation45_spill] sm:$0xff] }
 0x878   :  { %v1224_v18 = vadd.f32 %v1200_v33, %v1162_v48  ;;  %v1225_v17 = vadd.f32 %v1202_v0, %v1163_v13  ;;  %v9212_v54 = vmul.f32 %v9122_v29, %v8097_v55  ;;  %v1034_v62 = vmul.f32 %v9122_v29, %v8101_v27 }
 0x879   :  { %v1243_v48 = vmul.f32 %v1234_v32, %v12735_v37  ;;  %v1244_v13 = vmul.f32 %v1235_v56, %v12734_v16  ;;  %v1094_v58 = vmul.f32 %v9071_v46, %v8138_v42  ;;  %v1120_v38 = vmul.f32 %v9071_v46, %v8187_v24 }
 0x87a   :  { %v1278_v33 = vrot.slane %v1261_v49, 1  ;;  %v9224_v31 = vmul.f32 %v1309_v21, %v12733_v44  ;;  %v1319_v0 = vmul.f32 %v1310_v35, %v8176_v52  ;;  %v9228_v32 = vmul.f32 %v1311_v34, %v8183_v57 }
 0x87b   :  { %v1252_v12 = vadd.f32 %v1243_v48, %v1224_v18  ;;  %v1253_v6 = vadd.f32 %v1244_v13, %v1225_v17  ;;  %v1084_v56 = vadd.f32 %v1059_v11, %v1022_v43  ;;  %v1276_v61 = vrot.slane %v9207_v60, 1 }
 0x87c   :  { %v9235_v16 = vmul.f32 %v1034_v62, %v12739_v1  ;;  %v1103_v21 = vmul.f32 %v1094_v58, %v12738_v8  ;;  %v958_v35 = vmul.f32 %v9064_v15, %v8092_v25  ;;  %v9241_v18 = vmul.f32 %v1092_v20, %v8201_v41 }
 0x87d   :  { %v1177_v17 = vmul.f32 %v1092_v20, %v8191_v14  ;;  %v1279_v34 = vsel %vm401_vm1, %v1276_v61, %v1278_v33  ;;  %v12741_v43 = vrot.slane %v9186_v19, 1  ;;  %v12401_v11 = vrot.slane %v9224_v31, 2 }
 0x87e   :  { %12740 = vst [vmem:[#allocation8_spill] sm:$0xff] %v9241_v18  ;;  %v1338_v62 = vrot.slane %v1319_v0, 2  ;;  %v1301_v48 = vadd.f32 %v1279_v34, %v1252_v12  ;;  %v12402_v58 = vrot.slane %v9228_v32, 2  ;;  %v1112_v49 = vadd.f32 %v1103_v21, %v1084_v56  ;;  %v12744_v12 = vld [vmem:[#allocation44_spill] sm:$0xff] }
 0x87f   :  { %v1281_v60 = vsel %vm401_vm1, %v1278_v33, %v12741_v43  ;;  %v1136_v15 = vrot.slane %v1120_v38, 1  ;;  %v1178_v52 = vmul.f32 %v1169_v2, %v12737_v28  ;;  %v12742_v57 = vrot.slane %v9212_v54, 1 }
 0x880   :  { %v1302_v13 = vadd.f32 %v1281_v60, %v1253_v6  ;;  %v12743_v44 = vrot.slane %v9077_v30, 1  ;;  %v12404_v18 = vrot.slane %v9235_v16, 2  ;;  %v9259_v33 = vmul.f32 %v9066_v5, %v8201_v41 }
 0x881   :  { %v967_v6 = vmul.f32 %v958_v35, %v12744_v12  ;;  %v1315_v0 = vmul.f32 %v9197_v63, %v1092_v20  ;;  %v9264_v38 = vmul.f32 %v1177_v17, %v8500_v40  ;;  %v1339_v2 = vsel %vm561_vm8, %v12401_v11, %v1338_v62 }
 0x882   :  { %v1005_v37 = vsel %vm401_vm1, %v12743_v44, %v12742_v57  ;;  %v12745_v30 = vrot.slane %v9136_v47, 1  ;;  %v1308_v44 = vmul.f32 %v9197_v63, %v9066_v5  ;;  %v1240_v56 = vmul.f32 %v1092_v20, %v8195_v45 }
 0x883   :  { %v1341_v21 = vsel %vm561_vm8, %v1338_v62, %v12402_v58  ;;  %v9278_v35 = vadd.f32 %v1339_v2, %v1301_v48  ;;  %v1025_v34 = vadd.f32 %v1005_v37, %v967_v6  ;;  %v1160_v60 = vadd.f32 %v1136_v15, %v9176_v23  ;;  %v1231_v48 = vld [vmem:[#allocation2 + $0xb8] sm:$0xff] }
 0x884   :  { %v1138_v57 = vsel %vm401_vm1, %v1136_v15, %v12745_v30  ;;  %v9280_v43 = vadd.f32 %v1341_v21, %v1302_v13  ;;  %v1196_v47 = vrot.slane %v1178_v52, 2  ;;  %v12746_v30 = vrot.slane %v9097_v22, 2 }
 0x885   :  { %v1161_v17 = vadd.f32 %v1138_v57, %v1112_v49  ;;  %v1232_v20 = vmul.f32 %v9071_v46, %v8195_v45  ;;  %v1233_v62 = vmul.f32 %v9066_v5, %v8195_v45  ;;  %v12403_v49 = vrot.slane %v9259_v33, 1  ;;  %v9334_v57 = vld [vmem:[#allocation2 + $0xa8] sm:$0xff] }
 0x886   :  { %v1065_v11 = vsel %vm561_vm8, %v12746_v30, %v12404_v18  ;;  %v1097_v37 = vmul.f32 %v9122_v29, %v8138_v42  ;;  %v12747_v52 = vrot.slane %v9156_v7, 2  ;;  %v9299_v22 = vmul.f32 %v1308_v44, %v12737_v28  ;;  %v9311_v7 = vld [vmem:[#allocation2 + $0x98] sm:$0xff] }
 0x887   :  { %v9303_v13 = vmul.f32 %v9167_v36, %v8187_v24  ;;  %v1173_v5 = vmul.f32 %v9167_v36, %v8191_v14  ;;  %v1087_v15 = vadd.f32 %v1065_v11, %v1025_v34  ;;  %v9308_v6 = vmul.f32 %v1315_v0, %v8525_v3 }
 0x888   :  { %v1198_v23 = vsel %vm561_vm8, %v1196_v47, %v12747_v52  ;;  %v1222_v44 = vadd.f32 %v1196_v47, %v1160_v60  ;;  %v9315_v21 = vmul.f32 %v1240_v56, %v8481_v39  ;;  %v9318_v30 = vmul.f32 %v9197_v63, %v1231_v48  ;;  %v9320_v52 = vld [vmem:[#allocation2 + $0xa0] sm:$0xff] }
 0x889   :  { %v1223_v46 = vadd.f32 %v1198_v23, %v1161_v17  ;;  %v1241_v0 = vmul.f32 %v1232_v20, %v12736_v10  ;;  %v1242_v17 = vmul.f32 %v1233_v62, %v12738_v8  ;;  %v1106_v34 = vmul.f32 %v1097_v37, %v12744_v12 }
 0x88a   :  { %12748 = vst [vmem:[#allocation9_spill] sm:$0xff] %v9315_v21  ;;  %v1277_v60 = vsel %vm401_vm1, %v12403_v49, %v1276_v61  ;;  %v12408_v47 = vrot.slane %v9303_v13, 1  ;;  %v9332_v48 = vmul.f32 %v1173_v5, %v12739_v1  ;;  %v987_v20 = vmul.f32 %v9311_v7, %v8097_v55 }
 0x88b   :  { %v1251_v23 = vadd.f32 %v1242_v17, %v1223_v46  ;;  %v1115_v2 = vadd.f32 %v1106_v34, %v1087_v15  ;;  %v1036_v62 = vmul.f32 %v9311_v7, %v8101_v27  ;;  %v9340_v37 = vadd.f32 %v1241_v0, %v1222_v44 }
 0x88c   :  { %v1236_v61 = vmul.f32 %v9167_v36, %v8195_v45  ;;  %v988_v11 = vmul.f32 %v9320_v52, %v8097_v55  ;;  %v1037_v5 = vmul.f32 %v9320_v52, %v8101_v27  ;;  %v9350_v46 = vmul.f32 %v9311_v7, %v8201_v41 }
 0x88d   :  { %v1312_v15 = vmul.f32 %v9197_v63, %v9311_v7  ;;  %v986_v44 = vmul.f32 %v9167_v36, %v8097_v55  ;;  %v1035_v0 = vmul.f32 %v9167_v36, %v8101_v27  ;;  %v12749_v17 = vrot.slane %v9142_v59, 1 }
 0x88e   :  { %v961_v56 = vmul.f32 %v9311_v7, %v8092_v25  ;;  %v1038_v49 = vmul.f32 %v9334_v57, %v8101_v27  ;;  %v9368_v18 = vadd.f32 %v1277_v60, %v1251_v23  ;;  %v1008_v8 = vrot.slane %v987_v20, 1 }
 0x88f   :  { %v1144_v34 = vsel %vm401_vm1, %v12749_v17, %v12408_v47  ;;  %v1045_v28 = vmul.f32 %v1036_v62, %v8484_v53  ;;  %v960_v10 = vmul.f32 %v9167_v36, %v8092_v25  ;;  %v1010_v59 = vrot.slane %v988_v11, 1 }
 0x890   :  { %v1164_v55 = vadd.f32 %v1144_v34, %v1115_v2  ;;  %v1046_v17 = vmul.f32 %v1037_v5, %v8525_v3  ;;  %v959_v47 = vmul.f32 %v9122_v29, %v8092_v25  ;;  %v9378_v21 = vmul.f32 %v1312_v15, %v12739_v1 }
 0x891   :  { %v1006_v27 = vrot.slane %v986_v44, 1  ;;  %v1044_v2 = vmul.f32 %v1035_v0, %v8473_v51  ;;  %v12750_v60 = vrot.slane %v9332_v48, 2  ;;  %v12751_v23 = vrot.slane %v9160_v4, 2 }
 0x892   :  { %v1245_v11 = vmul.f32 %v1236_v61, %v12744_v12  ;;  %v970_v62 = vmul.f32 %v961_v56, %v8513_v50  ;;  %v1047_v29 = vmul.f32 %v1038_v49, %v8500_v40  ;;  %v1068_v15 = vrot.slane %v1045_v28, 2 }
 0x893   :  { %v1204_v20 = vsel %vm561_vm8, %v12751_v23, %v12750_v60  ;;  %v1009_v34 = vsel %vm401_vm1, %v1006_v27, %v1008_v8  ;;  %v962_v44 = vmul.f32 %v9320_v52, %v8092_v25  ;;  %v969_v0 = vmul.f32 %v960_v10, %v8465_v9 }
 0x894   :  { %v1226_v5 = vadd.f32 %v1204_v20, %v1164_v55  ;;  %v1011_v58 = vsel %vm401_vm1, %v1008_v8, %v1010_v59  ;;  %v1070_v4 = vrot.slane %v1046_v17, 2  ;;  %v968_v60 = vmul.f32 %v959_v47, %v8521_v26 }
 0x895   :  { %v12752_v61 = vrot.slane %v9350_v46, 1  ;;  %v12753_v56 = vrot.slane %v9186_v19, 1  ;;  %v1066_v23 = vrot.slane %v1044_v2, 2  ;;  %v12754_v28 = vrot.slane %v9212_v54, 1 }
 0x896   :  { %v1027_v20 = vadd.f32 %v1009_v34, %v969_v0  ;;  %v1099_v10 = vmul.f32 %v9311_v7, %v8138_v42  ;;  %v1100_v8 = vmul.f32 %v9320_v52, %v8138_v42  ;;  %v1072_v47 = vrot.slane %v1047_v29, 2 }
 0x897   :  { %v1283_v49 = vsel %vm401_vm1, %v12753_v56, %v12752_v61  ;;  %v1007_v25 = vsel %vm401_vm1, %v12754_v28, %v1006_v27  ;;  %v1254_v17 = vadd.f32 %v1245_v11, %v1226_v5  ;;  %v1028_v1 = vadd.f32 %v1011_v58, %v970_v62 }
 0x898   :  { %v1069_v19 = vsel %vm561_vm8, %v1066_v23, %v1068_v15  ;;  %v971_v61 = vmul.f32 %v962_v44, %v8481_v39  ;;  %v1071_v2 = vsel %vm561_vm8, %v1068_v15, %v1070_v4  ;;  %v1125_v54 = vmul.f32 %v9311_v7, %v8187_v24 }
 0x899   :  { %v1126_v27 = vmul.f32 %v9320_v52, %v8187_v24  ;;  %v1026_v34 = vadd.f32 %v1007_v25, %v968_v60  ;;  %v1127_v0 = vmul.f32 %v9334_v57, %v8187_v24  ;;  %v1174_v11 = vmul.f32 %v9311_v7, %v8191_v14 }
 0x89a   :  { %v1175_v58 = vmul.f32 %v9320_v52, %v8191_v14  ;;  %v12755_v62 = vrot.slane %v9235_v16, 2  ;;  %v1089_v5 = vadd.f32 %v1069_v19, %v1027_v20  ;;  %v1176_v15 = vmul.f32 %v9334_v57, %v8191_v14 }
 0x89b   :  { %v1098_v44 = vmul.f32 %v9167_v36, %v8138_v42  ;;  %v1073_v60 = vsel %vm561_vm8, %v1070_v4, %v1072_v47  ;;  %v1090_v24 = vadd.f32 %v1071_v2, %v1028_v1  ;;  %v1108_v56 = vmul.f32 %v1099_v10, %v8465_v9 }
 0x89c   :  { %v1067_v29 = vsel %vm561_vm8, %v12755_v62, %v1066_v23  ;;  %v1029_v28 = vadd.f32 %v1010_v59, %v971_v61  ;;  %v1101_v25 = vmul.f32 %v9334_v57, %v8138_v42  ;;  %v1303_v55 = vadd.f32 %v1283_v49, %v1254_v17 }
 0x89d   :  { %v1109_v16 = vmul.f32 %v1100_v8, %v8513_v50  ;;  %v1145_v23 = vrot.slane %v1125_v54, 1  ;;  %v1088_v20 = vadd.f32 %v1067_v29, %v1026_v34  ;;  %v1147_v19 = vrot.slane %v1126_v27, 1 }
 0x89e   :  { %v1183_v14 = vmul.f32 %v1174_v11, %v8473_v51  ;;  %v1184_v62 = vmul.f32 %v1175_v58, %v8484_v53  ;;  %v1091_v36 = vadd.f32 %v1073_v60, %v1029_v28  ;;  %v1117_v12 = vadd.f32 %v1108_v56, %v1089_v5 }
 0x89f   :  { %v1149_v4 = vrot.slane %v1127_v0, 1  ;;  %v1185_v1 = vmul.f32 %v1176_v15, %v8525_v3  ;;  %v1107_v59 = vmul.f32 %v1098_v44, %v8521_v26  ;;  %v12756_v42 = vrot.slane %v9259_v33, 1 }
 0x8a0   :  { %v12757_v10 = vrot.slane %v9224_v31, 2  ;;  %v12758_v8 = vrot.slane %v9299_v22, 2  ;;  %v1118_v17 = vadd.f32 %v1109_v16, %v1090_v24  ;;  %v1110_v61 = vmul.f32 %v1101_v25, %v8481_v39 }
 0x8a1   :  { %v1299_v49 = vadd.f32 %v12756_v42, %v9340_v37  ;;  %v12759_v54 = vrot.slane %v9378_v21, 2  ;;  %v12760_v27 = vrot.slane %v9228_v32, 2  ;;  %v1116_v0 = vadd.f32 %v1107_v59, %v1088_v20 }
 0x8a2   :  { %v1337_v47 = vsel %vm561_vm8, %v12758_v8, %v12757_v10  ;;  %v9454_v33 = vmul.f32 %v9318_v30, %v8500_v40  ;;  %v1148_v31 = vsel %vm401_vm1, %v1145_v23, %v1147_v19  ;;  %v1205_v37 = vrot.slane %v1183_v14, 2 }
 0x8a3   :  { %v1362_v2 = vadd.f32 %v1337_v47, %v9368_v18  ;;  %v1343_v34 = vsel %vm561_vm8, %v12760_v27, %v12759_v54  ;;  %v1207_v11 = vrot.slane %v1184_v62, 2  ;;  %v1119_v58 = vadd.f32 %v1110_v61, %v1091_v36 }
 0x8a4   :  { %v9457_v29 = vadd.f32 %v1343_v34, %v1303_v55  ;;  %v1150_v18 = vsel %vm401_vm1, %v1147_v19, %v1149_v4  ;;  %v1166_v5 = vadd.f32 %v1148_v31, %v1117_v12  ;;  %v1209_v15 = vrot.slane %v1185_v1, 2 }
 0x8a5   :  { %v12761_v32 = vrot.slane %v9280_v43, 7  ;;  %v12762_v44 = vrot.slane %v9278_v35, 7  ;;  %v12763_v30 = vmov %v12758_v8  ;;  %v1167_v56 = vadd.f32 %v1150_v18, %v1118_v17 }
 0x8a6   :  { %v1361_v24 = vadd.f32 %v12763_v30, %v1299_v49  ;;  %v12764_v28 = vrot.slane %v9303_v13, 1  ;;  %v1414_v55 = vrot.slane %v1362_v2, 7  ;;  %v1238_v16 = vmul.f32 %v9320_v52, %v8195_v45 }
 0x8a7   :  { %v1419_v60 = vsel %vm518_vm2, %v12762_v44, %v12761_v32  ;;  %v1239_v12 = vmul.f32 %v9334_v57, %v8195_v45  ;;  %v1208_v19 = vsel %vm561_vm8, %v1205_v37, %v1207_v11  ;;  %v1265_v14 = vmul.f32 %v9334_v57, %v8201_v41 }
 0x8a8   :  { %v1146_v25 = vsel %vm401_vm1, %v12764_v28, %v1145_v23  ;;  %v1314_v22 = vmul.f32 %v9197_v63, %v9334_v57  ;;  %v1168_v62 = vadd.f32 %v1149_v4, %v1119_v58  ;;  %v1420_v13 = vrot.slane %v9457_v29, 7 }
 0x8a9   :  { %v1165_v20 = vadd.f32 %v1146_v25, %v1116_v0  ;;  %v1210_v23 = vsel %vm561_vm8, %v1207_v11, %v1209_v15  ;;  %v1228_v36 = vadd.f32 %v1208_v19, %v1166_v5  ;;  %v1237_v1 = vmul.f32 %v9311_v7, %v8195_v45  ;;  %v9508_v11 = vld [vmem:[%s12289_s4] ss:$0 sm:$0xff] }
 0x8aa   :  { %v1229_v59 = vadd.f32 %v1210_v23, %v1167_v56  ;;  %v1264_v42 = vmul.f32 %v9320_v52, %v8201_v41  ;;  %v1313_v49 = vmul.f32 %v9197_v63, %v9320_v52  ;;  %v12765_v10 = vrot.slane %v9332_v48, 2  ;;  %v12767_v48 = vld [vmem:[#allocation8_spill] sm:$0xff] }
 0x8ab   :  { %v1413_v4 = vrot.slane %v1361_v24, 7  ;;  %v1247_v8 = vmul.f32 %v1238_v16, %v8465_v9  ;;  %v12766_v17 = vrot.slane %v9264_v38, 2  ;;  %v1248_v45 = vmul.f32 %v1239_v12, %v8513_v50  ;;  %v12770_v24 = vld [vmem:[#allocation9_spill] sm:$0xff] }
 0x8ac   :  { %v1206_v57 = vsel %vm561_vm8, %v12765_v10, %v1205_v37  ;;  %v1286_v7 = vrot.slane %v1265_v14, 1  ;;  %v1323_v41 = vmul.f32 %v1314_v22, %v8484_v53  ;;  %v1288_v54 = vrot.slane %v12767_v48, 1 }
 0x8ad   :  { %v1227_v47 = vadd.f32 %v1206_v57, %v1165_v20  ;;  %v1212_v61 = vsel %vm561_vm8, %v1209_v15, %v12766_v17  ;;  %v1415_v63 = vsel %vm518_vm2, %v1413_v4, %v1414_v55  ;;  %v1256_v52 = vadd.f32 %v1247_v8, %v1228_v36 }
 0x8ae   :  { %v1230_v2 = vadd.f32 %v1212_v61, %v1168_v62  ;;  %v1246_v27 = vmul.f32 %v1237_v1, %v8521_v26  ;;  %v12768_v34 = vmov %v12761_v32  ;;  %v1257_v0 = vadd.f32 %v1248_v45, %v1229_v59 }
 0x8af   :  { %v1421_v38 = vsel %vm518_vm2, %v12768_v34, %v1420_v13  ;;  %v1284_v31 = vrot.slane %v1264_v42, 1  ;;  %v1322_v37 = vmul.f32 %v1313_v49, %v8473_v51  ;;  %v1454_v58 = vadd.f32 %v9508_v11, %v1419_v60 }
 0x8b0   :  { %v1348_v18 = vrot.slane %v9308_v6, 2  ;;  %v1255_v5 = vadd.f32 %v1246_v27, %v1227_v47  ;;  %v1350_v15 = vrot.slane %v9454_v33, 2  ;;  %v12769_v43 = vmov %v12762_v44 }
 0x8b1   :  { %v1417_v32 = vsel %vm518_vm2, %v1414_v55, %v12769_v43  ;;  %v1287_v44 = vsel %vm401_vm1, %v1284_v31, %v1286_v7  ;;  %v1346_v30 = vrot.slane %v1323_v41, 2  ;;  %v1258_v56 = vadd.f32 %v12770_v24, %v1230_v2 }
 0x8b2   :  { %v1452_v25 = vadd.f32 %v9508_v11, %v1415_v63  ;;  %v1455_v16 = vadd.f32 %v9508_v11, %v1421_v38  ;;  %v1289_v60 = vsel %vm401_vm1, %v1286_v7, %v1288_v54  ;;  %v1305_v6 = vadd.f32 %v1287_v44, %v1256_v52 }
 0x8b3   :  { %v1306_v20 = vadd.f32 %v1289_v60, %v1257_v0  ;;  %v1344_v35 = vrot.slane %v1322_v37, 2  ;;  %v12771_v55 = vrot.slane %v9350_v46, 1  ;;  %v1453_v62 = vadd.f32 %v9508_v11, %v1417_v32 }
 0x8b4   :  { %v1351_v36 = vsel %vm561_vm8, %v1348_v18, %v1350_v15  ;;  %v1307_v10 = vadd.f32 %v1288_v54, %v1258_v56  ;;  %v1349_v4 = vsel %vm561_vm8, %v1346_v30, %v1348_v18  ;;  %v12772_v45 = vrot.slane %v9378_v21, 2 }
 0x8b5   :  { %v1285_v19 = vsel %vm401_vm1, %v12771_v55, %v1284_v31  ;;  %v1347_v49 = vsel %vm561_vm8, %v1344_v35, %v1346_v30  ;;  %v1368_v61 = vadd.f32 %v1349_v4, %v1306_v20 }
 0x8b6   :  { %v1304_v23 = vadd.f32 %v1285_v19, %v1255_v5  ;;  %v1367_v8 = vadd.f32 %v1347_v49, %v1305_v6  ;;  %v1345_v7 = vsel %vm561_vm8, %v12772_v45, %v1344_v35  ;;  %v1369_v54 = vadd.f32 %v1351_v36, %v1307_v10 }
 0x8b7   :  { %v1426_v21 = vrot.slane %v1368_v61, 7 }
 0x8b8   :  { %v1366_v63 = vadd.f32 %v1345_v7, %v1304_v23  ;;  %v1424_v31 = vrot.slane %v1367_v8, 7  ;;  %v1428_v43 = vrot.slane %v1369_v54, 7  ;;  %v9587_v8 = vld [vmem:[%s12293_s8] ss:$0 sm:$0xff] }
 0x8ba   :  { %v1422_v18 = vrot.slane %v1366_v63, 7  ;;  %v1427_v24 = vsel %vm518_vm2, %v1424_v31, %v1426_v21 }
 0x8bc   :  { %v1425_v60 = vsel %vm518_vm2, %v1422_v18, %v1424_v31 }
 0x91d   :  { %v6635_v28 = vpop.f32.mrb[8].mxu1 }
 0x91e   :  { %v9521_v12 = vadd.f32 %v6635_v28, %v1454_v58  ;;  %v2488_v33 = vpop.f32.mrb[9].mxu1  ;;  %v1423_v28 = vsel %vm518_vm2, %v1420_v13, %v1422_v18  ;;  %v1457_v13 = vadd.f32 %v9508_v11, %v1425_v60 }
 0x91f   :  { %v9526_v14 = vadd.f32 %v2488_v33, %v1452_v25  ;;  %v6636_v22 = vpop.f32.mrb[10].mxu1  ;;  %v1429_v25 = vsel %vm518_vm2, %v1426_v21, %v1428_v43  ;;  %v1456_v33 = vadd.f32 %v9508_v11, %v1423_v28 }
 0x920   :  { %v2561_v1 = vmul.f32 %v9521_v12, %v9521_v12  ;;  %v9532_v59 = vadd.f32 %v6636_v22, %v1455_v16  ;;  %v2491_v42 = vpop.f32.mrb[11].mxu1  ;;  %v1458_v16 = vadd.f32 %v9508_v11, %v1427_v24  ;;  %v1459_v55 = vadd.f32 %v9508_v11, %v1429_v25 }
 0x921   :  { %v2559_v46 = vmul.f32 %v9526_v14, %v9526_v14  ;;  %v9537_v57 = vadd.f32 %v2491_v42, %v1453_v62 }
 0x922   :  { %v2577_v47 = vmul.f32 %v2561_v1, %v9521_v12  ;;  %v2562_v17 = vmul.f32 %v9532_v59, %v9532_v59  ;;  %v2546_v61 = vmul.f32 0.5, %v9532_v59 }
 0x923   :  { %v2575_v41 = vmul.f32 %v2559_v46, %v9526_v14  ;;  %v2560_v2 = vmul.f32 %v9537_v57, %v9537_v57  ;;  %v2545_v46 = vmul.f32 0.5, %v9521_v12 }
 0x924   :  { %v2593_v52 = vmul.f32 0.044715, %v2577_v47  ;;  %v2578_v48 = vmul.f32 %v2562_v17, %v9532_v59  ;;  %v2543_v17 = vmul.f32 0.5, %v9526_v14 }
 0x925   :  { %v2591_v27 = vmul.f32 0.044715, %v2575_v41  ;;  %v2576_v34 = vmul.f32 %v2560_v2, %v9537_v57 }
 0x926   :  { %v2609_v38 = vadd.f32 %v2593_v52, %v9521_v12  ;;  %v2594_v0 = vmul.f32 0.044715, %v2578_v48  ;;  %v2544_v12 = vmul.f32 0.5, %v9537_v57 }
 0x927   :  { %v2607_v37 = vadd.f32 %v2591_v27, %v9526_v14  ;;  %v2592_v58 = vmul.f32 0.044715, %v2576_v34  ;;  %v9599_v14 = vld [vmem:[%s12294_s9] ss:$0 sm:$0xff] }
 0x928   :  { %v2625_v5 = vmul.f32 0.7978846, %v2609_v38  ;;  %v2610_v15 = vadd.f32 %v2594_v0, %v9532_v59 }
 0x929   :  { %v2623_v32 = vmul.f32 0.7978846, %v2607_v37  ;;  %v2608_v44 = vadd.f32 %v2592_v58, %v9537_v57 }
 0x92a   :  { %7013 = vtanh.f32 %v2625_v5  ;;  %v2626_v30 = vmul.f32 0.7978846, %v2610_v15 }
 0x92b   :  { %7015 = vtanh.f32 %v2623_v32  ;;  %v2624_v56 = vmul.f32 0.7978846, %v2608_v44 }
 0x92c   :  { %7017 = vtanh.f32 %v2626_v30 }
 0x92d   :  { %7019 = vtanh.f32 %v2624_v56 }
 0x92e   :  { %v6639_v6 = vpop.f32.mrb[12].mxu1 }
 0x92f   :  { %v9563_v20 = vadd.f32 %v6639_v6, %v1458_v16  ;;  %v2504_v35 = vpop.f32.mrb[13].mxu1  ;;  %v7159_v6 = vld [vmem:[%s12634_s22] sm:$0xff] }
 0x930   :  { %v9566_v19 = vadd.f32 %v2504_v35, %v1456_v33  ;;  %v6640_v29 = vpop.f32.mrb[14].mxu1 }
 0x931   :  { %v2565_v22 = vmul.f32 %v9563_v20, %v9563_v20  ;;  %v9571_v62 = vadd.f32 %v6640_v29, %v1459_v55  ;;  %v2507_v23 = vpop.f32.mrb[15].mxu1  ;;  %v7160_v55 = vld [vmem:[%s12634_s22 + $0x18] sm:$0xff] }
 0x932   :  { %v2563_v36 = vmul.f32 %v9566_v19, %v9566_v19  ;;  %v9575_v1 = vadd.f32 %v2507_v23, %v1457_v13  ;;  %v7161_v23 = vld [vmem:[%s12634_s22 + $0x8] sm:$0xff] }
 0x933   :  { %v2581_v42 = vmul.f32 %v2565_v22, %v9563_v20  ;;  %v2566_v49 = vmul.f32 %v9571_v62, %v9571_v62 }
 0x934   :  { %v7014_v10 = vpop.eup %7013  ;;  %v2579_v11 = vmul.f32 %v2563_v36, %v9566_v19  ;;  %v2564_v4 = vmul.f32 %v9575_v1, %v9575_v1 }
 0x935   :  { %v7016_v47 = vpop.eup %7015  ;;  %v2597_v45 = vmul.f32 0.044715, %v2581_v42  ;;  %v2582_v7 = vmul.f32 %v2566_v49, %v9571_v62  ;;  %v2657_v48 = vadd.f32 1.0, %v7014_v10 }
 0x936   :  { %v7018_v41 = vpop.eup %7017  ;;  %v2595_v2 = vmul.f32 0.044715, %v2579_v11  ;;  %v2580_v63 = vmul.f32 %v2564_v4, %v9575_v1  ;;  %v6651_v52 = vpop.f32.mrb[16].mxu1  ;;  %v2655_v0 = vadd.f32 1.0, %v7016_v47  ;;  %v7162_v11 = vld [vmem:[%s12634_s22 + $0x10] sm:$0xff] }
 0x937   :  { %v7020_v54 = vpop.eup %7019  ;;  %v2613_v27 = vadd.f32 %v2597_v45, %v9563_v20  ;;  %v2598_v34 = vmul.f32 0.044715, %v2582_v7  ;;  %v2793_v38 = vadd.f32 %v6651_v52, %v9587_v8  ;;  %v2784_v59 = vpop.f32.mrb[17].mxu1  ;;  %v2658_v58 = vadd.f32 1.0, %v7018_v41 }
 0x938   :  { %v2611_v57 = vadd.f32 %v2595_v2, %v9566_v19  ;;  %v2596_v31 = vmul.f32 0.044715, %v2580_v63  ;;  %v2785_v21 = vadd.f32 %v9587_v8, %v2784_v59  ;;  %v6652_v37 = vpop.f32.mrb[18].mxu1  ;;  %v2656_v32 = vadd.f32 1.0, %v7020_v54  ;;  %v7163_v59 = vld [vmem:[%s12634_s22 + $0x38] sm:$0xff] }
 0x939   :  { %v2629_v18 = vmul.f32 0.7978846, %v2613_v27  ;;  %v2614_v5 = vadd.f32 %v2598_v34, %v9571_v62  ;;  %v2796_v15 = vadd.f32 %v6652_v37, %v9587_v8  ;;  %v2787_v43 = vpop.f32.mrb[19].mxu1  ;;  %v2856_v25 = vmul.f32 %v9599_v14, %v2793_v38  ;;  %v7165_v37 = vld [vmem:[%s12634_s22 + $0x28] sm:$0xff] }
 0x93a   :  { %v2627_v44 = vmul.f32 0.7978846, %v2611_v57  ;;  %v2612_v30 = vadd.f32 %v2596_v31, %v9575_v1  ;;  %v2854_v24 = vmul.f32 %v9599_v14, %v2785_v21  ;;  %v2788_v56 = vadd.f32 %v9587_v8, %v2787_v43  ;;  %v7164_v31 = vld [vmem:[%s12634_s22 + $0x20] sm:$0xff] }
 0x93b   :  { %7021 = vtanh.f32 %v2629_v18  ;;  %v2630_v28 = vmul.f32 0.7978846, %v2614_v5  ;;  %v2857_v16 = vmul.f32 %v9599_v14, %v2796_v15  ;;  %v2671_v13 = vmul.f32 %v2655_v0, %v2543_v17  ;;  %v7166_v15 = vld [vmem:[%s12634_s22 + $0x30] sm:$0xff] }
 0x93c   :  { %7023 = vtanh.f32 %v2627_v44  ;;  %v2628_v60 = vmul.f32 0.7978846, %v2612_v30  ;;  %v9613_v33 = vadd.f32 %v7159_v6, %v2854_v24  ;;  %v2855_v35 = vmul.f32 %v9599_v14, %v2788_v56 }
 0x93d   :  { %7025 = vtanh.f32 %v2630_v28  ;;  %v9619_v29 = vadd.f32 %v7160_v55, %v2857_v16  ;;  %v2672_v22 = vmul.f32 %v2656_v32, %v2544_v12  ;;  %v2673_v49 = vmul.f32 %v2657_v48, %v2545_v46 }
 0x93e   :  { %12773 = vst [vmem:[#allocation11_spill] sm:$0xff] %v9613_v33  ;;  %7027 = vtanh.f32 %v2628_v60  ;;  %v9624_v36 = vadd.f32 %v7161_v23, %v2855_v35  ;;  %v6655_v42 = vpop.f32.mrb[20].mxu1  ;;  %v2674_v10 = vmul.f32 %v2658_v58, %v2546_v61  ;;  %v9629_v4 = vadd.f32 %v7162_v11, %v2856_v25  ;;  %v6889_v23 = vld [vmem:[%s12299_s14 + $0x40] sm:$0xff]   ;;  %v6888_v11 = vld [vmem:[%s12299_s14 + $0x18] sm:$0xff]  }
 0x93f   :  { %12774 = vst [vmem:[#allocation10_spill] sm:$0xff] %v9619_v29  ;;  %v2809_v47 = vadd.f32 %v6655_v42, %v9587_v8  ;;  %v2800_v17 = vpop.f32.mrb[21].mxu1  ;;  %v2683_v45 = vpack.c.bf16 %v2672_v22, %v2671_v13  ;;  %v2549_v30 = vmul.f32 0.5, %v9563_v20  ;;  %v2550_v24 = vmul.f32 0.5, %v9571_v62  ;;  %v6891_v42 = vld [vmem:[%s12299_s14 + $0x48] sm:$0xff]   ;;  %6713 = vmatprep.subr.bf16.mxu0 %v6889_v23 }
 0x940   :  { %12775 = vst [vmem:[#allocation12_spill] sm:$0xff] %v9624_v36  ;;  %12776 = vst [vmem:[#allocation13_spill] sm:$0xff] %v9629_v4  ;;  %v2886_v7 = vpack.c.bf16 %v9624_v36, %v9613_v33  ;;  %v2801_v41 = vadd.f32 %v9587_v8, %v2800_v17  ;;  %v6656_v12 = vpop.f32.mrb[22].mxu1  ;;  %v2684_v2 = vpack.c.bf16 %v2674_v10, %v2673_v49  ;;  %v2547_v25 = vmul.f32 0.5, %v9566_v19  ;;  %v9686_v19 = vld [vmem:[%s12299_s14] sm:$0xff]   ;;  %v6887_v49 = vld [vmem:[%s12299_s14 + $0x10] sm:$0xff]  }
 0x941   :  { %v2887_v46 = vpack.c.bf16 %v9619_v29, %v9629_v4  ;;  %6657 = vmatprep.mubr.msk.bf16.mxu1 %vm201_vm0, %v2683_v45  ;;  %v2812_v61 = vadd.f32 %v6656_v12, %v9587_v8  ;;  %v2803_v63 = vpop.f32.mrb[23].mxu1  ;;  %v2860_v54 = vmul.f32 %v9599_v14, %v2809_v47  ;;  %v2548_v16 = vmul.f32 0.5, %v9575_v1  ;;  %v6886_v1 = vld [vmem:[%s12299_s14 + $0x8] sm:$0xff]   ;;  %6777 = vmatprep.subr.bf16.mxu1 %v9686_v19  ;;  %v6893_v10 = vld [vmem:[%s12299_s14 + $0x50] sm:$0xff]   ;;  %v6895_v47 = vld [vmem:[%s12299_s14 + $0x58] sm:$0xff]  }
 0x942   :  { %v2858_v52 = vmul.f32 %v9599_v14, %v2801_v41  ;;  %6658 = vmatmul.mubr.msk.bf16.gmra.mrb[24].mxu1 %vm201_vm0, %v2684_v2  ;;  %v2804_v48 = vadd.f32 %v9587_v8, %v2803_v63  ;;  %6673 = vmatprep.mubr.msk.bf16.mxu0 %vm201_vm0, %v2886_v7  ;;  %v6890_v17 = vld [vmem:[%s12299_s14 + $0x20] sm:$0xff]   ;;  %v6894_v41 = vld [vmem:[%s12299_s14 + $0x30] sm:$0xff]   ;;  %v6896_v12 = vld [vmem:[%s12299_s14 + $0x38] sm:$0xff]  }
 0x943   :  { %v2861_v27 = vmul.f32 %v9599_v14, %v2812_v61  ;;  %6674 = vmatmul.mubr.msk.bf16.vlgmr.msra.gmra.mrb[32].mxu0 %vm201_vm0, %v2887_v46  ;;  %v9665_v43 = vadd.f32 %v7166_v15, %v2860_v54  ;;  %v6897_v45 = vld [vmem:[%s12299_s14 + $0x60] sm:$0xff]   ;;  %v9729_v2 = vld [vmem:[%s12297_s12 + $0x8] sm:$0xff]  ;;  %v12783_v63 = vld [vmem:[#allocation29_spill] sm:$0xff] }
 0x944   :  { %v2859_v34 = vmul.f32 %v9599_v14, %v2804_v48  ;;  %v9655_v21 = vadd.f32 %v7164_v31, %v2858_v52  ;;  %6714 = vmatpush3.bf16.msra.mxu0 %v6889_v23  ;;  %v9737_v52 = vrot.slane %v9729_v2, %v12783_v63  ;;  %v12785_v48 = vld [vmem:[#allocation30_spill] sm:$0xff] }
 0x945   :  { %v7022_v38 = vpop.eup %7021  ;;  %v9650_v0 = vadd.f32 %v7163_v59, %v2861_v27  ;;  %12780 = vst [vmem:[#allocation19_spill] sm:$0xff] %v9665_v43  ;;  %6715 = vmatprep.subr.bf16.mxu0 %v6891_v42  ;;  %v9741_v54 = vrot.slane %v9729_v2, %v12785_v48  ;;  %v3198_v59 = vld [vmem:[%s12297_s12] sm:$0xff] }
 0x946   :  { %v7024_v57 = vpop.eup %7023  ;;  %12778 = vst [vmem:[#allocation7_spill] sm:$0xff] %v9655_v21  ;;  %v9660_v58 = vadd.f32 %v7165_v37, %v2859_v34  ;;  %v2661_v18 = vadd.f32 1.0, %v7022_v38  ;;  %12784 = vst [vmem:[#allocation18_spill] sm:$0xff] %v9737_v52  ;;  %v4712_v34 = vmul.f32 0.0, %v9737_v52  ;;  %v12789_v37 = vld [vmem:[#allocation32_spill] sm:$0xff] }
 0x947   :  { %12777 = vst [vmem:[#allocation14_spill] sm:$0xff] %v9650_v0  ;;  %v7026_v5 = vpop.eup %7025  ;;  %v2659_v32 = vadd.f32 1.0, %v7024_v57  ;;  %v2889_v60 = vpack.c.bf16 %v9650_v0, %v9665_v43  ;;  %12786 = vst [vmem:[#allocation22_spill] sm:$0xff] %v9741_v54  ;;  %v4765_v38 = vmul.f32 0.0, %v9741_v54  ;;  %v12787_v57 = vld [vmem:[#allocation35_spill] sm:$0xff] }
 0x948   :  { %12779 = vst [vmem:[#allocation17_spill] sm:$0xff] %v9660_v58  ;;  %v7028_v44 = vpop.eup %7027  ;;  %v2888_v56 = vpack.c.bf16 %v9660_v58, %v9655_v21  ;;  %v2662_v28 = vadd.f32 1.0, %v7026_v5  ;;  %v2677_v35 = vmul.f32 %v2661_v18, %v2549_v30  ;;  %6716 = vmatpush3.bf16.msra.mxu0 %v6891_v42  ;;  %v9750_v31 = vrot.slane %v3198_v59, %v12787_v57  ;;  %v12791_v5 = vld [vmem:[#allocation33_spill] sm:$0xff] }
 0x949   :  { %v2660_v6 = vadd.f32 1.0, %v7028_v44  ;;  %v2675_v20 = vmul.f32 %v2659_v32, %v2547_v25  ;;  %6717 = vmatprep.subr.bf16.mxu0 %v6893_v10  ;;  %v9754_v18 = vrot.slane %v9729_v2, %v12789_v37  ;;  %v9757_v32 = vrot.slane %v4712_v34, 1  ;;  %v12793_v44 = vld [vmem:[#allocation31_spill] sm:$0xff]  ;;  %v12794_v25 = vld [vmem:[#allocation37_spill] sm:$0xff] }
 0x94a   :  { %6677 = vmatprep.mubr.msk.bf16.mxu0 %vm201_vm0, %v2888_v56  ;;  %v2678_v55 = vmul.f32 %v2662_v28, %v2550_v24  ;;  %12788 = vst [vmem:[#allocation21_spill] sm:$0xff] %v9750_v31  ;;  %v4774_v30 = vmul.f32 %v4765_v38, %v12793_v44  ;;  %v9763_v24 = vld [vmem:[%s12297_s12 + $0x10] ss:$0 sm:$0xff] }
 0x94b   :  { %6678 = vmatmul.mubr.msk.bf16.gmra.mrb[36].mxu0 %vm201_vm0, %v2889_v60  ;;  %v2676_v62 = vmul.f32 %v2660_v6, %v2548_v16  ;;  %12790 = vst [vmem:[#allocation24_spill] sm:$0xff] %v9754_v18  ;;  %12792 = vst [vmem:[#allocation23_spill] sm:$0xff] %v9757_v32  ;;  %v3620_v28 = vmul.f32 0.0, %v9763_v24  ;;  %v9768_v16 = vrot.slane %v3198_v59, %v12794_v25 }
 0x94c   :  { %v2686_v13 = vpack.c.bf16 %v2678_v55, %v2677_v35  ;;  %6718 = vmatpush3.bf16.msra.mxu0 %v6893_v10  ;;  %v9771_v6 = vrot.slane %v4774_v30, 2  ;;  %v4832_v35 = vmul.f32 0.0, %v9754_v18  ;;  %v12797_v55 = vld [vmem:[#allocation36_spill] sm:$0xff]  ;;  %v9793_v10 = vrot.slane %v3198_v59, %v12783_v63 }
 0x94d   :  { %v2685_v22 = vpack.c.bf16 %v2676_v62, %v2675_v20  ;;  %6719 = vmatprep.subr.bf16.mxu0 %v6895_v47  ;;  %12795 = vst [vmem:[#allocation15_spill] sm:$0xff] %v9768_v16  ;;  %v9775_v20 = vrot.slane %v3198_v59, %v12797_v55  ;;  %v3567_v62 = vmul.f32 0.0, %v9768_v16 }
 0x94e   :  { %12796 = vst [vmem:[#allocation16_spill] sm:$0xff] %v9771_v6  ;;  %12801 = vst [vmem:[#allocation8_spill] sm:$0xff] %v9793_v10 }
 0x94f   :  { %6661 = vmatprep.mubr.msk.bf16.mxu1 %vm201_vm0, %v2685_v22  ;;  %12798 = vst [vmem:[#allocation25_spill] sm:$0xff] %v9775_v20  ;;  %v3629_v22 = vmul.f32 %v3620_v28, %v8525_v3  ;;  %v3537_v42 = vmul.f32 0.0, %v9775_v20  ;;  %v9810_v63 = vrot.slane %v3567_v62, 1 }
 0x950   :  { %6662 = vmatmul.mubr.msk.bf16.gmra.mrb[28].mxu1 %vm201_vm0, %v2686_v13  ;;  %6720 = vmatpush3.bf16.msra.mxu0 %v6895_v47 }
 0x951   :  { %6697 = vmatprep.mubr.msk.bf16.mxu1 %vm201_vm0, %v2886_v7  ;;  %v6892_v7 = vld [vmem:[%s12299_s14 + $0x28] sm:$0xff]   ;;  %6721 = vmatprep.subr.bf16.mxu0 %v6897_v45  ;;  %12806 = vst [vmem:[#allocation30_spill] sm:$0xff] %v9810_v63  ;;  %v9814_v30 = vrot.slane %v3629_v22, 2 }
 0x953   :  { %12807 = vst [vmem:[#allocation35_spill] sm:$0xff] %v9814_v30 }
 0x954   :  { %6722 = vmatpush3.bf16.msra.mxu0 %v6897_v45 }
 0x958   :  { %6698 = vmatmul.mubr.msk.bf16.vlgmr.msra.gmra.mrb[32].mxu1 %vm201_vm0, %v2887_v46  ;;  %v12781_v46 = vld [vmem:[#allocation28_spill] sm:$0xff] }
 0x959   :  { %6701 = vmatprep.mubr.msk.bf16.mxu1 %vm201_vm0, %v2888_v56  ;;  %6785 = vmatpush3.bf16.msra.mxu1 %v9686_v19  ;;  %v9733_v61 = vrot.slane %v9729_v2, %v12781_v46  ;;  %v3470_v56 = vmul.f32 0.0, %v9750_v31  ;;  %v9784_v23 = vrot.slane %v3198_v59, %v12781_v46  ;;  %v9808_v46 = vrot.slane %v9729_v2, %v12787_v57 }
 0x95a   :  { %6778 = vmatprep.subr.bf16.mxu1 %v6886_v1  ;;  %v9819_v57 = vmul.f32 %v3537_v42, %v8481_v39 }
 0x95b   :  { %12782 = vst [vmem:[#allocation20_spill] sm:$0xff] %v9733_v61  ;;  %v4681_v27 = vmul.f32 0.0, %v9733_v61  ;;  %v9779_v13 = vmul.f32 %v3470_v56, %v8500_v40  ;;  %12800 = vst [vmem:[#allocation27_spill] sm:$0xff] %v9784_v23 }
 0x95c   :  { %12808 = vst [vmem:[#allocation32_spill] sm:$0xff] %v9819_v57 }
 0x95d   :  { %6786 = vmatpush3.bf16.msra.mxu1 %v6886_v1  ;;  %v4690_v15 = vmul.f32 %v4681_v27, %v12791_v5  ;;  %12799 = vst [vmem:[#allocation26_spill] sm:$0xff] %v9779_v13  ;;  %v3630_v1 = vmul.f32 %v3620_v28, %v8500_v40 }
 0x95e   :  { %6779 = vmatprep.subr.bf16.mxu1 %v6887_v49 }
 0x95f   :  { %v3655_v56 = vrot.slane %v3630_v1, 2 }
 0x960   :  { %6702 = vmatmul.mubr.msk.bf16.gmra.mrb[36].mxu1 %vm201_vm0, %v2889_v60  ;;  %v4752_v60 = vadd.f32 %v9757_v32, %v4690_v15 }
 0x961   :  { %6787 = vmatpush3.bf16.msra.mxu1 %v6887_v49  ;;  %v9790_v49 = vld [vmem:[%s12296_s11] ss:$0 sm:$0xff] }
 0x962   :  { %6780 = vmatprep.subr.bf16.mxu1 %v6888_v11  ;;  %v4818_v47 = vadd.f32 %v9771_v6, %v4752_v60 }
 0x965   :  { %6788 = vmatpush3.bf16.msra.mxu1 %v6888_v11  ;;  %v9796_v11 = vrot.slane %v3198_v59, %v12785_v48 }
 0x966   :  { %6781 = vmatprep.subr.bf16.mxu1 %v6890_v17 }
 0x967   :  { %12802 = vst [vmem:[#allocation9_spill] sm:$0xff] %v9796_v11 }
 0x969   :  { %6789 = vmatpush3.bf16.msra.mxu1 %v6890_v17  ;;  %v4841_v17 = vmul.f32 %v4832_v35, %v12791_v5 }
 0x96a   :  { %6782 = vmatprep.subr.bf16.mxu1 %v6892_v7 }
 0x96b   :  { %v9827_v1 = vadd.f32 %v4841_v17, %v4818_v47  ;;  %v9842_v47 = vsel %vm561_vm8, %v9814_v30, %v3655_v56 }
 0x96c   :  { %12814 = vst [vmem:[#allocation55_spill] sm:$0xff] %v9842_v47 }
 0x96d   :  { %6790 = vmatpush3.bf16.msra.mxu1 %v6892_v7  ;;  %v9801_v7 = vrot.slane %v3198_v59, %v12789_v37  ;;  %12810 = vst [vmem:[#allocation36_spill] sm:$0xff] %v9827_v1 }
 0x96e   :  { %6783 = vmatprep.subr.bf16.mxu1 %v6894_v41 }
 0x96f   :  { %12803 = vst [vmem:[#allocation28_spill] sm:$0xff] %v9801_v7 }
 0x971   :  { %6791 = vmatpush3.bf16.msra.mxu1 %v6894_v41  ;;  %v12804_v41 = vld [vmem:[#allocation34_spill] sm:$0xff] }
 0x972   :  { %6784 = vmatprep.subr.bf16.mxu1 %v6896_v12  ;;  %v9823_v35 = vrot.slane %v9729_v2, %v12804_v41 }
 0x974   :  { %12809 = vst [vmem:[#allocation37_spill] sm:$0xff] %v9823_v35 }
 0x975   :  { %6792 = vmatpush3.bf16.msra.mxu1 %v6896_v12  ;;  %v9804_v12 = vrot.slane %v3198_v59, %v12804_v41  ;;  %v12812_v41 = vld [vmem:[#allocation43_spill] sm:$0xff] }
 0x976   :  { %v9836_v33 = vmul.f32 %v4681_v27, %v12812_v41  ;;  %v7167_v27 = vld [vmem:[%s12634_s22 + $0x58] sm:$0xff] }
 0x977   :  { %12805 = vst [vmem:[#allocation29_spill] sm:$0xff] %v9804_v12 }
 0x978   :  { %12813 = vst [vmem:[#allocation54_spill] sm:$0xff] %v9836_v33 }
 0xa15   :  { %v6659_v45 = vpop.f32.mrb[24].mxu1 }
 0xa16   :  { %v2825_v48 = vadd.f32 %v6659_v45, %v9587_v8  ;;  %v2816_v34 = vpop.f32.mrb[25].mxu1  ;;  %v6675_v38 = vpop.f32.mrb[32].mxu0 }
 0xa17   :  { %v2817_v37 = vadd.f32 %v9587_v8, %v2816_v34  ;;  %v6660_v28 = vpop.f32.mrb[26].mxu1  ;;  %v3000_v59 = vadd.f32 %v6675_v38, %v9790_v49  ;;  %v2991_v60 = vpop.f32.mrb[33].mxu0  ;;  %v9831_v34 = vrot.slane %v9729_v2, %v12797_v55 }
 0xa18   :  { %v2828_v62 = vadd.f32 %v6660_v28, %v9587_v8  ;;  %v2819_v45 = vpop.f32.mrb[27].mxu1  ;;  %v2992_v22 = vadd.f32 %v9790_v49, %v2991_v60  ;;  %v6676_v15 = vpop.f32.mrb[34].mxu0  ;;  %v2864_v28 = vmul.f32 %v9599_v14, %v2825_v48 }
 0xa19   :  { %12811 = vst [vmem:[#allocation34_spill] sm:$0xff] %v9831_v34  ;;  %v2862_v38 = vmul.f32 %v9599_v14, %v2817_v37  ;;  %v2820_v42 = vadd.f32 %v9587_v8, %v2819_v45  ;;  %v3072_v36 = vmul.f32 %v3000_v59, %v3000_v59  ;;  %v2994_v29 = vpop.f32.mrb[35].mxu0  ;;  %v3003_v37 = vadd.f32 %v6676_v15, %v9790_v49 }
 0xa1a   :  { %v2865_v60 = vmul.f32 %v9599_v14, %v2828_v62  ;;  %v3070_v4 = vmul.f32 %v2992_v22, %v2992_v22  ;;  %v9848_v45 = vrot.slane %v9729_v2, %v12794_v25  ;;  %v9855_v62 = vmul.f32 0.5, %v3000_v59  ;;  %v7169_v2 = vld [vmem:[%s12634_s22 + $0x48] sm:$0xff] }
 0xa1b   :  { %v2863_v55 = vmul.f32 %v9599_v14, %v2820_v42  ;;  %v3088_v17 = vmul.f32 %v3072_v36, %v3000_v59  ;;  %v2995_v56 = vadd.f32 %v9790_v49, %v2994_v29  ;;  %v7168_v36 = vld [vmem:[%s12634_s22 + $0x40] sm:$0xff]  ;;  %v9873_v29 = vmul.f32 0.5, %v2992_v22 }
 0xa1c   :  { %12815 = vst [vmem:[#allocation56_spill] sm:$0xff] %v9848_v45  ;;  %v9853_v48 = vadd.f32 %v7167_v27, %v2865_v60  ;;  %v3086_v58 = vmul.f32 %v3070_v4, %v2992_v22  ;;  %v9861_v15 = vadd.f32 %v7168_v36, %v2862_v38  ;;  %v3073_v60 = vmul.f32 %v3003_v37, %v3003_v37  ;;  %v7170_v4 = vld [vmem:[%s12634_s22 + $0x50] sm:$0xff] }
 0xa1d   :  { %v9866_v25 = vadd.f32 %v7169_v2, %v2863_v55  ;;  %v3104_v42 = vmul.f32 0.044715, %v3088_v17  ;;  %v9871_v27 = vadd.f32 %v7170_v4, %v2864_v28  ;;  %v3071_v21 = vmul.f32 %v2995_v56, %v2995_v56 }
 0xa1e   :  { %12816 = vst [vmem:[#allocation57_spill] sm:$0xff] %v9853_v48  ;;  %12817 = vst [vmem:[#allocation58_spill] sm:$0xff] %v9861_v15  ;;  %v3102_v0 = vmul.f32 0.044715, %v3086_v58  ;;  %v6679_v38 = vpop.f32.mrb[36].mxu0  ;;  %v3089_v45 = vmul.f32 %v3073_v60, %v3003_v37  ;;  %v9881_v58 = vmul.f32 0.5, %v3003_v37 }
 0xa1f   :  { %12818 = vst [vmem:[#allocation59_spill] sm:$0xff] %v9866_v25  ;;  %12819 = vst [vmem:[#allocation60_spill] sm:$0xff] %v9871_v27  ;;  %v2890_v36 = vpack.c.bf16 %v9866_v25, %v9861_v15  ;;  %v3120_v43 = vadd.f32 %v3104_v42, %v3000_v59  ;;  %v3016_v55 = vadd.f32 %v6679_v38, %v9790_v49  ;;  %v3007_v17 = vpop.f32.mrb[37].mxu0  ;;  %v9885_v60 = vmul.f32 0.5, %v2995_v56 }
 0xa20   :  { %v2891_v2 = vpack.c.bf16 %v9853_v48, %v9871_v27  ;;  %v3118_v5 = vadd.f32 %v3102_v0, %v2992_v22  ;;  %v3087_v34 = vmul.f32 %v3071_v21, %v2995_v56  ;;  %v3008_v28 = vadd.f32 %v9790_v49, %v3007_v17  ;;  %v6680_v4 = vpop.f32.mrb[38].mxu0 }
 0xa21   :  { %v3136_v44 = vmul.f32 0.7978846, %v3120_v43  ;;  %v3105_v1 = vmul.f32 0.044715, %v3089_v45  ;;  %v3076_v35 = vmul.f32 %v3016_v55, %v3016_v55  ;;  %6681 = vmatprep.mubr.msk.bf16.mxu0 %vm201_vm0, %v2890_v36  ;;  %6705 = vmatprep.mubr.msk.bf16.mxu1 %vm201_vm0, %v2890_v36  ;;  %v3010_v59 = vpop.f32.mrb[39].mxu0  ;;  %12820 = vst [vmem:[#allocation61_spill] sm:$0xff] %v9885_v60  ;;  %v9890_v43 = vadd.f32 %v6680_v4, %v9790_v49 }
 0xa22   :  { %v3134_v42 = vmul.f32 0.7978846, %v3118_v5  ;;  %v3103_v38 = vmul.f32 0.044715, %v3087_v34  ;;  %v3074_v25 = vmul.f32 %v3008_v28, %v3008_v28  ;;  %6682 = vmatmul.mubr.msk.bf16.gmra.mrb[40].mxu0 %vm201_vm0, %v2891_v2  ;;  %6706 = vmatmul.mubr.msk.bf16.gmra.mrb[40].mxu1 %vm201_vm0, %v2891_v2  ;;  %v6898_v45 = vld [vmem:[%s12299_s14 + $0x68] sm:$0xff]   ;;  %v6899_v5 = vld [vmem:[%s12299_s14 + $0x70] sm:$0xff]   ;;  %v9899_v17 = vadd.f32 %v9790_v49, %v3010_v59 }
 0xa23   :  { %7029 = vtanh.f32 %v3136_v44  ;;  %v3121_v0 = vadd.f32 %v3105_v1, %v3003_v37  ;;  %v3092_v21 = vmul.f32 %v3076_v35, %v3016_v55  ;;  %v6663_v22 = vpop.f32.mrb[28].mxu1  ;;  %v9901_v1 = vmul.f32 0.5, %v3016_v55  ;;  %6723 = vmatprep.subr.bf16.mxu0 %v6898_v45 }
 0xa24   :  { %7031 = vtanh.f32 %v3134_v42  ;;  %v3119_v34 = vadd.f32 %v3103_v38, %v2995_v56  ;;  %v3090_v36 = vmul.f32 %v3074_v25, %v3008_v28  ;;  %v2832_v44 = vpop.f32.mrb[29].mxu1  ;;  %v3077_v2 = vmul.f32 %v9890_v43, %v9890_v43  ;;  %6724 = vmatpush3.bf16.msra.mxu0 %v6898_v45  ;;  %v6900_v38 = vld [vmem:[%s12299_s14 + $0x78] sm:$0xff]  }
 0xa25   :  { %v3137_v35 = vmul.f32 0.7978846, %v3121_v0  ;;  %v3108_v37 = vmul.f32 0.044715, %v3092_v21  ;;  %v6664_v4 = vpop.f32.mrb[30].mxu1  ;;  %v9905_v15 = vmul.f32 0.5, %v3008_v28  ;;  %v3075_v56 = vmul.f32 %v9899_v17, %v9899_v17  ;;  %6725 = vmatprep.subr.bf16.mxu0 %v6899_v5 }
 0xa26   :  { %v3135_v48 = vmul.f32 0.7978846, %v3119_v34  ;;  %v3106_v27 = vmul.f32 0.044715, %v3090_v36  ;;  %v2835_v25 = vpop.f32.mrb[31].mxu1  ;;  %v3093_v59 = vmul.f32 %v3077_v2, %v9890_v43  ;;  %v2841_v42 = vadd.f32 %v6663_v22, %v9587_v8 }
 0xa27   :  { %7033 = vtanh.f32 %v3137_v35  ;;  %v3124_v49 = vadd.f32 %v3108_v37, %v3016_v55  ;;  %v3091_v21 = vmul.f32 %v3075_v56, %v9899_v17  ;;  %v2833_v34 = vadd.f32 %v9587_v8, %v2832_v44 }
 0xa28   :  { %7035 = vtanh.f32 %v3135_v48  ;;  %v3122_v0 = vadd.f32 %v3106_v27, %v3008_v28  ;;  %v3109_v60 = vmul.f32 0.044715, %v3093_v59  ;;  %v2868_v45 = vmul.f32 %v9599_v14, %v2841_v42  ;;  %v9923_v48 = vld [vmem:[%s12296_s11 + $0x1] ss:$0 sm:$0xff]  ;;  %6726 = vmatpush3.bf16.msra.mxu0 %v6899_v5  ;;  %v7171_v28 = vld [vmem:[%s12634_s22 + $0x70] sm:$0xff] }
 0xa29   :  { %v3140_v36 = vmul.f32 0.7978846, %v3124_v49  ;;  %v2844_v55 = vadd.f32 %v6664_v4, %v9587_v8  ;;  %v3107_v37 = vmul.f32 0.044715, %v3091_v21  ;;  %v2866_v22 = vmul.f32 %v9599_v14, %v2833_v34  ;;  %6727 = vmatprep.subr.bf16.mxu0 %v6900_v38  ;;  %v7172_v5 = vld [vmem:[%s12634_s22 + $0x60] sm:$0xff] }
 0xa2a   :  { %v3138_v35 = vmul.f32 0.7978846, %v3122_v0  ;;  %v2836_v2 = vadd.f32 %v9587_v8, %v2835_v25  ;;  %v3125_v27 = vadd.f32 %v3109_v60, %v9890_v43  ;;  %v9929_v44 = vadd.f32 %v7171_v28, %v2868_v45  ;;  %v7173_v0 = vld [vmem:[%s12634_s22 + $0x78] sm:$0xff] }
 0xa2b   :  { %7037 = vtanh.f32 %v3140_v36  ;;  %v2869_v4 = vmul.f32 %v9599_v14, %v2844_v55  ;;  %v6699_v56 = vpop.f32.mrb[32].mxu1  ;;  %v3123_v8 = vadd.f32 %v3107_v37, %v9899_v17  ;;  %v9936_v25 = vadd.f32 %v7172_v5, %v2866_v22 }
 0xa2c   :  { %12821 = vst [vmem:[#allocation62_spill] sm:$0xff] %v9929_v44  ;;  %7039 = vtanh.f32 %v3138_v35  ;;  %v2867_v60 = vmul.f32 %v9599_v14, %v2836_v2  ;;  %v4445_v49 = vpop.f32.mrb[33].mxu1  ;;  %v3141_v42 = vmul.f32 0.7978846, %v3125_v27  ;;  %v4454_v34 = vadd.f32 %v6699_v56, %v9923_v48  ;;  %v7174_v14 = vld [vmem:[%s12634_s22 + $0x68] sm:$0xff]  ;;  %6728 = vmatpush3.bf16.msra.mxu0 %v6900_v38 }
 0xa2d   :  { %12822 = vst [vmem:[#allocation63_spill] sm:$0xff] %v9936_v25  ;;  %v7030_v59 = vpop.eup %7029  ;;  %v9942_v21 = vadd.f32 %v7173_v0, %v2869_v4  ;;  %v4446_v36 = vadd.f32 %v9923_v48, %v4445_v49  ;;  %v6700_v45 = vpop.f32.mrb[34].mxu1  ;;  %v3139_v37 = vmul.f32 0.7978846, %v3123_v8  ;;  %v9953_v4 = vmul.f32 0.5, %v9890_v43  ;;  %6745 = vmatprep.subr.bf16.mxu0 %v9686_v19 }
 0xa2e   :  { %v7032_v55 = vpop.eup %7031  ;;  %v3168_v35 = vadd.f32 1.0, %v7030_v59  ;;  %v9949_v22 = vadd.f32 %v7174_v14, %v2867_v60  ;;  %v4457_v2 = vadd.f32 %v6700_v45, %v9923_v48  ;;  %v4448_v27 = vpop.f32.mrb[35].mxu1  ;;  %7041 = vtanh.f32 %v3141_v42 }
 0xa2f   :  { %12823 = vst [vmem:[#allocation64_spill] sm:$0xff] %v9942_v21  ;;  %v3166_v28 = vadd.f32 1.0, %v7032_v55  ;;  %v9956_v56 = vmul.f32 0.5, %v9899_v17  ;;  %7043 = vtanh.f32 %v3139_v37  ;;  %v2893_v8 = vpack.c.bf16 %v9942_v21, %v9929_v44 }
 0xa30   :  { %12824 = vst [vmem:[#allocation65_spill] sm:$0xff] %v9949_v22  ;;  %v2892_v5 = vpack.c.bf16 %v9949_v22, %v9936_v25  ;;  %v4526_v60 = vmul.f32 %v4454_v34, %v4454_v34  ;;  %v9964_v38 = vmul.f32 %v3168_v35, %v9855_v62  ;;  %v9969_v59 = vmul.f32 0.5, %v4454_v34  ;;  %v12829_v25 = vld [vmem:[#allocation38_spill] sm:$0xff] }
 0xa31   :  { %v7034_v49 = vpop.eup %7033  ;;  %v9967_v43 = vmul.f32 %v3166_v28, %v9873_v29  ;;  %v4524_v17 = vmul.f32 %v4446_v36, %v4446_v36  ;;  %v9971_v45 = vmul.f32 0.5, %v4446_v36  ;;  %v4527_v55 = vmul.f32 %v4457_v2, %v4457_v2 }
 0xa32   :  { %12825 = vst [vmem:[#allocation66_spill] sm:$0xff] %v9964_v38  ;;  %v7036_v42 = vpop.eup %7035  ;;  %v3169_v19 = vadd.f32 1.0, %v7034_v49  ;;  %v4542_v0 = vmul.f32 %v4526_v60, %v4454_v34  ;;  %6685 = vmatprep.mubr.msk.bf16.mxu0 %vm201_vm0, %v2892_v5  ;;  %6709 = vmatprep.mubr.msk.bf16.mxu1 %vm201_vm0, %v2892_v5  ;;  %v9984_v37 = vadd.f32 %v9923_v48, %v4448_v27  ;;  %v9991_v49 = vmul.f32 0.5, %v4457_v2 }
 0xa33   :  { %12826 = vst [vmem:[#allocation67_spill] sm:$0xff] %v9967_v43  ;;  %v3229_v62 = vmul.f32 %v9784_v23, %v9967_v43  ;;  %v9979_v29 = vmul.f32 %v9793_v10, %v9967_v43  ;;  %v3312_v35 = vmul.f32 %v9796_v11, %v9967_v43  ;;  %6686 = vmatmul.mubr.msk.bf16.gmra.mrb[44].mxu0 %vm201_vm0, %v2893_v8  ;;  %v6703_v14 = vpop.f32.mrb[36].mxu1  ;;  %v10000_v41 = vadd.f32 1.0, %v7036_v42 }
 0xa34   :  { %v9989_v28 = vmul.f32 %v9801_v7, %v9967_v43  ;;  %v4558_v5 = vmul.f32 0.044715, %v4542_v0  ;;  %v4540_v60 = vmul.f32 %v4524_v17, %v4446_v36  ;;  %6710 = vmatmul.mubr.msk.bf16.gmra.mrb[44].mxu1 %vm201_vm0, %v2893_v8  ;;  %v4461_v22 = vpop.f32.mrb[37].mxu1  ;;  %v9998_v27 = vmul.f32 %v3169_v19, %v9881_v58  ;;  %v12833_v8 = vld [vmem:[#allocation40_spill] sm:$0xff] }
 0xa35   :  { %12827 = vst [vmem:[#allocation68_spill] sm:$0xff] %v9979_v29  ;;  %v7038_v21 = vpop.eup %7037  ;;  %v9995_v44 = vmul.f32 %v3229_v62, %v12829_v25  ;;  %12832 = vst [vmem:[#allocation72_spill] sm:$0xff] %v10000_v41  ;;  %v4543_v47 = vmul.f32 %v4527_v55, %v4457_v2  ;;  %v6704_v33 = vpop.f32.mrb[38].mxu1  ;;  %v10004_v57 = vmul.f32 %v3312_v35, %v12833_v8 }
 0xa36   :  { %12828 = vst [vmem:[#allocation69_spill] sm:$0xff] %v9989_v28  ;;  %12831 = vst [vmem:[#allocation71_spill] sm:$0xff] %v9998_v27  ;;  %v7040_v43 = vpop.eup %7039  ;;  %v3172_v17 = vadd.f32 1.0, %v7038_v21  ;;  %v4574_v28 = vadd.f32 %v4558_v5, %v4454_v34  ;;  %v4556_v6 = vmul.f32 0.044715, %v4540_v60  ;;  %v4464_v32 = vpop.f32.mrb[39].mxu1  ;;  %v4525_v55 = vmul.f32 %v9984_v37, %v9984_v37 }
 0xa37   :  { %12830 = vst [vmem:[#allocation70_spill] sm:$0xff] %v9995_v44  ;;  %12834 = vst [vmem:[#allocation73_spill] sm:$0xff] %v10004_v57  ;;  %v3170_v30 = vadd.f32 1.0, %v7040_v43  ;;  %v4559_v62 = vmul.f32 0.044715, %v4543_v47  ;;  %v10007_v44 = vmul.f32 0.5, %v9984_v37  ;;  %v4470_v35 = vadd.f32 %v6703_v14, %v9923_v48 }
 0xa38   :  { %v10010_v58 = vmul.f32 %v3172_v17, %v9901_v1  ;;  %v4590_v42 = vmul.f32 0.7978846, %v4574_v28  ;;  %v4572_v19 = vadd.f32 %v4556_v6, %v4446_v36  ;;  %v7042_v21 = vpop.eup %7041  ;;  %v4462_v47 = vadd.f32 %v9923_v48, %v4461_v22 }
 0xa39   :  { %v10015_v34 = vmul.f32 %v3170_v30, %v9905_v15  ;;  %v4575_v5 = vadd.f32 %v4559_v62, %v4457_v2  ;;  %v7044_v43 = vpop.eup %7043  ;;  %v3173_v60 = vadd.f32 1.0, %v7042_v21  ;;  %v4541_v21 = vmul.f32 %v4525_v55, %v9984_v37 }
 0xa3a   :  { %v3235_v1 = vmul.f32 %v9784_v23, %v10010_v58  ;;  %v10023_v6 = vmul.f32 %v9793_v10, %v10010_v58  ;;  %v3318_v36 = vmul.f32 %v9796_v11, %v10010_v58  ;;  %v3171_v28 = vadd.f32 1.0, %v7044_v43 }
 0xa3b   :  { %7045 = vtanh.f32 %v4590_v42  ;;  %v4588_v30 = vmul.f32 0.7978846, %v4572_v19  ;;  %v4591_v15 = vmul.f32 0.7978846, %v4575_v5  ;;  %v10028_v2 = vmul.f32 %v3173_v60, %v9953_v4 }
 0xa3c   :  { %v3244_v22 = vmul.f32 %v3235_v1, %v8481_v39  ;;  %v12443_v14 = vrot.slane %v10023_v6, 1  ;;  %v10033_v17 = vmul.f32 %v3318_v36, %v8525_v3  ;;  %v10036_v62 = vmul.f32 %v3171_v28, %v9956_v56 }
 0xa3d   :  { %7047 = vtanh.f32 %v4588_v30  ;;  %v10039_v43 = vmul.f32 0.5, %v4470_v35  ;;  %v3319_v4 = vmul.f32 %v9796_v11, %v10028_v2  ;;  %v3386_v5 = vmul.f32 %v9801_v7, %v10028_v2 }
 0xa3e   :  { %v3306_v42 = vadd.f32 %v12443_v14, %v3244_v22  ;;  %v10050_v56 = vmul.f32 %v9804_v12, %v10028_v2  ;;  %v3469_v55 = vmul.f32 %v9750_v31, %v10028_v2  ;;  %v10056_v60 = vmul.f32 %v9775_v20, %v10028_v2 }
 0xa3f   :  { %7049 = vtanh.f32 %v4591_v15  ;;  %v3328_v1 = vmul.f32 %v3319_v4, %v8500_v40  ;;  %v3395_v36 = vmul.f32 %v3386_v5, %v8481_v39  ;;  %v4557_v28 = vmul.f32 0.044715, %v4541_v21 }
 0xa40   :  { %12835 = vst [vmem:[#allocation74_spill] sm:$0xff] %v10056_v60  ;;  %v4530_v30 = vmul.f32 %v4470_v35, %v4470_v35  ;;  %v10062_v0 = vmul.f32 %v3469_v55, %v8525_v3  ;;  %v10064_v14 = vmul.f32 0.5, %v4462_v47  ;;  %v4528_v19 = vmul.f32 %v4462_v47, %v4462_v47 }
 0xa41   :  { %v3353_v29 = vrot.slane %v3328_v1, 2  ;;  %v4573_v41 = vadd.f32 %v4557_v28, %v9984_v37  ;;  %v4473_v15 = vadd.f32 %v6704_v33, %v9923_v48  ;;  %v4465_v21 = vadd.f32 %v9923_v48, %v4464_v32 }
 0xa42   :  { %12836 = vst [vmem:[#allocation75_spill] sm:$0xff] %v10062_v0  ;;  %v4546_v57 = vmul.f32 %v4530_v30, %v4470_v35  ;;  %v4544_v63 = vmul.f32 %v4528_v19, %v4462_v47  ;;  %v3231_v5 = vmul.f32 %v9784_v23, %v9964_v38  ;;  %v12837_v55 = vrot.slane %v10033_v17, 2 }
 0xa43   :  { %v4589_v3 = vmul.f32 0.7978846, %v4573_v41  ;;  %v10075_v1 = vmul.f32 0.5, %v4473_v15  ;;  %v4531_v33 = vmul.f32 %v4473_v15, %v4473_v15  ;;  %v10077_v60 = vmul.f32 0.5, %v4465_v21 }
 0xa44   :  { %v3354_v22 = vsel %vm561_vm8, %v12837_v55, %v3353_v29  ;;  %v4562_v39 = vmul.f32 0.044715, %v4546_v57  ;;  %v4560_v30 = vmul.f32 0.044715, %v4544_v63  ;;  %v4529_v48 = vmul.f32 %v4465_v21, %v4465_v21 }
 0xa45   :  { %v7046_v37 = vpop.eup %7045  ;;  %v3372_v28 = vadd.f32 %v3354_v22, %v3306_v42  ;;  %7051 = vtanh.f32 %v4589_v3  ;;  %v4547_v50 = vmul.f32 %v4531_v33, %v4473_v15  ;;  %v3232_v41 = vmul.f32 %v9784_v23, %v9998_v27 }
 0xa46   :  { %v4622_v19 = vadd.f32 1.0, %v7046_v37  ;;  %v4578_v32 = vadd.f32 %v4562_v39, %v4470_v35  ;;  %v4576_v0 = vadd.f32 %v4560_v30, %v4462_v47  ;;  %v4545_v63 = vmul.f32 %v4529_v48, %v4465_v21 }
 0xa47   :  { %v7048_v4 = vpop.eup %7047  ;;  %v3404_v13 = vadd.f32 %v3395_v36, %v3372_v28  ;;  %v12839_v55 = vrot.slane %v10050_v56, 1  ;;  %v4563_v3 = vmul.f32 0.044715, %v4547_v50  ;;  %v3233_v35 = vmul.f32 %v9784_v23, %v10015_v34  ;;  %v12841_v28 = vld [vmem:[#allocation44_spill] sm:$0xff] }
 0xa48   :  { %v10082_v57 = vmul.f32 %v4622_v19, %v9969_v59  ;;  %v4620_v29 = vadd.f32 1.0, %v7048_v4  ;;  %v4594_v42 = vmul.f32 0.7978846, %v4578_v32  ;;  %v4592_v39 = vmul.f32 0.7978846, %v4576_v0 }
 0xa49   :  { %v7050_v22 = vpop.eup %7049  ;;  %v10086_v37 = vadd.f32 %v12839_v55, %v3404_v13  ;;  %v4561_v59 = vmul.f32 0.044715, %v4545_v63  ;;  %v4579_v4 = vadd.f32 %v4563_v3, %v4473_v15  ;;  %v3240_v30 = vmul.f32 %v3231_v5, %v12841_v28 }
 0xa4a   :  { %12838 = vst [vmem:[#allocation76_spill] sm:$0xff] %v10082_v57  ;;  %v10091_v47 = vmul.f32 %v4620_v29, %v9971_v45  ;;  %v4623_v36 = vadd.f32 1.0, %v7050_v22  ;;  %7053 = vtanh.f32 %v4594_v42  ;;  %v3241_v33 = vmul.f32 %v3232_v41, %v8521_v26 }
 0xa4b   :  { %7055 = vtanh.f32 %v4592_v39  ;;  %v4595_v5 = vmul.f32 0.7978846, %v4579_v4  ;;  %v4577_v19 = vadd.f32 %v4561_v59, %v4465_v21  ;;  %v3242_v32 = vmul.f32 %v3233_v35, %v8465_v9 }
 0xa4c   :  { %12840 = vst [vmem:[#allocation77_spill] sm:$0xff] %v10091_v47  ;;  %v4683_v13 = vmul.f32 %v9733_v61, %v10091_v47  ;;  %v10099_v50 = vmul.f32 %v9737_v52, %v10091_v47  ;;  %v4766_v45 = vmul.f32 %v9741_v54, %v10091_v47  ;;  %v10105_v0 = vmul.f32 %v9754_v18, %v10091_v47 }
 0xa4d   :  { %v10108_v15 = vmul.f32 %v4623_v36, %v9991_v49  ;;  %v10120_v42 = vmul.f32 %v9793_v10, %v9964_v38  ;;  %7057 = vtanh.f32 %v4595_v5  ;;  %v4593_v63 = vmul.f32 0.7978846, %v4577_v19 }
 0xa4e   :  { %v10112_v48 = vmul.f32 %v4683_v13, %v12829_v25  ;;  %v10116_v29 = vmul.f32 %v4766_v45, %v12833_v8  ;;  %v3262_v49 = vmul.f32 %v9793_v10, %v9998_v27  ;;  %v3263_v21 = vmul.f32 %v9793_v10, %v10015_v34 }
 0xa4f   :  { %12842 = vst [vmem:[#allocation78_spill] sm:$0xff] %v10108_v15  ;;  %12843 = vst [vmem:[#allocation79_spill] sm:$0xff] %v10120_v42  ;;  %v7052_v22 = vpop.eup %7051  ;;  %v10129_v39 = vmul.f32 %v9793_v10, %v10036_v62  ;;  %v12469_v3 = vrot.slane %v10120_v42, 1  ;;  %v3314_v35 = vmul.f32 %v9796_v11, %v9964_v38  ;;  %7059 = vtanh.f32 %v4593_v63 }
 0xa50   :  { %v4621_v36 = vadd.f32 1.0, %v7052_v22  ;;  %v3281_v59 = vrot.slane %v3262_v49, 1  ;;  %v3283_v4 = vrot.slane %v3263_v21, 1  ;;  %v3315_v45 = vmul.f32 %v9796_v11, %v9998_v27  ;;  %v12844_v21 = vld [vmem:[#allocation42_spill] sm:$0xff] }
 0xa51   :  { %v12477_v13 = vrot.slane %v10129_v39, 1  ;;  %v3316_v5 = vmul.f32 %v9796_v11, %v10015_v34  ;;  %v3317_v19 = vmul.f32 %v9796_v11, %v10036_v62  ;;  %v10149_v22 = vmul.f32 %v3314_v35, %v12844_v21  ;;  %v12846_v11 = vld [vmem:[#allocation45_spill] sm:$0xff] }
 0xa52   :  { %v10142_v55 = vmul.f32 %v4621_v36, %v10007_v44  ;;  %v3282_v63 = vsel %vm401_vm1, %v12469_v3, %v3281_v59  ;;  %v3284_v49 = vsel %vm401_vm1, %v3281_v59, %v3283_v4  ;;  %v3324_v15 = vmul.f32 %v3315_v45, %v12846_v11 }
 0xa53   :  { %12845 = vst [vmem:[#allocation80_spill] sm:$0xff] %v10149_v22  ;;  %v3286_v38 = vsel %vm401_vm1, %v3283_v4, %v12477_v13  ;;  %v3302_v10 = vadd.f32 %v3282_v63, %v3240_v30  ;;  %v3303_v61 = vadd.f32 %v3284_v49, %v3241_v33  ;;  %v3325_v42 = vmul.f32 %v3316_v5, %v8473_v51 }
 0xa54   :  { %v7054_v41 = vpop.eup %7053  ;;  %v3304_v8 = vadd.f32 %v3286_v38, %v3242_v32  ;;  %v10157_v3 = vmul.f32 %v3317_v19, %v8484_v53  ;;  %v12473_v35 = vrot.slane %v10149_v22, 2  ;;  %v3345_v57 = vrot.slane %v3324_v15, 2 }
 0xa55   :  { %v7056_v44 = vpop.eup %7055  ;;  %v4626_v36 = vadd.f32 1.0, %v7054_v41  ;;  %v3382_v47 = vmul.f32 %v9801_v7, %v9998_v27  ;;  %v3347_v33 = vrot.slane %v3325_v42, 2  ;;  %v3383_v38 = vmul.f32 %v9801_v7, %v10015_v34 }
 0xa56   :  { %v4624_v59 = vadd.f32 1.0, %v7056_v44  ;;  %v12476_v4 = vrot.slane %v10157_v3, 2  ;;  %v3346_v41 = vsel %vm561_vm8, %v12473_v35, %v3345_v57  ;;  %v3384_v15 = vmul.f32 %v9801_v7, %v10036_v62 }
 0xa57   :  { %v10163_v30 = vmul.f32 %v4626_v36, %v10039_v43  ;;  %v3391_v45 = vmul.f32 %v3382_v47, %v12841_v28  ;;  %v7058_v43 = vpop.eup %7057  ;;  %v3348_v42 = vsel %vm561_vm8, %v3345_v57, %v3347_v33  ;;  %v3368_v19 = vadd.f32 %v3346_v41, %v3302_v10 }
 0xa58   :  { %v10169_v32 = vmul.f32 %v4624_v59, %v10064_v14  ;;  %v3350_v5 = vsel %vm561_vm8, %v3347_v33, %v12476_v4  ;;  %v3392_v14 = vmul.f32 %v3383_v38, %v8521_v26  ;;  %v4627_v63 = vadd.f32 1.0, %v7058_v43 }
 0xa59   :  { %v3369_v49 = vadd.f32 %v3348_v42, %v3303_v61  ;;  %v3370_v44 = vadd.f32 %v3350_v5, %v3304_v8  ;;  %v3393_v36 = vmul.f32 %v3384_v15, %v8465_v9  ;;  %v7060_v59 = vpop.eup %7059  ;;  %v3400_v35 = vadd.f32 %v3391_v45, %v3368_v19 }
 0xa5a   :  { %v10185_v47 = vmul.f32 %v9804_v12, %v9998_v27  ;;  %v3413_v57 = vmul.f32 %v9804_v12, %v10015_v34  ;;  %v3414_v33 = vmul.f32 %v9804_v12, %v10036_v62  ;;  %v10192_v10 = vmul.f32 %v4627_v63, %v10075_v1 }
 0xa5b   :  { %v4625_v38 = vadd.f32 1.0, %v7060_v59  ;;  %v3401_v61 = vadd.f32 %v3392_v14, %v3369_v49  ;;  %v3402_v8 = vadd.f32 %v3393_v36, %v3370_v44  ;;  %v10196_v41 = vmul.f32 %v9804_v12, %v10010_v58 }
 0xa5c   :  { %12847 = vst [vmem:[#allocation81_spill] sm:$0xff] %v10185_v47  ;;  %v12474_v15 = vrot.slane %v10185_v47, 1  ;;  %v3432_v45 = vrot.slane %v3413_v57, 1  ;;  %v3434_v43 = vrot.slane %v3414_v33, 1  ;;  %v4773_v42 = vmul.f32 %v9741_v54, %v10192_v10 }
 0xa5d   :  { %v10203_v5 = vmul.f32 %v9754_v18, %v10192_v10  ;;  %v10207_v1 = vmul.f32 %v9808_v46, %v10192_v10  ;;  %v10210_v19 = vmul.f32 %v4625_v38, %v10077_v60  ;;  %v12475_v49 = vrot.slane %v10196_v41, 1 }
 0xa5e   :  { %v3433_v14 = vsel %vm401_vm1, %v12474_v15, %v3432_v45  ;;  %v3435_v63 = vsel %vm401_vm1, %v3432_v45, %v3434_v43  ;;  %v3465_v44 = vmul.f32 %v9750_v31, %v9998_v27  ;;  %v10220_v36 = vmul.f32 %v4773_v42, %v8500_v40 }
 0xa5f   :  { %12848 = vst [vmem:[#allocation82_spill] sm:$0xff] %v10207_v1  ;;  %v3453_v59 = vadd.f32 %v3433_v14, %v3400_v35  ;;  %v3454_v57 = vadd.f32 %v3435_v63, %v3401_v61  ;;  %v3466_v60 = vmul.f32 %v9750_v31, %v10015_v34  ;;  %v3437_v33 = vsel %vm401_vm1, %v3434_v43, %v12475_v49 }
 0xa60   :  { %12849 = vst [vmem:[#allocation83_spill] sm:$0xff] %v10220_v36  ;;  %v3467_v38 = vmul.f32 %v9750_v31, %v10036_v62  ;;  %v3468_v45 = vmul.f32 %v9750_v31, %v10010_v58  ;;  %v10232_v15 = vmul.f32 %v3465_v44, %v12844_v21  ;;  %v3455_v35 = vadd.f32 %v3437_v33, %v3402_v8 }
 0xa61   :  { %v3475_v61 = vmul.f32 %v3466_v60, %v12846_v11  ;;  %v3533_v14 = vmul.f32 %v9775_v20, %v10015_v34  ;;  %v3534_v4 = vmul.f32 %v9775_v20, %v10036_v62  ;;  %v3535_v44 = vmul.f32 %v9775_v20, %v10010_v58 }
 0xa62   :  { %12850 = vst [vmem:[#allocation84_spill] sm:$0xff] %v10232_v15  ;;  %v3476_v63 = vmul.f32 %v3467_v38, %v8473_v51  ;;  %v3477_v43 = vmul.f32 %v3468_v45, %v8484_v53  ;;  %v12489_v49 = vrot.slane %v10232_v15, 2  ;;  %v10248_v60 = vmul.f32 %v9768_v16, %v10015_v34 }
 0xa63   :  { %v3496_v13 = vrot.slane %v3475_v61, 2  ;;  %v3542_v8 = vmul.f32 %v3533_v14, %v12841_v28  ;;  %v3543_v38 = vmul.f32 %v3534_v4, %v8521_v26  ;;  %v3564_v45 = vmul.f32 %v9768_v16, %v10036_v62 }
 0xa64   :  { %12851 = vst [vmem:[#allocation85_spill] sm:$0xff] %v10248_v60  ;;  %v3498_v33 = vrot.slane %v3476_v63, 2  ;;  %v3500_v42 = vrot.slane %v3477_v43, 2  ;;  %v3544_v47 = vmul.f32 %v3535_v44, %v8465_v9  ;;  %v3565_v14 = vmul.f32 %v9768_v16, %v10010_v58 }
 0xa65   :  { %v3497_v61 = vsel %vm561_vm8, %v12489_v49, %v3496_v13  ;;  %v3566_v22 = vmul.f32 %v9768_v16, %v10028_v2  ;;  %v12497_v27 = vrot.slane %v10248_v60, 1  ;;  %v3583_v15 = vrot.slane %v3564_v45, 1 }
 0xa66   :  { %v3499_v63 = vsel %vm561_vm8, %v3496_v13, %v3498_v33  ;;  %v3501_v43 = vsel %vm561_vm8, %v3498_v33, %v3500_v42  ;;  %v3519_v4 = vadd.f32 %v3497_v61, %v3453_v59  ;;  %v3585_v12 = vrot.slane %v3565_v14, 1 }
 0xa67   :  { %v3520_v20 = vadd.f32 %v3499_v63, %v3454_v57  ;;  %v3521_v31 = vadd.f32 %v3501_v43, %v3455_v35  ;;  %v3587_v40 = vrot.slane %v3566_v22, 1  ;;  %v3616_v44 = vmul.f32 %v9763_v24, %v10015_v34  ;;  %v12857_v63 = vld [vmem:[#allocation51_spill] sm:$0xff] }
 0xa68   :  { %v3551_v49 = vadd.f32 %v3542_v8, %v3519_v4  ;;  %v3617_v1 = vmul.f32 %v9763_v24, %v10036_v62  ;;  %v3584_v13 = vsel %vm401_vm1, %v12497_v27, %v3583_v15  ;;  %v3586_v59 = vsel %vm401_vm1, %v3583_v15, %v3585_v12 }
 0xa69   :  { %v3552_v16 = vadd.f32 %v3543_v38, %v3520_v20  ;;  %v3553_v36 = vadd.f32 %v3544_v47, %v3521_v31  ;;  %v3588_v57 = vsel %vm401_vm1, %v3585_v12, %v3587_v40  ;;  %v3618_v22 = vmul.f32 %v9763_v24, %v10010_v58 }
 0xa6a   :  { %v3604_v35 = vadd.f32 %v3584_v13, %v3551_v49  ;;  %v3619_v34 = vmul.f32 %v9763_v24, %v10028_v2  ;;  %v10278_v20 = vmul.f32 %v3616_v44, %v12844_v21  ;;  %v3626_v31 = vmul.f32 %v3617_v1, %v12846_v11  ;;  %v12860_v44 = vld [vmem:[#allocation75_spill] sm:$0xff] }
 0xa6b   :  { %v3605_v8 = vadd.f32 %v3586_v59, %v3552_v16  ;;  %v3606_v33 = vadd.f32 %v3588_v57, %v3553_v36  ;;  %v3627_v47 = vmul.f32 %v3618_v22, %v8473_v51  ;;  %v3234_v12 = vmul.f32 %v9784_v23, %v10036_v62  ;;  %v12862_v59 = vld [vmem:[#allocation26_spill] sm:$0xff] }
 0xa6c   :  { %12852 = vst [vmem:[#allocation86_spill] sm:$0xff] %v10278_v20  ;;  %v3628_v15 = vmul.f32 %v3619_v34, %v8484_v53  ;;  %v12853_v49 = vrot.slane %v10023_v6, 1  ;;  %v12854_v38 = vrot.slane %v10129_v39, 1  ;;  %v12496_v16 = vrot.slane %v10278_v20, 2 }
 0xa6d   :  { %v3647_v2 = vrot.slane %v3626_v31, 2  ;;  %v12855_v36 = vrot.slane %v10033_v17, 2  ;;  %v12856_v1 = vrot.slane %v10157_v3, 2  ;;  %v3385_v61 = vmul.f32 %v9801_v7, %v10010_v58 }
 0xa6e   :  { %v3288_v24 = vsel %vm401_vm1, %v12854_v38, %v12853_v49  ;;  %v3649_v14 = vrot.slane %v3627_v47, 2  ;;  %v3651_v62 = vrot.slane %v3628_v15, 2  ;;  %v3243_v6 = vmul.f32 %v3234_v12, %v12857_v63 }
 0xa6f   :  { %v3352_v45 = vsel %vm561_vm8, %v12856_v1, %v12855_v36  ;;  %v12858_v39 = vrot.slane %v10050_v56, 1  ;;  %v12859_v43 = vrot.slane %v10196_v41, 1  ;;  %v3648_v17 = vsel %vm561_vm8, %v12496_v16, %v3647_v2  ;;  %v12877_v16 = vld [vmem:[#allocation41_spill] sm:$0xff] }
 0xa70   :  { %v3394_v3 = vmul.f32 %v3385_v61, %v12857_v63  ;;  %v12861_v13 = vrot.slane %v12860_v44, 2  ;;  %v12863_v57 = vrot.slane %v12862_v59, 2  ;;  %v3650_v41 = vsel %vm561_vm8, %v3647_v2, %v3649_v14  ;;  %v12867_v61 = vld [vmem:[#allocation30_spill] sm:$0xff]  ;;  %v12868_v2 = vld [vmem:[#allocation35_spill] sm:$0xff]  ;;  %v12873_v44 = vld [vmem:[#allocation16_spill] sm:$0xff] }
 0xa71   :  { %v3439_v4 = vsel %vm401_vm1, %v12859_v43, %v12858_v39  ;;  %v3652_v34 = vsel %vm561_vm8, %v3649_v14, %v3651_v62  ;;  %v10318_v31 = vadd.f32 %v3648_v17, %v3604_v35  ;;  %v3305_v47 = vadd.f32 %v3288_v24, %v3243_v6  ;;  %v12871_v17 = vld [vmem:[#allocation23_spill] sm:$0xff] }
 0xa72   :  { %v3503_v58 = vsel %vm561_vm8, %v3500_v42, %v12861_v13  ;;  %v12864_v22 = vmov %v12861_v13  ;;  %v3671_v15 = vadd.f32 %v3650_v41, %v3605_v8  ;;  %v10320_v12 = vadd.f32 %v3652_v34, %v3606_v33  ;;  %v12866_v42 = vld [vmem:[#allocation74_spill] sm:$0xff]  ;;  %v12869_v8 = vld [vmem:[#allocation32_spill] sm:$0xff] }
 0xa73   :  { %v3505_v56 = vsel %vm561_vm8, %v12864_v22, %v12863_v57  ;;  %12865 = vst [vmem:[#allocation75_spill] sm:$0xff] %v10318_v31  ;;  %v3545_v38 = vmul.f32 %v12866_v42, %v12857_v63  ;;  %v12495_v36 = vrot.slane %v10318_v31, 7  ;;  %v3371_v1 = vadd.f32 %v3352_v45, %v3305_v47  ;;  %v6340_v57 = vld [vmem:[%s12298_s13] ss:$0 sm:$0xff] }
 0xa74   :  { %v3523_v49 = vadd.f32 %v3505_v56, %v10086_v37  ;;  %v3590_v39 = vsel %vm401_vm1, %v3587_v40, %v12867_v61  ;;  %v3654_v14 = vsel %vm561_vm8, %v3651_v62, %v12868_v2  ;;  %v4132_v35 = vrot.slane %v3671_v15, 7 }
 0xa75   :  { %v12498_v24 = vrot.slane %v10320_v12, 7  ;;  %v10334_v37 = vmul.f32 %v9737_v52, %v10142_v55  ;;  %v3403_v6 = vadd.f32 %v3394_v3, %v3371_v1  ;;  %v12870_v43 = vrot.slane %v10099_v50, 1  ;;  %v12875_v1 = vld [vmem:[#allocation55_spill] sm:$0xff] }
 0xa76   :  { %v3555_v33 = vadd.f32 %v12869_v8, %v3523_v49  ;;  %v4767_v40 = vmul.f32 %v9741_v54, %v10142_v55  ;;  %v12872_v62 = vrot.slane %v10116_v29, 2  ;;  %v4133_v3 = vsel %vm518_vm2, %v12495_v36, %v4132_v35  ;;  %v12874_v49 = vld [vmem:[#allocation54_spill] sm:$0xff] }
 0xa77   :  { %v4730_v45 = vsel %vm401_vm1, %v12871_v17, %v12870_v43  ;;  %v4135_v22 = vsel %vm518_vm2, %v4132_v35, %v12498_v24  ;;  %v12499_v41 = vrot.slane %v10334_v37, 1  ;;  %v4192_v34 = vadd.f32 %v6340_v57, %v4133_v3 }
 0xa78   :  { %v4794_v13 = vsel %vm561_vm8, %v12873_v44, %v12872_v62  ;;  %v3608_v56 = vadd.f32 %v12867_v61, %v3555_v33  ;;  %v4193_v47 = vadd.f32 %v6340_v57, %v4135_v22  ;;  %v3456_v15 = vadd.f32 %v3439_v4, %v3403_v6 }
 0xa79   :  { %v4753_v42 = vadd.f32 %v4730_v45, %v12874_v49  ;;  %v12876_v62 = vrot.slane %v10099_v50, 1  ;;  %v10365_v27 = vmul.f32 %v4767_v40, %v12877_v16  ;;  %v4834_v35 = vmul.f32 %v9754_v18, %v10142_v55  ;;  %v12878_v40 = vld [vmem:[#allocation43_spill] sm:$0xff]  ;;  %v12889_v49 = vld [vmem:[#allocation56_spill] sm:$0xff] }
 0xa7a   :  { %v3674_v43 = vadd.f32 %v12875_v1, %v3608_v56  ;;  %v10369_v33 = vmul.f32 0.5, %v4192_v34  ;;  %v10371_v3 = vmul.f32 0.5, %v4193_v47  ;;  %v4224_v4 = vmul.f32 %v4192_v34, %v4192_v34 }
 0xa7b   :  { %v4732_v36 = vsel %vm401_vm1, %v12876_v62, %v12499_v41  ;;  %v4225_v6 = vmul.f32 %v4193_v47, %v4193_v47  ;;  %v3522_v45 = vadd.f32 %v3503_v58, %v3456_v15  ;;  %v12503_v50 = vrot.slane %v10365_v27, 2  ;;  %v12880_v15 = vld [vmem:[#allocation77_spill] sm:$0xff] }
 0xa7c   :  { %v4138_v22 = vrot.slane %v3674_v43, 7  ;;  %v4754_v56 = vadd.f32 %v4732_v36, %v10112_v48  ;;  %v4240_v24 = vmul.f32 %v4224_v4, %v4192_v34  ;;  %v4819_v41 = vadd.f32 %v4794_v13, %v4753_v42  ;;  %v12881_v43 = vld [vmem:[#allocation37_spill] sm:$0xff] }
 0xa7d   :  { %v4241_v62 = vmul.f32 %v4225_v6, %v4193_v47  ;;  %v4842_v31 = vmul.f32 %v10105_v0, %v12878_v40  ;;  %v3554_v20 = vadd.f32 %v3545_v38, %v3522_v45  ;;  %v12879_v60 = vrot.slane %v10116_v29, 2  ;;  %v12882_v38 = vld [vmem:[#allocation76_spill] sm:$0xff] }
 0xa7e   :  { %v4843_v58 = vmul.f32 %v4834_v35, %v12829_v25  ;;  %v4863_v48 = vmul.f32 %v12881_v43, %v12880_v15  ;;  %v4256_v36 = vmul.f32 0.044715, %v4240_v24  ;;  %v4864_v0 = vmul.f32 %v12881_v43, %v10142_v55 }
 0xa7f   :  { %v4796_v1 = vsel %vm561_vm8, %v12879_v60, %v12503_v50  ;;  %v4257_v2 = vmul.f32 0.044715, %v4241_v62  ;;  %v4851_v6 = vadd.f32 %v4842_v31, %v4819_v41  ;;  %v3607_v13 = vadd.f32 %v3590_v39, %v3554_v20  ;;  %v12883_v31 = vld [vmem:[#allocation36_spill] sm:$0xff] }
 0xa80   :  { %v4820_v4 = vadd.f32 %v4796_v1, %v4754_v56  ;;  %v10389_v42 = vmul.f32 %v12881_v43, %v12882_v38  ;;  %v4879_v29 = vrot.slane %v4863_v48, 1  ;;  %v4272_v45 = vadd.f32 %v4256_v36, %v4192_v34 }
 0xa81   :  { %v4273_v60 = vadd.f32 %v4257_v2, %v4193_v47  ;;  %v4916_v35 = vmul.f32 %v9808_v46, %v12880_v15  ;;  %v3673_v8 = vadd.f32 %v3654_v14, %v3607_v13  ;;  %v4880_v24 = vrot.slane %v4864_v0, 1  ;;  %v12884_v47 = vld [vmem:[#allocation31_spill] sm:$0xff] }
 0xa82   :  { %v4852_v50 = vadd.f32 %v4843_v58, %v4820_v4  ;;  %v12504_v1 = vrot.slane %v10389_v42, 1  ;;  %v4903_v20 = vadd.f32 %v4879_v29, %v12883_v31  ;;  %v4288_v39 = vmul.f32 0.7978846, %v4272_v45  ;;  %v12885_v4 = vld [vmem:[#allocation40_spill] sm:$0xff] }
 0xa83   :  { %v4289_v41 = vmul.f32 0.7978846, %v4273_v60  ;;  %v4917_v56 = vmul.f32 %v9808_v46, %v10142_v55  ;;  %v4918_v62 = vmul.f32 %v9808_v46, %v12882_v38  ;;  %v4136_v34 = vrot.slane %v3673_v8, 7 }
 0xa84   :  { %v4881_v2 = vsel %vm401_vm1, %v4879_v29, %v4880_v24  ;;  %v4883_v14 = vsel %vm401_vm1, %v4880_v24, %v12504_v1  ;;  %v4925_v58 = vmul.f32 %v4916_v35, %v12884_v47  ;;  %7061 = vtanh.f32 %v4288_v39 }
 0xa85   :  { %v4904_v48 = vadd.f32 %v4881_v2, %v4851_v6  ;;  %v4905_v36 = vadd.f32 %v4883_v14, %v4852_v50  ;;  %v4926_v13 = vmul.f32 %v4917_v56, %v12885_v4  ;;  %7063 = vtanh.f32 %v4289_v41  ;;  %v12887_v50 = vld [vmem:[#allocation34_spill] sm:$0xff] }
 0xa86   :  { %v12886_v0 = vrot.slane %v10320_v12, 7  ;;  %v4139_v8 = vsel %vm518_vm2, %v4136_v34, %v4138_v22  ;;  %v10410_v29 = vmul.f32 %v4918_v62, %v12877_v16  ;;  %v4943_v24 = vrot.slane %v4925_v58, 2 }
 0xa87   :  { %v4195_v59 = vadd.f32 %v6340_v57, %v4139_v8  ;;  %v4944_v1 = vrot.slane %v4926_v13, 2  ;;  %v4983_v6 = vmul.f32 %v12887_v50, %v12880_v15  ;;  %v4984_v39 = vmul.f32 %v12887_v50, %v10142_v55  ;;  %v12888_v15 = vld [vmem:[#allocation33_spill] sm:$0xff] }
 0xa88   :  { %v4137_v45 = vsel %vm518_vm2, %v12886_v0, %v4136_v34  ;;  %v12508_v35 = vrot.slane %v10410_v29, 2  ;;  %v4985_v12 = vmul.f32 %v12887_v50, %v12882_v38  ;;  %v4969_v2 = vadd.f32 %v4943_v24, %v4903_v20 }
 0xa89   :  { %v4194_v60 = vadd.f32 %v6340_v57, %v4137_v45  ;;  %v10421_v22 = vmul.f32 0.5, %v4195_v59  ;;  %v4227_v62 = vmul.f32 %v4195_v59, %v4195_v59  ;;  %v4945_v57 = vsel %vm561_vm8, %v4943_v24, %v4944_v1 }
 0xa8a   :  { %v4947_v34 = vsel %vm561_vm8, %v4944_v1, %v12508_v35  ;;  %v4992_v14 = vmul.f32 %v4983_v6, %v12888_v15  ;;  %v4970_v0 = vadd.f32 %v4945_v57, %v4904_v48  ;;  %v4993_v8 = vmul.f32 %v4984_v39, %v12878_v40  ;;  %v10435_v1 = vld [vmem:[%s12297_s12 + $0x18] ss:$0 sm:$0xff] }
 0xa8b   :  { %v10419_v41 = vmul.f32 0.5, %v4194_v60  ;;  %v4226_v56 = vmul.f32 %v4194_v60, %v4194_v60  ;;  %v4243_v13 = vmul.f32 %v4227_v62, %v4195_v59  ;;  %v4971_v45 = vadd.f32 %v4947_v34, %v4905_v36  ;;  %v12890_v48 = vld [vmem:[#allocation78_spill] sm:$0xff] }
 0xa8c   :  { %v4994_v61 = vmul.f32 %v4985_v12, %v12829_v25  ;;  %v5001_v31 = vadd.f32 %v4992_v14, %v4969_v2  ;;  %v5014_v44 = vmul.f32 %v12889_v49, %v10142_v55  ;;  %v5015_v20 = vmul.f32 %v12889_v49, %v12882_v38 }
 0xa8d   :  { %v4242_v58 = vmul.f32 %v4226_v56, %v4194_v60  ;;  %v4259_v7 = vmul.f32 0.044715, %v4243_v13  ;;  %v10441_v36 = vmul.f32 %v12889_v49, %v12890_v48  ;;  %v5002_v24 = vadd.f32 %v4993_v8, %v4970_v0 }
 0xa8e   :  { %v5003_v6 = vadd.f32 %v4994_v61, %v4971_v45  ;;  %v5030_v39 = vrot.slane %v5014_v44, 1  ;;  %v5067_v12 = vmul.f32 %v10435_v1, %v10142_v55  ;;  %v7062_v56 = vpop.eup %7061  ;;  %v5031_v34 = vrot.slane %v5015_v20, 1 }
 0xa8f   :  { %v4258_v17 = vmul.f32 0.044715, %v4242_v58  ;;  %v4275_v57 = vadd.f32 %v4259_v7, %v4195_v59  ;;  %v12511_v2 = vrot.slane %v10441_v36, 1  ;;  %v7064_v14 = vpop.eup %7063  ;;  %v4320_v58 = vadd.f32 1.0, %v7062_v56 }
 0xa90   :  { %v5054_v13 = vadd.f32 %v5030_v39, %v5001_v31  ;;  %v5068_v35 = vmul.f32 %v10435_v1, %v12882_v38  ;;  %v5069_v0 = vmul.f32 %v10435_v1, %v12890_v48  ;;  %v4321_v61 = vadd.f32 1.0, %v7064_v14 }
 0xa91   :  { %v4274_v62 = vadd.f32 %v4258_v17, %v4194_v60  ;;  %v4291_v45 = vmul.f32 0.7978846, %v4275_v57  ;;  %v5032_v8 = vsel %vm401_vm1, %v5030_v39, %v5031_v34  ;;  %v4336_v17 = vmul.f32 %v4320_v58, %v10369_v33  ;;  %v12891_v33 = vld [vmem:[#allocation20_spill] sm:$0xff] }
 0xa92   :  { %v5034_v7 = vsel %vm401_vm1, %v5031_v34, %v12511_v2  ;;  %v5055_v59 = vadd.f32 %v5032_v8, %v5002_v24  ;;  %v5076_v31 = vmul.f32 %v5067_v12, %v12884_v47  ;;  %v4337_v60 = vmul.f32 %v4321_v61, %v10371_v3 }
 0xa93   :  { %v4290_v44 = vmul.f32 0.7978846, %v4274_v62  ;;  %v5056_v20 = vadd.f32 %v5034_v7, %v5003_v6  ;;  %v5077_v56 = vmul.f32 %v5068_v35, %v12885_v4  ;;  %v10459_v62 = vmul.f32 %v5069_v0, %v12877_v16  ;;  %v12892_v35 = vld [vmem:[#allocation39_spill] sm:$0xff] }
 0xa94   :  { %v5094_v39 = vrot.slane %v5076_v31, 2  ;;  %v4684_v57 = vmul.f32 %v12891_v33, %v10142_v55  ;;  %v4350_v14 = vpack.c.bf16 %v4337_v60, %v4336_v17  ;;  %v4685_v24 = vmul.f32 %v12891_v33, %v12882_v38 }
 0xa95   :  { %7065 = vtanh.f32 %v4290_v44  ;;  %v5095_v58 = vrot.slane %v5077_v56, 2  ;;  %v4715_v3 = vmul.f32 %v9737_v52, %v12882_v38  ;;  %v12510_v6 = vrot.slane %v10459_v62, 2 }
 0xa96   :  { %7067 = vtanh.f32 %v4291_v45  ;;  %v5120_v12 = vadd.f32 %v5094_v39, %v5054_v13  ;;  %v4693_v34 = vmul.f32 %v4684_v57, %v12892_v35  ;;  %v10471_v0 = vmul.f32 %v9737_v52, %v12890_v48  ;;  %6765 = vmatprep.mubr.bf16.mxu1 %v4350_v14  ;;  %v10492_v14 = vld [vmem:[%s12298_s13 + $0x1] ss:$0 sm:$0xff] }
 0xa97   :  { %v5096_v55 = vsel %vm561_vm8, %v5094_v39, %v5095_v58  ;;  %v4694_v61 = vmul.f32 %v4685_v24, %v12841_v28  ;;  %v4733_v44 = vrot.slane %v4715_v3, 1  ;;  %v4768_v45 = vmul.f32 %v9741_v54, %v12882_v38 }
 0xa98   :  { %v5098_v8 = vsel %vm561_vm8, %v5095_v58, %v12510_v6  ;;  %v5121_v13 = vadd.f32 %v5096_v55, %v5055_v59  ;;  %v5576_v17 = vrot.slane %v5120_v12, 7  ;;  %v12509_v7 = vrot.slane %v10471_v0, 1 }
 0xa99   :  { %v10481_v31 = vadd.f32 %v5098_v8, %v5056_v20  ;;  %v12893_v60 = vrot.slane %v10334_v37, 1  ;;  %v4769_v39 = vmul.f32 %v9741_v54, %v12890_v48  ;;  %v4777_v57 = vmul.f32 %v4768_v45, %v12844_v21 }
 0xa9a   :  { %v5577_v59 = vrot.slane %v5121_v13, 7  ;;  %v4736_v20 = vsel %vm401_vm1, %v4733_v44, %v12509_v7  ;;  %v4835_v37 = vmul.f32 %v9754_v18, %v12882_v38  ;;  %v4836_v8 = vmul.f32 %v9754_v18, %v12890_v48 }
 0xa9b   :  { %v4734_v56 = vsel %vm401_vm1, %v12893_v60, %v4733_v44  ;;  %v12513_v24 = vrot.slane %v10481_v31, 7  ;;  %v4756_v3 = vadd.f32 %v4736_v20, %v4694_v61  ;;  %v10501_v12 = vmul.f32 %v4769_v39, %v12846_v11 }
 0xa9c   :  { %v4755_v58 = vadd.f32 %v4734_v56, %v4693_v34  ;;  %v4797_v55 = vrot.slane %v4777_v57, 2  ;;  %v5578_v45 = vsel %vm518_vm2, %v5576_v17, %v5577_v59  ;;  %v4844_v13 = vmul.f32 %v4835_v37, %v12892_v35 }
 0xa9d   :  { %v4866_v34 = vmul.f32 %v12881_v43, %v12890_v48  ;;  %v5580_v38 = vsel %vm518_vm2, %v5577_v59, %v12513_v24  ;;  %v5641_v61 = vadd.f32 %v10492_v14, %v5578_v45  ;;  %v12894_v60 = vrot.slane %v10365_v27, 2 }
 0xa9e   :  { %v12515_v17 = vrot.slane %v10501_v12, 2  ;;  %v5642_v20 = vadd.f32 %v10492_v14, %v5580_v38  ;;  %v4845_v7 = vmul.f32 %v4836_v8, %v12841_v28  ;;  %v10530_v8 = vmul.f32 %v12881_v43, %v10169_v32 }
 0xa9f   :  { %v7066_v44 = vpop.eup %7065  ;;  %v4798_v56 = vsel %vm561_vm8, %v12894_v60, %v4797_v55  ;;  %v10519_v2 = vmul.f32 0.5, %v5641_v61  ;;  %v5673_v4 = vmul.f32 %v5641_v61, %v5641_v61  ;;  %v4884_v25 = vrot.slane %v4866_v34, 1 }
 0xaa0   :  { %v7068_v39 = vpop.eup %7067  ;;  %v4322_v57 = vadd.f32 1.0, %v7066_v44  ;;  %v4821_v37 = vadd.f32 %v4798_v56, %v4755_v58  ;;  %v4800_v59 = vsel %vm561_vm8, %v4797_v55, %v12515_v17  ;;  %v10525_v45 = vmul.f32 0.5, %v5642_v20 }
 0xaa1   :  { %v4323_v6 = vadd.f32 1.0, %v7068_v39  ;;  %v5674_v60 = vmul.f32 %v5642_v20, %v5642_v20  ;;  %v4822_v24 = vadd.f32 %v4800_v59, %v4756_v3  ;;  %v5689_v38 = vmul.f32 %v5673_v4, %v5641_v61 }
 0xaa2   :  { %v4338_v27 = vmul.f32 %v4322_v57, %v10419_v41  ;;  %v4853_v58 = vadd.f32 %v4844_v13, %v4821_v37  ;;  %v4919_v55 = vmul.f32 %v9808_v46, %v12890_v48  ;;  %v4886_v57 = vrot.slane %v10530_v8, 1 }
 0xaa3   :  { %v4339_v44 = vmul.f32 %v4323_v6, %v10421_v22  ;;  %v5690_v56 = vmul.f32 %v5674_v60, %v5642_v20  ;;  %v4854_v39 = vadd.f32 %v4845_v7, %v4822_v24  ;;  %v5705_v41 = vmul.f32 0.044715, %v5689_v38 }
 0xaa4   :  { %v4920_v3 = vmul.f32 %v9808_v46, %v10169_v32  ;;  %v12895_v4 = vrot.slane %v10389_v42, 1  ;;  %v4928_v13 = vmul.f32 %v4919_v55, %v12844_v21  ;;  %v4986_v7 = vmul.f32 %v12887_v50, %v12890_v48 }
 0xaa5   :  { %v4351_v17 = vpack.c.bf16 %v4339_v44, %v4338_v27  ;;  %v5706_v22 = vmul.f32 0.044715, %v5690_v56  ;;  %v5721_v24 = vadd.f32 %v5705_v41, %v5641_v61  ;;  %v4887_v34 = vsel %vm401_vm1, %v4884_v25, %v4886_v57 }
 0xaa6   :  { %v4885_v6 = vsel %vm401_vm1, %v12895_v4, %v4884_v25  ;;  %v10547_v59 = vmul.f32 %v4920_v3, %v12846_v11  ;;  %v4907_v60 = vadd.f32 %v4887_v34, %v4854_v39  ;;  %v4948_v42 = vrot.slane %v4928_v13, 2 }
 0xaa7   :  { %6766 = vmatmul.mubr.bf16.vlgmr.msra.gmra.mrb[48].mxu1 %v4351_v17  ;;  %v4906_v37 = vadd.f32 %v4885_v6, %v4853_v58  ;;  %v5722_v27 = vadd.f32 %v5706_v22, %v5642_v20  ;;  %v4987_v44 = vmul.f32 %v12887_v50, %v10169_v32  ;;  %v5737_v38 = vmul.f32 0.7978846, %v5721_v24 }
 0xaa8   :  { %v4950_v56 = vrot.slane %v10547_v59, 2  ;;  %v4995_v17 = vmul.f32 %v4986_v7, %v12892_v35  ;;  %v5017_v61 = vmul.f32 %v12889_v49, %v10169_v32  ;;  %v12896_v25 = vrot.slane %v10410_v29, 2 }
 0xaa9   :  { %v5738_v55 = vmul.f32 0.7978846, %v5722_v27  ;;  %v4996_v20 = vmul.f32 %v4987_v44, %v12841_v28  ;;  %v10561_v39 = vmul.f32 %v12889_v49, %v10210_v19  ;;  %7069 = vtanh.f32 %v5737_v38 }
 0xaaa   :  { %v4949_v58 = vsel %vm561_vm8, %v12896_v25, %v4948_v42  ;;  %v4951_v41 = vsel %vm561_vm8, %v4948_v42, %v4950_v56  ;;  %v5035_v22 = vrot.slane %v5017_v61, 1  ;;  %v5070_v29 = vmul.f32 %v10435_v1, %v10169_v32 }
 0xaab   :  { %v4972_v3 = vadd.f32 %v4949_v58, %v4906_v37  ;;  %7071 = vtanh.f32 %v5738_v55  ;;  %v4973_v4 = vadd.f32 %v4951_v41, %v4907_v60  ;;  %v12516_v6 = vrot.slane %v10561_v39, 1 }
 0xaac   :  { %v12897_v7 = vrot.slane %v10441_v36, 1  ;;  %v5071_v34 = vmul.f32 %v10435_v1, %v10210_v19  ;;  %v4686_v27 = vmul.f32 %v12891_v33, %v12890_v48  ;;  %v5079_v42 = vmul.f32 %v5070_v29, %v12844_v21 }
 0xaad   :  { %v5004_v13 = vadd.f32 %v4995_v17, %v4972_v3  ;;  %v5005_v37 = vadd.f32 %v4996_v20, %v4973_v4  ;;  %v5038_v60 = vsel %vm401_vm1, %v5035_v22, %v12516_v6  ;;  %v4687_v44 = vmul.f32 %v12891_v33, %v10169_v32 }
 0xaae   :  { %v5036_v24 = vsel %vm401_vm1, %v12897_v7, %v5035_v22  ;;  %v10583_v36 = vmul.f32 %v5071_v34, %v12846_v11  ;;  %v4695_v17 = vmul.f32 %v4686_v27, %v8521_v26  ;;  %v4717_v61 = vmul.f32 %v9737_v52, %v10169_v32 }
 0xaaf   :  { %v5057_v38 = vadd.f32 %v5036_v24, %v5004_v13  ;;  %v5058_v48 = vadd.f32 %v5038_v60, %v5005_v37  ;;  %v5099_v55 = vrot.slane %v5079_v42, 2  ;;  %v4696_v25 = vmul.f32 %v4687_v44, %v8465_v9 }
 0xab0   :  { %v10591_v58 = vmul.f32 %v9737_v52, %v10210_v19  ;;  %v12517_v20 = vrot.slane %v10583_v36, 2  ;;  %v4737_v41 = vrot.slane %v4717_v61, 1  ;;  %v4770_v3 = vmul.f32 %v9741_v54, %v10169_v32 }
 0xab1   :  { %v4771_v22 = vmul.f32 %v9741_v54, %v10210_v19  ;;  %v12898_v4 = vrot.slane %v10459_v62, 2  ;;  %v4837_v7 = vmul.f32 %v9754_v18, %v10169_v32  ;;  %v4838_v24 = vmul.f32 %v9754_v18, %v10210_v19 }
 0xab2   :  { %v4739_v13 = vrot.slane %v10591_v58, 1  ;;  %v5102_v34 = vsel %vm561_vm8, %v5099_v55, %v12517_v20  ;;  %v12899_v37 = vrot.slane %v10471_v0, 1  ;;  %v4779_v62 = vmul.f32 %v4770_v3, %v8473_v51 }
 0xab3   :  { %v5100_v29 = vsel %vm561_vm8, %v12898_v4, %v5099_v55  ;;  %v10613_v42 = vadd.f32 %v5102_v34, %v5058_v48  ;;  %v10619_v61 = vmul.f32 %v4771_v22, %v8484_v53  ;;  %v7070_v4 = vpop.eup %7069  ;;  %v4846_v0 = vmul.f32 %v4837_v7, %v8521_v26 }
 0xab4   :  { %v5123_v27 = vadd.f32 %v5100_v29, %v5057_v38  ;;  %v4738_v60 = vsel %vm401_vm1, %v12899_v37, %v4737_v41  ;;  %v4740_v32 = vsel %vm401_vm1, %v4737_v41, %v4739_v13  ;;  %v4801_v38 = vrot.slane %v4779_v62, 2 }
 0xab5   :  { %v4757_v44 = vadd.f32 %v4738_v60, %v4695_v17  ;;  %v4758_v55 = vadd.f32 %v4740_v32, %v4696_v25  ;;  %v7072_v29 = vpop.eup %7071  ;;  %v5769_v37 = vadd.f32 1.0, %v7070_v4  ;;  %v12518_v3 = vrot.slane %v10613_v42, 7 }
 0xab6   :  { %v5581_v6 = vrot.slane %v5123_v27, 7  ;;  %v12519_v48 = vrot.slane %v10619_v61, 2  ;;  %v4847_v34 = vmul.f32 %v4838_v24, %v8465_v9  ;;  %v5770_v20 = vadd.f32 1.0, %v7072_v29 }
 0xab7   :  { %v12900_v17 = vrot.slane %v10481_v31, 7  ;;  %v12901_v22 = vrot.slane %v10501_v12, 2  ;;  %v4868_v7 = vmul.f32 %v12881_v43, %v10210_v19  ;;  %v5785_v27 = vmul.f32 %v5769_v37, %v10519_v2 }
 0xab8   :  { %v5584_v60 = vsel %vm518_vm2, %v5581_v6, %v12518_v3  ;;  %v4804_v31 = vsel %vm561_vm8, %v4801_v38, %v12519_v48  ;;  %v5786_v62 = vmul.f32 %v5770_v20, %v10525_v45  ;;  %v10647_v2 = vmul.f32 %v12881_v43, %v10163_v30 }
 0xab9   :  { %v5582_v41 = vsel %vm518_vm2, %v12900_v17, %v5581_v6  ;;  %v4802_v25 = vsel %vm561_vm8, %v12901_v22, %v4801_v38  ;;  %v5644_v12 = vadd.f32 %v10492_v14, %v5584_v60  ;;  %v4824_v4 = vadd.f32 %v4804_v31, %v4758_v55 }
 0xaba   :  { %v5643_v24 = vadd.f32 %v10492_v14, %v5582_v41  ;;  %v4823_v32 = vadd.f32 %v4802_v25, %v4757_v44  ;;  %v4888_v6 = vrot.slane %v4868_v7, 1  ;;  %v5801_v37 = vpack.c.bf16 %v5786_v62, %v5785_v27 }
 0xabb   :  { %v10649_v41 = vmul.f32 0.5, %v5644_v12  ;;  %v5676_v22 = vmul.f32 %v5644_v12, %v5644_v12  ;;  %v4856_v48 = vadd.f32 %v4847_v34, %v4824_v4  ;;  %v4890_v20 = vrot.slane %v10647_v2, 1 }
 0xabc   :  { %v10643_v29 = vmul.f32 0.5, %v5643_v24  ;;  %v5675_v17 = vmul.f32 %v5643_v24, %v5643_v24  ;;  %v4855_v3 = vadd.f32 %v4846_v0, %v4823_v32  ;;  %v4889_v45 = vsel %vm401_vm1, %v4886_v57, %v4888_v6  ;;  %6729 = vmatprep.mubr.bf16.mxu0 %v5801_v37 }
 0xabd   :  { %v5692_v44 = vmul.f32 %v5676_v22, %v5644_v12  ;;  %v4921_v25 = vmul.f32 %v9808_v46, %v10210_v19  ;;  %v4922_v7 = vmul.f32 %v9808_v46, %v10163_v30  ;;  %v4891_v0 = vsel %vm401_vm1, %v4888_v6, %v4890_v20 }
 0xabe   :  { %v5691_v38 = vmul.f32 %v5675_v17, %v5643_v24  ;;  %v4908_v55 = vadd.f32 %v4889_v45, %v4855_v3  ;;  %v4988_v8 = vmul.f32 %v12887_v50, %v10210_v19  ;;  %v4989_v57 = vmul.f32 %v12887_v50, %v10163_v30 }
 0xabf   :  { %v5708_v34 = vmul.f32 0.044715, %v5692_v44  ;;  %v4909_v60 = vadd.f32 %v4891_v0, %v4856_v48  ;;  %v4930_v3 = vmul.f32 %v4921_v25, %v8473_v51  ;;  %v10668_v31 = vmul.f32 %v4922_v7, %v8484_v53 }
 0xac0   :  { %v5707_v27 = vmul.f32 0.044715, %v5691_v38  ;;  %v4997_v32 = vmul.f32 %v4988_v8, %v8521_v26  ;;  %v4998_v4 = vmul.f32 %v4989_v57, %v8465_v9  ;;  %v5019_v17 = vmul.f32 %v12889_v49, %v10163_v30 }
 0xac1   :  { %v5724_v6 = vadd.f32 %v5708_v34, %v5644_v12  ;;  %v4952_v37 = vrot.slane %v4930_v3, 2  ;;  %v4954_v22 = vrot.slane %v10668_v31, 2  ;;  %v10677_v48 = vmul.f32 %v12889_v49, %v10192_v10 }
 0xac2   :  { %v5723_v62 = vadd.f32 %v5707_v27, %v5643_v24  ;;  %v5039_v45 = vrot.slane %v5019_v17, 1  ;;  %v5072_v24 = vmul.f32 %v10435_v1, %v10163_v30  ;;  %v5073_v44 = vmul.f32 %v10435_v1, %v10192_v10 }
 0xac3   :  { %v5740_v25 = vmul.f32 0.7978846, %v5724_v6  ;;  %v4953_v12 = vsel %vm561_vm8, %v4950_v56, %v4952_v37  ;;  %v4955_v7 = vsel %vm561_vm8, %v4952_v37, %v4954_v22  ;;  %v5041_v27 = vrot.slane %v10677_v48, 1 }
 0xac4   :  { %v5739_v38 = vmul.f32 0.7978846, %v5723_v62  ;;  %v4974_v0 = vadd.f32 %v4953_v12, %v4908_v55  ;;  %v4975_v8 = vadd.f32 %v4955_v7, %v4909_v60  ;;  %v12902_v57 = vrot.slane %v10561_v39, 1 }
 0xac5   :  { %v5042_v59 = vsel %vm401_vm1, %v5039_v45, %v5041_v27  ;;  %v5081_v56 = vmul.f32 %v5072_v24, %v8473_v51  ;;  %v10698_v3 = vmul.f32 %v5073_v44, %v8484_v53  ;;  %v4688_v55 = vmul.f32 %v12891_v33, %v10210_v19 }
 0xac6   :  { %7073 = vtanh.f32 %v5739_v38  ;;  %v5040_v34 = vsel %vm401_vm1, %v12902_v57, %v5039_v45  ;;  %v5006_v62 = vadd.f32 %v4997_v32, %v4974_v0  ;;  %v5007_v17 = vadd.f32 %v4998_v4, %v4975_v8  ;;  %v12903_v4 = vld [vmem:[#allocation48_spill] sm:$0xff]  ;;  %v12905_v0 = vld [vmem:[#allocation53_spill] sm:$0xff] }
 0xac7   :  { %7075 = vtanh.f32 %v5740_v25  ;;  %v4689_v39 = vmul.f32 %v12891_v33, %v10163_v30  ;;  %v5103_v60 = vrot.slane %v5081_v56, 2  ;;  %v5105_v6 = vrot.slane %v10698_v3, 2 }
 0xac8   :  { %v4719_v37 = vmul.f32 %v9737_v52, %v10163_v30  ;;  %v4772_v38 = vmul.f32 %v9741_v54, %v10163_v30  ;;  %v5059_v45 = vadd.f32 %v5040_v34, %v5006_v62  ;;  %v5060_v24 = vadd.f32 %v5042_v59, %v5007_v17 }
 0xac9   :  { %v4697_v32 = vmul.f32 %v4688_v55, %v12857_v63  ;;  %v4698_v44 = vmul.f32 %v4689_v39, %v12903_v4  ;;  %v12904_v19 = vrot.slane %v10583_v36, 2  ;;  %v5106_v12 = vsel %vm561_vm8, %v5103_v60, %v5105_v6 }
 0xaca   :  { %v4741_v7 = vrot.slane %v4719_v37, 1  ;;  %v4781_v8 = vmul.f32 %v4772_v38, %v12905_v0  ;;  %v10718_v56 = vadd.f32 %v5106_v12, %v5060_v24  ;;  %v4839_v34 = vmul.f32 %v9754_v18, %v10163_v30 }
 0xacb   :  { %v5104_v25 = vsel %vm561_vm8, %v12904_v19, %v5103_v60  ;;  %v4849_v59 = vmul.f32 %v10203_v5, %v12903_v4  ;;  %v4870_v55 = vmul.f32 %v12881_v43, %v10192_v10  ;;  %v12906_v30 = vrot.slane %v10619_v61, 2  ;;  %v12907_v5 = vld [vmem:[#allocation83_spill] sm:$0xff] }
 0xacc   :  { %v5125_v57 = vadd.f32 %v5104_v25, %v5059_v45  ;;  %v4742_v36 = vsel %vm401_vm1, %v4739_v13, %v4741_v7  ;;  %v4760_v62 = vadd.f32 %v4741_v7, %v4698_v44  ;;  %v4805_v17 = vrot.slane %v4781_v8, 2 }
 0xacd   :  { %v5587_v60 = vrot.slane %v10718_v56, 7  ;;  %v4759_v37 = vadd.f32 %v4742_v36, %v4697_v32  ;;  %v4848_v38 = vmul.f32 %v4839_v34, %v12857_v63  ;;  %v12908_v24 = vrot.slane %v12907_v5, 2  ;;  %v12910_v5 = vld [vmem:[#allocation82_spill] sm:$0xff] }
 0xace   :  { %v5585_v39 = vrot.slane %v5125_v57, 7  ;;  %v4806_v45 = vsel %vm561_vm8, %v12906_v30, %v4805_v17  ;;  %v4892_v13 = vrot.slane %v4870_v55, 1  ;;  %v4924_v44 = vmul.f32 0.0, %v9808_v46 }
 0xacf   :  { %v4808_v58 = vsel %vm561_vm8, %v4805_v17, %v12908_v24  ;;  %v12909_v25 = vrot.slane %v10613_v42, 7  ;;  %v4825_v7 = vadd.f32 %v4806_v45, %v4759_v37  ;;  %v12911_v37 = vld [vmem:[#allocation73_spill] sm:$0xff]  ;;  %v12913_v24 = vld [vmem:[#allocation72_spill] sm:$0xff] }
 0xad0   :  { %v7074_v19 = vpop.eup %7073  ;;  %v5588_v32 = vsel %vm518_vm2, %v5585_v39, %v5587_v60  ;;  %v4826_v61 = vadd.f32 %v4808_v58, %v4760_v62  ;;  %v4893_v42 = vsel %vm401_vm1, %v4890_v20, %v4892_v13  ;;  %v12522_v62 = vrot.slane %v12911_v37, 2  ;;  %v12912_v45 = vld [vmem:[#allocation61_spill] sm:$0xff] }
 0xad1   :  { %v5586_v12 = vsel %vm518_vm2, %v12909_v25, %v5585_v39  ;;  %v7076_v8 = vpop.eup %7075  ;;  %v5771_v57 = vadd.f32 1.0, %v7074_v19  ;;  %v10748_v36 = vadd.f32 %v10492_v14, %v5588_v32  ;;  %v4857_v55 = vadd.f32 %v4848_v38, %v4825_v7  ;;  %v12915_v32 = vld [vmem:[#allocation50_spill] sm:$0xff] }
 0xad2   :  { %v10745_v34 = vadd.f32 %v10492_v14, %v5586_v12  ;;  %v5772_v17 = vadd.f32 1.0, %v7076_v8  ;;  %v4858_v30 = vadd.f32 %v4849_v59, %v4826_v61  ;;  %v4932_v39 = vmul.f32 %v12910_v5, %v12905_v0 }
 0xad3   :  { %v10758_v58 = vmul.f32 %v12913_v24, %v12912_v45  ;;  %v5787_v19 = vmul.f32 %v5771_v57, %v10643_v29  ;;  %v5678_v20 = vmul.f32 %v10748_v36, %v10748_v36  ;;  %v4910_v59 = vadd.f32 %v4893_v42, %v4857_v55  ;;  %v7175_v24 = vld [vmem:[%s12299_s14] sm:$0xff]  }
 0xad4   :  { %v5677_v25 = vmul.f32 %v10745_v34, %v10745_v34  ;;  %v5788_v2 = vmul.f32 %v5772_v17, %v10649_v41  ;;  %v4911_v38 = vadd.f32 %v4892_v13, %v4858_v30  ;;  %v10768_v7 = vmul.f32 %v4924_v44, %v12915_v32 }
 0xad5   :  { %12914 = vst [vmem:[#allocation74_spill] sm:$0xff] %v10758_v58  ;;  %v4956_v61 = vrot.slane %v4932_v39, 2  ;;  %v4990_v8 = vmul.f32 %v12887_v50, %v10192_v10  ;;  %v5694_v57 = vmul.f32 %v5678_v20, %v10748_v36  ;;  %v4991_v5 = vmul.f32 0.0, %v12887_v50 }
 0xad6   :  { %v5693_v12 = vmul.f32 %v5677_v25, %v10745_v34  ;;  %12916 = vst [vmem:[#allocation41_spill] sm:$0xff] %v10768_v7  ;;  %v5802_v29 = vpack.c.bf16 %v5788_v2, %v5787_v19  ;;  %v5021_v41 = vmul.f32 0.0, %v12889_v49  ;;  %v12521_v42 = vrot.slane %v10768_v7, 2 }
 0xad7   :  { %v4957_v13 = vsel %vm561_vm8, %v4954_v22, %v4956_v61  ;;  %v4999_v44 = vmul.f32 %v4990_v8, %v12857_v63  ;;  %v5710_v55 = vmul.f32 0.044715, %v5694_v57  ;;  %v10781_v10 = vmul.f32 %v4991_v5, %v12903_v4  ;;  %v10959_v63 = vld [vmem:[%s12297_s12 + $0x10] ss:$0 sm:$0xff] }
 0xad8   :  { %v5709_v17 = vmul.f32 0.044715, %v5693_v12  ;;  %6730 = vmatmul.mubr.bf16.vlgmr.msra.gmra.mrb[48].mxu0 %v5802_v29  ;;  %v4976_v30 = vadd.f32 %v4957_v13, %v4910_v59  ;;  %v10783_v39 = vrot.slane %v5021_v41, 1  ;;  %v4959_v31 = vsel %vm561_vm8, %v4956_v61, %v12521_v42  ;;  %v12935_v42 = vld [vmem:[#allocation38_spill] sm:$0xff]  ;;  %12947 = vst [vmem:[#allocation61_spill] sm:$0xff] %v10959_v63 }
 0xad9   :  { %12917 = vst [vmem:[#allocation43_spill] sm:$0xff] %v10781_v10  ;;  %v5074_v22 = vmul.f32 0.0, %v10435_v1  ;;  %6746 = vmatpush3.bf16.msra.mxu0 %v7175_v24  ;;  %v3227_v19 = vmul.f32 0.0, %v9784_v23  ;;  %v5726_v25 = vadd.f32 %v5710_v55, %v10748_v36  ;;  %v4977_v2 = vadd.f32 %v4959_v31, %v4911_v38  ;;  %v7176_v1 = vld [vmem:[%s12299_s14 + $0x8] sm:$0xff]   ;;  %v7177_v55 = vld [vmem:[%s12299_s14 + $0x10] sm:$0xff]  }
 0xada   :  { %12918 = vst [vmem:[#allocation77_spill] sm:$0xff] %v10783_v39  ;;  %v5725_v45 = vadd.f32 %v5709_v17, %v10745_v34  ;;  %v5008_v20 = vadd.f32 %v4999_v44, %v4976_v30  ;;  %v5044_v59 = vsel %vm401_vm1, %v5041_v27, %v10783_v39  ;;  %6747 = vmatprep.subr.bf16.mxu0 %v7176_v1  ;;  %v12920_v17 = vld [vmem:[#allocation8_spill] sm:$0xff]  ;;  %v12921_v30 = vld [vmem:[#allocation9_spill] sm:$0xff] }
 0xadb   :  { %v5083_v61 = vmul.f32 %v5074_v22, %v12905_v0  ;;  %v5084_v8 = vmul.f32 %v5074_v22, %v12915_v32  ;;  %v3236_v29 = vmul.f32 %v3227_v19, %v12888_v15  ;;  %v5742_v57 = vmul.f32 0.7978846, %v5726_v25  ;;  %v12922_v31 = vld [vmem:[#allocation28_spill] sm:$0xff] }
 0xadc   :  { %v5741_v12 = vmul.f32 0.7978846, %v5725_v45  ;;  %v5009_v38 = vadd.f32 %v10781_v10, %v4977_v2  ;;  %v5061_v5 = vadd.f32 %v5044_v59, %v5008_v20  ;;  %v10807_v48 = vmul.f32 %v3227_v19, %v12878_v40 }
 0xadd   :  { %v10809_v27 = vrot.slane %v5083_v61, 2  ;;  %v5109_v41 = vrot.slane %v5084_v8, 2  ;;  %6748 = vmatpush3.bf16.msra.mxu0 %v7176_v1  ;;  %v3258_v13 = vmul.f32 0.0, %v12920_v17  ;;  %v3311_v45 = vmul.f32 0.0, %v12921_v30 }
 0xade   :  { %7077 = vtanh.f32 %v5741_v12  ;;  %v5062_v44 = vadd.f32 %v10783_v39, %v5009_v38  ;;  %6749 = vmatprep.subr.bf16.mxu0 %v7177_v55  ;;  %v3378_v22 = vmul.f32 0.0, %v12922_v31  ;;  %v10830_v2 = vmul.f32 %v12920_v17, %v10758_v58 }
 0xadf   :  { %12919 = vst [vmem:[#allocation76_spill] sm:$0xff] %v10809_v27  ;;  %7079 = vtanh.f32 %v5742_v57  ;;  %v5108_v24 = vsel %vm561_vm8, %v5105_v6, %v10809_v27  ;;  %v10824_v19 = vsel %vm561_vm8, %v10809_v27, %v5109_v41  ;;  %v10826_v25 = vrot.slane %v3258_v13, 1  ;;  %v12925_v6 = vld [vmem:[#allocation68_spill] sm:$0xff]  ;;  %v7178_v13 = vld [vmem:[%s12299_s14 + $0x18] sm:$0xff]  }
 0xae0   :  { %12923 = vst [vmem:[#allocation31_spill] sm:$0xff] %v10824_v19  ;;  %12924 = vst [vmem:[#allocation34_spill] sm:$0xff] %v10830_v2  ;;  %v5661_v20 = vmul.f32 0.5, %v10745_v34  ;;  %v5127_v59 = vadd.f32 %v5108_v24, %v5061_v5  ;;  %v5128_v1 = vadd.f32 %v10824_v19, %v5062_v44  ;;  %v3320_v12 = vmul.f32 %v3311_v45, %v12884_v47 }
 0xae1   :  { %v3298_v3 = vadd.f32 %v10826_v25, %v3236_v29  ;;  %6750 = vmatpush3.bf16.msra.mxu0 %v7177_v55  ;;  %v12926_v61 = vrot.slane %v12925_v6, 1  ;;  %v12520_v57 = vrot.slane %v10830_v2, 1  ;;  %v3313_v38 = vmul.f32 %v12921_v30, %v10758_v58 }
 0xae2   :  { %v5589_v41 = vrot.slane %v5127_v59, 7  ;;  %v5591_v34 = vrot.slane %v5128_v1, 7  ;;  %v10843_v5 = vrot.slane %v3320_v12, 2  ;;  %6751 = vmatprep.subr.bf16.mxu0 %v7178_v13  ;;  %v3387_v44 = vmul.f32 %v3378_v22, %v12888_v15 }
 0xae3   :  { %v3276_v8 = vsel %vm401_vm1, %v10826_v25, %v12926_v61  ;;  %v12928_v55 = vmov %v12926_v61  ;;  %v10856_v24 = vmul.f32 %v3313_v38, %v12877_v16  ;;  %v3380_v59 = vmul.f32 %v12922_v31, %v10758_v58  ;;  %v12930_v61 = vld [vmem:[#allocation70_spill] sm:$0xff] }
 0xae4   :  { %12927 = vst [vmem:[#allocation33_spill] sm:$0xff] %v10843_v5  ;;  %v3299_v29 = vadd.f32 %v3276_v8, %v10807_v48  ;;  %v3278_v45 = vsel %vm401_vm1, %v12928_v55, %v12520_v57  ;;  %v5590_v1 = vsel %vm518_vm2, %v5587_v60, %v5589_v41  ;;  %v5592_v12 = vsel %vm518_vm2, %v5589_v41, %v5591_v34  ;;  %v12931_v34 = vld [vmem:[#allocation69_spill] sm:$0xff] }
 0xae5   :  { %12929 = vst [vmem:[#allocation56_spill] sm:$0xff] %v10856_v24  ;;  %v3364_v22 = vadd.f32 %v10843_v5, %v3298_v3  ;;  %v3300_v8 = vadd.f32 %v3278_v45, %v12930_v61  ;;  %v10867_v6 = vadd.f32 %v10492_v14, %v5590_v1  ;;  %v10870_v55 = vadd.f32 %v10492_v14, %v5592_v12  ;;  %v7179_v3 = vld [vmem:[%s12299_s14 + $0x20] sm:$0xff]  }
 0xae6   :  { %6752 = vmatpush3.bf16.msra.mxu0 %v7178_v13  ;;  %v3340_v56 = vsel %vm561_vm8, %v10843_v5, %v12522_v62  ;;  %v5662_v38 = vmul.f32 0.5, %v10748_v36  ;;  %v3388_v14 = vmul.f32 %v12931_v34, %v12878_v40  ;;  %v12932_v45 = vld [vmem:[#allocation67_spill] sm:$0xff]  ;;  %v12933_v13 = vld [vmem:[#allocation29_spill] sm:$0xff]  ;;  %v3389_v62 = vmul.f32 %v3380_v59, %v12935_v42 }
 0xae7   :  { %6753 = vmatprep.subr.bf16.mxu0 %v7179_v3  ;;  %v3365_v41 = vadd.f32 %v3340_v56, %v3299_v29  ;;  %v3409_v1 = vmul.f32 %v12933_v13, %v12932_v45  ;;  %v5679_v61 = vmul.f32 %v10867_v6, %v10867_v6  ;;  %v5680_v57 = vmul.f32 %v10870_v55, %v10870_v55 }
 0xae8   :  { %v7078_v12 = vpop.eup %7077  ;;  %v10889_v36 = vadd.f32 %v3387_v44, %v3364_v22  ;;  %v12936_v29 = vrot.slane %v10856_v24, 2  ;;  %v12937_v56 = vrot.slane %v12911_v37, 2  ;;  %v3410_v10 = vmul.f32 %v12933_v13, %v10758_v58  ;;  %v12938_v37 = vld [vmem:[#allocation66_spill] sm:$0xff] }
 0xae9   :  { %v7080_v60 = vpop.eup %7079  ;;  %v5773_v2 = vadd.f32 1.0, %v7078_v12  ;;  %v3397_v19 = vadd.f32 %v3388_v14, %v3365_v41  ;;  %v5695_v7 = vmul.f32 %v5679_v61, %v10867_v6  ;;  %v5696_v44 = vmul.f32 %v5680_v57, %v10870_v55  ;;  %v7180_v12 = vld [vmem:[%s12299_s14 + $0x28] sm:$0xff]  }
 0xaea   :  { %12934 = vst [vmem:[#allocation78_spill] sm:$0xff] %v10889_v36  ;;  %v3342_v34 = vsel %vm561_vm8, %v12937_v56, %v12936_v29  ;;  %v5774_v27 = vadd.f32 1.0, %v7080_v60  ;;  %6754 = vmatpush3.bf16.msra.mxu0 %v7179_v3  ;;  %v10906_v29 = vmul.f32 %v12933_v13, %v12938_v37  ;;  %v3425_v41 = vrot.slane %v3409_v1, 1 }
 0xaeb   :  { %v3366_v22 = vadd.f32 %v3342_v34, %v3300_v8  ;;  %v5789_v59 = vmul.f32 %v5773_v2, %v5661_v20  ;;  %6755 = vmatprep.subr.bf16.mxu0 %v7180_v12  ;;  %v3426_v14 = vrot.slane %v3410_v10, 1  ;;  %v5711_v60 = vmul.f32 0.044715, %v5695_v7  ;;  %v12940_v20 = vld [vmem:[#allocation21_spill] sm:$0xff] }
 0xaec   :  { %12939 = vst [vmem:[#allocation83_spill] sm:$0xff] %v10906_v29  ;;  %v5790_v56 = vmul.f32 %v5774_v27, %v5662_v38  ;;  %v5712_v24 = vmul.f32 0.044715, %v5696_v44  ;;  %v12532_v8 = vrot.slane %v10906_v29, 1  ;;  %v3449_v2 = vadd.f32 %v3425_v41, %v10889_v36 }
 0xaed   :  { %v3398_v61 = vadd.f32 %v3389_v62, %v3366_v22  ;;  %v3427_v57 = vsel %vm401_vm1, %v3425_v41, %v3426_v14  ;;  %v3462_v3 = vmul.f32 %v12940_v20, %v12932_v45  ;;  %v5727_v39 = vadd.f32 %v5711_v60, %v10867_v6  ;;  %v7181_v62 = vld [vmem:[%s12299_s14 + $0x30] sm:$0xff]  }
 0xaee   :  { %v5803_v34 = vpack.c.bf16 %v5790_v56, %v5789_v59  ;;  %v5728_v0 = vadd.f32 %v5712_v24, %v10870_v55  ;;  %6756 = vmatpush3.bf16.msra.mxu0 %v7180_v12  ;;  %v3450_v10 = vadd.f32 %v3427_v57, %v3397_v19  ;;  %v3429_v7 = vsel %vm401_vm1, %v3426_v14, %v12532_v8  ;;  %v12941_v22 = vld [vmem:[#allocation25_spill] sm:$0xff]  ;;  %v12942_v12 = vld [vmem:[#allocation40_spill] sm:$0xff] }
 0xaef   :  { %6757 = vmatprep.subr.bf16.mxu0 %v7181_v62  ;;  %v3463_v27 = vmul.f32 %v12940_v20, %v10758_v58  ;;  %v3464_v38 = vmul.f32 %v12940_v20, %v12938_v37  ;;  %v3471_v1 = vmul.f32 %v3462_v3, %v12884_v47  ;;  %v5743_v24 = vmul.f32 0.7978846, %v5727_v39  ;;  %v12944_v39 = vld [vmem:[#allocation15_spill] sm:$0xff] }
 0xaf0   :  { %6733 = vmatprep.mubr.bf16.mxu0 %v5803_v34  ;;  %v5744_v19 = vmul.f32 0.7978846, %v5728_v0  ;;  %v3451_v44 = vadd.f32 %v3429_v7, %v3398_v61  ;;  %v3529_v59 = vmul.f32 %v12941_v22, %v12932_v45  ;;  %v3530_v60 = vmul.f32 %v12941_v22, %v10758_v58  ;;  %v7182_v34 = vld [vmem:[%s12299_s14 + $0x38] sm:$0xff]  }
 0xaf1   :  { %v3472_v41 = vmul.f32 %v3463_v27, %v12942_v12  ;;  %v10930_v56 = vmul.f32 %v3464_v38, %v12877_v16  ;;  %v3489_v14 = vrot.slane %v3471_v1, 2  ;;  %7081 = vtanh.f32 %v5743_v24  ;;  %v12945_v27 = vld [vmem:[#allocation71_spill] sm:$0xff] }
 0xaf2   :  { %6758 = vmatpush3.bf16.msra.mxu0 %v7181_v62  ;;  %v3538_v57 = vmul.f32 %v3529_v59, %v12888_v15  ;;  %v3560_v0 = vmul.f32 %v12944_v39, %v10758_v58  ;;  %7083 = vtanh.f32 %v5744_v19  ;;  %v3531_v62 = vmul.f32 %v12941_v22, %v12938_v37 }
 0xaf3   :  { %12943 = vst [vmem:[#allocation82_spill] sm:$0xff] %v10930_v56  ;;  %v3490_v61 = vrot.slane %v3472_v41, 2  ;;  %v12536_v45 = vrot.slane %v10930_v56, 2  ;;  %v3515_v3 = vadd.f32 %v3489_v14, %v3449_v2  ;;  %6759 = vmatprep.subr.bf16.mxu0 %v7182_v34  ;;  %v3561_v7 = vmul.f32 %v12944_v39, %v12938_v37 }
 0xaf4   :  { %v10947_v38 = vmul.f32 %v12944_v39, %v12945_v27  ;;  %v3576_v19 = vrot.slane %v3560_v0, 1  ;;  %v3539_v8 = vmul.f32 %v3530_v60, %v12878_v40 }
 0xaf5   :  { %v3491_v1 = vsel %vm561_vm8, %v3489_v14, %v3490_v61  ;;  %v3493_v2 = vsel %vm561_vm8, %v3490_v61, %v12536_v45  ;;  %v3547_v24 = vadd.f32 %v3538_v57, %v3515_v3  ;;  %v3577_v29 = vrot.slane %v3561_v7, 1  ;;  %v6683_v45 = vpop.f32.mrb[40].mxu0 }
 0xaf6   :  { %12946 = vst [vmem:[#allocation73_spill] sm:$0xff] %v10947_v38  ;;  %v3516_v59 = vadd.f32 %v3491_v1, %v3450_v10  ;;  %v3517_v41 = vadd.f32 %v3493_v2, %v3451_v44  ;;  %6760 = vmatpush3.bf16.msra.mxu0 %v7182_v34  ;;  %v3613_v14 = vmul.f32 %v10959_v63, %v10758_v58  ;;  %v12538_v0 = vrot.slane %v10947_v38, 1 }
 0xaf7   :  { %v10954_v4 = vadd.f32 %v3576_v19, %v3547_v24  ;;  %v3614_v57 = vmul.f32 %v10959_v63, %v12938_v37  ;;  %v3615_v10 = vmul.f32 %v10959_v63, %v12945_v27  ;;  %v3540_v44 = vmul.f32 %v3531_v62, %v12935_v42 }
 0xaf8   :  { %v3548_v60 = vadd.f32 %v3539_v8, %v3516_v59  ;;  %v3578_v61 = vsel %vm401_vm1, %v3576_v19, %v3577_v29  ;;  %v10971_v3 = vmul.f32 %v3613_v14, %v12884_v47  ;;  %v5663_v59 = vmul.f32 0.5, %v10867_v6  ;;  %v6707_v14 = vpop.f32.mrb[40].mxu1  ;;  %v10995_v6 = vld [vmem:[%s12296_s11 + $0x1] ss:$0 sm:$0xff] }
 0xaf9   :  { %v3623_v34 = vmul.f32 %v3614_v57, %v12942_v12  ;;  %v10975_v7 = vmul.f32 %v3615_v10, %v12877_v16  ;;  %v3549_v1 = vadd.f32 %v3540_v44, %v3517_v41  ;;  %v5664_v19 = vmul.f32 0.5, %v10870_v55  ;;  %v10989_v41 = vld [vmem:[%s12296_s11] ss:$0 sm:$0xff] }
 0xafa   :  { %v10977_v2 = vadd.f32 %v3578_v61, %v3548_v60  ;;  %v3580_v57 = vsel %vm401_vm1, %v3577_v29, %v12538_v0  ;;  %v3032_v44 = vadd.f32 %v10989_v41, %v6683_v45  ;;  %v4486_v55 = vadd.f32 %v10995_v6, %v6707_v14  ;;  %v3023_v60 = vpop.f32.mrb[41].mxu0  ;;  %v4477_v61 = vpop.f32.mrb[41].mxu1 }
 0xafb   :  { %12948 = vst [vmem:[#allocation72_spill] sm:$0xff] %v10975_v7  ;;  %v7082_v8 = vpop.eup %7081  ;;  %v3641_v62 = vrot.slane %v3623_v34, 2  ;;  %v4478_v0 = vadd.f32 %v10995_v6, %v4477_v61  ;;  %v6684_v24 = vpop.f32.mrb[42].mxu0  ;;  %v3602_v27 = vadd.f32 %v3580_v57, %v3549_v1  ;;  %v12949_v51 = vrot.slane %v10971_v3, 2 }
 0xafc   :  { %v7084_v10 = vpop.eup %7083  ;;  %v5775_v56 = vadd.f32 1.0, %v7082_v8  ;;  %v3024_v8 = vadd.f32 %v10989_v41, %v3023_v60  ;;  %v6708_v38 = vpop.f32.mrb[42].mxu1  ;;  %v3080_v45 = vmul.f32 %v3032_v44, %v3032_v44  ;;  %v12950_v14 = vrot.slane %v10975_v7, 2 }
 0xafd   :  { %v5776_v29 = vadd.f32 1.0, %v7084_v10  ;;  %v3026_v58 = vpop.f32.mrb[43].mxu0  ;;  %v4480_v53 = vpop.f32.mrb[43].mxu1  ;;  %v3642_v9 = vsel %vm561_vm8, %v12949_v51, %v3641_v62  ;;  %v11006_v26 = vmul.f32 0.5, %v3032_v44  ;;  %v4534_v60 = vmul.f32 %v4486_v55, %v4486_v55 }
 0xafe   :  { %v5791_v37 = vmul.f32 %v5775_v56, %v5663_v59  ;;  %v3644_v34 = vsel %vm561_vm8, %v3641_v62, %v12950_v14  ;;  %v3078_v61 = vmul.f32 %v3024_v8, %v3024_v8  ;;  %v3096_v11 = vmul.f32 %v3080_v45, %v3032_v44 }
 0xaff   :  { %v5792_v10 = vmul.f32 %v5776_v29, %v5664_v19  ;;  %v11008_v21 = vmul.f32 0.5, %v4486_v55  ;;  %v4532_v56 = vmul.f32 %v4478_v0, %v4478_v0  ;;  %v3035_v1 = vadd.f32 %v10989_v41, %v6684_v24 }
 0xb00   :  { %v4550_v57 = vmul.f32 %v4534_v60, %v4486_v55  ;;  %v3094_v28 = vmul.f32 %v3078_v61, %v3024_v8  ;;  %v4489_v51 = vadd.f32 %v10995_v6, %v6708_v38  ;;  %v3112_v35 = vmul.f32 0.044715, %v3096_v11 }
 0xb01   :  { %v5804_v59 = vpack.c.bf16 %v5792_v10, %v5791_v37  ;;  %v11012_v7 = vmul.f32 0.5, %v3024_v8  ;;  %v4548_v62 = vmul.f32 %v4532_v56, %v4478_v0  ;;  %v3081_v19 = vmul.f32 %v3035_v1, %v3035_v1 }
 0xb02   :  { %v4566_v29 = vmul.f32 0.044715, %v4550_v57  ;;  %v3110_v14 = vmul.f32 0.044715, %v3094_v28  ;;  %v11014_v63 = vmul.f32 0.5, %v4478_v0  ;;  %v4535_v45 = vmul.f32 %v4489_v51, %v4489_v51 }
 0xb03   :  { %6734 = vmatmul.mubr.bf16.gmra.mrb[52].mxu0 %v5804_v59  ;;  %v3128_v39 = vadd.f32 %v3112_v35, %v3032_v44  ;;  %v4564_v22 = vmul.f32 0.044715, %v4548_v62  ;;  %v3097_v36 = vmul.f32 %v3081_v19, %v3035_v1  ;;  %v3027_v37 = vadd.f32 %v10989_v41, %v3026_v58 }
 0xb04   :  { %v4582_v24 = vadd.f32 %v4566_v29, %v4486_v55  ;;  %v3126_v10 = vadd.f32 %v3110_v14, %v3024_v8  ;;  %v4551_v60 = vmul.f32 %v4535_v45, %v4489_v51  ;;  %v4481_v11 = vadd.f32 %v10995_v6, %v4480_v53 }
 0xb05   :  { %v3144_v38 = vmul.f32 0.7978846, %v3128_v39  ;;  %v4580_v61 = vadd.f32 %v4564_v22, %v4478_v0  ;;  %v11018_v56 = vmul.f32 0.5, %v3035_v1  ;;  %v3113_v59 = vmul.f32 0.044715, %v3097_v36 }
 0xb06   :  { %v4598_v57 = vmul.f32 0.7978846, %v4582_v24  ;;  %v3142_v28 = vmul.f32 0.7978846, %v3126_v10  ;;  %v4567_v13 = vmul.f32 0.044715, %v4551_v60  ;;  %v3079_v5 = vmul.f32 %v3027_v37, %v3027_v37 }
 0xb07   :  { %7085 = vtanh.f32 %v3144_v38  ;;  %v4596_v35 = vmul.f32 0.7978846, %v4580_v61  ;;  %v3129_v44 = vadd.f32 %v3113_v59, %v3035_v1  ;;  %v11020_v62 = vmul.f32 0.5, %v4489_v51  ;;  %v6687_v1 = vpop.f32.mrb[44].mxu0 }
 0xb08   :  { %7087 = vtanh.f32 %v4598_v57  ;;  %v4583_v58 = vadd.f32 %v4567_v13, %v4489_v51  ;;  %v3095_v55 = vmul.f32 %v3079_v5, %v3027_v37  ;;  %v4533_v8 = vmul.f32 %v4481_v11, %v4481_v11  ;;  %v3039_v24 = vpop.f32.mrb[45].mxu0 }
 0xb09   :  { %7089 = vtanh.f32 %v3142_v28  ;;  %v3145_v53 = vmul.f32 0.7978846, %v3129_v44  ;;  %v12951_v22 = vrot.slane %v10971_v3, 2  ;;  %v11026_v36 = vadd.f32 %v3642_v9, %v10977_v2  ;;  %v6688_v38 = vpop.f32.mrb[46].mxu0 }
 0xb0a   :  { %7091 = vtanh.f32 %v4596_v35  ;;  %v4599_v0 = vmul.f32 0.7978846, %v4583_v58  ;;  %v3111_v19 = vmul.f32 0.044715, %v3095_v55  ;;  %v4549_v29 = vmul.f32 %v4533_v8, %v4481_v11  ;;  %v11043_v35 = vpop.f32.mrb[47].mxu0 }
 0xb0b   :  { %v3666_v39 = vadd.f32 %v12951_v22, %v10954_v4  ;;  %12952 = vst [vmem:[#allocation50_spill] sm:$0xff] %v11026_v36  ;;  %7093 = vtanh.f32 %v3145_v53  ;;  %v11028_v14 = vadd.f32 %v3644_v34, %v3602_v27  ;;  %v12563_v5 = vrot.slane %v11026_v36, 7  ;;  %v6711_v4 = vpop.f32.mrb[44].mxu1 }
 0xb0c   :  { %7095 = vtanh.f32 %v4599_v0  ;;  %v3127_v51 = vadd.f32 %v3111_v19, %v3027_v37  ;;  %v4565_v45 = vmul.f32 0.044715, %v4549_v29  ;;  %v3048_v3 = vadd.f32 %v10989_v41, %v6687_v1  ;;  %v4493_v60 = vpop.f32.mrb[45].mxu1 }
 0xb0d   :  { %12953 = vst [vmem:[#allocation8_spill] sm:$0xff] %v11028_v14  ;;  %v4123_v13 = vrot.slane %v3666_v39, 7  ;;  %v11032_v9 = vmul.f32 0.5, %v3027_v37  ;;  %v4502_v2 = vadd.f32 %v10995_v6, %v6711_v4  ;;  %v3040_v10 = vadd.f32 %v10989_v41, %v3039_v24  ;;  %v6712_v28 = vpop.f32.mrb[46].mxu1 }
 0xb0e   :  { %v3143_v34 = vmul.f32 0.7978846, %v3127_v51  ;;  %v11041_v61 = vmul.f32 0.5, %v4481_v11  ;;  %v4581_v59 = vadd.f32 %v4565_v45, %v4481_v11  ;;  %v3084_v57 = vmul.f32 %v3048_v3, %v3048_v3  ;;  %v11047_v55 = vpop.f32.mrb[47].mxu1 }
 0xb0f   :  { %v11039_v27 = vsel %vm518_vm2, %v4123_v13, %v12563_v5  ;;  %v11045_v37 = vmul.f32 0.5, %v3048_v3  ;;  %v4538_v44 = vmul.f32 %v4502_v2, %v4502_v2  ;;  %v3082_v58 = vmul.f32 %v3040_v10, %v3040_v10 }
 0xb10   :  { %12954 = vst [vmem:[#allocation9_spill] sm:$0xff] %v11039_v27  ;;  %7097 = vtanh.f32 %v3143_v34  ;;  %v4597_v53 = vmul.f32 0.7978846, %v4581_v59  ;;  %v3100_v22 = vmul.f32 %v3084_v57, %v3048_v3  ;;  %v11051_v39 = vadd.f32 %v10995_v6, %v4493_v60 }
 0xb11   :  { %v7086_v0 = vpop.eup %7085  ;;  %v11053_v11 = vmul.f32 0.5, %v4502_v2  ;;  %v4554_v19 = vmul.f32 %v4538_v44, %v4502_v2  ;;  %v11055_v29 = vmul.f32 0.5, %v3040_v10  ;;  %v3098_v1 = vmul.f32 %v3082_v58, %v3040_v10 }
 0xb12   :  { %v7088_v13 = vpop.eup %7087  ;;  %v3176_v51 = vadd.f32 1.0, %v7086_v0  ;;  %7099 = vtanh.f32 %v4597_v53  ;;  %v3116_v45 = vmul.f32 0.044715, %v3100_v22  ;;  %v11058_v4 = vadd.f32 %v10989_v41, %v6688_v38 }
 0xb13   :  { %v7090_v24 = vpop.eup %7089  ;;  %v4630_v34 = vadd.f32 1.0, %v7088_v13  ;;  %v4570_v59 = vmul.f32 0.044715, %v4554_v19  ;;  %v3114_v57 = vmul.f32 0.044715, %v3098_v1  ;;  %v4536_v60 = vmul.f32 %v11051_v39, %v11051_v39 }
 0xb14   :  { %v7092_v5 = vpop.eup %7091  ;;  %v3174_v8 = vadd.f32 1.0, %v7090_v24  ;;  %v3132_v44 = vadd.f32 %v3116_v45, %v3048_v3  ;;  %v11063_v27 = vmul.f32 0.5, %v11051_v39  ;;  %v11066_v58 = vadd.f32 %v10995_v6, %v6712_v28 }
 0xb15   :  { %v7094_v53 = vpop.eup %7093  ;;  %v11069_v38 = vmul.f32 %v3176_v51, %v11006_v26  ;;  %v4628_v22 = vadd.f32 1.0, %v7092_v5  ;;  %v4586_v0 = vadd.f32 %v4570_v59, %v4502_v2  ;;  %v3130_v19 = vadd.f32 %v3114_v57, %v3040_v10 }
 0xb16   :  { %v7096_v1 = vpop.eup %7095  ;;  %v11072_v13 = vmul.f32 %v4630_v34, %v11008_v21  ;;  %v11075_v24 = vmul.f32 %v3174_v8, %v11012_v7  ;;  %v3177_v3 = vadd.f32 1.0, %v7094_v53  ;;  %v11078_v45 = vmul.f32 0.5, %v11058_v4 }
 0xb17   :  { %12955 = vst [vmem:[#allocation28_spill] sm:$0xff] %v11069_v38  ;;  %v11081_v28 = vmul.f32 %v4628_v22, %v11014_v63  ;;  %v4631_v36 = vadd.f32 1.0, %v7096_v1  ;;  %v3148_v26 = vmul.f32 0.7978846, %v3132_v44  ;;  %v4552_v5 = vmul.f32 %v4536_v60, %v11051_v39 }
 0xb18   :  { %12956 = vst [vmem:[#allocation68_spill] sm:$0xff] %v11075_v24  ;;  %v3700_v2 = vmul.f32 %v9784_v23, %v11075_v24  ;;  %v11088_v21 = vmul.f32 %v12920_v17, %v11075_v24  ;;  %v3775_v7 = vmul.f32 %v12921_v30, %v11075_v24  ;;  %v4602_v10 = vmul.f32 0.7978846, %v4586_v0 }
 0xb19   :  { %v5153_v8 = vmul.f32 %v12891_v33, %v11081_v28  ;;  %v5179_v63 = vmul.f32 %v9737_v52, %v11081_v28  ;;  %v5228_v51 = vmul.f32 %v9741_v54, %v11081_v28  ;;  %v3146_v34 = vmul.f32 0.7978846, %v3130_v19 }
 0xb1a   :  { %v7098_v59 = vpop.eup %7097  ;;  %v11099_v57 = vmul.f32 %v3700_v2, %v12935_v42  ;;  %v11102_v60 = vmul.f32 %v3775_v7, %v12942_v12  ;;  %v11106_v44 = vmul.f32 %v12922_v31, %v11075_v24  ;;  %v11110_v53 = vmul.f32 %v9754_v18, %v11081_v28 }
 0xb1b   :  { %v5162_v0 = vmul.f32 %v5153_v8, %v12935_v42  ;;  %v11115_v19 = vmul.f32 %v5228_v51, %v12942_v12  ;;  %v11118_v1 = vmul.f32 %v3177_v3, %v11018_v56  ;;  %v5195_v7 = vrot.slane %v5179_v63, 1 }
 0xb1c   :  { %12957 = vst [vmem:[#allocation70_spill] sm:$0xff] %v11106_v44  ;;  %v7100_v2 = vpop.eup %7099  ;;  %v3175_v14 = vadd.f32 1.0, %v7098_v59  ;;  %7101 = vtanh.f32 %v3148_v26  ;;  %v4568_v23 = vmul.f32 0.044715, %v4552_v5  ;;  %v11121_v33 = vmul.f32 %v4631_v36, %v11020_v62 }
 0xb1d   :  { %12958 = vst [vmem:[#allocation69_spill] sm:$0xff] %v11118_v1  ;;  %v4629_v38 = vadd.f32 1.0, %v7100_v2  ;;  %7103 = vtanh.f32 %v4602_v10  ;;  %v3085_v22 = vmul.f32 %v11058_v4, %v11058_v4  ;;  %v5255_v51 = vrot.slane %v11115_v19, 2 }
 0xb1e   :  { %7105 = vtanh.f32 %v3146_v34  ;;  %v4584_v56 = vadd.f32 %v4568_v23, %v11051_v39  ;;  %v4539_v62 = vmul.f32 %v11066_v58, %v11066_v58  ;;  %v3043_v36 = vadd.f32 %v10989_v41, %v11043_v35  ;;  %v12959_v34 = vld [vmem:[#allocation23_spill] sm:$0xff] }
 0xb1f   :  { %v11129_v3 = vmul.f32 %v4629_v38, %v11041_v61  ;;  %v3101_v26 = vmul.f32 %v3085_v22, %v11058_v4  ;;  %v11137_v5 = vmul.f32 %v3175_v14, %v11032_v9  ;;  %v11140_v63 = vmul.f32 0.5, %v11066_v58  ;;  %v12961_v14 = vld [vmem:[#allocation16_spill] sm:$0xff] }
 0xb20   :  { %v4600_v10 = vmul.f32 0.7978846, %v4584_v56  ;;  %v4497_v23 = vadd.f32 %v10995_v6, %v11047_v55  ;;  %v4555_v39 = vmul.f32 %v4539_v62, %v11066_v58  ;;  %v3083_v38 = vmul.f32 %v3043_v36, %v3043_v36 }
 0xb21   :  { %v3117_v61 = vmul.f32 0.044715, %v3101_v26  ;;  %v5196_v59 = vsel %vm401_vm1, %v12959_v34, %v5195_v7  ;;  %v11149_v41 = vmul.f32 %v9737_v52, %v11129_v3  ;;  %v5256_v9 = vsel %vm561_vm8, %v12961_v14, %v5255_v51  ;;  %v12962_v52 = vld [vmem:[#allocation54_spill] sm:$0xff] }
 0xb22   :  { %7107 = vtanh.f32 %v4600_v10  ;;  %v4537_v22 = vmul.f32 %v4497_v23, %v4497_v23  ;;  %v4571_v19 = vmul.f32 0.044715, %v4555_v39  ;;  %v11154_v6 = vmul.f32 0.5, %v3043_v36 }
 0xb23   :  { %12960 = vst [vmem:[#allocation67_spill] sm:$0xff] %v11149_v41  ;;  %v3133_v35 = vadd.f32 %v3117_v61, %v11058_v4  ;;  %v3099_v55 = vmul.f32 %v3083_v38, %v3043_v36  ;;  %v11156_v2 = vmul.f32 0.5, %v4497_v23  ;;  %v12577_v26 = vrot.slane %v11149_v41, 1 }
 0xb24   :  { %v4553_v56 = vmul.f32 %v4537_v22, %v4497_v23  ;;  %v5229_v62 = vmul.f32 %v9741_v54, %v11129_v3  ;;  %v4587_v34 = vadd.f32 %v4571_v19, %v11066_v58  ;;  %v5219_v14 = vadd.f32 %v5196_v59, %v12962_v52 }
 0xb25   :  { %v3149_v10 = vmul.f32 0.7978846, %v3133_v35  ;;  %v3115_v8 = vmul.f32 0.044715, %v3099_v55  ;;  %v5198_v61 = vsel %vm401_vm1, %v5195_v7, %v12577_v26  ;;  %v5292_v38 = vmul.f32 %v9754_v18, %v11129_v3 }
 0xb26   :  { %v7102_v1 = vpop.eup %7101  ;;  %v4569_v4 = vmul.f32 0.044715, %v4553_v56  ;;  %v11167_v39 = vmul.f32 %v5229_v62, %v12877_v16  ;;  %v4603_v35 = vmul.f32 0.7978846, %v4587_v34  ;;  %v5220_v59 = vadd.f32 %v5198_v61, %v5162_v0 }
 0xb27   :  { %v7104_v22 = vpop.eup %7103  ;;  %v3180_v24 = vadd.f32 1.0, %v7102_v1  ;;  %7109 = vtanh.f32 %v3149_v10  ;;  %v3131_v58 = vadd.f32 %v3115_v8, %v3043_v36  ;;  %v5281_v7 = vadd.f32 %v5256_v9, %v5219_v14 }
 0xb28   :  { %v7106_v19 = vpop.eup %7105  ;;  %v4634_v55 = vadd.f32 1.0, %v7104_v22  ;;  %v4585_v52 = vadd.f32 %v4569_v4, %v4497_v23  ;;  %v12580_v56 = vrot.slane %v11167_v39, 2  ;;  %7111 = vtanh.f32 %v4603_v35 }
 0xb29   :  { %v3147_v41 = vmul.f32 0.7978846, %v3131_v58  ;;  %v5300_v62 = vmul.f32 %v11110_v53, %v12878_v40  ;;  %v11175_v26 = vmul.f32 %v3180_v24, %v11045_v37  ;;  %v3178_v44 = vadd.f32 1.0, %v7106_v19 }
 0xb2a   :  { %v4601_v1 = vmul.f32 0.7978846, %v4585_v52  ;;  %v5258_v8 = vsel %vm561_vm8, %v5255_v51, %v12580_v56  ;;  %v11181_v36 = vmul.f32 %v4634_v55, %v11053_v11  ;;  %v5301_v23 = vmul.f32 %v5292_v38, %v12935_v42  ;;  %v12965_v52 = vld [vmem:[#allocation36_spill] sm:$0xff] }
 0xb2b   :  { %12963 = vst [vmem:[#allocation38_spill] sm:$0xff] %v11175_v26  ;;  %7113 = vtanh.f32 %v3147_v41  ;;  %v5282_v0 = vadd.f32 %v5258_v8, %v5220_v59  ;;  %v5317_v53 = vmul.f32 %v12881_v43, %v11081_v28  ;;  %v5318_v37 = vmul.f32 %v12881_v43, %v11129_v3 }
 0xb2c   :  { %12964 = vst [vmem:[#allocation40_spill] sm:$0xff] %v11181_v36  ;;  %v7108_v9 = vpop.eup %7107  ;;  %7115 = vtanh.f32 %v4601_v1  ;;  %v11190_v24 = vmul.f32 %v12881_v43, %v11072_v13  ;;  %v5309_v51 = vadd.f32 %v5300_v62, %v5281_v7  ;;  %v5366_v11 = vmul.f32 %v9808_v46, %v11081_v28 }
 0xb2d   :  { %v5310_v10 = vadd.f32 %v5301_v23, %v5282_v0  ;;  %v5367_v41 = vmul.f32 %v9808_v46, %v11129_v3  ;;  %v5333_v34 = vrot.slane %v5317_v53, 1  ;;  %v5334_v14 = vrot.slane %v5318_v37, 1 }
 0xb2e   :  { %v12579_v4 = vrot.slane %v11190_v24, 1  ;;  %v5368_v61 = vmul.f32 %v9808_v46, %v11072_v13  ;;  %v4632_v38 = vadd.f32 1.0, %v7108_v9  ;;  %v5375_v22 = vmul.f32 %v5366_v11, %v12884_v47 }
 0xb2f   :  { %v5376_v35 = vmul.f32 %v5367_v41, %v12942_v12  ;;  %v5429_v58 = vmul.f32 %v12887_v50, %v11081_v28  ;;  %v5335_v19 = vsel %vm401_vm1, %v5333_v34, %v5334_v14  ;;  %v5357_v59 = vadd.f32 %v5333_v34, %v12965_v52 }
 0xb30   :  { %v5337_v55 = vsel %vm401_vm1, %v5334_v14, %v12579_v4  ;;  %v11209_v7 = vmul.f32 %v5368_v61, %v12877_v16  ;;  %v5358_v1 = vadd.f32 %v5335_v19, %v5309_v51  ;;  %v5393_v0 = vrot.slane %v5375_v22, 2 }
 0xb31   :  { %v7110_v62 = vpop.eup %7109  ;;  %v5359_v8 = vadd.f32 %v5337_v55, %v5310_v10  ;;  %v5394_v23 = vrot.slane %v5376_v35, 2  ;;  %v5430_v28 = vmul.f32 %v12887_v50, %v11129_v3  ;;  %v5431_v37 = vmul.f32 %v12887_v50, %v11072_v13 }
 0xb32   :  { %v3181_v9 = vadd.f32 1.0, %v7110_v62  ;;  %v12578_v53 = vrot.slane %v11209_v7, 2  ;;  %v7112_v11 = vpop.eup %7111  ;;  %v11217_v41 = vmul.f32 %v3178_v44, %v11055_v29  ;;  %v5419_v14 = vadd.f32 %v5393_v0, %v5357_v59 }
 0xb33   :  { %v5395_v34 = vsel %vm561_vm8, %v5393_v0, %v5394_v23  ;;  %v5438_v51 = vmul.f32 %v5429_v58, %v12888_v15  ;;  %v4635_v61 = vadd.f32 1.0, %v7112_v11  ;;  %v11228_v55 = vmul.f32 %v4632_v38, %v11063_v27 }
 0xb34   :  { %v11222_v10 = vmul.f32 %v3181_v9, %v11078_v45  ;;  %v5397_v22 = vsel %vm561_vm8, %v5394_v23, %v12578_v53  ;;  %v5420_v35 = vadd.f32 %v5395_v34, %v5358_v1  ;;  %v5439_v44 = vmul.f32 %v5430_v28, %v12878_v40 }
 0xb35   :  { %v7114_v19 = vpop.eup %7113  ;;  %v5421_v29 = vadd.f32 %v5397_v22, %v5359_v8  ;;  %v5440_v52 = vmul.f32 %v5431_v37, %v12935_v42  ;;  %v11235_v58 = vmul.f32 %v4635_v61, %v11140_v63  ;;  %v5447_v62 = vadd.f32 %v5438_v51, %v5419_v14 }
 0xb36   :  { %12966 = vst [vmem:[#allocation23_spill] sm:$0xff] %v11222_v10  ;;  %v7116_v59 = vpop.eup %7115  ;;  %v3782_v45 = vmul.f32 %v12921_v30, %v11222_v10  ;;  %v5456_v1 = vmul.f32 %v12889_v49, %v11129_v3  ;;  %v3179_v0 = vadd.f32 1.0, %v7114_v19  ;;  %v5448_v27 = vadd.f32 %v5439_v44, %v5420_v35  ;;  %v11275_v35 = vld [vmem:[%s12297_s12 + $0x18] ss:$0 sm:$0xff] }
 0xb37   :  { %12967 = vst [vmem:[#allocation16_spill] sm:$0xff] %v11235_v58  ;;  %v4633_v23 = vadd.f32 1.0, %v7116_v59  ;;  %v5449_v38 = vadd.f32 %v5440_v52, %v5421_v29  ;;  %v11244_v9 = vmul.f32 %v12922_v31, %v11222_v10  ;;  %v11248_v28 = vmul.f32 %v12940_v20, %v11222_v10 }
 0xb38   :  { %v11240_v8 = vmul.f32 %v3782_v45, %v12915_v32  ;;  %v5235_v63 = vmul.f32 %v9741_v54, %v11235_v58  ;;  %v11254_v37 = vmul.f32 %v9754_v18, %v11235_v58  ;;  %v11258_v11 = vmul.f32 %v9808_v46, %v11235_v58 }
 0xb39   :  { %12969 = vst [vmem:[#allocation36_spill] sm:$0xff] %v11244_v9  ;;  %12970 = vst [vmem:[#allocation87_spill] sm:$0xff] %v11248_v28  ;;  %v5457_v34 = vmul.f32 %v12889_v49, %v11072_v13  ;;  %v11264_v14 = vmul.f32 %v12889_v49, %v11121_v33  ;;  %v11267_v51 = vmul.f32 %v3179_v0, %v11154_v6  ;;  %v5472_v22 = vrot.slane %v5456_v1, 1 }
 0xb3a   :  { %12968 = vst [vmem:[#allocation54_spill] sm:$0xff] %v11240_v8  ;;  %12971 = vst [vmem:[#allocation88_spill] sm:$0xff] %v11254_v37  ;;  %v11270_v61 = vmul.f32 %v4633_v23, %v11156_v2  ;;  %v5505_v19 = vmul.f32 %v11275_v35, %v11129_v3  ;;  %v5506_v52 = vmul.f32 %v11275_v35, %v11072_v13  ;;  %v12981_v8 = vld [vmem:[#allocation29_spill] sm:$0xff] }
 0xb3b   :  { %12972 = vst [vmem:[#allocation89_spill] sm:$0xff] %v11258_v11  ;;  %12973 = vst [vmem:[#allocation90_spill] sm:$0xff] %v11267_v51  ;;  %v5473_v29 = vrot.slane %v5457_v34, 1  ;;  %v12581_v44 = vrot.slane %v11264_v14, 1  ;;  %v5507_v6 = vmul.f32 %v11275_v35, %v11121_v33  ;;  %v11285_v2 = vmul.f32 %v5235_v63, %v12915_v32 }
 0xb3c   :  { %v5496_v59 = vadd.f32 %v5472_v22, %v5447_v62  ;;  %v5514_v45 = vmul.f32 %v5505_v19, %v12884_v47  ;;  %v11290_v1 = vmul.f32 %v12920_v17, %v11137_v5  ;;  %v5515_v34 = vmul.f32 %v5506_v52, %v12942_v12 }
 0xb3d   :  { %12974 = vst [vmem:[#allocation91_spill] sm:$0xff] %v11285_v2  ;;  %v5474_v0 = vsel %vm401_vm1, %v5472_v22, %v5473_v29  ;;  %v5476_v23 = vsel %vm401_vm1, %v5473_v29, %v12581_v44  ;;  %v11298_v53 = vmul.f32 %v5507_v6, %v12877_v16  ;;  %v12975_v19 = vrot.slane %v11088_v21, 1 }
 0xb3e   :  { %v5497_v32 = vadd.f32 %v5474_v0, %v5448_v27  ;;  %v5498_v63 = vadd.f32 %v5476_v23, %v5449_v38  ;;  %v5532_v62 = vrot.slane %v5514_v45, 2  ;;  %v5533_v56 = vrot.slane %v5515_v34, 2  ;;  %v12977_v38 = vld [vmem:[#allocation33_spill] sm:$0xff] }
 0xb3f   :  { %v3743_v4 = vsel %vm401_vm1, %v10826_v25, %v12975_v19  ;;  %v12582_v22 = vrot.slane %v11298_v53, 2  ;;  %v12584_v28 = vrot.slane %v11290_v1, 1  ;;  %v3776_v52 = vmul.f32 %v12921_v30, %v11137_v5 }
 0xb40   :  { %v3766_v29 = vadd.f32 %v3743_v4, %v10807_v48  ;;  %v5558_v44 = vadd.f32 %v5532_v62, %v5496_v59  ;;  %v12976_v27 = vrot.slane %v11102_v60, 2  ;;  %v3839_v45 = vmul.f32 %v12922_v31, %v11137_v5 }
 0xb41   :  { %v5534_v25 = vsel %vm561_vm8, %v5532_v62, %v5533_v56  ;;  %v5536_v0 = vsel %vm561_vm8, %v5533_v56, %v12582_v22  ;;  %v12978_v48 = vmov %v12975_v19  ;;  %v12979_v62 = vld [vmem:[#allocation70_spill] sm:$0xff]  ;;  %v12980_v22 = vld [vmem:[#allocation68_spill] sm:$0xff] }
 0xb42   :  { %v3803_v6 = vsel %vm561_vm8, %v12977_v38, %v12976_v27  ;;  %v3745_v4 = vsel %vm401_vm1, %v12978_v48, %v12584_v28  ;;  %v5559_v23 = vadd.f32 %v5534_v25, %v5497_v32  ;;  %v11324_v34 = vadd.f32 %v5536_v0, %v5498_v63 }
 0xb43   :  { %v3828_v59 = vadd.f32 %v3803_v6, %v3766_v29  ;;  %v5610_v19 = vrot.slane %v5558_v44, 7  ;;  %v3767_v27 = vadd.f32 %v3745_v4, %v11099_v57  ;;  %v11328_v38 = vmul.f32 %v3776_v52, %v12877_v16  ;;  %v12982_v44 = vld [vmem:[#allocation28_spill] sm:$0xff] }
 0xb44   :  { %v3847_v9 = vmul.f32 %v12979_v62, %v12878_v40  ;;  %v3848_v56 = vmul.f32 %v3839_v45, %v12935_v42  ;;  %v3864_v21 = vmul.f32 %v12981_v8, %v12980_v22  ;;  %v5611_v11 = vrot.slane %v5559_v23, 7  ;;  %v11353_v23 = vld [vmem:[%s12298_s13 + $0x1] ss:$0 sm:$0xff] }
 0xb45   :  { %v12583_v29 = vrot.slane %v11324_v34, 7  ;;  %v3865_v32 = vmul.f32 %v12981_v8, %v11137_v5  ;;  %v11340_v57 = vmul.f32 %v12981_v8, %v12982_v44  ;;  %v12589_v63 = vrot.slane %v11328_v38, 2 }
 0xb46   :  { %v3856_v52 = vadd.f32 %v3847_v9, %v3828_v59  ;;  %v3880_v6 = vrot.slane %v3864_v21, 1  ;;  %v3913_v45 = vmul.f32 %v12940_v20, %v12980_v22  ;;  %v5612_v25 = vsel %vm518_vm2, %v5610_v19, %v5611_v11  ;;  %v12985_v21 = vld [vmem:[#allocation78_spill] sm:$0xff] }
 0xb47   :  { %12983 = vst [vmem:[#allocation33_spill] sm:$0xff] %v11340_v57  ;;  %v5614_v0 = vsel %vm518_vm2, %v5611_v11, %v12583_v29  ;;  %v3881_v48 = vrot.slane %v3865_v32, 1  ;;  %v12588_v4 = vrot.slane %v11340_v57, 1  ;;  %v5649_v9 = vadd.f32 %v11353_v23, %v5612_v25  ;;  %v12987_v57 = vld [vmem:[#allocation15_spill] sm:$0xff] }
 0xb48   :  { %v5650_v59 = vadd.f32 %v11353_v23, %v5614_v0  ;;  %v12984_v19 = vrot.slane %v11102_v60, 2  ;;  %v3904_v11 = vadd.f32 %v3880_v6, %v12985_v21  ;;  %v3914_v25 = vmul.f32 %v12940_v20, %v11137_v5 }
 0xb49   :  { %v3882_v29 = vsel %vm401_vm1, %v3880_v6, %v3881_v48  ;;  %v3884_v28 = vsel %vm401_vm1, %v3881_v48, %v12588_v4  ;;  %v11369_v37 = vmul.f32 0.5, %v5649_v9  ;;  %v5681_v10 = vmul.f32 %v5649_v9, %v5649_v9  ;;  %v12986_v4 = vld [vmem:[#allocation25_spill] sm:$0xff] }
 0xb4a   :  { %v3805_v62 = vsel %vm561_vm8, %v12984_v19, %v12589_v63  ;;  %v11371_v0 = vmul.f32 0.5, %v5650_v59  ;;  %v5682_v60 = vmul.f32 %v5650_v59, %v5650_v59  ;;  %v3905_v19 = vadd.f32 %v3882_v29, %v3856_v52 }
 0xb4b   :  { %v3829_v32 = vadd.f32 %v3805_v62, %v3767_v27  ;;  %v3915_v27 = vmul.f32 %v12940_v20, %v12982_v44  ;;  %v3922_v6 = vmul.f32 %v3913_v45, %v12884_v47  ;;  %v5697_v62 = vmul.f32 %v5681_v10, %v5649_v9 }
 0xb4c   :  { %v5698_v21 = vmul.f32 %v5682_v60, %v5650_v59  ;;  %v3923_v48 = vmul.f32 %v3914_v25, %v12942_v12  ;;  %v3976_v63 = vmul.f32 %v12986_v4, %v12980_v22  ;;  %v3978_v10 = vmul.f32 %v12986_v4, %v12982_v44 }
 0xb4d   :  { %v3857_v26 = vadd.f32 %v3848_v56, %v3829_v32  ;;  %v11380_v36 = vmul.f32 %v3915_v27, %v12877_v16  ;;  %v3940_v51 = vrot.slane %v3922_v6, 2  ;;  %v3977_v56 = vmul.f32 %v12986_v4, %v11137_v5 }
 0xb4e   :  { %v5713_v29 = vmul.f32 0.044715, %v5697_v62  ;;  %v5714_v52 = vmul.f32 0.044715, %v5698_v21  ;;  %v3941_v32 = vrot.slane %v3923_v48, 2  ;;  %v3985_v60 = vmul.f32 %v3976_v63, %v12888_v15 }
 0xb4f   :  { %v3906_v58 = vadd.f32 %v3884_v28, %v3857_v26  ;;  %v12598_v45 = vrot.slane %v11380_v36, 2  ;;  %v3966_v25 = vadd.f32 %v3940_v51, %v3904_v11  ;;  %v3986_v26 = vmul.f32 %v3977_v56, %v12878_v40 }
 0xb50   :  { %v5729_v28 = vadd.f32 %v5713_v29, %v5649_v9  ;;  %v5730_v22 = vadd.f32 %v5714_v52, %v5650_v59  ;;  %v3942_v27 = vsel %vm561_vm8, %v3940_v51, %v3941_v32  ;;  %v3987_v6 = vmul.f32 %v3978_v10, %v12935_v42  ;;  %v12988_v9 = vld [vmem:[#allocation69_spill] sm:$0xff] }
 0xb51   :  { %v3944_v62 = vsel %vm561_vm8, %v3941_v32, %v12598_v45  ;;  %v3967_v21 = vadd.f32 %v3942_v27, %v3905_v19  ;;  %v3994_v48 = vadd.f32 %v3985_v60, %v3966_v25  ;;  %v4003_v4 = vmul.f32 %v12987_v57, %v11137_v5  ;;  %v12989_v59 = vld [vmem:[#allocation61_spill] sm:$0xff] }
 0xb52   :  { %v5745_v11 = vmul.f32 0.7978846, %v5729_v28  ;;  %v5746_v20 = vmul.f32 0.7978846, %v5730_v22  ;;  %v3968_v15 = vadd.f32 %v3944_v62, %v3906_v58  ;;  %v4004_v40 = vmul.f32 %v12987_v57, %v12982_v44 }
 0xb53   :  { %v3995_v63 = vadd.f32 %v3986_v26, %v3967_v21  ;;  %v11400_v51 = vmul.f32 %v12987_v57, %v12988_v9  ;;  %v4019_v42 = vrot.slane %v4003_v4, 1  ;;  %v4052_v56 = vmul.f32 %v12989_v59, %v11137_v5  ;;  %v12990_v26 = vld [vmem:[#allocation20_spill] sm:$0xff] }
 0xb54   :  { %7117 = vtanh.f32 %v5745_v11  ;;  %v3996_v19 = vadd.f32 %v3987_v6, %v3968_v15  ;;  %v4020_v29 = vrot.slane %v4004_v40, 1  ;;  %v4053_v52 = vmul.f32 %v12989_v59, %v12982_v44  ;;  %v12992_v15 = vld [vmem:[#allocation44_spill] sm:$0xff]  ;;  %v12993_v40 = vld [vmem:[#allocation18_spill] sm:$0xff] }
 0xb55   :  { %7119 = vtanh.f32 %v5746_v20  ;;  %v12597_v58 = vrot.slane %v11400_v51, 1  ;;  %v4043_v32 = vadd.f32 %v4019_v42, %v3994_v48  ;;  %v4054_v10 = vmul.f32 %v12989_v59, %v12988_v9 }
 0xb56   :  { %v4021_v25 = vsel %vm401_vm1, %v4019_v42, %v4020_v29  ;;  %v4061_v4 = vmul.f32 %v4052_v56, %v12884_v47  ;;  %v4062_v60 = vmul.f32 %v4053_v52, %v12942_v12  ;;  %v5154_v28 = vmul.f32 %v12990_v26, %v11129_v3  ;;  %v12991_v47 = vld [vmem:[#allocation39_spill] sm:$0xff] }
 0xb57   :  { %v4023_v22 = vsel %vm401_vm1, %v4020_v29, %v12597_v58  ;;  %v4044_v20 = vadd.f32 %v4021_v25, %v3995_v63  ;;  %v11418_v27 = vmul.f32 %v4054_v10, %v12877_v16  ;;  %v5155_v6 = vmul.f32 %v12990_v26, %v11072_v13  ;;  %v12997_v58 = vld [vmem:[#allocation67_spill] sm:$0xff] }
 0xb58   :  { %v4045_v62 = vadd.f32 %v4023_v22, %v3996_v19  ;;  %v4079_v21 = vrot.slane %v4061_v4, 2  ;;  %v4080_v48 = vrot.slane %v4062_v60, 2  ;;  %v5163_v11 = vmul.f32 %v5154_v28, %v12991_v47  ;;  %v12994_v28 = vld [vmem:[#allocation42_spill] sm:$0xff] }
 0xb59   :  { %v12601_v12 = vrot.slane %v11418_v27, 2  ;;  %v5164_v3 = vmul.f32 %v5155_v6, %v12992_v15  ;;  %v5181_v42 = vmul.f32 %v12993_v40, %v11072_v13  ;;  %v11429_v63 = vmul.f32 %v12993_v40, %v11121_v33 }
 0xb5a   :  { %v4081_v16 = vsel %vm561_vm8, %v4079_v21, %v4080_v48  ;;  %v4105_v59 = vadd.f32 %v4079_v21, %v4043_v32  ;;  %v5230_v56 = vmul.f32 %v9741_v54, %v11072_v13  ;;  %v5231_v19 = vmul.f32 %v9741_v54, %v11121_v33  ;;  %v12995_v32 = vld [vmem:[#allocation45_spill] sm:$0xff] }
 0xb5b   :  { %v4083_v29 = vsel %vm561_vm8, %v4080_v48, %v12601_v12  ;;  %v4106_v52 = vadd.f32 %v4081_v16, %v4044_v20  ;;  %v5199_v10 = vrot.slane %v5181_v42, 1  ;;  %v12603_v25 = vrot.slane %v11429_v63, 1 }
 0xb5c   :  { %v11440_v4 = vadd.f32 %v4083_v29, %v4045_v62  ;;  %v4157_v60 = vrot.slane %v4105_v59, 7  ;;  %v5239_v22 = vmul.f32 %v5230_v56, %v12994_v28  ;;  %v11444_v6 = vmul.f32 %v5231_v19, %v12995_v32 }
 0xb5d   :  { %v4158_v21 = vrot.slane %v4106_v52, 7  ;;  %v12998_v45 = vrot.slane %v12997_v58, 1  ;;  %v5202_v20 = vsel %vm401_vm1, %v5199_v10, %v12603_v25  ;;  %v5293_v48 = vmul.f32 %v9754_v18, %v11072_v13 }
 0xb5e   :  { %12996 = vst [vmem:[#allocation70_spill] sm:$0xff] %v11444_v6  ;;  %v7118_v62 = vpop.eup %7117  ;;  %v12602_v42 = vrot.slane %v11440_v4, 7  ;;  %v5222_v59 = vadd.f32 %v5202_v20, %v5164_v3  ;;  %v5259_v56 = vrot.slane %v5239_v22, 2  ;;  %v12606_v58 = vrot.slane %v11444_v6, 2 }
 0xb5f   :  { %v5200_v54 = vsel %vm401_vm1, %v12998_v45, %v5199_v10  ;;  %v7120_v19 = vpop.eup %7119  ;;  %v5777_v29 = vadd.f32 1.0, %v7118_v62  ;;  %v4159_v52 = vsel %vm518_vm2, %v4157_v60, %v4158_v21  ;;  %v5294_v45 = vmul.f32 %v9754_v18, %v11121_v33 }
 0xb60   :  { %v5221_v16 = vadd.f32 %v5200_v54, %v5163_v11  ;;  %v5778_v12 = vadd.f32 1.0, %v7120_v19  ;;  %v4161_v13 = vsel %vm518_vm2, %v4158_v21, %v12602_v42  ;;  %v11465_v54 = vld [vmem:[%s12298_s13] ss:$0 sm:$0xff]  ;;  %v13000_v3 = vrot.slane %v11167_v39, 2 }
 0xb61   :  { %12999 = vst [vmem:[#allocation68_spill] sm:$0xff] %v11465_v54  ;;  %v4196_v11 = vadd.f32 %v11465_v54, %v4159_v52  ;;  %v4197_v22 = vadd.f32 %v11465_v54, %v4161_v13  ;;  %v5262_v20 = vsel %vm561_vm8, %v5259_v56, %v12606_v58  ;;  %v5793_v62 = vmul.f32 %v5777_v29, %v11369_v37 }
 0xb62   :  { %v5260_v10 = vsel %vm561_vm8, %v13000_v3, %v5259_v56  ;;  %v5794_v19 = vmul.f32 %v5778_v12, %v11371_v0  ;;  %v5284_v25 = vadd.f32 %v5262_v20, %v5222_v59  ;;  %v5302_v3 = vmul.f32 %v5293_v48, %v12991_v47 }
 0xb63   :  { %v5283_v21 = vadd.f32 %v5260_v10, %v5221_v16  ;;  %v4228_v42 = vmul.f32 %v4196_v11, %v4196_v11  ;;  %v11478_v52 = vmul.f32 0.5, %v4196_v11  ;;  %v4229_v39 = vmul.f32 %v4197_v22, %v4197_v22 }
 0xb64   :  { %v5303_v60 = vmul.f32 %v5294_v45, %v12992_v15  ;;  %v5805_v2 = vpack.c.bf16 %v5794_v19, %v5793_v62  ;;  %v5320_v6 = vmul.f32 %v12881_v43, %v11121_v33  ;;  %v11486_v16 = vmul.f32 %v12881_v43, %v11228_v55 }
 0xb65   :  { %v4244_v13 = vmul.f32 %v4228_v42, %v4196_v11  ;;  %v4245_v37 = vmul.f32 %v4229_v39, %v4197_v22  ;;  %v5311_v0 = vadd.f32 %v5302_v3, %v5283_v21  ;;  %v5369_v59 = vmul.f32 %v9808_v46, %v11121_v33 }
 0xb66   :  { %v5312_v12 = vadd.f32 %v5303_v60, %v5284_v25  ;;  %6737 = vmatprep.mubr.bf16.mxu0 %v5805_v2  ;;  %v5338_v48 = vrot.slane %v5320_v6, 1  ;;  %v12613_v29 = vrot.slane %v11486_v16, 1  ;;  %v5370_v42 = vmul.f32 %v9808_v46, %v11228_v55 }
 0xb67   :  { %v4260_v56 = vmul.f32 0.044715, %v4244_v13  ;;  %v4261_v45 = vmul.f32 0.044715, %v4245_v37  ;;  %v5378_v10 = vmul.f32 %v5369_v59, %v12994_v28  ;;  %v5432_v20 = vmul.f32 %v12887_v50, %v11121_v33 }
 0xb68   :  { %v5433_v25 = vmul.f32 %v12887_v50, %v11228_v55  ;;  %v13001_v21 = vrot.slane %v11190_v24, 1  ;;  %v5341_v6 = vsel %vm401_vm1, %v5338_v48, %v12613_v29  ;;  %v11505_v62 = vmul.f32 %v5370_v42, %v12995_v32 }
 0xb69   :  { %v4276_v60 = vadd.f32 %v4260_v56, %v4196_v11  ;;  %v4277_v19 = vadd.f32 %v4261_v45, %v4197_v22  ;;  %v5361_v3 = vadd.f32 %v5341_v6, %v5312_v12  ;;  %v5398_v13 = vrot.slane %v5378_v10, 2  ;;  %v13003_v6 = vld [vmem:[#allocation27_spill] sm:$0xff] }
 0xb6a   :  { %v5339_v2 = vsel %vm401_vm1, %v13001_v21, %v5338_v48  ;;  %v12609_v59 = vrot.slane %v11505_v62, 2  ;;  %v5441_v11 = vmul.f32 %v5432_v20, %v12991_v47  ;;  %v5442_v24 = vmul.f32 %v5433_v25, %v12992_v15 }
 0xb6b   :  { %v5360_v39 = vadd.f32 %v5339_v2, %v5311_v0  ;;  %v4292_v37 = vmul.f32 0.7978846, %v4276_v60  ;;  %v4293_v56 = vmul.f32 0.7978846, %v4277_v19  ;;  %v13002_v21 = vrot.slane %v11209_v7, 2 }
 0xb6c   :  { %v5459_v48 = vmul.f32 %v12889_v49, %v11228_v55  ;;  %v11517_v0 = vmul.f32 %v12889_v49, %v11270_v61  ;;  %v5401_v12 = vsel %vm561_vm8, %v5398_v13, %v12609_v59  ;;  %v5508_v45 = vmul.f32 %v11275_v35, %v11228_v55 }
 0xb6d   :  { %v5399_v58 = vsel %vm561_vm8, %v13002_v21, %v5398_v13  ;;  %7121 = vtanh.f32 %v4292_v37  ;;  %v5423_v7 = vadd.f32 %v5401_v12, %v5361_v3  ;;  %v5509_v60 = vmul.f32 %v11275_v35, %v11270_v61 }
 0xb6e   :  { %v5422_v42 = vadd.f32 %v5399_v58, %v5360_v39  ;;  %7123 = vtanh.f32 %v4293_v56  ;;  %v5477_v10 = vrot.slane %v5459_v48, 1  ;;  %v12608_v20 = vrot.slane %v11517_v0, 1 }
 0xb6f   :  { %v5517_v2 = vmul.f32 %v5508_v45, %v12994_v28  ;;  %v3701_v19 = vmul.f32 %v13003_v6, %v11137_v5  ;;  %v4213_v37 = vmul.f32 0.5, %v4197_v22  ;;  %v5451_v13 = vadd.f32 %v5442_v24, %v5423_v7 }
 0xb70   :  { %v5450_v25 = vadd.f32 %v5441_v11, %v5422_v42  ;;  %v13004_v58 = vrot.slane %v11264_v14, 1  ;;  %v3702_v3 = vmul.f32 %v13003_v6, %v12982_v44  ;;  %v5480_v11 = vsel %vm401_vm1, %v5477_v10, %v12608_v20 }
 0xb71   :  { %v11539_v21 = vmul.f32 %v5509_v60, %v12995_v32  ;;  %v5537_v48 = vrot.slane %v5517_v2, 2  ;;  %v5500_v12 = vadd.f32 %v5480_v11, %v5451_v13  ;;  %v3710_v5 = vmul.f32 %v3701_v19, %v12991_v47 }
 0xb72   :  { %v5478_v39 = vsel %vm401_vm1, %v13004_v58, %v5477_v10  ;;  %v3728_v14 = vmul.f32 %v12920_v17, %v12982_v44  ;;  %v11546_v22 = vmul.f32 %v12920_v17, %v12988_v9  ;;  %v13005_v24 = vrot.slane %v11298_v53, 2 }
 0xb73   :  { %v5499_v56 = vadd.f32 %v5478_v39, %v5450_v25  ;;  %v12607_v45 = vrot.slane %v11539_v21, 2  ;;  %v3777_v7 = vmul.f32 %v12921_v30, %v12982_v44  ;;  %v3778_v10 = vmul.f32 %v12921_v30, %v12988_v9 }
 0xb74   :  { %v5538_v42 = vsel %vm561_vm8, %v13005_v24, %v5537_v48  ;;  %v3711_v60 = vmul.f32 %v3702_v3, %v12992_v15  ;;  %v3746_v2 = vrot.slane %v3728_v14, 1  ;;  %v12612_v19 = vrot.slane %v11546_v22, 1 }
 0xb75   :  { %v5561_v25 = vadd.f32 %v5538_v42, %v5499_v56  ;;  %v5540_v53 = vsel %vm561_vm8, %v5537_v48, %v12607_v45  ;;  %v3786_v13 = vmul.f32 %v3777_v7, %v12994_v28  ;;  %v11563_v58 = vmul.f32 %v3778_v10, %v12995_v32 }
 0xb76   :  { %v3840_v39 = vmul.f32 %v12922_v31, %v12982_v44  ;;  %v11567_v11 = vadd.f32 %v5540_v53, %v5500_v12  ;;  %v13006_v3 = vrot.slane %v11290_v1, 1  ;;  %v3749_v24 = vsel %vm401_vm1, %v3746_v2, %v12612_v19 }
 0xb77   :  { %v5615_v56 = vrot.slane %v5561_v25, 7  ;;  %v7122_v48 = vpop.eup %7121  ;;  %v3769_v7 = vadd.f32 %v3749_v24, %v3711_v60  ;;  %v3806_v45 = vrot.slane %v3786_v13, 2  ;;  %v12610_v10 = vrot.slane %v11563_v58, 2 }
 0xb78   :  { %v3747_v14 = vsel %vm401_vm1, %v13006_v3, %v3746_v2  ;;  %v7124_v20 = vpop.eup %7123  ;;  %v4324_v59 = vadd.f32 1.0, %v7122_v48  ;;  %v13007_v44 = vrot.slane %v11324_v34, 7  ;;  %v12611_v1 = vrot.slane %v11567_v11, 7 }
 0xb79   :  { %v3768_v42 = vadd.f32 %v3747_v14, %v3710_v5  ;;  %v3841_v25 = vmul.f32 %v12922_v31, %v12988_v9  ;;  %v4325_v53 = vadd.f32 1.0, %v7124_v20  ;;  %v13008_v5 = vrot.slane %v11328_v38, 2 }
 0xb7a   :  { %v5616_v12 = vsel %vm518_vm2, %v13007_v44, %v5615_v56  ;;  %v3809_v13 = vsel %vm561_vm8, %v3806_v45, %v12610_v10  ;;  %v5618_v34 = vsel %vm518_vm2, %v5615_v56, %v12611_v1  ;;  %v3849_v24 = vmul.f32 %v3840_v39, %v12991_v47  ;;  %v11602_v56 = vpop.f32.mrb[48].mxu1 }
 0xb7b   :  { %v5651_v2 = vadd.f32 %v11353_v23, %v5616_v12  ;;  %v3807_v60 = vsel %vm561_vm8, %v13008_v5, %v3806_v45  ;;  %v3831_v14 = vadd.f32 %v3809_v13, %v3769_v7  ;;  %v4340_v20 = vmul.f32 %v4324_v59, %v11478_v52  ;;  %13010 = vst [vmem:[#allocation28_spill] sm:$0xff] %v11602_v56 }
 0xb7c   :  { %v3830_v3 = vadd.f32 %v3807_v60, %v3768_v42  ;;  %v4341_v48 = vmul.f32 %v4325_v53, %v4213_v37  ;;  %v5652_v44 = vadd.f32 %v11353_v23, %v5618_v34  ;;  %v3850_v12 = vmul.f32 %v3841_v25, %v12992_v15  ;;  %v11606_v37 = vpop.f32.mrb[49].mxu1  ;;  %v13012_v60 = vld [vmem:[#allocation21_spill] sm:$0xff] }
 0xb7d   :  { %v5683_v38 = vmul.f32 %v5651_v2, %v5651_v2  ;;  %v3867_v45 = vmul.f32 %v12981_v8, %v12988_v9  ;;  %v11600_v10 = vmul.f32 %v12981_v8, %v11217_v41  ;;  %v11604_v39 = vmul.f32 0.5, %v5651_v2  ;;  %13011 = vst [vmem:[#allocation78_spill] sm:$0xff] %v11606_v37  ;;  %v11611_v34 = vpop.f32.mrb[50].mxu1 }
 0xb7e   :  { %v3858_v5 = vadd.f32 %v3849_v24, %v3830_v3  ;;  %v4352_v42 = vpack.c.bf16 %v4341_v48, %v4340_v20  ;;  %v5684_v52 = vmul.f32 %v5652_v44, %v5652_v44  ;;  %v3859_v7 = vadd.f32 %v3850_v12, %v3831_v14  ;;  %13013 = vst [vmem:[#allocation15_spill] sm:$0xff] %v11611_v34  ;;  %v13014_v48 = vld [vmem:[#allocation25_spill] sm:$0xff]  ;;  %v11617_v1 = vpop.f32.mrb[51].mxu1 }
 0xb7f   :  { %13009 = vst [vmem:[#allocation29_spill] sm:$0xff] %v11600_v10  ;;  %v5699_v59 = vmul.f32 %v5683_v38, %v5651_v2  ;;  %v3885_v53 = vrot.slane %v3867_v45, 1  ;;  %v12616_v25 = vrot.slane %v11600_v10, 1  ;;  %v3916_v13 = vmul.f32 %v13012_v60, %v12988_v9  ;;  %13015 = vst [vmem:[#allocation69_spill] sm:$0xff] %v11617_v1  ;;  %v13016_v14 = vld [vmem:[#allocation33_spill] sm:$0xff] }
 0xb80   :  { %6769 = vmatprep.mubr.bf16.mxu1 %v4352_v42  ;;  %v5700_v3 = vmul.f32 %v5684_v52, %v5652_v44  ;;  %v3917_v20 = vmul.f32 %v13012_v60, %v11217_v41  ;;  %v3979_v38 = vmul.f32 %v13014_v48, %v12988_v9  ;;  %v13017_v12 = vrot.slane %v13016_v14, 1 }
 0xb81   :  { %v5715_v24 = vmul.f32 0.044715, %v5699_v59  ;;  %v3888_v42 = vsel %vm401_vm1, %v3885_v53, %v12616_v25  ;;  %v3925_v19 = vmul.f32 %v3916_v13, %v12994_v28  ;;  %v3980_v52 = vmul.f32 %v13014_v48, %v11217_v41  ;;  %v13018_v13 = vld [vmem:[#allocation90_spill] sm:$0xff] }
 0xb82   :  { %v3886_v45 = vsel %vm401_vm1, %v13017_v12, %v3885_v53  ;;  %v5716_v59 = vmul.f32 0.044715, %v5700_v3  ;;  %v3908_v37 = vadd.f32 %v3888_v42, %v3859_v7  ;;  %v11629_v56 = vmul.f32 %v3917_v20, %v12995_v32 }
 0xb83   :  { %v5731_v29 = vadd.f32 %v5715_v24, %v5651_v2  ;;  %v3907_v34 = vadd.f32 %v3886_v45, %v3858_v5  ;;  %v3945_v1 = vrot.slane %v3925_v19, 2  ;;  %v3988_v14 = vmul.f32 %v3979_v38, %v12991_v47  ;;  %v11646_v19 = vld [vmem:[%s12297_s12 + $0x10] ss:$0 sm:$0xff] }
 0xb84   :  { %v3989_v12 = vmul.f32 %v3980_v52, %v12992_v15  ;;  %v5732_v10 = vadd.f32 %v5716_v59, %v5652_v44  ;;  %v4006_v53 = vmul.f32 %v12987_v57, %v11217_v41  ;;  %v11637_v25 = vmul.f32 %v12987_v57, %v13018_v13 }
 0xb85   :  { %v5747_v60 = vmul.f32 0.7978846, %v5731_v29  ;;  %v13019_v2 = vrot.slane %v11380_v36, 2  ;;  %v12617_v7 = vrot.slane %v11629_v56, 2  ;;  %v4055_v15 = vmul.f32 %v11646_v19, %v11217_v41 }
 0xb86   :  { %v4056_v29 = vmul.f32 %v11646_v19, %v13018_v13  ;;  %v5748_v3 = vmul.f32 0.7978846, %v5732_v10  ;;  %v4024_v20 = vrot.slane %v4006_v53, 1  ;;  %v12620_v38 = vrot.slane %v11637_v25, 1 }
 0xb87   :  { %v3946_v5 = vsel %vm561_vm8, %v13019_v2, %v3945_v1  ;;  %7125 = vtanh.f32 %v5747_v60  ;;  %v3948_v36 = vsel %vm561_vm8, %v3945_v1, %v12617_v7  ;;  %v4064_v45 = vmul.f32 %v4055_v15, %v12994_v28 }
 0xb88   :  { %v3969_v24 = vadd.f32 %v3946_v5, %v3907_v34  ;;  %v11658_v42 = vmul.f32 %v4056_v29, %v12995_v32  ;;  %7127 = vtanh.f32 %v5748_v3  ;;  %v3970_v52 = vadd.f32 %v3948_v36, %v3908_v37  ;;  %v13024_v29 = vld [vmem:[#allocation52_spill] sm:$0xff]  ;;  %v13025_v36 = vld [vmem:[#allocation46_spill] sm:$0xff] }
 0xb89   :  { %v13021_v2 = vrot.slane %v11400_v51, 1  ;;  %v5668_v60 = vmul.f32 0.5, %v5652_v44  ;;  %v4084_v34 = vrot.slane %v4064_v45, 2  ;;  %v5156_v1 = vmul.f32 %v12990_v26, %v11121_v33 }
 0xb8a   :  { %13020 = vst [vmem:[#allocation61_spill] sm:$0xff] %v11658_v42  ;;  %v3997_v59 = vadd.f32 %v3988_v14, %v3969_v24  ;;  %v12618_v53 = vrot.slane %v11658_v42, 2  ;;  %v3998_v5 = vadd.f32 %v3989_v12, %v3970_v52  ;;  %v5157_v28 = vmul.f32 %v12990_v26, %v11228_v55 }
 0xb8b   :  { %v4025_v10 = vsel %vm401_vm1, %v13021_v2, %v4024_v20  ;;  %v5183_v32 = vmul.f32 %v12993_v40, %v11228_v55  ;;  %v4027_v51 = vsel %vm401_vm1, %v4024_v20, %v12620_v38  ;;  %v13022_v44 = vrot.slane %v11418_v27, 2  ;;  %v13026_v27 = vld [vmem:[#allocation22_spill] sm:$0xff] }
 0xb8c   :  { %v4046_v7 = vadd.f32 %v4025_v10, %v3997_v59  ;;  %v4087_v33 = vsel %vm561_vm8, %v4084_v34, %v12618_v53  ;;  %v11681_v14 = vmul.f32 %v12993_v40, %v11270_v61  ;;  %v4047_v12 = vadd.f32 %v4027_v51, %v3998_v5  ;;  %v13030_v51 = vld [vmem:[#allocation49_spill] sm:$0xff] }
 0xb8d   :  { %v4085_v37 = vsel %vm561_vm8, %v13022_v44, %v4084_v34  ;;  %v5165_v3 = vmul.f32 %v5156_v1, %v13024_v29  ;;  %v5203_v24 = vrot.slane %v5183_v32, 1  ;;  %v5166_v45 = vmul.f32 %v5157_v28, %v13025_v36  ;;  %v13029_v28 = vld [vmem:[#allocation47_spill] sm:$0xff] }
 0xb8e   :  { %13023 = vst [vmem:[#allocation20_spill] sm:$0xff] %v11681_v14  ;;  %v4108_v15 = vadd.f32 %v4085_v37, %v4046_v7  ;;  %v12619_v20 = vrot.slane %v11681_v14, 1  ;;  %v5232_v52 = vmul.f32 %v13026_v27, %v11228_v55  ;;  %v5233_v59 = vmul.f32 %v13026_v27, %v11270_v61 }
 0xb8f   :  { %v11690_v2 = vadd.f32 %v4087_v33, %v4047_v12  ;;  %v13028_v34 = vrot.slane %v11429_v63, 1  ;;  %v5295_v1 = vmul.f32 %v9754_v18, %v11228_v55  ;;  %v5296_v37 = vmul.f32 %v9754_v18, %v11270_v61 }
 0xb90   :  { %v4162_v10 = vrot.slane %v4108_v15, 7  ;;  %v5206_v5 = vsel %vm401_vm1, %v5203_v24, %v12619_v20  ;;  %v5241_v32 = vmul.f32 %v5232_v52, %v13029_v28  ;;  %v11702_v44 = vmul.f32 %v5233_v59, %v13030_v51 }
 0xb91   :  { %13027 = vst [vmem:[#allocation44_spill] sm:$0xff] %v11690_v2  ;;  %v5204_v7 = vsel %vm401_vm1, %v13028_v34, %v5203_v24  ;;  %v7126_v33 = vpop.eup %7125  ;;  %v13032_v63 = vrot.slane %v11440_v4, 7  ;;  %v12622_v15 = vrot.slane %v11690_v2, 7  ;;  %v5224_v34 = vadd.f32 %v5206_v5, %v5166_v45 }
 0xb92   :  { %13031 = vst [vmem:[#allocation18_spill] sm:$0xff] %v11702_v44  ;;  %v5223_v55 = vadd.f32 %v5204_v7, %v5165_v3  ;;  %v5779_v53 = vadd.f32 1.0, %v7126_v33  ;;  %v5263_v20 = vrot.slane %v5241_v32, 2  ;;  %v7128_v59 = vpop.eup %7127  ;;  %v5304_v47 = vmul.f32 %v5295_v1, %v13024_v29 }
 0xb93   :  { %v4163_v12 = vsel %vm518_vm2, %v13032_v63, %v4162_v10  ;;  %v4165_v38 = vsel %vm518_vm2, %v4162_v10, %v12622_v15  ;;  %v5322_v4 = vmul.f32 %v12881_v43, %v11270_v61  ;;  %v13033_v63 = vld [vmem:[#allocation40_spill] sm:$0xff]  ;;  %v5780_v45 = vadd.f32 1.0, %v7128_v59 }
 0xb94   :  { %v4198_v24 = vadd.f32 %v11465_v54, %v4163_v12  ;;  %v11720_v3 = vmul.f32 %v12881_v43, %v13033_v63  ;;  %v5795_v7 = vmul.f32 %v5779_v53, %v11604_v39  ;;  %v4199_v5 = vadd.f32 %v11465_v54, %v4165_v38  ;;  %v13034_v12 = vld [vmem:[#allocation70_spill] sm:$0xff] }
 0xb95   :  { %v5305_v32 = vmul.f32 %v5296_v37, %v13025_v36  ;;  %v13035_v52 = vrot.slane %v13034_v12, 2  ;;  %v13036_v1 = vrot.slane %v11702_v44, 2  ;;  %v5342_v2 = vrot.slane %v5322_v4, 1 }
 0xb96   :  { %v4230_v33 = vmul.f32 %v4198_v24, %v4198_v24  ;;  %v5796_v14 = vmul.f32 %v5780_v45, %v5668_v60  ;;  %v11731_v43 = vmul.f32 0.5, %v4198_v24  ;;  %v4231_v59 = vmul.f32 %v4199_v5, %v4199_v5 }
 0xb97   :  { %v5264_v10 = vsel %vm561_vm8, %v13035_v52, %v5263_v20  ;;  %v5266_v15 = vsel %vm561_vm8, %v5263_v20, %v13036_v1  ;;  %v11733_v39 = vmul.f32 0.5, %v4199_v5  ;;  %v5344_v37 = vrot.slane %v11720_v3, 1  ;;  %v13074_v3 = vld [vmem:[#allocation76_spill] sm:$0xff] }
 0xb98   :  { %v5285_v18 = vadd.f32 %v5264_v10, %v5223_v55  ;;  %v4246_v38 = vmul.f32 %v4230_v33, %v4198_v24  ;;  %v5286_v53 = vadd.f32 %v5266_v15, %v5224_v34  ;;  %v5806_v54 = vpack.c.bf16 %v5796_v14, %v5795_v7 }
 0xb99   :  { %v4247_v12 = vmul.f32 %v4231_v59, %v4199_v5  ;;  %v5371_v52 = vmul.f32 %v9808_v46, %v11270_v61  ;;  %v13037_v60 = vrot.slane %v11486_v16, 1  ;;  %v5372_v55 = vmul.f32 %v9808_v46, %v13033_v63  ;;  %v13038_v59 = vld [vmem:[#allocation16_spill] sm:$0xff] }
 0xb9a   :  { %v5313_v42 = vadd.f32 %v5304_v47, %v5285_v18  ;;  %v4262_v44 = vmul.f32 0.044715, %v4246_v38  ;;  %v5314_v20 = vadd.f32 %v5305_v32, %v5286_v53  ;;  %6738 = vmatmul.mubr.bf16.gmra.mrb[56].mxu0 %v5806_v54  ;;  %v5345_v14 = vsel %vm401_vm1, %v5342_v2, %v5344_v37 }
 0xb9b   :  { %v5343_v4 = vsel %vm401_vm1, %v13037_v60, %v5342_v2  ;;  %v4263_v45 = vmul.f32 0.044715, %v4247_v12  ;;  %v5380_v18 = vmul.f32 %v5371_v52, %v13029_v28  ;;  %v5434_v47 = vmul.f32 %v12887_v50, %v11270_v61 }
 0xb9c   :  { %v4278_v15 = vadd.f32 %v4262_v44, %v4198_v24  ;;  %v5362_v34 = vadd.f32 %v5343_v4, %v5313_v42  ;;  %v5363_v7 = vadd.f32 %v5345_v14, %v5314_v20  ;;  %v11750_v16 = vmul.f32 %v5372_v55, %v13030_v51 }
 0xb9d   :  { %v4279_v32 = vadd.f32 %v4263_v45, %v4199_v5  ;;  %v5402_v33 = vrot.slane %v5380_v18, 2  ;;  %v5435_v46 = vmul.f32 %v12887_v50, %v13033_v63  ;;  %v5461_v54 = vmul.f32 %v12889_v49, %v13033_v63 }
 0xb9e   :  { %v4294_v2 = vmul.f32 0.7978846, %v4278_v15  ;;  %v5404_v10 = vrot.slane %v11750_v16, 2  ;;  %v5443_v1 = vmul.f32 %v5434_v47, %v13024_v29  ;;  %v11760_v42 = vmul.f32 %v12889_v49, %v13038_v59 }
 0xb9f   :  { %v4295_v44 = vmul.f32 0.7978846, %v4279_v32  ;;  %v13039_v24 = vrot.slane %v11505_v62, 2  ;;  %v5481_v38 = vrot.slane %v5461_v54, 1  ;;  %v5510_v53 = vmul.f32 %v11275_v35, %v13033_v63 }
 0xba0   :  { %7129 = vtanh.f32 %v4294_v2  ;;  %v5405_v12 = vsel %vm561_vm8, %v5402_v33, %v5404_v10  ;;  %v5483_v20 = vrot.slane %v11760_v42, 1  ;;  %v5444_v60 = vmul.f32 %v5435_v46, %v13025_v36 }
 0xba1   :  { %v5403_v5 = vsel %vm561_vm8, %v13039_v24, %v5402_v33  ;;  %7131 = vtanh.f32 %v4295_v44  ;;  %v5425_v49 = vadd.f32 %v5405_v12, %v5363_v7  ;;  %v5511_v62 = vmul.f32 %v11275_v35, %v13038_v59 }
 0xba2   :  { %v5424_v52 = vadd.f32 %v5403_v5, %v5362_v34  ;;  %v5484_v55 = vsel %vm401_vm1, %v5481_v38, %v5483_v20  ;;  %v5519_v45 = vmul.f32 %v5510_v53, %v13029_v28  ;;  %v3703_v14 = vmul.f32 %v13003_v6, %v12988_v9 }
 0xba3   :  { %v5453_v18 = vadd.f32 %v5444_v60, %v5425_v49  ;;  %v13040_v47 = vrot.slane %v11517_v0, 1  ;;  %v11784_v34 = vmul.f32 %v5511_v62, %v13030_v51  ;;  %v3730_v35 = vmul.f32 %v12920_v17, %v11217_v41 }
 0xba4   :  { %v5452_v4 = vadd.f32 %v5443_v1, %v5424_v52  ;;  %v5541_v32 = vrot.slane %v5519_v45, 2  ;;  %v3704_v33 = vmul.f32 %v13003_v6, %v11217_v41  ;;  %v11792_v46 = vmul.f32 %v12920_v17, %v13018_v13 }
 0xba5   :  { %v5482_v15 = vsel %vm401_vm1, %v13040_v47, %v5481_v38  ;;  %v5502_v9 = vadd.f32 %v5484_v55, %v5453_v18  ;;  %v5543_v0 = vrot.slane %v11784_v34, 2  ;;  %v3712_v54 = vmul.f32 %v3703_v14, %v13024_v29 }
 0xba6   :  { %v5501_v7 = vadd.f32 %v5482_v15, %v5452_v4  ;;  %v3750_v2 = vrot.slane %v3730_v35, 1  ;;  %v13041_v1 = vrot.slane %v11539_v21, 2  ;;  %v3752_v24 = vrot.slane %v11792_v46, 1 }
 0xba7   :  { %v3779_v5 = vmul.f32 %v12921_v30, %v11217_v41  ;;  %v3780_v38 = vmul.f32 %v12921_v30, %v13018_v13  ;;  %v5544_v53 = vsel %vm561_vm8, %v5541_v32, %v5543_v0  ;;  %v13042_v52 = vrot.slane %v11546_v22, 1 }
 0xba8   :  { %v5542_v44 = vsel %vm561_vm8, %v13041_v1, %v5541_v32  ;;  %v3842_v21 = vmul.f32 %v12922_v31, %v11217_v41  ;;  %v11812_v60 = vadd.f32 %v5544_v53, %v5502_v9  ;;  %v3713_v62 = vmul.f32 %v3704_v33, %v13025_v36 }
 0xba9   :  { %v5563_v12 = vadd.f32 %v5542_v44, %v5501_v7  ;;  %v3751_v49 = vsel %vm401_vm1, %v13042_v52, %v3750_v2  ;;  %v3753_v4 = vsel %vm401_vm1, %v3750_v2, %v3752_v24  ;;  %v3788_v55 = vmul.f32 %v3779_v5, %v13029_v28 }
 0xbaa   :  { %v3770_v14 = vadd.f32 %v3751_v49, %v3712_v54  ;;  %v11820_v18 = vmul.f32 %v3780_v38, %v13030_v51  ;;  %v3843_v22 = vmul.f32 %v12922_v31, %v13018_v13  ;;  %v7130_v47 = vpop.eup %7129  ;;  %v5621_v41 = vrot.slane %v11812_v60, 7 }
 0xbab   :  { %v5619_v45 = vrot.slane %v5563_v12, 7  ;;  %v3771_v15 = vadd.f32 %v3753_v4, %v3713_v62  ;;  %v3810_v35 = vrot.slane %v3788_v55, 2  ;;  %v3851_v7 = vmul.f32 %v3842_v21, %v13024_v29  ;;  %v7132_v32 = vpop.eup %7131 }
 0xbac   :  { %v4326_v33 = vadd.f32 1.0, %v7130_v47  ;;  %v13043_v9 = vrot.slane %v11567_v11, 7  ;;  %v3812_v54 = vrot.slane %v11820_v18, 2  ;;  %v3869_v1 = vmul.f32 %v12981_v8, %v13018_v13 }
 0xbad   :  { %v4327_v44 = vadd.f32 1.0, %v7132_v32  ;;  %v5622_v5 = vsel %vm518_vm2, %v5619_v45, %v5621_v41  ;;  %v13044_v53 = vrot.slane %v11563_v58, 2  ;;  %v3852_v21 = vmul.f32 %v3843_v22, %v13025_v36  ;;  %v13045_v32 = vld [vmem:[#allocation38_spill] sm:$0xff] }
 0xbae   :  { %v5620_v2 = vsel %vm518_vm2, %v13043_v9, %v5619_v45  ;;  %v11840_v11 = vadd.f32 %v11353_v23, %v5622_v5  ;;  %v3813_v52 = vsel %vm561_vm8, %v3810_v35, %v3812_v54  ;;  %v4342_v62 = vmul.f32 %v4326_v33, %v11731_v43  ;;  %v13047_v5 = vld [vmem:[#allocation29_spill] sm:$0xff] }
 0xbaf   :  { %v5653_v38 = vadd.f32 %v11353_v23, %v5620_v2  ;;  %v3811_v12 = vsel %vm561_vm8, %v13044_v53, %v3810_v35  ;;  %v4343_v4 = vmul.f32 %v4327_v44, %v11733_v39  ;;  %v3833_v45 = vadd.f32 %v3813_v52, %v3771_v15  ;;  %v13046_v15 = vld [vmem:[#allocation21_spill] sm:$0xff] }
 0xbb0   :  { %v3832_v49 = vadd.f32 %v3811_v12, %v3770_v14  ;;  %v5686_v58 = vmul.f32 %v11840_v11, %v11840_v11  ;;  %v11854_v9 = vmul.f32 %v12981_v8, %v13045_v32  ;;  %v3889_v22 = vrot.slane %v3869_v1, 1 }
 0xbb1   :  { %v5685_v55 = vmul.f32 %v5653_v38, %v5653_v38  ;;  %v11848_v47 = vmul.f32 0.5, %v5653_v38  ;;  %v4353_v35 = vpack.c.bf16 %v4343_v4, %v4342_v62  ;;  %v3861_v2 = vadd.f32 %v3852_v21, %v3833_v45 }
 0xbb2   :  { %v3860_v23 = vadd.f32 %v3851_v7, %v3832_v49  ;;  %v5702_v43 = vmul.f32 %v5686_v58, %v11840_v11  ;;  %v3891_v39 = vrot.slane %v11854_v9, 1  ;;  %v3918_v33 = vmul.f32 %v13046_v15, %v13018_v13 }
 0xbb3   :  { %v5701_v14 = vmul.f32 %v5685_v55, %v5653_v38  ;;  %v3919_v44 = vmul.f32 %v13046_v15, %v13045_v32  ;;  %6770 = vmatmul.mubr.bf16.gmra.mrb[52].mxu1 %v4353_v35  ;;  %v13048_v53 = vrot.slane %v13047_v5, 1  ;;  %v3981_v52 = vmul.f32 %v13014_v48, %v13018_v13 }
 0xbb4   :  { %v3982_v1 = vmul.f32 %v13014_v48, %v13045_v32  ;;  %v5718_v49 = vmul.f32 0.044715, %v5702_v43  ;;  %v3892_v21 = vsel %vm401_vm1, %v3889_v22, %v3891_v39  ;;  %v3927_v4 = vmul.f32 %v3918_v33, %v13029_v28 }
 0xbb5   :  { %v5717_v7 = vmul.f32 0.044715, %v5701_v14  ;;  %v3890_v12 = vsel %vm401_vm1, %v13048_v53, %v3889_v22  ;;  %v3910_v45 = vadd.f32 %v3892_v21, %v3861_v2  ;;  %v11874_v58 = vmul.f32 %v3919_v44, %v13030_v51  ;;  %v13049_v22 = vld [vmem:[#allocation23_spill] sm:$0xff] }
 0xbb6   :  { %v3909_v62 = vadd.f32 %v3890_v12, %v3860_v23  ;;  %v3990_v35 = vmul.f32 %v3981_v52, %v13024_v29  ;;  %v5734_v14 = vadd.f32 %v5718_v49, %v11840_v11  ;;  %v3949_v15 = vrot.slane %v3927_v4, 2 }
 0xbb7   :  { %v5733_v55 = vadd.f32 %v5717_v7, %v5653_v38  ;;  %v3991_v5 = vmul.f32 %v3982_v1, %v13025_v36  ;;  %v4008_v43 = vmul.f32 %v12987_v57, %v13045_v32  ;;  %v3951_v23 = vrot.slane %v11874_v58, 2 }
 0xbb8   :  { %v11884_v38 = vmul.f32 %v12987_v57, %v13049_v22  ;;  %v4057_v2 = vmul.f32 %v11646_v19, %v13045_v32  ;;  %v5750_v33 = vmul.f32 0.7978846, %v5734_v14  ;;  %v13050_v29 = vrot.slane %v11629_v56, 2 }
 0xbb9   :  { %v5749_v53 = vmul.f32 0.7978846, %v5733_v55  ;;  %v4028_v7 = vrot.slane %v4008_v43, 1  ;;  %v4058_v36 = vmul.f32 %v11646_v19, %v13049_v22  ;;  %v3952_v12 = vsel %vm561_vm8, %v3949_v15, %v3951_v23  ;;  %v13052_v43 = vld [vmem:[#allocation51_spill] sm:$0xff] }
 0xbba   :  { %v3950_v44 = vsel %vm561_vm8, %v13050_v29, %v3949_v15  ;;  %v4030_v57 = vrot.slane %v11884_v38, 1  ;;  %v3972_v1 = vadd.f32 %v3952_v12, %v3910_v45  ;;  %v13051_v49 = vrot.slane %v11637_v25, 1 }
 0xbbb   :  { %7133 = vtanh.f32 %v5749_v53  ;;  %v3971_v52 = vadd.f32 %v3950_v44, %v3909_v62  ;;  %v4066_v21 = vmul.f32 %v4057_v2, %v13029_v28  ;;  %v11905_v55 = vmul.f32 %v4058_v36, %v13030_v51  ;;  %v13056_v36 = vld [vmem:[#allocation53_spill] sm:$0xff] }
 0xbbc   :  { %7135 = vtanh.f32 %v5750_v33  ;;  %v4029_v56 = vsel %vm401_vm1, %v13051_v49, %v4028_v7  ;;  %v4031_v19 = vsel %vm401_vm1, %v4028_v7, %v4030_v57  ;;  %v5158_v62 = vmul.f32 %v12990_v26, %v11270_v61  ;;  %v13053_v33 = vld [vmem:[#allocation61_spill] sm:$0xff] }
 0xbbd   :  { %v3999_v4 = vadd.f32 %v3990_v35, %v3971_v52  ;;  %v4000_v14 = vadd.f32 %v3991_v5, %v3972_v1  ;;  %v4088_v15 = vrot.slane %v4066_v21, 2  ;;  %v5159_v25 = vmul.f32 %v12990_v26, %v13033_v63  ;;  %v13055_v5 = vld [vmem:[#allocation48_spill] sm:$0xff] }
 0xbbe   :  { %v5185_v45 = vmul.f32 %v12993_v40, %v13033_v63  ;;  %v4090_v35 = vrot.slane %v11905_v55, 2  ;;  %v5167_v53 = vmul.f32 %v5158_v62, %v13052_v43  ;;  %v5234_v51 = vmul.f32 %v13026_v27, %v13033_v63  ;;  %v13057_v52 = vld [vmem:[#allocation24_spill] sm:$0xff] }
 0xbbf   :  { %v4048_v28 = vadd.f32 %v4029_v56, %v3999_v4  ;;  %v4049_v2 = vadd.f32 %v4031_v19, %v4000_v14  ;;  %v13054_v29 = vrot.slane %v13053_v33, 2  ;;  %v5168_v44 = vmul.f32 %v5159_v25, %v13055_v5  ;;  %v13058_v56 = vld [vmem:[#allocation20_spill] sm:$0xff] }
 0xbc0   :  { %v5207_v7 = vrot.slane %v5185_v45, 1  ;;  %v4091_v26 = vsel %vm561_vm8, %v4088_v15, %v4090_v35  ;;  %v5243_v12 = vmul.f32 %v5234_v51, %v13056_v36  ;;  %v5297_v1 = vmul.f32 %v13057_v52, %v13033_v63  ;;  %v13061_v63 = vld [vmem:[#allocation37_spill] sm:$0xff] }
 0xbc1   :  { %v4089_v61 = vsel %vm561_vm8, %v13054_v29, %v4088_v15  ;;  %v5670_v27 = vmul.f32 0.5, %v11840_v11  ;;  %v11928_v49 = vadd.f32 %v4091_v26, %v4049_v2  ;;  %v13059_v21 = vrot.slane %v13058_v56, 1  ;;  %v13060_v15 = vld [vmem:[#allocation88_spill] sm:$0xff]  ;;  %v13062_v2 = vld [vmem:[#allocation89_spill] sm:$0xff] }
 0xbc2   :  { %v4110_v40 = vadd.f32 %v4089_v61, %v4048_v28  ;;  %v5226_v19 = vadd.f32 %v5207_v7, %v5168_v44  ;;  %v5267_v25 = vrot.slane %v5243_v12, 2  ;;  %v5307_v45 = vmul.f32 %v13060_v15, %v13055_v5  ;;  %v13063_v61 = vld [vmem:[#allocation44_spill] sm:$0xff]  ;;  %v13067_v12 = vld [vmem:[#allocation91_spill] sm:$0xff] }
 0xbc3   :  { %v5208_v4 = vsel %vm401_vm1, %v13059_v21, %v5207_v7  ;;  %v4168_v28 = vrot.slane %v11928_v49, 7  ;;  %v5306_v51 = vmul.f32 %v5297_v1, %v13052_v43  ;;  %v5324_v11 = vmul.f32 %v13061_v63, %v13038_v59  ;;  %v13069_v63 = vld [vmem:[#allocation68_spill] sm:$0xff] }
 0xbc4   :  { %v4166_v62 = vrot.slane %v4110_v40, 7  ;;  %v5225_v14 = vadd.f32 %v5208_v4, %v5167_v53  ;;  %v5382_v33 = vmul.f32 %v13062_v2, %v13056_v36  ;;  %v13064_v26 = vrot.slane %v13063_v61, 7  ;;  %v13065_v53 = vld [vmem:[#allocation18_spill] sm:$0xff] }
 0xbc5   :  { %v7134_v29 = vpop.eup %7133  ;;  %v13066_v7 = vrot.slane %v13065_v53, 2  ;;  %v13068_v52 = vrot.slane %v13067_v12, 2  ;;  %v5436_v1 = vmul.f32 %v12887_v50, %v13038_v59  ;;  %v5346_v12 = vrot.slane %v5324_v11, 1 }
 0xbc6   :  { %v4167_v44 = vsel %vm518_vm2, %v13064_v26, %v4166_v62  ;;  %v7136_v21 = vpop.eup %7135  ;;  %v5781_v4 = vadd.f32 1.0, %v7134_v29  ;;  %v4169_v15 = vsel %vm518_vm2, %v4166_v62, %v4168_v28  ;;  %v13071_v29 = vld [vmem:[#allocation77_spill] sm:$0xff]  ;;  %v3781_v34 = vmul.f32 %v12921_v30, %v13045_v32 }
 0xbc7   :  { %v5268_v40 = vsel %vm561_vm8, %v13066_v7, %v5267_v25  ;;  %v5270_v56 = vsel %vm561_vm8, %v5267_v25, %v13068_v52  ;;  %v11956_v2 = vadd.f32 %v13069_v63, %v4167_v44  ;;  %v5782_v26 = vadd.f32 1.0, %v7136_v21  ;;  %v13070_v25 = vld [vmem:[#allocation54_spill] sm:$0xff] }
 0xbc8   :  { %v5287_v61 = vadd.f32 %v5268_v40, %v5225_v14  ;;  %v11959_v53 = vadd.f32 %v13069_v63, %v4169_v15  ;;  %v5288_v7 = vadd.f32 %v5270_v56, %v5226_v19  ;;  %v3816_v52 = vrot.slane %v13070_v25, 2 }
 0xbc9   :  { %v4232_v50 = vmul.f32 %v11956_v2, %v11956_v2  ;;  %v5486_v62 = vsel %vm401_vm1, %v5483_v20, %v13071_v29  ;;  %v5797_v44 = vmul.f32 %v5781_v4, %v11848_v47  ;;  %v5798_v14 = vmul.f32 %v5782_v26, %v5670_v27 }
 0xbca   :  { %v5315_v59 = vadd.f32 %v5306_v51, %v5287_v61  ;;  %v4233_v40 = vmul.f32 %v11959_v53, %v11959_v53  ;;  %v5316_v21 = vadd.f32 %v5307_v45, %v5288_v7  ;;  %v5347_v11 = vsel %vm401_vm1, %v5344_v37, %v5346_v12  ;;  %v13072_v45 = vld [vmem:[#allocation41_spill] sm:$0xff] }
 0xbcb   :  { %v4248_v19 = vmul.f32 %v4232_v50, %v11956_v2  ;;  %v5406_v56 = vrot.slane %v5382_v33, 2  ;;  %v5445_v51 = vmul.f32 %v5436_v1, %v13052_v43  ;;  %v5807_v15 = vpack.c.bf16 %v5798_v14, %v5797_v44 }
 0xbcc   :  { %v4249_v42 = vmul.f32 %v4233_v40, %v11959_v53  ;;  %v5364_v20 = vadd.f32 %v5347_v11, %v5315_v59  ;;  %v5365_v61 = vadd.f32 %v5346_v12, %v5316_v21  ;;  %v13073_v4 = vrot.slane %v13072_v45, 2  ;;  %v13075_v59 = vld [vmem:[#allocation43_spill] sm:$0xff]  ;;  %v13077_v45 = vld [vmem:[#allocation36_spill] sm:$0xff] }
 0xbcd   :  { %v4264_v47 = vmul.f32 0.044715, %v4248_v19  ;;  %v5407_v27 = vsel %vm561_vm8, %v5404_v10, %v5406_v56  ;;  %v5546_v37 = vsel %vm561_vm8, %v5543_v0, %v13074_v3  ;;  %6741 = vmatprep.mubr.bf16.mxu0 %v5807_v15  ;;  %v3705_v12 = vmul.f32 %v13003_v6, %v13018_v13 }
 0xbce   :  { %v5409_v26 = vsel %vm561_vm8, %v5406_v56, %v13073_v4  ;;  %v4265_v33 = vmul.f32 0.044715, %v4249_v42  ;;  %v5426_v1 = vadd.f32 %v5407_v27, %v5364_v20  ;;  %v3706_v10 = vmul.f32 %v13003_v6, %v13045_v32 }
 0xbcf   :  { %v5427_v7 = vadd.f32 %v5409_v26, %v5365_v61  ;;  %v4280_v16 = vadd.f32 %v4264_v47, %v11956_v2  ;;  %v3732_v25 = vmul.f32 %v12920_v17, %v13045_v32  ;;  %v3714_v14 = vmul.f32 %v3705_v12, %v13052_v43  ;;  %v13076_v61 = vld [vmem:[#allocation31_spill] sm:$0xff] }
 0xbd0   :  { %v4281_v0 = vadd.f32 %v4265_v33, %v11959_v53  ;;  %v5454_v50 = vadd.f32 %v5445_v51, %v5426_v1  ;;  %v3715_v13 = vmul.f32 %v3706_v10, %v13055_v5  ;;  %v3790_v19 = vmul.f32 %v3781_v34, %v13056_v36  ;;  %v13078_v33 = vld [vmem:[#allocation87_spill] sm:$0xff]  ;;  %v13081_v34 = vld [vmem:[#allocation50_spill] sm:$0xff] }
 0xbd1   :  { %v5455_v44 = vadd.f32 %v5427_v7, %v13075_v59  ;;  %v4296_v40 = vmul.f32 0.7978846, %v4280_v16  ;;  %v3754_v21 = vrot.slane %v3732_v25, 1  ;;  %v3844_v30 = vmul.f32 %v12922_v31, %v13045_v32  ;;  %v13083_v59 = vld [vmem:[#allocation9_spill] sm:$0xff] }
 0xbd2   :  { %v4297_v11 = vmul.f32 0.7978846, %v4281_v0  ;;  %v5503_v56 = vadd.f32 %v5486_v62, %v5454_v50  ;;  %v3814_v42 = vrot.slane %v3790_v19, 2  ;;  %v3854_v46 = vmul.f32 %v13077_v45, %v13055_v5  ;;  %v7190_v5 = vld [vmem:[%s12298_s13 + $0x1] ss:$0 sm:$0xff]  ;;  %v13087_v45 = vld [vmem:[#allocation32_spill] sm:$0xff] }
 0xbd3   :  { %v5504_v17 = vadd.f32 %v5455_v44, %v13071_v29  ;;  %7137 = vtanh.f32 %v4296_v40  ;;  %v3755_v51 = vsel %vm401_vm1, %v3752_v24, %v3754_v21  ;;  %v3773_v15 = vadd.f32 %v3754_v21, %v3715_v13  ;;  %v13084_v13 = vld [vmem:[#allocation30_spill] sm:$0xff] }
 0xbd4   :  { %7139 = vtanh.f32 %v4297_v11  ;;  %v5565_v20 = vadd.f32 %v5546_v37, %v5503_v56  ;;  %v3772_v27 = vadd.f32 %v3755_v51, %v3714_v14  ;;  %v3815_v62 = vsel %vm561_vm8, %v3812_v54, %v3814_v42  ;;  %v13085_v11 = vld [vmem:[#allocation26_spill] sm:$0xff] }
 0xbd5   :  { %v5566_v47 = vadd.f32 %v5504_v17, %v13076_v61  ;;  %v3817_v29 = vsel %vm561_vm8, %v3814_v42, %v3816_v52  ;;  %v3853_v32 = vmul.f32 %v3844_v30, %v13052_v43  ;;  %v3871_v37 = vmul.f32 %v12981_v8, %v13049_v22 }
 0xbd6   :  { %v5623_v4 = vrot.slane %v5565_v20, 7  ;;  %v3834_v26 = vadd.f32 %v3815_v62, %v3772_v27  ;;  %v3835_v3 = vadd.f32 %v3817_v29, %v3773_v15  ;;  %v3929_v1 = vmul.f32 %v13078_v33, %v13056_v36  ;;  %v6735_v20 = vpop.f32.mrb[52].mxu0 }
 0xbd7   :  { %v5625_v24 = vrot.slane %v5566_v47, 7  ;;  %v3893_v8 = vrot.slane %v3871_v37, 1  ;;  %v4216_v36 = vmul.f32 0.5, %v11956_v2  ;;  %v3983_v60 = vmul.f32 %v13014_v48, %v13049_v22  ;;  %v5923_v29 = vpop.f32.mrb[53].mxu0 }
 0xbd8   :  { %v5624_v18 = vsel %vm518_vm2, %v5621_v41, %v5623_v4  ;;  %v3862_v52 = vadd.f32 %v3853_v32, %v3834_v26  ;;  %v3863_v7 = vadd.f32 %v3854_v46, %v3835_v3  ;;  %v3953_v10 = vrot.slane %v3929_v1, 2  ;;  %v13079_v41 = vld [vmem:[#allocation8_spill] sm:$0xff]  ;;  %v12080_v1 = vld [vmem:[%s12300_s15] ss:$0 sm:$0xff] }
 0xbd9   :  { %v5626_v54 = vsel %vm518_vm2, %v5623_v4, %v5625_v24  ;;  %v12026_v12 = vadd.f32 %v7190_v5, %v5624_v18  ;;  %v13080_v25 = vrot.slane %v13079_v41, 7  ;;  %v13082_v0 = vrot.slane %v13081_v34, 7  ;;  %v13088_v4 = vld [vmem:[#allocation35_spill] sm:$0xff]  ;;  %v6736_v24 = vpop.f32.mrb[54].mxu0 }
 0xbda   :  { %v12028_v16 = vadd.f32 %v7190_v5, %v5626_v54  ;;  %v12040_v44 = vadd.f32 %v13069_v63, %v13083_v59  ;;  %v4217_v14 = vmul.f32 0.5, %v11959_v53  ;;  %v4033_v22 = vsel %vm401_vm1, %v4030_v57, %v13084_v13  ;;  %v5926_v18 = vpop.f32.mrb[55].mxu0  ;;  %v12091_v59 = vld [vmem:[%s12301_s16] ss:$0 sm:$0xff] }
 0xbdb   :  { %v4127_v50 = vsel %vm518_vm2, %v13082_v0, %v13080_v25  ;;  %v5687_v40 = vmul.f32 %v12026_v12, %v12026_v12  ;;  %v3894_v21 = vsel %vm401_vm1, %v3891_v39, %v3893_v8  ;;  %v3912_v19 = vadd.f32 %v3893_v8, %v3863_v7 }
 0xbdc   :  { %v5688_v2 = vmul.f32 %v12028_v16, %v12028_v16  ;;  %v3954_v53 = vsel %vm561_vm8, %v3951_v23, %v3953_v10  ;;  %v13086_v56 = vrot.slane %v13085_v11, 2  ;;  %v3911_v15 = vadd.f32 %v3894_v21, %v3862_v52  ;;  %v13089_v52 = vld [vmem:[#allocation28_spill] sm:$0xff] }
 0xbdd   :  { %v7138_v30 = vpop.eup %7137  ;;  %v5703_v51 = vmul.f32 %v5687_v40, %v12026_v12  ;;  %v12063_v57 = vadd.f32 %v13069_v63, %v4127_v50  ;;  %v3992_v58 = vmul.f32 %v3983_v60, %v13052_v43  ;;  %v4220_v23 = vmul.f32 %v12040_v44, %v12040_v44  ;;  %v13090_v60 = vld [vmem:[#allocation55_spill] sm:$0xff]  ;;  %v13091_v40 = vld [vmem:[#allocation78_spill] sm:$0xff] }
 0xbde   :  { %v3956_v17 = vsel %vm561_vm8, %v3953_v10, %v13086_v56  ;;  %v5704_v38 = vmul.f32 %v5688_v2, %v12028_v16  ;;  %v7140_v9 = vpop.eup %7139  ;;  %v4328_v39 = vadd.f32 1.0, %v7138_v30  ;;  %v3973_v62 = vadd.f32 %v3954_v53, %v3911_v15  ;;  %v13093_v15 = vld [vmem:[#allocation69_spill] sm:$0xff] }
 0xbdf   :  { %v3974_v42 = vadd.f32 %v3956_v17, %v3912_v19  ;;  %v4329_v61 = vadd.f32 1.0, %v7140_v9  ;;  %v5719_v47 = vmul.f32 0.044715, %v5703_v51  ;;  %v4093_v63 = vsel %vm561_vm8, %v4090_v35, %v13088_v4 }
 0xbe0   :  { %v5720_v27 = vmul.f32 0.044715, %v5704_v38  ;;  %v4344_v32 = vmul.f32 %v4328_v39, %v4216_v36  ;;  %v4221_v43 = vmul.f32 %v12063_v57, %v12063_v57  ;;  %v4001_v33 = vadd.f32 %v3992_v58, %v3973_v62  ;;  %v13094_v39 = vld [vmem:[#allocation74_spill] sm:$0xff] }
 0xbe1   :  { %v4002_v46 = vadd.f32 %v3974_v42, %v13087_v45  ;;  %v4345_v26 = vmul.f32 %v4329_v61, %v4217_v14  ;;  %v5735_v3 = vadd.f32 %v5719_v47, %v12026_v12  ;;  %v4236_v35 = vmul.f32 %v4220_v23, %v12040_v44  ;;  %v13097_v45 = vld [vmem:[#allocation39_spill] sm:$0xff] }
 0xbe2   :  { %v5736_v37 = vadd.f32 %v5720_v27, %v12028_v16  ;;  %v4237_v54 = vmul.f32 %v4221_v43, %v12063_v57  ;;  %v6077_v7 = vadd.f32 %v13089_v52, %v6735_v20  ;;  %v4050_v36 = vadd.f32 %v4033_v22, %v4001_v33  ;;  %v13095_v20 = vld [vmem:[#allocation19_spill] sm:$0xff]  ;;  %v13098_v43 = vld [vmem:[#allocation14_spill] sm:$0xff]  ;;  %v13105_v52 = vld [vmem:[#allocation56_spill] sm:$0xff] }
 0xbe3   :  { %v4051_v55 = vadd.f32 %v4002_v46, %v13084_v13  ;;  %v4354_v5 = vpack.c.bf16 %v4345_v26, %v4344_v32  ;;  %v5751_v8 = vmul.f32 0.7978846, %v5735_v3  ;;  %v4252_v34 = vmul.f32 0.044715, %v4236_v35  ;;  %v13092_v13 = vld [vmem:[#allocation15_spill] sm:$0xff]  ;;  %v13101_v33 = vld [vmem:[#allocation34_spill] sm:$0xff] }
 0xbe4   :  { %v5752_v10 = vmul.f32 0.7978846, %v5736_v37  ;;  %v4253_v0 = vmul.f32 0.044715, %v4237_v54  ;;  %v6128_v50 = vadd.f32 %v12080_v1, %v6077_v7  ;;  %v4112_v14 = vadd.f32 %v4093_v63, %v4050_v36  ;;  %v12112_v27 = vld [vmem:[%s12298_s13] ss:$0 sm:$0xff] }
 0xbe5   :  { %v4113_v25 = vadd.f32 %v4051_v55, %v13090_v60  ;;  %6773 = vmatprep.mubr.bf16.mxu1 %v4354_v5  ;;  %7141 = vtanh.f32 %v5751_v8  ;;  %v6069_v2 = vadd.f32 %v13091_v40, %v5923_v29  ;;  %v6080_v21 = vadd.f32 %v13092_v13, %v6736_v24  ;;  %v13099_v3 = vld [vmem:[#allocation79_spill] sm:$0xff]  ;;  %v13103_v35 = vld [vmem:[#allocation80_spill] sm:$0xff]  ;;  %v13107_v60 = vld [vmem:[#allocation66_spill] sm:$0xff] }
 0xbe6   :  { %7143 = vtanh.f32 %v5752_v10  ;;  %v4268_v19 = vadd.f32 %v4252_v34, %v12040_v44  ;;  %v4269_v53 = vadd.f32 %v4253_v0, %v12063_v57  ;;  %v4170_v11 = vrot.slane %v4112_v14, 7 }
 0xbe7   :  { %v4172_v22 = vrot.slane %v4113_v25, 7  ;;  %v6151_v56 = vmul.f32 %v12091_v59, %v6128_v50  ;;  %v6126_v17 = vadd.f32 %v12080_v1, %v6069_v2  ;;  %v6129_v30 = vadd.f32 %v12080_v1, %v6080_v21  ;;  %v13108_v50 = vld [vmem:[#allocation17_spill] sm:$0xff] }
 0xbe8   :  { %v4284_v51 = vmul.f32 0.7978846, %v4268_v19  ;;  %v4285_v38 = vmul.f32 0.7978846, %v4269_v53  ;;  %v6072_v9 = vadd.f32 %v13093_v15, %v5926_v18  ;;  %v3230_v42 = vmul.f32 %v13003_v6, %v13094_v39  ;;  %v13110_v39 = vld [vmem:[#allocation81_spill] sm:$0xff] }
 0xbe9   :  { %v4171_v58 = vsel %vm518_vm2, %v4168_v28, %v4170_v11  ;;  %v4173_v23 = vsel %vm518_vm2, %v4170_v11, %v4172_v22  ;;  %v6167_v61 = vadd.f32 %v6151_v56, %v13095_v20  ;;  %v6149_v47 = vmul.f32 %v12091_v59, %v6126_v17  ;;  %v13096_v28 = vld [vmem:[#allocation7_spill] sm:$0xff] }
 0xbea   :  { %v12115_v62 = vadd.f32 %v12112_v27, %v4171_v58  ;;  %v12118_v6 = vadd.f32 %v12112_v27, %v4173_v23  ;;  %7145 = vtanh.f32 %v4284_v51  ;;  %v6152_v49 = vmul.f32 %v12091_v59, %v6129_v30  ;;  %v13109_v51 = vld [vmem:[#allocation71_spill] sm:$0xff] }
 0xbeb   :  { %7147 = vtanh.f32 %v4285_v38  ;;  %6183 = vst.msk [vmem:[%s12302_s17 + $0x30] sm:$0xff] %vm201_vm0, %v6167_v61  ;;  %v6165_v29 = vadd.f32 %v6149_v47, %v13096_v28  ;;  %v6127_v32 = vadd.f32 %v12080_v1, %v6072_v9  ;;  %v3239_v46 = vmul.f32 %v3230_v42, %v13097_v45  ;;  %v13112_v58 = vld [vmem:[#allocation83_spill] sm:$0xff] }
 0xbec   :  { %v4234_v4 = vmul.f32 %v12115_v62, %v12115_v62  ;;  %v4235_v63 = vmul.f32 %v12118_v6, %v12118_v6  ;;  %v6168_v24 = vadd.f32 %v6152_v49, %v13098_v43  ;;  %v13100_v37 = vrot.slane %v13099_v3, 1 }
 0xbed   :  { %6181 = vst.msk [vmem:[%s12302_s17 + $0x20] sm:$0xff] %vm201_vm0, %v6165_v29  ;;  %v6150_v26 = vmul.f32 %v12091_v59, %v6127_v32  ;;  %v13102_v18 = vrot.slane %v13101_v33, 1  ;;  %v13104_v54 = vrot.slane %v13103_v35, 2  ;;  %v13106_v7 = vrot.slane %v13105_v52, 2 }
 0xbee   :  { %v4250_v8 = vmul.f32 %v4234_v4, %v12115_v62  ;;  %v4251_v10 = vmul.f32 %v4235_v63, %v12118_v6  ;;  %v3381_v25 = vmul.f32 %v12922_v31, %v13107_v60  ;;  %v5671_v0 = vmul.f32 0.5, %v12026_v12  ;;  %6184 = vst.msk [vmem:[%s12302_s17 + $0x38] sm:$0xff] %vm201_vm0, %v6168_v24  ;;  %v13116_v63 = vld [vmem:[#allocation82_spill] sm:$0xff] }
 0xbef   :  { %v3280_v55 = vsel %vm401_vm1, %v13102_v18, %v13100_v37  ;;  %v3344_v5 = vsel %vm561_vm8, %v13106_v7, %v13104_v54  ;;  %v7142_v34 = vpop.eup %7141  ;;  %v6166_v14 = vadd.f32 %v6150_v26, %v13108_v50  ;;  %v5672_v19 = vmul.f32 0.5, %v12028_v16  ;;  %v13120_v54 = vld [vmem:[#allocation73_spill] sm:$0xff] }
 0xbf0   :  { %v3301_v36 = vadd.f32 %v3280_v55, %v3239_v46  ;;  %v7144_v40 = vpop.eup %7143  ;;  %v5783_v2 = vadd.f32 1.0, %v7142_v34  ;;  %v4266_v13 = vmul.f32 0.044715, %v4250_v8  ;;  %v4267_v21 = vmul.f32 0.044715, %v4251_v10  ;;  %v13118_v55 = vld [vmem:[#allocation85_spill] sm:$0xff] }
 0xbf1   :  { %v5784_v53 = vadd.f32 1.0, %v7144_v40  ;;  %6182 = vst.msk [vmem:[%s12302_s17 + $0x28] sm:$0xff] %vm201_vm0, %v6166_v14  ;;  %v3390_v31 = vmul.f32 %v3381_v25, %v13097_v45  ;;  %v3532_v38 = vmul.f32 %v13014_v48, %v13109_v51  ;;  %v13111_v42 = vrot.slane %v13110_v39, 1  ;;  %v13114_v48 = vld [vmem:[#allocation84_spill] sm:$0xff] }
 0xbf2   :  { %v3367_v22 = vadd.f32 %v3344_v5, %v3301_v36  ;;  %v5799_v12 = vmul.f32 %v5783_v2, %v5671_v0  ;;  %v4282_v11 = vadd.f32 %v4266_v13, %v12115_v62  ;;  %v4283_v56 = vadd.f32 %v4267_v21, %v12118_v6  ;;  %v13122_v5 = vld [vmem:[#allocation86_spill] sm:$0xff]  ;;  %v13124_v10 = vld [vmem:[#allocation72_spill] sm:$0xff]  ;;  %v13127_v13 = vld [vmem:[#allocation75_spill] sm:$0xff] }
 0xbf3   :  { %v5800_v17 = vmul.f32 %v5784_v53, %v5672_v19  ;;  %v13113_v23 = vrot.slane %v13112_v58, 1  ;;  %v4204_v49 = vmul.f32 0.5, %v12040_v44  ;;  %v4205_v32 = vmul.f32 0.5, %v12063_v57 }
 0xbf4   :  { %v3399_v30 = vadd.f32 %v3390_v31, %v3367_v22  ;;  %v7146_v15 = vpop.eup %7145  ;;  %v4298_v16 = vmul.f32 0.7978846, %v4282_v11  ;;  %v4299_v9 = vmul.f32 0.7978846, %v4283_v56  ;;  %v13115_v4 = vrot.slane %v13114_v48, 2 }
 0xbf5   :  { %v3431_v20 = vsel %vm401_vm1, %v13113_v23, %v13111_v42  ;;  %v7148_v61 = vpop.eup %7147  ;;  %v5808_v47 = vpack.c.bf16 %v5800_v17, %v5799_v12  ;;  %v4316_v28 = vadd.f32 1.0, %v7146_v15  ;;  %v13117_v43 = vrot.slane %v13116_v63, 2 }
 0xbf6   :  { %v3452_v29 = vadd.f32 %v3431_v20, %v3399_v30  ;;  %7149 = vtanh.f32 %v4298_v16  ;;  %v4317_v46 = vadd.f32 1.0, %v7148_v61  ;;  %v3541_v3 = vmul.f32 %v3532_v38, %v13097_v45 }
 0xbf7   :  { %v3495_v24 = vsel %vm561_vm8, %v13117_v43, %v13115_v4  ;;  %6742 = vmatmul.mubr.bf16.gmra.mrb[60].mxu0 %v5808_v47  ;;  %7151 = vtanh.f32 %v4299_v9  ;;  %v4332_v37 = vmul.f32 %v4316_v28, %v4204_v49  ;;  %v13119_v35 = vrot.slane %v13118_v55, 1 }
 0xbf8   :  { %v3518_v26 = vadd.f32 %v3495_v24, %v3452_v29  ;;  %v4333_v33 = vmul.f32 %v4317_v46, %v4205_v32  ;;  %v13121_v57 = vrot.slane %v13120_v54, 1  ;;  %v13123_v8 = vrot.slane %v13122_v5, 2 }
 0xbf9   :  { %v13125_v36 = vrot.slane %v13124_v10, 2  ;;  %v4218_v50 = vmul.f32 0.5, %v12115_v62  ;;  %v13126_v40 = vrot.slane %v13079_v41, 7  ;;  %v13128_v21 = vrot.slane %v13127_v13, 7 }
 0xbfa   :  { %v3550_v44 = vadd.f32 %v3541_v3, %v3518_v26  ;;  %v4348_v18 = vpack.c.bf16 %v4333_v33, %v4332_v37  ;;  %v3582_v52 = vsel %vm401_vm1, %v13121_v57, %v13119_v35  ;;  %v4219_v19 = vmul.f32 0.5, %v12118_v6 }
 0xbfb   :  { %v3646_v60 = vsel %vm561_vm8, %v13125_v36, %v13123_v8  ;;  %v13130_v8 = vld [vmem:[#allocation58_spill] sm:$0xff] }
 0xbfc   :  { %v3603_v7 = vadd.f32 %v3582_v52, %v3550_v44  ;;  %6761 = vmatprep.mubr.bf16.mxu0 %v4348_v18  ;;  %v13129_v52 = vld [vmem:[#allocation60_spill] sm:$0xff] }
 0xbfe   :  { %v3669_v25 = vadd.f32 %v3646_v60, %v3603_v7  ;;  %v13131_v60 = vld [vmem:[#allocation57_spill] sm:$0xff] }
 0xc00   :  { %v4128_v45 = vrot.slane %v3669_v25, 7  ;;  %v7150_v34 = vpop.eup %7149 }
 0xc01   :  { %v7152_v0 = vpop.eup %7151  ;;  %v4330_v14 = vadd.f32 1.0, %v7150_v34 }
 0xc02   :  { %v4129_v2 = vsel %vm518_vm2, %v13126_v40, %v4128_v45  ;;  %v4131_v22 = vsel %vm518_vm2, %v4128_v45, %v13128_v21  ;;  %v4331_v53 = vadd.f32 1.0, %v7152_v0  ;;  %v13132_v45 = vld [vmem:[#allocation59_spill] sm:$0xff] }
 0xc03   :  { %v4190_v31 = vadd.f32 %v12112_v27, %v4129_v2  ;;  %v4191_v12 = vadd.f32 %v12112_v27, %v4131_v22  ;;  %v4346_v11 = vmul.f32 %v4330_v14, %v4218_v50 }
 0xc04   :  { %v4347_v56 = vmul.f32 %v4331_v53, %v4219_v19 }
 0xc05   :  { %v4222_v17 = vmul.f32 %v4190_v31, %v4190_v31  ;;  %v4223_v62 = vmul.f32 %v4191_v12, %v4191_v12  ;;  %v4206_v23 = vmul.f32 0.5, %v4190_v31  ;;  %v4207_v20 = vmul.f32 0.5, %v4191_v12 }
 0xc06   :  { %v4355_v30 = vpack.c.bf16 %v4347_v56, %v4346_v11 }
 0xc07   :  { %v4238_v51 = vmul.f32 %v4222_v17, %v4190_v31  ;;  %v4239_v41 = vmul.f32 %v4223_v62, %v4191_v12 }
 0xc08   :  { %6774 = vmatmul.mubr.bf16.gmra.mrb[56].mxu1 %v4355_v30 }
 0xc09   :  { %v4254_v38 = vmul.f32 0.044715, %v4238_v51  ;;  %v4255_v15 = vmul.f32 0.044715, %v4239_v41  ;;  %v13133_v41 = vld [vmem:[#allocation62_spill] sm:$0xff] }
 0xc0b   :  { %v4270_v16 = vadd.f32 %v4254_v38, %v4190_v31  ;;  %v4271_v9 = vadd.f32 %v4255_v15, %v4191_v12 }
 0xc0d   :  { %v4286_v39 = vmul.f32 0.7978846, %v4270_v16  ;;  %v4287_v42 = vmul.f32 0.7978846, %v4271_v9  ;;  %v13134_v16 = vld [vmem:[#allocation63_spill] sm:$0xff] }
 0xc0f   :  { %7153 = vtanh.f32 %v4286_v39 }
 0xc10   :  { %7155 = vtanh.f32 %v4287_v42  ;;  %v13135_v42 = vld [vmem:[#allocation64_spill] sm:$0xff] }
 0xc19   :  { %v7154_v6 = vpop.eup %7153 }
 0xc1a   :  { %v7156_v58 = vpop.eup %7155  ;;  %v4318_v27 = vadd.f32 1.0, %v7154_v6 }
 0xc1b   :  { %v4319_v61 = vadd.f32 1.0, %v7156_v58  ;;  %v13136_v58 = vld [vmem:[#allocation65_spill] sm:$0xff] }
 0xc1c   :  { %v4334_v47 = vmul.f32 %v4318_v27, %v4206_v23 }
 0xc1d   :  { %v4335_v49 = vmul.f32 %v4319_v61, %v4207_v20 }
 0xc1f   :  { %v4349_v28 = vpack.c.bf16 %v4335_v49, %v4334_v47 }
 0xc21   :  { %6762 = vmatmul.mubr.bf16.vlgmr.msra.gmra.mrb[48].mxu0 %v4349_v28 }
 0xc6d   :  { %v6739_v29 = vpop.f32.mrb[56].mxu0 }
 0xc6e   :  { %v5939_v32 = vpop.f32.mrb[57].mxu0 }
 0xc6f   :  { %v6740_v46 = vpop.f32.mrb[58].mxu0 }
 0xc70   :  { %v5942_v48 = vpop.f32.mrb[59].mxu0 }
 0xc86   :  { %v6771_v4 = vpop.f32.mrb[52].mxu1 }
 0xc87   :  { %v6093_v63 = vadd.f32 %v6771_v4, %v6739_v29  ;;  %v6084_v43 = vpop.f32.mrb[53].mxu1  ;;  %v13137_v4 = vld [vmem:[#allocation13_spill] sm:$0xff] }
 0xc88   :  { %v6085_v24 = vadd.f32 %v6084_v43, %v5939_v32  ;;  %v6772_v26 = vpop.f32.mrb[54].mxu1 }
 0xc89   :  { %v6132_v3 = vadd.f32 %v12080_v1, %v6093_v63  ;;  %v6096_v37 = vadd.f32 %v6772_v26, %v6740_v46  ;;  %v6087_v33 = vpop.f32.mrb[55].mxu1 }
 0xc8a   :  { %v6130_v44 = vadd.f32 %v12080_v1, %v6085_v24  ;;  %v6088_v18 = vadd.f32 %v6087_v33, %v5942_v48  ;;  %v13138_v24 = vld [vmem:[#allocation11_spill] sm:$0xff] }
 0xc8b   :  { %v6155_v55 = vmul.f32 %v12091_v59, %v6132_v3  ;;  %v6133_v35 = vadd.f32 %v12080_v1, %v6096_v37  ;;  %v13139_v37 = vld [vmem:[#allocation10_spill] sm:$0xff] }
 0xc8c   :  { %v6153_v54 = vmul.f32 %v12091_v59, %v6130_v44  ;;  %v6131_v57 = vadd.f32 %v12080_v1, %v6088_v18 }
 0xc8d   :  { %v6171_v7 = vadd.f32 %v6155_v55, %v13129_v52  ;;  %v6156_v5 = vmul.f32 %v12091_v59, %v6133_v35 }
 0xc8e   :  { %v6169_v10 = vadd.f32 %v6153_v54, %v13130_v8  ;;  %v6154_v36 = vmul.f32 %v12091_v59, %v6131_v57 }
 0xc8f   :  { %6187 = vst.msk [vmem:[%s12302_s17 + $0x50] sm:$0xff] %vm201_vm0, %v6171_v7  ;;  %v6172_v25 = vadd.f32 %v6156_v5, %v13131_v60 }
 0xc90   :  { %6185 = vst.msk [vmem:[%s12302_s17 + $0x40] sm:$0xff] %vm201_vm0, %v6169_v10  ;;  %v6170_v34 = vadd.f32 %v6154_v36, %v13132_v45 }
 0xc91   :  { %6188 = vst.msk [vmem:[%s12302_s17 + $0x58] sm:$0xff] %vm201_vm0, %v6172_v25 }
 0xc92   :  { %6186 = vst.msk [vmem:[%s12302_s17 + $0x48] sm:$0xff] %vm201_vm0, %v6170_v34 }
 0xcca   :  { %v6743_v0 = vpop.f32.mrb[60].mxu0 }
 0xccb   :  { %v5955_v50 = vpop.f32.mrb[61].mxu0 }
 0xccc   :  { %v6744_v14 = vpop.f32.mrb[62].mxu0 }
 0xccd   :  { %v5958_v40 = vpop.f32.mrb[63].mxu0 }
 0xcdb   :  { %v6775_v2 = vpop.f32.mrb[56].mxu1 }
 0xcdc   :  { %v6109_v13 = vadd.f32 %v6775_v2, %v6743_v0  ;;  %v6100_v21 = vpop.f32.mrb[57].mxu1 }
 0xcdd   :  { %v6101_v22 = vadd.f32 %v6100_v21, %v5955_v50  ;;  %v6776_v19 = vpop.f32.mrb[58].mxu1 }
 0xcde   :  { %v6136_v53 = vadd.f32 %v12080_v1, %v6109_v13  ;;  %v6112_v31 = vadd.f32 %v6776_v19, %v6744_v14  ;;  %v6103_v12 = vpop.f32.mrb[59].mxu1 }
 0xcdf   :  { %v6134_v11 = vadd.f32 %v12080_v1, %v6101_v22  ;;  %v6104_v56 = vadd.f32 %v6103_v12, %v5958_v40 }
 0xce0   :  { %v6159_v17 = vmul.f32 %v12091_v59, %v6136_v53  ;;  %v6137_v62 = vadd.f32 %v12080_v1, %v6112_v31 }
 0xce1   :  { %v6157_v30 = vmul.f32 %v12091_v59, %v6134_v11  ;;  %v6135_v51 = vadd.f32 %v12080_v1, %v6104_v56 }
 0xce2   :  { %v6175_v38 = vadd.f32 %v6159_v17, %v13133_v41  ;;  %v6160_v15 = vmul.f32 %v12091_v59, %v6137_v62 }
 0xce3   :  { %v6173_v9 = vadd.f32 %v6157_v30, %v13134_v16  ;;  %v6158_v39 = vmul.f32 %v12091_v59, %v6135_v51 }
 0xce4   :  { %6191 = vst.msk [vmem:[%s12302_s17 + $0x70] sm:$0xff] %vm201_vm0, %v6175_v38  ;;  %v6176_v6 = vadd.f32 %v6160_v15, %v13135_v42 }
 0xce5   :  { %6189 = vst.msk [vmem:[%s12302_s17 + $0x60] sm:$0xff] %vm201_vm0, %v6173_v9  ;;  %v6174_v23 = vadd.f32 %v6158_v39, %v13136_v58 }
 0xce6   :  { %6192 = vst.msk [vmem:[%s12302_s17 + $0x78] sm:$0xff] %vm201_vm0, %v6176_v6 }
 0xce7   :  { %6190 = vst.msk [vmem:[%s12302_s17 + $0x68] sm:$0xff] %vm201_vm0, %v6174_v23 }
 0xcf4   :  { %v6763_v27 = vpop.f32.mrb[48].mxu0 }
 0xcf5   :  { %v6124_v20 = vadd.f32 %v6763_v27, %v12080_v1  ;;  %v6052_v61 = vpop.f32.mrb[49].mxu0 }
 0xcf6   :  { %v6122_v47 = vadd.f32 %v12080_v1, %v6052_v61  ;;  %v6764_v49 = vpop.f32.mrb[50].mxu0 }
 0xcf7   :  { %v6147_v28 = vmul.f32 %v12091_v59, %v6124_v20  ;;  %v6125_v29 = vadd.f32 %v6764_v49, %v12080_v1  ;;  %v6055_v32 = vpop.f32.mrb[51].mxu0 }
 0xcf8   :  { %v6145_v46 = vmul.f32 %v12091_v59, %v6122_v47  ;;  %v6123_v48 = vadd.f32 %v12080_v1, %v6055_v32  ;;  %v13140_v1 = vld [vmem:[#allocation12_spill] sm:$0xff] }
 0xcf9   :  { %v6163_v63 = vadd.f32 %v6147_v28, %v13137_v4  ;;  %v6148_v43 = vmul.f32 %v12091_v59, %v6125_v29 }
 0xcfa   :  { %v6161_v26 = vadd.f32 %v6145_v46, %v13138_v24  ;;  %v6146_v3 = vmul.f32 %v12091_v59, %v6123_v48 }
 0xcfb   :  { %6179 = vst.msk [vmem:[%s12302_s17 + $0x10] sm:$0xff] %vm201_vm0, %v6163_v63  ;;  %v6164_v33 = vadd.f32 %v6148_v43, %v13139_v37 }
 0xcfc   :  { %6177 = vst.msk [vmem:[%s12302_s17] sm:$0xff] %vm201_vm0, %v6161_v26  ;;  %v6162_v44 = vadd.f32 %v6146_v3, %v13140_v1 }
 0xcfd   :  { %6180 = vst.msk [vmem:[%s12302_s17 + $0x18] sm:$0xff] %vm201_vm0, %v6164_v33 }
 0xcfe   :  { %6178 = vst.msk [vmem:[%s12302_s17 + $0x8] sm:$0xff] %vm201_vm0, %v6162_v44 }
 0xcff   :  { %6197 = vsyncpa [#allocation5], 1 }

</bundles_post_ra>
